<compile_context>
chip_gen: v7x
topology: tpu7x:2x2x1
jax: 0.10.0
libtpu: 0.0.40
codegen_flags: <defaults>
</compile_context>

<pallas_src>
import jax
import jax.numpy as jnp
import numpy as np
from jax.experimental import pallas as pl
from jax.experimental.pallas import tpu as pltpu

EMBED_DIM = 15
EMBED_PAD = 16                    # pad embed dim 15 -> 16 (zero column)
CHANNELS = 25
KERNEL_SIZES = (1, 2, 3, 4, 5, 6, 7)
KMAX = max(KERNEL_SIZES)
NTAPS = 8                         # padded tap count: 7 real taps + 1 all-zero tap
CHAR_VOCAB = 128                  # == lane width, so one-hot matmul is natural
BERT_HID = 768
HIGHWAY_WIDTH = sum(KERNEL_SIZES) * CHANNELS     # 700
HPAD = 768                        # lane-dense padded feature/highway width (6*128)


def _round_up(x, m):
    return ((x + m - 1) // m) * m


# ---------------------------------------------------------------------------
# The single fused kernel
# ---------------------------------------------------------------------------
def _charlm_kernel(ids_ref, embed_ref, wconv_ref, bias_ref, mask_ref,
                   wt1_ref, wh1_ref, wt2_ref, wh2_ref, wfc_ref, o_ref):
    f32, bf16 = jnp.float32, jnp.bfloat16
    TM, Lp = ids_ref.shape                  # Lp >= char_len + NTAPS - 1 (zero-id padded)
    L, HP = mask_ref.shape                  # HP == HPAD
    EP = embed_ref.shape[1]                 # 16

    biases = bias_ref[...]                  # (8, HP) f32: rows conv,t1,h1,t2,h2,fc

    # (1) Embedding lookup fused as a one-hot matmul on the MXU (K = 128 = vocab).
    #     One-hot built directly in bf16; result cast to bf16 once (exact: embed
    #     weights are already bf16) BEFORE windowing.
    ids = ids_ref[...]                                              # (TM, Lp) int32
    iota = jax.lax.broadcasted_iota(jnp.int32, (TM, Lp, CHAR_VOCAB), 2)
    onehot = (ids[:, :, None] == iota).astype(bf16)
    emb = jax.lax.dot_general(onehot, embed_ref[...],
                              (((2,), (0,)), ((), ())),
                              preferred_element_type=f32).astype(bf16)  # (TM, Lp, EP)

    # (2)+(3)+(4) chunked over time: 8-tap in-VMEM im2col (last dim = 8*EP = 128)
    #     -> one stacked conv matmul (K = 128) per chunk -> masked running max.
    wconv = wconv_ref[...]                  # (NTAPS*EP = 128, HP) bf16
    mask = mask_ref[...]                    # (L, HP) f32 additive (-1e30 = invalid)
    acc = jnp.full((TM, HP), -jnp.inf, f32)
    tc = 8                                  # time chunk (keeps temps O(TM*tc*HP))
    for t0 in range(0, L, tc):
        t1 = min(t0 + tc, L)
        win = jnp.concatenate([emb[:, t0 + j:t1 + j, :] for j in range(NTAPS)],
                              axis=-1)                              # (TM, t1-t0, 128)
        y = jax.lax.dot_general(win, wconv, (((2,), (0,)), ((), ())),
                                preferred_element_type=f32)         # (TM, t1-t0, HP)
        acc = jnp.maximum(acc, jnp.max(y + mask[t0:t1][None, :, :], axis=1))

    # bias + tanh AFTER the max (equivalent; padded lanes stay exactly 0).
    feats = jnp.tanh(acc + biases[0:1, :])

    # (5) highway -> highway -> fc, bf16 operands / f32 accumulation & math.
    def affine(a, w_ref, b):
        return jnp.dot(a.astype(bf16), w_ref[...],
                       preferred_element_type=f32) + b

    def highway(x, wt_ref, bt, wh_ref, bh):
        t = jax.nn.sigmoid(affine(x, wt_ref, bt))
        h = jnp.maximum(affine(x, wh_ref, bh), 0.0)
        return t * h + (1.0 - t) * x

    x = highway(feats, wt1_ref, biases[1:2, :], wh1_ref, biases[2:3, :])
    x = highway(x, wt2_ref, biases[3:4, :], wh2_ref, biases[4:5, :])
    o_ref[...] = affine(x, wfc_ref, biases[5:6, :]).astype(o_ref.dtype)


# ---------------------------------------------------------------------------
# Parameter init (original layout) and packing into kernel-ready operands
# ---------------------------------------------------------------------------
def init_params(key):
    ks = iter(jax.random.split(key, 32))
    p = {}
    p["embed"] = jax.random.normal(next(ks), (CHAR_VOCAB, EMBED_DIM),
                                   jnp.float32) * 0.1
    p["conv_w"] = []   # W_k as (k*EMBED_DIM, CHANNELS*k); row j*E+e == (in e, tap j)
    p["conv_b"] = []   # (1, CHANNELS*k)
    for k in KERNEL_SIZES:
        p["conv_w"].append(jax.random.normal(
            next(ks), (k * EMBED_DIM, CHANNELS * k), jnp.float32) * 0.05)
        p["conv_b"].append(jax.random.normal(
            next(ks), (1, CHANNELS * k), jnp.float32) * 0.05)
    H = HIGHWAY_WIDTH
    for name, shape in [("wt1", (H, H)), ("bt1", (1, H)),
                        ("wh1", (H, H)), ("bh1", (1, H)),
                        ("wt2", (H, H)), ("bt2", (1, H)),
                        ("wh2", (H, H)), ("bh2", (1, H)),
                        ("wfc", (H, BERT_HID)), ("bfc", (1, BERT_HID))]:
        p[name] = jax.random.normal(next(ks), shape, jnp.float32) * 0.05
    return p


def pack_params(p):
    """Pad to lane-dense shapes, stack conv weights (8 taps), pack all biases
    into one (8, HPAD) tile, cast matmul operands to bf16."""
    f32, bf16 = jnp.float32, jnp.bfloat16
    H = HIGHWAY_WIDTH

    embed = jnp.zeros((CHAR_VOCAB, EMBED_PAD), f32).at[:, :EMBED_DIM].set(p["embed"])

    # wconv[j*EP+e, col-of-(k,c)] = W_k[in e, tap j] for j < k; tap 7 rows stay 0.
    wconv = jnp.zeros((NTAPS * EMBED_PAD, HPAD), f32)
    bias_pack = jnp.zeros((8, HPAD), f32)
    off = 0
    for i, k in enumerate(KERNEL_SIZES):
        w = p["conv_w"][i]                                   # (k*E, 25k)
        for j in range(k):
            wconv = wconv.at[j * EMBED_PAD:j * EMBED_PAD + EMBED_DIM,
                             off:off + CHANNELS * k].set(
                                 w[j * EMBED_DIM:(j + 1) * EMBED_DIM, :])
        bias_pack = bias_pack.at[0, off:off + CHANNELS * k].set(p["conv_b"][i][0])
        off += CHANNELS * k

    bias_pack = bias_pack.at[1, :H].set(p["bt1"][0])
    bias_pack = bias_pack.at[2, :H].set(p["bh1"][0])
    bias_pack = bias_pack.at[3, :H].set(p["bt2"][0])
    bias_pack = bias_pack.at[4, :H].set(p["bh2"][0])
    bias_pack = bias_pack.at[5, :BERT_HID].set(p["bfc"][0])

    def pad_w(w, rows, cols):
        return jnp.zeros((rows, cols), f32).at[:w.shape[0], :w.shape[1]].set(w).astype(bf16)

    return dict(
        embed=embed.astype(bf16),
        wconv=wconv.astype(bf16),
        bias=bias_pack,
        wt1=pad_w(p["wt1"], HPAD, HPAD),
        wh1=pad_w(p["wh1"], HPAD, HPAD),
        wt2=pad_w(p["wt2"], HPAD, HPAD),
        wh2=pad_w(p["wh2"], HPAD, HPAD),
        wfc=pad_w(p["wfc"], HPAD, BERT_HID),
    )


def _time_mask(L):
    """(L, HPAD) additive mask: 0 where time t is valid for a column's kernel size."""
    k_of_col = np.ones((HPAD,), np.int32)      # padded lanes behave like k=1 -> stay 0
    off = 0
    for k in KERNEL_SIZES:
        k_of_col[off:off + CHANNELS * k] = k
        off += CHANNELS * k
    t = np.arange(L)[:, None]
    valid = t <= (L - k_of_col)[None, :]
    return jnp.asarray(np.where(valid, 0.0, -1e30), dtype=jnp.float32)


# ---------------------------------------------------------------------------
# Per-generation config + wrapper: one batch-tiled pallas_call for the forward
# ---------------------------------------------------------------------------
def _tpu_config(block_m, vmem_limit_bytes):
    """Derive defaults per TPU generation (v5e/v6e: 128 MiB VMEM; v7x: 64 MiB/TC)."""
    cap = None
    try:
        cap = int(getattr(pltpu.get_tpu_info(), "vmem_capacity_bytes", 0)) or None
    except Exception:
        cap = None
    if cap is None:
        cap = 64 * 1024 * 1024                       # conservative (v7x-class)
    if block_m is None:
        block_m = 256                                # fills the 256-row MXU (v6e/v7x)
    if vmem_limit_bytes is None:
        if cap <= 96 * 1024 * 1024:                  # v7x-class: 64 MiB per TensorCore
            vmem_limit_bytes = min(int(0.80 * cap), 52 * 1024 * 1024)
        else:                                        # v5e / v6e: 128 MiB
            vmem_limit_bytes = min(int(0.78 * cap), 100 * 1024 * 1024)
        vmem_limit_bytes = max(vmem_limit_bytes, 32 * 1024 * 1024)
    return block_m, vmem_limit_bytes


def _resident_spec(shape):
    """Grid-constant operand: full block, constant index map, single pipeline buffer
    (the second buffer would never be used but would still consume VMEM)."""
    try:
        return pl.BlockSpec(shape, lambda i: (0, 0), pipeline_mode=pl.Buffered(1))
    except (TypeError, ValueError, AttributeError):
        return pl.BlockSpec(shape, lambda i: (0, 0))


def charlm_forward(packed, x_ids, *, block_m=None, vmem_limit_bytes=None):
    B, L = x_ids.shape
    assert L >= KMAX, "char_len must be >= max kernel size (7)"
    block_m, vmem_limit_bytes = _tpu_config(block_m, vmem_limit_bytes)

    # Time padding so all 8 taps stay in range; rounded to a sublane multiple.
    Lp = _round_up(L + NTAPS - 1, 8)

    # Balanced batch tiles: whenever B > block_m the grid gets >= 2 (even-sized)
    # steps so the "parallel" batch axis splits across both v7x TensorCores.
    rows = _round_up(B, 8)
    n_tiles = pl.cdiv(rows, _round_up(min(block_m, rows), 8))
    TM = _round_up(pl.cdiv(rows, n_tiles), 8)
    Bp = TM * n_tiles

    # Only remaining host-side glue: pad ids (pad id 0 is harmless — padded taps
    # multiply zero weight rows and invalid positions are masked before the max).
    ids = jnp.zeros((Bp, Lp), jnp.int32).at[:B, :L].set(x_ids.astype(jnp.int32))
    mask = _time_mask(L)

    w_args = (packed["embed"], packed["wconv"], packed["bias"], mask,
              packed["wt1"], packed["wh1"], packed["wt2"], packed["wh2"],
              packed["wfc"])

    out = pl.pallas_call(
        _charlm_kernel,
        out_shape=jax.ShapeDtypeStruct((Bp, BERT_HID), jnp.float32),
        grid=(Bp // TM,),
        in_specs=[pl.BlockSpec((TM, Lp), lambda i: (i, 0))]
                 + [_resident_spec(a.shape) for a in w_args],
        out_specs=pl.BlockSpec((TM, BERT_HID), lambda i: (i, 0)),
        compiler_params=pltpu.CompilerParams(
            dimension_semantics=("parallel",),       # megacore: shard batch tiles
            vmem_limit_bytes=vmem_limit_bytes,
        ),
    )(ids, *w_args)
    return out[:B]


# ---------------------------------------------------------------------------
# Pure-JAX reference (PyTorch structure; same bf16-operand / f32-accum precision)
# ---------------------------------------------------------------------------
def charlm_reference(params, x_ids):
    f32, bf16 = jnp.float32, jnp.bfloat16
    q = lambda a: a.astype(bf16).astype(f32)           # bf16 operand rounding

    emb = q(params["embed"])[x_ids]                     # (B, L, 15)
    L = x_ids.shape[1]
    feats = []
    for i, k in enumerate(KERNEL_SIZES):
        T = L - k + 1
        xw = jnp.concatenate([emb[:, j:j + T, :] for j in range(k)], axis=-1)
        y = jnp.tanh(jnp.einsum("btf,fc->btc", q(xw), q(params["conv_w"][i]),
                                preferred_element_type=f32)
                     + params["conv_b"][i][None, :, :])
        feats.append(jnp.max(y, axis=1))                # Tanh -> MaxPool1d(T)
    x = jnp.concatenate(feats, axis=1)                  # (B, 700)

    def highway(x, wt, bt, wh, bh):
        t = jax.nn.sigmoid(q(x) @ q(wt) + bt)
        h = jnp.maximum(q(x) @ q(wh) + bh, 0.0)
        return t * h + (1.0 - t) * x

    x = highway(x, params["wt1"], params["bt1"], params["wh1"], params["bh1"])
    x = highway(x, params["wt2"], params["bt2"], params["wh2"], params["bh2"])
    return q(x) @ q(params["wfc"]) + params["bfc"]


if __name__ == "__main__":
    key = jax.random.PRNGKey(0)
    pkey, xkey = jax.random.split(key)
    params = init_params(pkey)
    packed = pack_params(params)

    batch, char_len = 4, 16
    x_ids = jax.random.randint(xkey, (batch, char_len), 0, CHAR_VOCAB,
                               dtype=jnp.int32)

    fwd = jax.jit(charlm_forward)
    out = jax.block_until_ready(fwd(packed, x_ids))
    ref = jax.block_until_ready(charlm_reference(params, x_ids))

    assert out.shape == (batch, BERT_HID), out.shape
    max_err = float(jnp.max(jnp.abs(out - ref)))
    assert jnp.allclose(out, ref, atol=2e-3, rtol=2e-3), max_err
    print("KERNEL_OK")
</pallas_src>

<mosaic_0001>
module attributes {stable_mosaic.version = 11 : i64} {
  func.func @_charlm_kernel(%arg0: i32, %arg1: memref<8x24xi32, #tpu.memory_space<vmem>>, %arg2: memref<128x16xbf16, #tpu.memory_space<vmem>>, %arg3: memref<128x768xbf16, #tpu.memory_space<vmem>>, %arg4: memref<8x768xf32, #tpu.memory_space<vmem>>, %arg5: memref<16x768xf32, #tpu.memory_space<vmem>>, %arg6: memref<768x768xbf16, #tpu.memory_space<vmem>>, %arg7: memref<768x768xbf16, #tpu.memory_space<vmem>>, %arg8: memref<768x768xbf16, #tpu.memory_space<vmem>>, %arg9: memref<768x768xbf16, #tpu.memory_space<vmem>>, %arg10: memref<768x768xbf16, #tpu.memory_space<vmem>>, %arg11: memref<8x768xf32, #tpu.memory_space<vmem>>) attributes {dimension_semantics = [#tpu.dimension_semantics<parallel>], iteration_bounds = array<i64: 1>, scalar_prefetch = 0 : i64, scratch_operands = 0 : i64, tpu.core_type = #tpu.core_type<tc>, window_params = [{transform_indices = @transform_0, window_bounds = array<i64: 8, 24>}, {pipeline_mode = #tpu.pipeline_mode<synchronous>, transform_indices = @transform_1, window_bounds = array<i64: 128, 16>}, {pipeline_mode = #tpu.pipeline_mode<synchronous>, transform_indices = @transform_2, window_bounds = array<i64: 128, 768>}, {pipeline_mode = #tpu.pipeline_mode<synchronous>, transform_indices = @transform_3, window_bounds = array<i64: 8, 768>}, {pipeline_mode = #tpu.pipeline_mode<synchronous>, transform_indices = @transform_4, window_bounds = array<i64: 16, 768>}, {pipeline_mode = #tpu.pipeline_mode<synchronous>, transform_indices = @transform_5, window_bounds = array<i64: 768, 768>}, {pipeline_mode = #tpu.pipeline_mode<synchronous>, transform_indices = @transform_6, window_bounds = array<i64: 768, 768>}, {pipeline_mode = #tpu.pipeline_mode<synchronous>, transform_indices = @transform_7, window_bounds = array<i64: 768, 768>}, {pipeline_mode = #tpu.pipeline_mode<synchronous>, transform_indices = @transform_8, window_bounds = array<i64: 768, 768>}, {pipeline_mode = #tpu.pipeline_mode<synchronous>, transform_indices = @transform_9, window_bounds = array<i64: 768, 768>}, {transform_indices = @transform_10, window_bounds = array<i64: 8, 768>}]} {
    %c0 = arith.constant 0 : index
    %c0_0 = arith.constant 0 : index
    %0 = vector.load %arg4[%c0, %c0_0] : memref<8x768xf32, #tpu.memory_space<vmem>>, vector<8x768xf32>
    %c0_1 = arith.constant 0 : index
    %c0_2 = arith.constant 0 : index
    %1 = vector.load %arg1[%c0_1, %c0_2] : memref<8x24xi32, #tpu.memory_space<vmem>>, vector<8x24xi32>
    %2 = tpu.iota {dimensions = array<i32: 2>} : vector<8x24x128xi32>
    %3 = vector.shape_cast %1 : vector<8x24xi32> to vector<8x24x1xi32>
    %4 = vector.broadcast %3 : vector<8x24x1xi32> to vector<8x24x128xi32>
    %5 = arith.cmpi eq, %4, %2 : vector<8x24x128xi32>
    %6 = arith.extui %5 : vector<8x24x128xi1> to vector<8x24x128xi32>
    %7 = arith.sitofp %6 : vector<8x24x128xi32> to vector<8x24x128xf32>
    %8 = arith.truncf %7 : vector<8x24x128xf32> to vector<8x24x128xbf16>
    %c0_3 = arith.constant 0 : index
    %c0_4 = arith.constant 0 : index
    %9 = vector.load %arg2[%c0_3, %c0_4] : memref<128x16xbf16, #tpu.memory_space<vmem>>, vector<128x16xbf16>
    %cst = arith.constant dense<0.000000e+00> : vector<8x24x16xf32>
    %10 = tpu.matmul %8, %9, %cst {dimension_numbers = #tpu.dot_dimension_numbers<[2], [0], [0, 1], [1], [0, 0, 0, 1, 1, 1], [], []>} : vector<8x24x128xbf16>, vector<128x16xbf16>, vector<8x24x16xf32> -> vector<8x24x16xf32>
    %11 = arith.truncf %10 : vector<8x24x16xf32> to vector<8x24x16xbf16>
    %c0_5 = arith.constant 0 : index
    %c0_6 = arith.constant 0 : index
    %12 = vector.load %arg3[%c0_5, %c0_6] : memref<128x768xbf16, #tpu.memory_space<vmem>>, vector<128x768xbf16>
    %c0_7 = arith.constant 0 : index
    %c0_8 = arith.constant 0 : index
    %13 = vector.load %arg5[%c0_7, %c0_8] : memref<16x768xf32, #tpu.memory_space<vmem>>, vector<16x768xf32>
    %cst_9 = arith.constant 0xFF800000 : f32
    %14 = vector.broadcast %cst_9 : f32 to vector<8x768xf32>
    %15 = vector.extract_strided_slice %11 {offsets = [0, 0, 0], sizes = [8, 8, 16], strides = [1, 1, 1]} : vector<8x24x16xbf16> to vector<8x8x16xbf16>
    %16 = vector.extract_strided_slice %11 {offsets = [0, 1, 0], sizes = [8, 8, 16], strides = [1, 1, 1]} : vector<8x24x16xbf16> to vector<8x8x16xbf16>
    %17 = vector.extract_strided_slice %11 {offsets = [0, 2, 0], sizes = [8, 8, 16], strides = [1, 1, 1]} : vector<8x24x16xbf16> to vector<8x8x16xbf16>
    %18 = vector.extract_strided_slice %11 {offsets = [0, 3, 0], sizes = [8, 8, 16], strides = [1, 1, 1]} : vector<8x24x16xbf16> to vector<8x8x16xbf16>
    %19 = vector.extract_strided_slice %11 {offsets = [0, 4, 0], sizes = [8, 8, 16], strides = [1, 1, 1]} : vector<8x24x16xbf16> to vector<8x8x16xbf16>
    %20 = vector.extract_strided_slice %11 {offsets = [0, 5, 0], sizes = [8, 8, 16], strides = [1, 1, 1]} : vector<8x24x16xbf16> to vector<8x8x16xbf16>
    %21 = vector.extract_strided_slice %11 {offsets = [0, 6, 0], sizes = [8, 8, 16], strides = [1, 1, 1]} : vector<8x24x16xbf16> to vector<8x8x16xbf16>
    %22 = vector.extract_strided_slice %11 {offsets = [0, 7, 0], sizes = [8, 8, 16], strides = [1, 1, 1]} : vector<8x24x16xbf16> to vector<8x8x16xbf16>
    %23 = tpu.concatenate %15, %16, %17, %18, %19, %20, %21, %22 in 2 : vector<8x8x16xbf16>, vector<8x8x16xbf16>, vector<8x8x16xbf16>, vector<8x8x16xbf16>, vector<8x8x16xbf16>, vector<8x8x16xbf16>, vector<8x8x16xbf16>, vector<8x8x16xbf16> -> vector<8x8x128xbf16>
    %cst_10 = arith.constant dense<0.000000e+00> : vector<8x8x768xf32>
    %24 = tpu.matmul %23, %12, %cst_10 {dimension_numbers = #tpu.dot_dimension_numbers<[2], [0], [0, 1], [1], [0, 0, 0, 1, 1, 1], [], []>} : vector<8x8x128xbf16>, vector<128x768xbf16>, vector<8x8x768xf32> -> vector<8x8x768xf32>
    %25 = vector.extract_strided_slice %13 {offsets = [0, 0], sizes = [8, 768], strides = [1, 1]} : vector<16x768xf32> to vector<8x768xf32>
    %26 = vector.shape_cast %25 : vector<8x768xf32> to vector<1x8x768xf32>
    %27 = vector.broadcast %26 : vector<1x8x768xf32> to vector<8x8x768xf32>
    %28 = arith.addf %24, %27 : vector<8x8x768xf32>
    %cst_11 = arith.constant dense<0xFF800000> : vector<8x768xf32>
    %29 = vector.multi_reduction <maximumf>, %28, %cst_11 [1] : vector<8x8x768xf32> to vector<8x768xf32>
    %30 = arith.maximumf %14, %29 : vector<8x768xf32>
    %31 = vector.extract_strided_slice %11 {offsets = [0, 8, 0], sizes = [8, 8, 16], strides = [1, 1, 1]} : vector<8x24x16xbf16> to vector<8x8x16xbf16>
    %32 = vector.extract_strided_slice %11 {offsets = [0, 9, 0], sizes = [8, 8, 16], strides = [1, 1, 1]} : vector<8x24x16xbf16> to vector<8x8x16xbf16>
    %33 = vector.extract_strided_slice %11 {offsets = [0, 10, 0], sizes = [8, 8, 16], strides = [1, 1, 1]} : vector<8x24x16xbf16> to vector<8x8x16xbf16>
    %34 = vector.extract_strided_slice %11 {offsets = [0, 11, 0], sizes = [8, 8, 16], strides = [1, 1, 1]} : vector<8x24x16xbf16> to vector<8x8x16xbf16>
    %35 = vector.extract_strided_slice %11 {offsets = [0, 12, 0], sizes = [8, 8, 16], strides = [1, 1, 1]} : vector<8x24x16xbf16> to vector<8x8x16xbf16>
    %36 = vector.extract_strided_slice %11 {offsets = [0, 13, 0], sizes = [8, 8, 16], strides = [1, 1, 1]} : vector<8x24x16xbf16> to vector<8x8x16xbf16>
    %37 = vector.extract_strided_slice %11 {offsets = [0, 14, 0], sizes = [8, 8, 16], strides = [1, 1, 1]} : vector<8x24x16xbf16> to vector<8x8x16xbf16>
    %38 = vector.extract_strided_slice %11 {offsets = [0, 15, 0], sizes = [8, 8, 16], strides = [1, 1, 1]} : vector<8x24x16xbf16> to vector<8x8x16xbf16>
    %39 = tpu.concatenate %31, %32, %33, %34, %35, %36, %37, %38 in 2 : vector<8x8x16xbf16>, vector<8x8x16xbf16>, vector<8x8x16xbf16>, vector<8x8x16xbf16>, vector<8x8x16xbf16>, vector<8x8x16xbf16>, vector<8x8x16xbf16>, vector<8x8x16xbf16> -> vector<8x8x128xbf16>
    %cst_12 = arith.constant dense<0.000000e+00> : vector<8x8x768xf32>
    %40 = tpu.matmul %39, %12, %cst_12 {dimension_numbers = #tpu.dot_dimension_numbers<[2], [0], [0, 1], [1], [0, 0, 0, 1, 1, 1], [], []>} : vector<8x8x128xbf16>, vector<128x768xbf16>, vector<8x8x768xf32> -> vector<8x8x768xf32>
    %41 = vector.extract_strided_slice %13 {offsets = [8, 0], sizes = [8, 768], strides = [1, 1]} : vector<16x768xf32> to vector<8x768xf32>
    %42 = vector.shape_cast %41 : vector<8x768xf32> to vector<1x8x768xf32>
    %43 = vector.broadcast %42 : vector<1x8x768xf32> to vector<8x8x768xf32>
    %44 = arith.addf %40, %43 : vector<8x8x768xf32>
    %cst_13 = arith.constant dense<0xFF800000> : vector<8x768xf32>
    %45 = vector.multi_reduction <maximumf>, %44, %cst_13 [1] : vector<8x8x768xf32> to vector<8x768xf32>
    %46 = arith.maximumf %30, %45 : vector<8x768xf32>
    %47 = vector.extract_strided_slice %0 {offsets = [0, 0], sizes = [1, 768], strides = [1, 1]} : vector<8x768xf32> to vector<1x768xf32>
    %48 = vector.broadcast %47 : vector<1x768xf32> to vector<8x768xf32>
    %49 = arith.addf %46, %48 : vector<8x768xf32>
    %50 = math.tanh %49 : vector<8x768xf32>
    %51 = vector.extract_strided_slice %0 {offsets = [1, 0], sizes = [1, 768], strides = [1, 1]} : vector<8x768xf32> to vector<1x768xf32>
    %52 = vector.extract_strided_slice %0 {offsets = [2, 0], sizes = [1, 768], strides = [1, 1]} : vector<8x768xf32> to vector<1x768xf32>
    %53 = arith.truncf %50 : vector<8x768xf32> to vector<8x768xbf16>
    %c0_14 = arith.constant 0 : index
    %c0_15 = arith.constant 0 : index
    %54 = vector.load %arg6[%c0_14, %c0_15] : memref<768x768xbf16, #tpu.memory_space<vmem>>, vector<768x768xbf16>
    %cst_16 = arith.constant dense<0.000000e+00> : vector<8x768xf32>
    %55 = tpu.matmul %53, %54, %cst_16 {dimension_numbers = #tpu.dot_dimension_numbers<[1], [0], [0], [1], [0, 0, 1, 1], [], []>} : vector<8x768xbf16>, vector<768x768xbf16>, vector<8x768xf32> -> vector<8x768xf32>
    %56 = vector.broadcast %51 : vector<1x768xf32> to vector<8x768xf32>
    %57 = arith.addf %55, %56 : vector<8x768xf32>
    %58 = arith.negf %57 : vector<8x768xf32>
    %59 = math.exp %58 : vector<8x768xf32>
    %cst_17 = arith.constant 1.000000e+00 : f32
    %60 = vector.broadcast %cst_17 : f32 to vector<8x768xf32>
    %61 = arith.addf %60, %59 : vector<8x768xf32>
    %62 = arith.divf %60, %61 : vector<8x768xf32>
    %63 = arith.truncf %50 : vector<8x768xf32> to vector<8x768xbf16>
    %c0_18 = arith.constant 0 : index
    %c0_19 = arith.constant 0 : index
    %64 = vector.load %arg7[%c0_18, %c0_19] : memref<768x768xbf16, #tpu.memory_space<vmem>>, vector<768x768xbf16>
    %cst_20 = arith.constant dense<0.000000e+00> : vector<8x768xf32>
    %65 = tpu.matmul %63, %64, %cst_20 {dimension_numbers = #tpu.dot_dimension_numbers<[1], [0], [0], [1], [0, 0, 1, 1], [], []>} : vector<8x768xbf16>, vector<768x768xbf16>, vector<8x768xf32> -> vector<8x768xf32>
    %66 = vector.broadcast %52 : vector<1x768xf32> to vector<8x768xf32>
    %67 = arith.addf %65, %66 : vector<8x768xf32>
    %cst_21 = arith.constant 0.000000e+00 : f32
    %68 = vector.broadcast %cst_21 : f32 to vector<8x768xf32>
    %69 = arith.maximumf %67, %68 : vector<8x768xf32>
    %70 = arith.mulf %62, %69 : vector<8x768xf32>
    %cst_22 = arith.constant 1.000000e+00 : f32
    %71 = vector.broadcast %cst_22 : f32 to vector<8x768xf32>
    %72 = arith.subf %71, %62 : vector<8x768xf32>
    %73 = arith.mulf %72, %50 : vector<8x768xf32>
    %74 = arith.addf %70, %73 : vector<8x768xf32>
    %75 = vector.extract_strided_slice %0 {offsets = [3, 0], sizes = [1, 768], strides = [1, 1]} : vector<8x768xf32> to vector<1x768xf32>
    %76 = vector.extract_strided_slice %0 {offsets = [4, 0], sizes = [1, 768], strides = [1, 1]} : vector<8x768xf32> to vector<1x768xf32>
    %77 = arith.truncf %74 : vector<8x768xf32> to vector<8x768xbf16>
    %c0_23 = arith.constant 0 : index
    %c0_24 = arith.constant 0 : index
    %78 = vector.load %arg8[%c0_23, %c0_24] : memref<768x768xbf16, #tpu.memory_space<vmem>>, vector<768x768xbf16>
    %cst_25 = arith.constant dense<0.000000e+00> : vector<8x768xf32>
    %79 = tpu.matmul %77, %78, %cst_25 {dimension_numbers = #tpu.dot_dimension_numbers<[1], [0], [0], [1], [0, 0, 1, 1], [], []>} : vector<8x768xbf16>, vector<768x768xbf16>, vector<8x768xf32> -> vector<8x768xf32>
    %80 = vector.broadcast %75 : vector<1x768xf32> to vector<8x768xf32>
    %81 = arith.addf %79, %80 : vector<8x768xf32>
    %82 = arith.negf %81 : vector<8x768xf32>
    %83 = math.exp %82 : vector<8x768xf32>
    %cst_26 = arith.constant 1.000000e+00 : f32
    %84 = vector.broadcast %cst_26 : f32 to vector<8x768xf32>
    %85 = arith.addf %84, %83 : vector<8x768xf32>
    %86 = arith.divf %84, %85 : vector<8x768xf32>
    %87 = arith.truncf %74 : vector<8x768xf32> to vector<8x768xbf16>
    %c0_27 = arith.constant 0 : index
    %c0_28 = arith.constant 0 : index
    %88 = vector.load %arg9[%c0_27, %c0_28] : memref<768x768xbf16, #tpu.memory_space<vmem>>, vector<768x768xbf16>
    %cst_29 = arith.constant dense<0.000000e+00> : vector<8x768xf32>
    %89 = tpu.matmul %87, %88, %cst_29 {dimension_numbers = #tpu.dot_dimension_numbers<[1], [0], [0], [1], [0, 0, 1, 1], [], []>} : vector<8x768xbf16>, vector<768x768xbf16>, vector<8x768xf32> -> vector<8x768xf32>
    %90 = vector.broadcast %76 : vector<1x768xf32> to vector<8x768xf32>
    %91 = arith.addf %89, %90 : vector<8x768xf32>
    %cst_30 = arith.constant 0.000000e+00 : f32
    %92 = vector.broadcast %cst_30 : f32 to vector<8x768xf32>
    %93 = arith.maximumf %91, %92 : vector<8x768xf32>
    %94 = arith.mulf %86, %93 : vector<8x768xf32>
    %cst_31 = arith.constant 1.000000e+00 : f32
    %95 = vector.broadcast %cst_31 : f32 to vector<8x768xf32>
    %96 = arith.subf %95, %86 : vector<8x768xf32>
    %97 = arith.mulf %96, %74 : vector<8x768xf32>
    %98 = arith.addf %94, %97 : vector<8x768xf32>
    %99 = vector.extract_strided_slice %0 {offsets = [5, 0], sizes = [1, 768], strides = [1, 1]} : vector<8x768xf32> to vector<1x768xf32>
    %100 = arith.truncf %98 : vector<8x768xf32> to vector<8x768xbf16>
    %c0_32 = arith.constant 0 : index
    %c0_33 = arith.constant 0 : index
    %101 = vector.load %arg10[%c0_32, %c0_33] : memref<768x768xbf16, #tpu.memory_space<vmem>>, vector<768x768xbf16>
    %cst_34 = arith.constant dense<0.000000e+00> : vector<8x768xf32>
    %102 = tpu.matmul %100, %101, %cst_34 {dimension_numbers = #tpu.dot_dimension_numbers<[1], [0], [0], [1], [0, 0, 1, 1], [], []>} : vector<8x768xbf16>, vector<768x768xbf16>, vector<8x768xf32> -> vector<8x768xf32>
    %103 = vector.broadcast %99 : vector<1x768xf32> to vector<8x768xf32>
    %104 = arith.addf %102, %103 : vector<8x768xf32>
    %c0_35 = arith.constant 0 : index
    %c0_36 = arith.constant 0 : index
    %105 = vector.load %arg11[%c0_35, %c0_36] : memref<8x768xf32, #tpu.memory_space<vmem>>, vector<8x768xf32>
    tpu.vector_store %arg11[%c0_35, %c0_36], %104 {strides = array<i32>} : memref<8x768xf32, #tpu.memory_space<vmem>>, vector<8x768xf32>,
    return
  }
  func.func @transform_0(%arg0: i32) -> (i32, i32) {
    %c0_i32 = arith.constant 0 : i32
    %c0_i32_0 = arith.constant 0 : i32
    return %arg0, %c0_i32 : i32, i32
  }
  func.func @transform_1(%arg0: i32) -> (i32, i32) {
    %c0_i32 = arith.constant 0 : i32
    %c0_i32_0 = arith.constant 0 : i32
    %c0_i32_1 = arith.constant 0 : i32
    return %c0_i32, %c0_i32_0 : i32, i32
  }
  func.func @transform_2(%arg0: i32) -> (i32, i32) {
    %c0_i32 = arith.constant 0 : i32
    %c0_i32_0 = arith.constant 0 : i32
    %c0_i32_1 = arith.constant 0 : i32
    return %c0_i32, %c0_i32_0 : i32, i32
  }
  func.func @transform_3(%arg0: i32) -> (i32, i32) {
    %c0_i32 = arith.constant 0 : i32
    %c0_i32_0 = arith.constant 0 : i32
    %c0_i32_1 = arith.constant 0 : i32
    return %c0_i32, %c0_i32_0 : i32, i32
  }
  func.func @transform_4(%arg0: i32) -> (i32, i32) {
    %c0_i32 = arith.constant 0 : i32
    %c0_i32_0 = arith.constant 0 : i32
    %c0_i32_1 = arith.constant 0 : i32
    return %c0_i32, %c0_i32_0 : i32, i32
  }
  func.func @transform_5(%arg0: i32) -> (i32, i32) {
    %c0_i32 = arith.constant 0 : i32
    %c0_i32_0 = arith.constant 0 : i32
    %c0_i32_1 = arith.constant 0 : i32
    return %c0_i32, %c0_i32_0 : i32, i32
  }
  func.func @transform_6(%arg0: i32) -> (i32, i32) {
    %c0_i32 = arith.constant 0 : i32
    %c0_i32_0 = arith.constant 0 : i32
    %c0_i32_1 = arith.constant 0 : i32
    return %c0_i32, %c0_i32_0 : i32, i32
  }
  func.func @transform_7(%arg0: i32) -> (i32, i32) {
    %c0_i32 = arith.constant 0 : i32
    %c0_i32_0 = arith.constant 0 : i32
    %c0_i32_1 = arith.constant 0 : i32
    return %c0_i32, %c0_i32_0 : i32, i32
  }
  func.func @transform_8(%arg0: i32) -> (i32, i32) {
    %c0_i32 = arith.constant 0 : i32
    %c0_i32_0 = arith.constant 0 : i32
    %c0_i32_1 = arith.constant 0 : i32
    return %c0_i32, %c0_i32_0 : i32, i32
  }
  func.func @transform_9(%arg0: i32) -> (i32, i32) {
    %c0_i32 = arith.constant 0 : i32
    %c0_i32_0 = arith.constant 0 : i32
    %c0_i32_1 = arith.constant 0 : i32
    return %c0_i32, %c0_i32_0 : i32, i32
  }
  func.func @transform_10(%arg0: i32) -> (i32, i32) {
    %c0_i32 = arith.constant 0 : i32
    %c0_i32_0 = arith.constant 0 : i32
    return %arg0, %c0_i32 : i32, i32
  }
}

</mosaic_0001>

<bundles_post_ra>
// kernel: charlm_forward.1
= control target key start
LH: loop header
LB: loop body
LE: loop exit
PB: predicated region body
PF: predicated region fallthrough
CT: control target
= control target key end

     0   :  { %15 = vsyncpa [#allocation3], 0  ;;  %s21298_s0 = inlined_call_operand.vmem [shape: s32[8,24], index: 0, kind: input, shape index: {}]   ;;  %s21299_s1 = inlined_call_operand.vmem [shape: bf16[128,16], index: 1, kind: input, shape index: {}]   ;;  %s21300_s2 = inlined_call_operand.hbm [shape: bf16[128,768], index: 2, kind: input, shape index: {}]   ;;  %s21301_s3 = inlined_call_operand.hbm [shape: f32[8,768], index: 3, kind: input, shape index: {}]   ;;  %s21302_s4 = inlined_call_operand.hbm [shape: f32[16,768], index: 4, kind: input, shape index: {}]   ;;  %s21303_s5 = inlined_call_operand.hbm [shape: bf16[768,768], index: 5, kind: input, shape index: {}]   ;;  %s21304_s6 = inlined_call_operand.hbm [shape: bf16[768,768], index: 6, kind: input, shape index: {}]   ;;  %s21305_s7 = inlined_call_operand.hbm [shape: bf16[768,768], index: 7, kind: input, shape index: {}]   ;;  %s21306_s8 = inlined_call_operand.hbm [shape: bf16[768,768], index: 8, kind: input, shape index: {}]   ;;  %s21307_s9 = inlined_call_operand.hbm [shape: bf16[768,768], index: 9, kind: input, shape index: {}]   ;;  %s21308_s10 = inlined_call_operand.vmem [shape: f32[8,768], index: 10, kind: output, shape index: {}]  }
   0x1   :  { %16 = vsyncpa [#allocation5], 0 }
   0x2   :  { %17 = vsyncpa [#allocation8], 0 }
   0x3   :  { %18 = vsyncpa [#allocation11], 0 }
   0x4   :  { %19 = vsyncpa [#allocation14], 0  ;;  %s18573_s13 = smov [#allocation4]   ;;  %s18387_s17 = scalar_lea.hbm %s21301_s3, 768 }
   0x5   :  { %s42_s14 = sshll.u32 %s18573_s13, 4  ;;  %p18388_p0 = scmp.ne.s32.totalorder %s21301_s3, %s18387_s17  ;;  %s43_s14 = int_to_ptr.vmem [resolvable:$true] %s42_s14 }
   0x6   :  { %p18391_p1 = scmp.lt.u32.totalorder %s18387_s17, %s21301_s3 }
   0x8   :  { %p18393_p2 = pnand %p18391_p1, %p18388_p0 }
   0xa   :  { %18396 = shalt.err (!%p18393_p2)
}
   0xb   :  { %s18397_s22 = scalar_lea.vmem %s43_s14, 768  ;;  %p18402_p4 = scmp.lt.s32.totalorder %s43_s14, %s43_s14 }
   0xc   :  { %p18398_p3 = scmp.ne.s32.totalorder %s43_s14, %s18397_s22  ;;  %p18403_p5 = scmp.lt.s32.totalorder %s18397_s22, %s18397_s22 }
   0xe   :  { %p18404_p6 = por %p18403_p5, %p18402_p4 }
  0x10   :  { %p18405_p7 = pnand %p18404_p6, %p18398_p3 }
  0x12   :  { %18408 = shalt.err (!%p18405_p7)
}
  0x13   :  { %45 = dma.hbm_to_vmem [thread:$0]  %s21301_s3, 768, %s43_s14, [#allocation5]  }
  0x14   :  { %s18574_s25 = smov [#allocation7]   ;;  %s18575_s27 = smov [#allocation10]  }
  0x15   :  { %s63_s26 = sshll.u32 %s18574_s25, 4  ;;  %s87_s28 = sshll.u32 %s18575_s27, 4  ;;  %s64_s26 = int_to_ptr.vmem [resolvable:$true] %s63_s26  ;;  %s88_s28 = int_to_ptr.vmem [resolvable:$true] %s87_s28 }
  0x16   :  { %s18409_s11 = scalar_lea.hbm %s21303_s5, 36864 }
  0x17   :  { %p18410_p8 = scmp.ne.s32.totalorder %s21303_s5, %s18409_s11  ;;  %p18413_p9 = scmp.lt.u32.totalorder %s18409_s11, %s21303_s5 }
  0x19   :  { %p18415_p10 = pnand %p18413_p9, %p18410_p8 }
  0x1b   :  { %18418 = shalt.err (!%p18415_p10)
}
  0x1c   :  { %s18419_s3 = scalar_lea.vmem %s64_s26, 36864  ;;  %p18424_p12 = scmp.lt.s32.totalorder %s64_s26, %s64_s26 }
  0x1d   :  { %p18420_p11 = scmp.ne.s32.totalorder %s64_s26, %s18419_s3  ;;  %p18425_p13 = scmp.lt.s32.totalorder %s18419_s3, %s18419_s3 }
  0x1f   :  { %p18426_p0 = por %p18425_p13, %p18424_p12 }
  0x21   :  { %p18427_p1 = pnand %p18426_p0, %p18420_p11 }
  0x23   :  { %18430 = shalt.err (!%p18427_p1)
}
  0x24   :  { %s18576_s14 = smov 384   ;;  %s18577_s17 = smov 24  }
  0x25   :  { %69 = dma.hbm_to_vmem [thread:$0]  %s21303_s5, 36864, %s64_s26, [#allocation8], %s18576_s14, %s18576_s14, %s18577_s17  }
  0x26   :  { %s18431_s22 = scalar_lea.hbm %s21305_s7, 36864 }
  0x27   :  { %p18432_p2 = scmp.ne.s32.totalorder %s21305_s7, %s18431_s22  ;;  %p18435_p3 = scmp.lt.u32.totalorder %s18431_s22, %s21305_s7 }
  0x29   :  { %p18437_p4 = pnand %p18435_p3, %p18432_p2 }
  0x2b   :  { %18440 = shalt.err (!%p18437_p4)
}
  0x2c   :  { %s18441_s29 = scalar_lea.vmem %s88_s28, 36864  ;;  %p18446_p6 = scmp.lt.s32.totalorder %s88_s28, %s88_s28 }
  0x2d   :  { %p18442_p5 = scmp.ne.s32.totalorder %s88_s28, %s18441_s29  ;;  %p18447_p7 = scmp.lt.s32.totalorder %s18441_s29, %s18441_s29 }
  0x2f   :  { %p18448_p8 = por %p18447_p7, %p18446_p6 }
  0x31   :  { %p18449_p9 = pnand %p18448_p8, %p18442_p5 }
  0x33   :  { %18452 = shalt.err (!%p18449_p9)
}
  0x34   :  { %93 = dma.hbm_to_vmem [thread:$0]  %s21305_s7, 36864, %s88_s28, [#allocation11], %s18576_s14, %s18576_s14, %s18577_s17  }
  0x35   :  { %s18578_s30 = smov [#allocation2]   ;;  %s18579_s12 = smov [#allocation6]  }
  0x36   :  { %s29_s11 = sshll.u32 %s18578_s30, 4  ;;  %s51_s13 = sshll.u32 %s18579_s12, 4  ;;  %s30_s11 = int_to_ptr.vmem [resolvable:$true] %s29_s11  ;;  %s52_s13 = int_to_ptr.vmem [resolvable:$true] %s51_s13 }
  0x37   :  { %s18453_s3 = scalar_lea.hbm %s21300_s2, 6144 }
  0x38   :  { %p18454_p10 = scmp.ne.s32.totalorder %s21300_s2, %s18453_s3  ;;  %p18457_p11 = scmp.lt.u32.totalorder %s18453_s3, %s21300_s2 }
  0x3a   :  { %p18459_p12 = pnand %p18457_p11, %p18454_p10 }
  0x3c   :  { %18462 = shalt.err (!%p18459_p12)
}
  0x3d   :  { %s18463_s7 = scalar_lea.vmem %s30_s11, 6144  ;;  %p18468_p0 = scmp.lt.s32.totalorder %s30_s11, %s30_s11 }
  0x3e   :  { %p18464_p13 = scmp.ne.s32.totalorder %s30_s11, %s18463_s7  ;;  %p18469_p1 = scmp.lt.s32.totalorder %s18463_s7, %s18463_s7 }
  0x40   :  { %p18470_p2 = por %p18469_p1, %p18468_p0 }
  0x42   :  { %p18471_p3 = pnand %p18470_p2, %p18464_p13 }
  0x44   :  { %18474 = shalt.err (!%p18471_p3)
}
  0x45   :  { %35 = dma.hbm_to_vmem [thread:$0]  %s21300_s2, 6144, %s30_s11, [#allocation3], %s18576_s14, %s18576_s14, %s18577_s17  }
  0x46   :  { %s18475_s25 = scalar_lea.hbm %s21302_s4, 1536 }
  0x47   :  { %p18476_p4 = scmp.ne.s32.totalorder %s21302_s4, %s18475_s25  ;;  %p18479_p5 = scmp.lt.u32.totalorder %s18475_s25, %s21302_s4 }
  0x49   :  { %p18481_p6 = pnand %p18479_p5, %p18476_p4 }
  0x4b   :  { %18484 = shalt.err (!%p18481_p6)
}
  0x4c   :  { %s18485_s30 = scalar_lea.vmem %s52_s13, 1536  ;;  %p18490_p8 = scmp.lt.s32.totalorder %s52_s13, %s52_s13 }
  0x4d   :  { %p18486_p7 = scmp.ne.s32.totalorder %s52_s13, %s18485_s30  ;;  %p18491_p9 = scmp.lt.s32.totalorder %s18485_s30, %s18485_s30 }
  0x4f   :  { %p18492_p10 = por %p18491_p9, %p18490_p8 }
  0x51   :  { %p18493_p11 = pnand %p18492_p10, %p18486_p7 }
  0x53   :  { %18496 = shalt.err (!%p18493_p11)
}
  0x54   :  { %s18580_s2 = smov 768   ;;  %s18581_s11 = smov 48  }
  0x55   :  { %57 = dma.hbm_to_vmem [thread:$0]  %s21302_s4, 1536, %s52_s13, [#allocation5], %s18580_s2, %s18580_s2, %s18581_s11  }
  0x56   :  { %s18582_s16 = smov [#allocation9]   ;;  %s18583_s18 = smov [#allocation12]  }
  0x57   :  { %s75_s3 = sshll.u32 %s18582_s16, 4  ;;  %s99_s19 = sshll.u32 %s18583_s18, 4  ;;  %s76_s3 = int_to_ptr.vmem [resolvable:$true] %s75_s3  ;;  %s100_s19 = int_to_ptr.vmem [resolvable:$true] %s99_s19 }
  0x58   :  { %s18497_s7 = scalar_lea.hbm %s21304_s6, 36864 }
  0x59   :  { %p18498_p12 = scmp.ne.s32.totalorder %s21304_s6, %s18497_s7  ;;  %p18501_p13 = scmp.lt.u32.totalorder %s18497_s7, %s21304_s6 }
  0x5b   :  { %p18503_p0 = pnand %p18501_p13, %p18498_p12 }
  0x5d   :  { %18506 = shalt.err (!%p18503_p0)
}
  0x5e   :  { %s18507_s4 = scalar_lea.vmem %s76_s3, 36864  ;;  %p18512_p2 = scmp.lt.s32.totalorder %s76_s3, %s76_s3 }
  0x5f   :  { %p18508_p1 = scmp.ne.s32.totalorder %s76_s3, %s18507_s4  ;;  %p18513_p3 = scmp.lt.s32.totalorder %s18507_s4, %s18507_s4 }
  0x61   :  { %p18514_p4 = por %p18513_p3, %p18512_p2 }
  0x63   :  { %p18515_p5 = pnand %p18514_p4, %p18508_p1 }
  0x65   :  { %18518 = shalt.err (!%p18515_p5)
}
  0x66   :  { %81 = dma.hbm_to_vmem [thread:$0]  %s21304_s6, 36864, %s76_s3, [#allocation8], %s18576_s14, %s18576_s14, %s18577_s17  }
  0x67   :  { %s18519_s5 = scalar_lea.hbm %s21306_s8, 36864 }
  0x68   :  { %p18520_p6 = scmp.ne.s32.totalorder %s21306_s8, %s18519_s5  ;;  %p18523_p7 = scmp.lt.u32.totalorder %s18519_s5, %s21306_s8 }
  0x6a   :  { %p18525_p8 = pnand %p18523_p7, %p18520_p6 }
  0x6c   :  { %18528 = shalt.err (!%p18525_p8)
}
  0x6d   :  { %s18529_s15 = scalar_lea.vmem %s100_s19, 36864  ;;  %p18534_p10 = scmp.lt.s32.totalorder %s100_s19, %s100_s19 }
  0x6e   :  { %p18530_p9 = scmp.ne.s32.totalorder %s100_s19, %s18529_s15  ;;  %p18535_p11 = scmp.lt.s32.totalorder %s18529_s15, %s18529_s15 }
  0x70   :  { %p18536_p12 = por %p18535_p11, %p18534_p10 }
  0x72   :  { %p18537_p13 = pnand %p18536_p12, %p18530_p9 }
  0x74   :  { %18540 = shalt.err (!%p18537_p13)
}
  0x75   :  { %105 = dma.hbm_to_vmem [thread:$0]  %s21306_s8, 36864, %s100_s19, [#allocation11], %s18576_s14, %s18576_s14, %s18577_s17  }
  0x76   :  { %s18584_s3 = smov [#allocation13]   ;;  %s18541_s7 = scalar_lea.hbm %s21307_s9, 36864 }
  0x77   :  { %s111_s18 = sshll.u32 %s18584_s3, 4  ;;  %p18542_p0 = scmp.ne.s32.totalorder %s21307_s9, %s18541_s7  ;;  %s112_s18 = int_to_ptr.vmem [resolvable:$true] %s111_s18 }
  0x78   :  { %p18545_p1 = scmp.lt.u32.totalorder %s18541_s7, %s21307_s9 }
  0x7a   :  { %p18547_p2 = pnand %p18545_p1, %p18542_p0 }
  0x7c   :  { %18550 = shalt.err (!%p18547_p2)
}
  0x7d   :  { %s18551_s4 = scalar_lea.vmem %s112_s18, 36864  ;;  %p18556_p4 = scmp.lt.s32.totalorder %s112_s18, %s112_s18 }
  0x7e   :  { %p18552_p3 = scmp.ne.s32.totalorder %s112_s18, %s18551_s4  ;;  %p18557_p5 = scmp.lt.s32.totalorder %s18551_s4, %s18551_s4 }
  0x80   :  { %p18558_p6 = por %p18557_p5, %p18556_p4 }
  0x82   :  { %p18559_p7 = pnand %p18558_p6, %p18552_p3 }
  0x84   :  { %18562 = shalt.err (!%p18559_p7)
}
  0x85   :  { %117 = dma.hbm_to_vmem [thread:$0]  %s21307_s9, 36864, %s112_s18, [#allocation14], %s18576_s14, %s18576_s14, %s18577_s17  }
  0x86   :  { %18563 = dma.done.wait [#allocation3], 6144  }
  0x87   :  { %18564 = vsyncadd [#allocation3], 4294961152 }
  0x88   :  { %18565 = dma.done.wait [#allocation5], 2304  }
  0x89   :  { %18566 = vsyncadd [#allocation5], 4294964992 }
  0x8a   :  { %18567 = dma.done.wait [#allocation8], 73728  }
  0x8b   :  { %18568 = vsyncadd [#allocation8], 4294893568 }
  0x8c   :  { %18569 = dma.done.wait [#allocation11], 73728  }
  0x8d   :  { %18570 = vsyncadd [#allocation11], 4294893568 }
  0x8e   :  { %18571 = dma.done.wait [#allocation14], 36864  }
  0x8f   :  { %18572 = vsyncadd [#allocation14], 4294930432  ;;  %v150_v0 = vlaneseq  ;;  %v18776_v4 = vld [vmem:[%s21298_s0] sm:$0xff]  ;;  %v15952_v7 = vld [vmem:[%s21299_s1 + $0x8] sm:$0xff]   ;;  %v18585_v32 = vmov 1.0|1.0  }
  0x90   :  { %v15951_v6 = vld [vmem:[%s21299_s1] sm:$0xff]   ;;  %v15953_v9 = vld [vmem:[%s21299_s1 + $0x10] sm:$0xff]   ;;  %v15954_v11 = vld [vmem:[%s21299_s1 + $0x18] sm:$0xff]   ;;  %v18586_v35 = vmov 0.0   ;;  %s18588_s20 = smov 64   ;;  %s18589_s21 = smov 96  }
  0x91   :  { %v18765_v1 = vshrl.u32 %v150_v0, 7  ;;  %15726 = vmatprep.subr.bf16.mxu0 %v15951_v6  ;;  %15766 = vmatprep.subr.bf16.mxu1 %v15951_v6  ;;  %v15955_v14 = vld [vmem:[%s21299_s1 + $0x20] sm:$0xff]   ;;  %v15956_v16 = vld [vmem:[%s21299_s1 + $0x28] sm:$0xff]   ;;  %v15957_v18 = vld [vmem:[%s21299_s1 + $0x30] sm:$0xff]   ;;  %v18831_v29 = vand.u32 127, %v150_v0  ;;  %s18590_s7 = smov 112  }
  0x92   :  { %15727 = vmatpush3.bf16.msra.mxu0 %v15951_v6  ;;  %15774 = vmatpush3.bf16.msra.mxu1 %v15951_v6  ;;  %v15958_v21 = vld [vmem:[%s21299_s1 + $0x38] sm:$0xff]   ;;  %s18587_s1 = smov 32   ;;  %s18591_s28 = smov 16  }
  0x93   :  { %v18768_v2 = vsub.s32 0, %v18765_v1  ;;  %v18771_v3 = vsub.s32 1, %v18765_v1  ;;  %15728 = vmatprep.subr.bf16.mxu0 %v15952_v7  ;;  %15767 = vmatprep.subr.bf16.mxu1 %v15952_v7  ;;  %v18792_v10 = vsub.s32 2, %v18765_v1  ;;  %v18800_v13 = vsub.s32 3, %v18765_v1  ;;  %s18592_s22 = smov 80  }
  0x94   :  { %v18811_v17 = vsub.s32 5, %v18765_v1  ;;  %v18819_v20 = vsub.s32 4, %v18765_v1  ;;  %v244_v23 = vsub.s32 6, %v18765_v1  ;;  %v259_v25 = vsub.s32 7, %v18765_v1 }
  0x95   :  { %21379 = vst [vmem:[#allocation20_spill] sm:$0xff] %v18768_v2  ;;  %21380 = vst [vmem:[#allocation21_spill] sm:$0xff] %v18771_v3  ;;  %v155_v5 = vrot.slane %v18776_v4, %v18768_v2  ;;  %v170_v8 = vrot.slane %v18776_v4, %v18771_v3  ;;  %v185_v12 = vrot.slane %v18776_v4, %v18792_v10 }
  0x96   :  { %21381 = vst [vmem:[#allocation22_spill] sm:$0xff] %v18792_v10  ;;  %15729 = vmatpush3.bf16.msra.mxu0 %v15952_v7  ;;  %15775 = vmatpush3.bf16.msra.mxu1 %v15952_v7  ;;  %21382 = vst [vmem:[#allocation23_spill] sm:$0xff] %v18800_v13  ;;  %v200_v15 = vrot.slane %v18776_v4, %v18800_v13  ;;  %v230_v19 = vrot.slane %v18776_v4, %v18811_v17  ;;  %v21326_v13 = vmov 0  }
  0x97   :  { %165 = vbcast.lane.b32.xlu1 %v155_v5, 272  ;;  %157 = vbcast.lane.b32.xlu0 %v155_v5, 256  ;;  %21383 = vst [vmem:[#allocation24_spill] sm:$0xff] %v18811_v17  ;;  %21384 = vst [vmem:[#allocation25_spill] sm:$0xff] %v18819_v20  ;;  %v215_v22 = vrot.slane %v18776_v4, %v18819_v20  ;;  %v245_v24 = vrot.slane %v18776_v4, %v244_v23 }
  0x98   :  { %15730 = vmatprep.subr.bf16.mxu0 %v15953_v9  ;;  %15768 = vmatprep.subr.bf16.mxu1 %v15953_v9  ;;  %v260_v26 = vrot.slane %v18776_v4, %v259_v25 }
  0x9a   :  { %15731 = vmatpush3.bf16.msra.mxu0 %v15953_v9  ;;  %15776 = vmatpush3.bf16.msra.mxu1 %v15953_v9 }
  0x9b   :  { %172 = vbcast.lane.b32.xlu1 %v170_v8, 256  ;;  %161 = vbcast.lane.b32.xlu0 %v155_v5, 264 }
  0x9c   :  { %15732 = vmatprep.subr.bf16.mxu0 %v15954_v11  ;;  %15769 = vmatprep.subr.bf16.mxu1 %v15954_v11 }
  0x9e   :  { %15733 = vmatpush3.bf16.msra.mxu0 %v15954_v11  ;;  %15777 = vmatpush3.bf16.msra.mxu1 %v15954_v11 }
  0x9f   :  { %180 = vbcast.lane.b32.xlu1 %v170_v8, 272  ;;  %176 = vbcast.lane.b32.xlu0 %v170_v8, 264 }
  0xa0   :  { %15734 = vmatprep.subr.bf16.mxu0 %v15955_v14  ;;  %15770 = vmatprep.subr.bf16.mxu1 %v15955_v14 }
  0xa2   :  { %15735 = vmatpush3.bf16.msra.mxu0 %v15955_v14  ;;  %15778 = vmatpush3.bf16.msra.mxu1 %v15955_v14 }
  0xa3   :  { %187 = vbcast.lane.b32.xlu0 %v185_v12, 256  ;;  %191 = vbcast.lane.b32.xlu1 %v185_v12, 264 }
  0xa4   :  { %15736 = vmatprep.subr.bf16.mxu0 %v15956_v16  ;;  %15771 = vmatprep.subr.bf16.mxu1 %v15956_v16 }
  0xa6   :  { %15737 = vmatpush3.bf16.msra.mxu0 %v15956_v16  ;;  %15779 = vmatpush3.bf16.msra.mxu1 %v15956_v16 }
  0xa7   :  { %202 = vbcast.lane.b32.xlu0 %v200_v15, 256  ;;  %206 = vbcast.lane.b32.xlu1 %v200_v15, 264 }
  0xa8   :  { %15738 = vmatprep.subr.bf16.mxu0 %v15957_v18  ;;  %15772 = vmatprep.subr.bf16.mxu1 %v15957_v18 }
  0xaa   :  { %15739 = vmatpush3.bf16.msra.mxu0 %v15957_v18  ;;  %15780 = vmatpush3.bf16.msra.mxu1 %v15957_v18 }
  0xab   :  { %210 = vbcast.lane.b32.xlu0 %v200_v15, 272  ;;  %195 = vbcast.lane.b32.xlu1 %v185_v12, 272 }
  0xac   :  { %15740 = vmatprep.subr.bf16.mxu0 %v15958_v21  ;;  %15773 = vmatprep.subr.bf16.mxu1 %v15958_v21 }
  0xae   :  { %15741 = vmatpush3.bf16.msra.mxu0 %v15958_v21  ;;  %15781 = vmatpush3.bf16.msra.mxu1 %v15958_v21 }
  0xaf   :  { %236 = vbcast.lane.b32.xlu1 %v230_v19, 264  ;;  %232 = vbcast.lane.b32.xlu0 %v230_v19, 256 }
  0xb3   :  { %217 = vbcast.lane.b32.xlu1 %v215_v22, 256  ;;  %240 = vbcast.lane.b32.xlu0 %v230_v19, 272 }
  0xb7   :  { %225 = vbcast.lane.b32.xlu1 %v215_v22, 272  ;;  %221 = vbcast.lane.b32.xlu0 %v215_v22, 264 }
  0xbb   :  { %251 = vbcast.lane.b32.xlu1 %v245_v24, 264  ;;  %247 = vbcast.lane.b32.xlu0 %v245_v24, 256 }
  0xbf   :  { %262 = vbcast.lane.b32.xlu0 %v260_v26, 256  ;;  %266 = vbcast.lane.b32.xlu1 %v260_v26, 264 }
  0xc3   :  { %270 = vbcast.lane.b32.xlu0 %v260_v26, 272  ;;  %255 = vbcast.lane.b32.xlu1 %v245_v24, 272 }
 0x109   :  { %v166_v27 = vpop.permute.xlu1 %165  ;;  %v158_v28 = vpop.permute.xlu0 %157 }
 0x10a   :  { %vm274_vm0 = vcmp.eq.s32.totalorder %v166_v27, %v18831_v29  ;;  %vm272_vm4 = vcmp.eq.s32.totalorder %v158_v28, %v18831_v29 }
 0x10d   :  { %v173_v30 = vpop.permute.xlu1 %172  ;;  %v162_v31 = vpop.permute.xlu0 %161 }
 0x10e   :  { %vm275_vm1 = vcmp.eq.s32.totalorder %v173_v30, %v18831_v29  ;;  %vm273_vm2 = vcmp.eq.s32.totalorder %v162_v31, %v18831_v29 }
 0x10f   :  { %vm15698_vm3 = vmpackc.low %vm275_vm1, %vm274_vm0  ;;  %v14145_v36 = vsel %vm275_vm1, 1.0, %v18586_v35 }
 0x110   :  { %vm14178_vm5 = vmpackc.low %vm273_vm2, %vm272_vm4 }
 0x111   :  { %15742 = vmatprep.mubr.msk.bf16.mxu0 %vm14178_vm5, %v18585_v32  ;;  %v181_v33 = vpop.permute.xlu1 %180  ;;  %v177_v34 = vpop.permute.xlu0 %176 }
 0x112   :  { %vm277_vm6 = vcmp.eq.s32.totalorder %v181_v33, %v18831_v29  ;;  %15743 = vmatmul.mubr.msk.bf16.vlgmr.msra.gmra.mrb[0].mxu0 %vm15698_vm3, %v18585_v32  ;;  %vm276_vm7 = vcmp.eq.s32.totalorder %v177_v34, %v18831_v29 }
 0x113   :  { %v14147_v37 = vsel %vm277_vm6, 1.0, %v18586_v35  ;;  %v14146_v38 = vsel %vm276_vm7, 1.0, %v18586_v35 }
 0x114   :  { %v347_v39 = vpack.c.bf16 %v14147_v37, %v14147_v37  ;;  %v346_v40 = vpack.c.bf16 %v14146_v38, %v14145_v36 }
 0x115   :  { %v188_v41 = vpop.permute.xlu0 %187  ;;  %v192_v42 = vpop.permute.xlu1 %191 }
 0x116   :  { %v397_v43 = vunpack.c.l.b16 %v347_v39  ;;  %v396_v44 = vunpack.c.h.b16 %v346_v40  ;;  %vm278_vm8 = vcmp.eq.s32.totalorder %v188_v41, %v18831_v29  ;;  %vm279_vm9 = vcmp.eq.s32.totalorder %v192_v42, %v18831_v29  ;;  %v15962_v39 = vld [vmem:[#allocation2 + $0x10] ss:$24 sps:$4 sm:$0xff]   ;;  %v15964_v40 = vld [vmem:[#allocation2 + $0x14] ss:$24 sps:$4 sm:$0xff]  }
 0x117   :  { %vm14180_vm10 = vmpackc.low %vm279_vm9, %vm278_vm8  ;;  %1494 = vmatprep.subr.bf16.mxu0 %v15964_v40 }
 0x118   :  { %v418_v45 = vpack.c.b16 %v397_v43, %v396_v44  ;;  %1495 = vmatpush1.bf16.msra.mxu0 %v15962_v39 }
 0x119   :  { %v203_v46 = vpop.permute.xlu0 %202  ;;  %v207_v47 = vpop.permute.xlu1 %206 }
 0x11a   :  { %vm281_vm11 = vcmp.eq.s32.totalorder %v203_v46, %v18831_v29  ;;  %15746 = vmatprep.mubr.bf16.mxu0 %v418_v45  ;;  %vm282_vm12 = vcmp.eq.s32.totalorder %v207_v47, %v18831_v29  ;;  %v15967_v46 = vld [vmem:[#allocation2 + $0x44] ss:$24 sps:$4 sm:$0xff]  }
 0x11b   :  { %v14151_v48 = vsel %vm281_vm11, 1.0, %v18586_v35  ;;  %v14152_v49 = vsel %vm282_vm12, 1.0, %v18586_v35  ;;  %15747 = vmatmul.mubr.msk.bf16.gmra.mrb[4].mxu0 %vm14180_vm10, %v18585_v32  ;;  %1496 = vmatprep.subr.bf16.mxu0 %v15967_v46 }
 0x11c   :  { %v350_v50 = vpack.c.bf16 %v14152_v49, %v14151_v48  ;;  %v15965_v48 = vld [vmem:[#allocation2 + $0x40] ss:$24 sps:$4 sm:$0xff]   ;;  %v15968_v49 = vld [vmem:[#allocation2 + $0x30] ss:$24 sps:$4 sm:$0xff]  }
 0x11d   :  { %v211_v51 = vpop.permute.xlu0 %210  ;;  %v196_v52 = vpop.permute.xlu1 %195  ;;  %1497 = vmatpush1.bf16.msra.mxu0 %v15965_v48 }
 0x11e   :  { %vm283_vm13 = vcmp.eq.s32.totalorder %v211_v51, %v18831_v29  ;;  %vm280_vm14 = vcmp.eq.s32.totalorder %v196_v52, %v18831_v29  ;;  %v402_v54 = vunpack.c.h.b16 %v350_v50  ;;  %v15970_v51 = vld [vmem:[#allocation2 + $0x34] ss:$24 sps:$4 sm:$0xff]  }
 0x11f   :  { %v14153_v53 = vsel %vm283_vm13, 1.0, %v18586_v35  ;;  %vm15700_vm15 = vmpackc.low %vm281_vm11, %vm280_vm14 }
 0x120   :  { %v351_v55 = vpack.c.bf16 %v14153_v53, %v14153_v53  ;;  %15750 = vmatprep.mubr.msk.bf16.mxu0 %vm15700_vm15, %v18585_v32 }
 0x121   :  { %v237_v56 = vpop.permute.xlu1 %236  ;;  %v233_v57 = vpop.permute.xlu0 %232 }
 0x122   :  { %v403_v58 = vunpack.c.l.b16 %v351_v55  ;;  %vm288_vm0 = vcmp.eq.s32.totalorder %v237_v56, %v18831_v29  ;;  %vm287_vm1 = vcmp.eq.s32.totalorder %v233_v57, %v18831_v29  ;;  %v15973_v56 = vld [vmem:[#allocation2 + $0x74] ss:$24 sps:$4 sm:$0xff]   ;;  %v15974_v57 = vld [vmem:[#allocation2 + $0x60] ss:$24 sps:$4 sm:$0xff]  }
 0x123   :  { %v14158_v59 = vsel %vm288_vm0, 1.0, %v18586_v35  ;;  %v14157_v60 = vsel %vm287_vm1, 1.0, %v18586_v35  ;;  %vm1920_vm0 = vcmask 1046528   ;;  %1498 = vmatprep.subr.bf16.mxu0 %v15973_v56 }
 0x124   :  { %v421_v61 = vpack.c.b16 %v403_v58, %v402_v54  ;;  %v354_v62 = vpack.c.bf16 %v14158_v59, %v14157_v60  ;;  %v15971_v54 = vld [vmem:[#allocation2 + $0x70] ss:$24 sps:$4 sm:$0xff]   ;;  %v15976_v59 = vld [vmem:[#allocation2 + $0x64] ss:$24 sps:$4 sm:$0xff]  }
 0x125   :  { %v218_v63 = vpop.permute.xlu1 %217  ;;  %v241_v0 = vpop.permute.xlu0 %240  ;;  %1499 = vmatpush1.bf16.msra.mxu0 %v15971_v54 }
 0x126   :  { %15751 = vmatmul.mubr.bf16.gmra.mrb[8].mxu0 %v421_v61  ;;  %vm289_vm2 = vcmp.eq.s32.totalorder %v241_v0, %v18831_v29  ;;  %v408_v5 = vunpack.c.h.b16 %v354_v62  ;;  %vm284_vm3 = vcmp.eq.s32.totalorder %v218_v63, %v18831_v29 }
 0x127   :  { %v14159_v1 = vsel %vm289_vm2, 1.0, %v18586_v35  ;;  %vm2100_vm2 = vcmask 1044480  }
 0x128   :  { %v355_v4 = vpack.c.bf16 %v14159_v1, %v14159_v1 }
 0x129   :  { %v226_v6 = vpop.permute.xlu1 %225  ;;  %v222_v7 = vpop.permute.xlu0 %221 }
 0x12a   :  { %vm286_vm4 = vcmp.eq.s32.totalorder %v226_v6, %v18831_v29  ;;  %vm285_vm5 = vcmp.eq.s32.totalorder %v222_v7, %v18831_v29  ;;  %v409_v8 = vunpack.c.l.b16 %v355_v4  ;;  %v15979_v6 = vld [vmem:[#allocation2 + $0xa4] ss:$24 sps:$4 sm:$0xff]  }
 0x12b   :  { %vm15702_vm6 = vmpackc.low %vm287_vm1, %vm286_vm4  ;;  %vm2018_vm1 = vcmask 1045504   ;;  %1500 = vmatprep.subr.bf16.mxu0 %v15979_v6  ;;  %vm1855_vm4 = vsmask.f32 7424  ;;  %v15994_v6 = vld [vmem:[#allocation2 + $0xf4] ss:$24 sps:$4 sm:$0xff]  }
 0x12c   :  { %vm14182_vm7 = vmpackc.low %vm285_vm5, %vm284_vm3  ;;  %v424_v9 = vpack.c.b16 %v409_v8, %v408_v5  ;;  %vm2133_vm3 = vsmask.f32 4352  ;;  %vm1953_vm5 = vsmask.f32 6400 }
 0x12d   :  { %v252_v11 = vpop.permute.xlu1 %251  ;;  %v248_v12 = vpop.permute.xlu0 %247  ;;  %15754 = vmatprep.mubr.msk.bf16.mxu0 %vm14182_vm7, %v18585_v32  ;;  %vm965_vm7 = vcmask 130048  }
 0x12e   :  { %vm291_vm8 = vcmp.eq.s32.totalorder %v252_v11, %v18831_v29  ;;  %vm290_vm9 = vcmp.eq.s32.totalorder %v248_v12, %v18831_v29  ;;  %15758 = vmatprep.mubr.bf16.mxu1 %v424_v9  ;;  %15755 = vmatmul.mubr.msk.bf16.gmra.mrb[12].mxu0 %vm15702_vm6, %v18585_v32  ;;  %v15977_v9 = vld [vmem:[#allocation2 + $0xa0] ss:$24 sps:$4 sm:$0xff]   ;;  %v15980_v11 = vld [vmem:[#allocation2 + $0x90] ss:$24 sps:$4 sm:$0xff]   ;;  %vm2051_vm6 = vsmask.f32 5376 }
 0x12f   :  { %vm14184_vm10 = vmpackc.low %vm291_vm8, %vm290_vm9  ;;  %1501 = vmatpush1.bf16.msra.mxu0 %v15977_v9  ;;  %1526 = vmatprep.mubr.bf16.mxu0 %v21326_v13  ;;  %vm982_vm8 = vcmask 261120   ;;  %vm999_vm9 = vcmask 392192  }
 0x130   :  { %15759 = vmatmul.mubr.msk.bf16.vlgmr.msra.gmra.mrb[0].mxu1 %vm14184_vm10, %v18585_v32  ;;  %vm1016_vm10 = vcmask 523264  }
 0x131   :  { %v263_v14 = vpop.permute.xlu0 %262  ;;  %v267_v15 = vpop.permute.xlu1 %266 }
 0x132   :  { %vm293_vm11 = vcmp.eq.s32.totalorder %v263_v14, %v18831_v29  ;;  %vm294_vm12 = vcmp.eq.s32.totalorder %v267_v15, %v18831_v29 }
 0x133   :  { %v14163_v16 = vsel %vm293_vm11, 1.0, %v18586_v35  ;;  %v14164_v18 = vsel %vm294_vm12, 1.0, %v18586_v35  ;;  %vm1050_vm12 = vcmask 785408  }
 0x134   :  { %v358_v19 = vpack.c.bf16 %v14164_v18, %v14163_v16  ;;  %v15982_v18 = vld [vmem:[#allocation2 + $0x94] ss:$24 sps:$4 sm:$0xff]  }
 0x135   :  { %v271_v21 = vpop.permute.xlu0 %270  ;;  %v256_v22 = vpop.permute.xlu1 %255 }
 0x136   :  { %vm295_vm13 = vcmp.eq.s32.totalorder %v271_v21, %v18831_v29  ;;  %vm292_vm14 = vcmp.eq.s32.totalorder %v256_v22, %v18831_v29  ;;  %v414_v24 = vunpack.c.h.b16 %v358_v19  ;;  %v15959_v29 = vld [vmem:[#allocation2] ss:$24 sps:$4 sm:$0xff]  }
 0x137   :  { %v14165_v23 = vsel %vm295_vm13, 1.0, %v18586_v35  ;;  %vm15704_vm15 = vmpackc.low %vm293_vm11, %vm292_vm14  ;;  %v15961_v35 = vld [vmem:[#allocation2 + $0x4] ss:$24 sps:$4 sm:$0xff]   ;;  %vm1033_vm11 = vcmask 654336   ;;  %vm1067_vm13 = vcmask 916480   ;;  %vm3450_vm14 = vcmask 1041409  }
 0x138   :  { %v359_v25 = vpack.c.bf16 %v14165_v23, %v14165_v23  ;;  %15762 = vmatprep.mubr.msk.bf16.mxu1 %vm15704_vm15, %v18585_v32  ;;  %1348 = vmatprep.subr.bf16.mxu1 %v15961_v35  ;;  %v15985_v23 = vld [vmem:[#allocation2 + $0xd4] ss:$24 sps:$4 sm:$0xff]   ;;  %v15988_v35 = vld [vmem:[#allocation2 + $0xc4] ss:$24 sps:$4 sm:$0xff]   ;;  %vm3453_vm15 = vcmask 1042434  }
 0x139   :  { %1349 = vmatpush1.bf16.msra.mxu1 %v15959_v29  ;;  %1502 = vmatprep.subr.bf16.mxu0 %v15985_v23 }
 0x13a   :  { %v415_v26 = vunpack.c.l.b16 %v359_v25  ;;  %1350 = vmatprep.subr.bf16.mxu1 %v15970_v51 }
 0x13c   :  { %v427_v27 = vpack.c.b16 %v415_v26, %v414_v24 }
 0x13d   :  { %1351 = vmatpush1.bf16.msra.mxu1 %v15968_v49 }
 0x13e   :  { %15763 = vmatmul.mubr.bf16.gmra.mrb[4].mxu1 %v427_v27  ;;  %1352 = vmatprep.subr.bf16.mxu1 %v15976_v59  ;;  %v15992_v59 = vld [vmem:[#allocation2 + $0xf0] ss:$24 sps:$4 sm:$0xff]  }
 0x13f   :  { %1380 = vmatprep.mubr.bf16.mxu1 %v21326_v13 }
 0x141   :  { %1353 = vmatpush1.bf16.msra.mxu1 %v15974_v57 }
 0x142   :  { %1354 = vmatprep.subr.bf16.mxu1 %v15982_v18 }
 0x145   :  { %1355 = vmatpush1.bf16.msra.mxu1 %v15980_v11 }
 0x146   :  { %1356 = vmatprep.subr.bf16.mxu1 %v15988_v35 }
 0x1e5   :  { %v15744_v28 = vpop.f32.mrb[0].mxu0 }
 0x1e6   :  { %v522_v30 = vpop.f32.mrb[1].mxu0  ;;  %v18888_v43 = vpack.c.bf16 %v15744_v28, %v15744_v28  ;;  %v15983_v28 = vld [vmem:[#allocation2 + $0xd0] ss:$24 sps:$4 sm:$0xff]  }
 0x1e7   :  { %v15745_v31 = vpop.f32.mrb[2].mxu0  ;;  %1503 = vmatpush1.bf16.msra.mxu0 %v15983_v28 }
 0x1e8   :  { %v525_v33 = vpop.f32.mrb[3].mxu0  ;;  %v18897_v52 = vshll.u32 %v18888_v43, 16  ;;  %v1921_v53 = vrot.slane %v18888_v43, 1  ;;  %v18909_v61 = vshrl.u32 %v18888_v43, 16  ;;  %v2019_v63 = vrot.slane %v18888_v43, 2 }
 0x1e9   :  { %v18881_v34 = vpack.c.bf16 %v525_v33, %v522_v30  ;;  %v2101_v19 = vrot.slane %v18888_v43, 3  ;;  %v15986_v30 = vld [vmem:[#allocation2 + $0xc0] ss:$24 sps:$4 sm:$0xff]   ;;  %v15991_v43 = vld [vmem:[#allocation2 + $0x104] ss:$24 sps:$4 sm:$0xff]  }
 0x1ea   :  { %v2135_v5 = vrot.slane %v18897_v52, 4  ;;  %v2134_v15 = vrot.slane %v18909_v61, 3  ;;  %v2053_v39 = vrot.slane %v18897_v52, 3  ;;  %1357 = vmatpush1.bf16.msra.mxu1 %v15986_v30  ;;  %1504 = vmatprep.subr.bf16.mxu0 %v15991_v43  ;;  %v2052_v35 = vrot.slane %v18909_v61, 2 }
 0x1eb   :  { %21385 = vst [vmem:[#allocation26_spill] sm:$0xff] %v18881_v34  ;;  %v773_v36 = vrot.slane %v18881_v34, 1  ;;  %v837_v32 = vrot.slane %v18881_v34, 2  ;;  %v901_v50 = vrot.slane %v18881_v34, 3  ;;  %v18915_v4 = vshrl.u32 %v18881_v34, 16  ;;  %1358 = vmatprep.subr.bf16.mxu1 %v15994_v6 }
 0x1ec   :  { %v18939_v27 = vshll.u32 %v18881_v34, 16 }
 0x1ed   :  { %781 = vrot.lane.b32.xlu0 %v773_v36, %s18587_s1  ;;  %v1922_v60 = vsel %vm1920_vm0, %v773_v36, %v1921_v53  ;;  %v2020_v14 = vsel %vm2018_vm1, %v837_v32, %v2019_v63  ;;  %v2102_v24 = vsel %vm2100_vm2, %v901_v50, %v2101_v19  ;;  %v925_v33 = vrot.slane %v18915_v4, 3 }
 0x1ee   :  { %v15748_v37 = vpop.f32.mrb[4].mxu0  ;;  %v2136_v36 = vor.u32 %v2135_v5, %v2134_v15  ;;  %v698_v48 = vrot.slane %v18939_v27, 1  ;;  %v798_v5 = vrot.slane %v18939_v27, 2  ;;  %1359 = vmatpush1.bf16.msra.mxu1 %v15992_v59 }
 0x1ef   :  { %v538_v38 = vpop.f32.mrb[5].mxu0 }
 0x1f0   :  { %v18886_v41 = vpack.c.bf16 %v538_v38, %v15745_v31  ;;  %v15749_v42 = vpop.f32.mrb[6].mxu0  ;;  %v2137_v51 = vsel %vm2133_vm3, %v925_v33, %v2136_v36  ;;  %v18997_v19 = vor.u32 %v698_v48, %v18915_v4  ;;  %v15998_v36 = vld [vmem:[#allocation2 + $0x120] ss:$24 sps:$4 sm:$0xff]  }
 0x1f1   :  { %845 = vrot.lane.b32.xlu0 %v837_v32, %s18588_s20  ;;  %v18891_v44 = vpack.c.bf16 %v15749_v42, %v15748_v37  ;;  %v541_v45 = vpop.f32.mrb[7].mxu0  ;;  %v1957_v32 = vrot.slane %v18897_v52, 2 }
 0x1f2   :  { %21386 = vst [vmem:[#allocation27_spill] sm:$0xff] %v18886_v41  ;;  %v774_v47 = vrot.slane %v18886_v41, 1  ;;  %v838_v55 = vrot.slane %v18886_v41, 2  ;;  %v18902_v58 = vpack.c.bf16 %v541_v45, %v541_v45  ;;  %v902_v1 = vrot.slane %v18886_v41, 3 }
 0x1f3   :  { %v18933_v22 = vshll.u32 %v18891_v44, 16  ;;  %v18951_v38 = vshll.u32 %v18886_v41, 16  ;;  %v18956_v42 = vshrl.u32 %v18891_v44, 16  ;;  %v18986_v11 = vshrl.u32 %v18886_v41, 16 }
 0x1f4   :  { %783 = vrot.lane.b32.xlu1 %v774_v47, %s18587_s1  ;;  %v1923_v7 = vrot.slane %v18902_v58, 1  ;;  %v2021_v26 = vrot.slane %v18902_v58, 2  ;;  %v2103_v49 = vrot.slane %v18902_v58, 3  ;;  %v18994_v18 = vshll.u32 %v18902_v58, 16 }
 0x1f5   :  { %909 = vrot.lane.b32.xlu0 %v901_v50, %s18589_s21  ;;  %v712_v29 = vrot.slane %v18933_v22, 1  ;;  %v15989_v50 = vld [vmem:[#allocation2 + $0x100] ss:$24 sps:$4 sm:$0xff]   ;;  %v800_v43 = vrot.slane %v18986_v11, 1  ;;  %v928_v6 = vrot.slane %v18986_v11, 3 }
 0x1f6   :  { %v1924_v25 = vsel %vm1920_vm0, %v774_v47, %v1923_v7  ;;  %v2022_v45 = vsel %vm2018_vm1, %v838_v55, %v2021_v26  ;;  %v2104_v23 = vsel %vm2100_vm2, %v902_v1, %v2103_v49  ;;  %1505 = vmatpush1.bf16.msra.mxu0 %v15989_v50  ;;  %v16000_v26 = vld [vmem:[#allocation2 + $0x124] ss:$24 sps:$4 sm:$0xff]   ;;  %v864_v49 = vrot.slane %v18986_v11, 2 }
 0x1f7   :  { %v18968_v56 = vor.u32 %v712_v29, %v18956_v42  ;;  %v862_v29 = vrot.slane %v18939_v27, 3  ;;  %1360 = vmatprep.subr.bf16.mxu1 %v16000_v26  ;;  %v865_v50 = vrot.slane %v18951_v38, 3  ;;  %v1859_v26 = vrot.slane %v18897_v52, 1 }
 0x1f8   :  { %847 = vrot.lane.b32.xlu1 %v838_v55, %s18588_s20  ;;  %1361 = vmatpush1.bf16.msra.mxu1 %v15998_v36 }
 0x1f9   :  { %1937 = vrot.lane.b32.xlu0 %v1922_v60, %s18587_s1  ;;  %v15752_v62 = vpop.f32.mrb[8].mxu0 }
 0x1fa   :  { %v554_v0 = vpop.f32.mrb[9].mxu0 }
 0x1fb   :  { %v18919_v8 = vpop.f32.mrb[10].mxu0  ;;  %v18921_v12 = vpack.c.bf16 %v554_v0, %v554_v0  ;;  %v797_v0 = vrot.slane %v18915_v4, 1 }
 0x1fc   :  { %911 = vrot.lane.b32.xlu1 %v902_v1, %s18589_s21  ;;  %v557_v16 = vpop.f32.mrb[11].mxu0  ;;  %v19007_v28 = vpack.c.bf16 %v18919_v8, %v18919_v8  ;;  %v1956_v8 = vrot.slane %v18909_v61, 1 }
 0x1fd   :  { %2035 = vrot.lane.b32.xlu0 %v2020_v14, %s18588_s20  ;;  %v18930_v21 = vpack.c.bf16 %v15752_v62, %v557_v16  ;;  %v18942_v31 = vshll.u32 %v18921_v12, 16  ;;  %v705_v14 = vrot.slane %v18951_v38, 1  ;;  %v15997_v16 = vld [vmem:[#allocation2 + $0x134] ss:$24 sps:$4 sm:$0xff]   ;;  %v799_v48 = vor.u32 %v798_v5, %v797_v0 }
 0x1fe   :  { %1506 = vmatprep.subr.bf16.mxu0 %v15997_v16  ;;  %v19027_v61 = vshll.u32 %v19007_v28, 16  ;;  %v16006_v0 = vld [vmem:[#allocation2 + $0x154] ss:$24 sps:$4 sm:$0xff]  }
 0x1ff   :  { %v18971_v55 = vshll.u32 %v18930_v21, 16  ;;  %v1869_v57 = vrot.slane %v18942_v31, 1  ;;  %v19011_v30 = vshrl.u32 %v18930_v21, 16  ;;  %1362 = vmatprep.subr.bf16.mxu1 %v16006_v0  ;;  %v19155_v0 = vshrl.u32 %v19007_v28, 16 }
 0x200   :  { %1939 = vrot.lane.b32.xlu1 %v1924_v25, %s18587_s1  ;;  %v15995_v25 = vld [vmem:[#allocation2 + $0x130] ss:$24 sps:$4 sm:$0xff]   ;;  %v1874_v16 = vrot.slane %v19027_v61, 1  ;;  %v2065_v2 = vrot.slane %v19027_v61, 3 }
 0x201   :  { %2117 = vrot.lane.b32.xlu0 %v2102_v24, %s18589_s21  ;;  %v18948_v37 = vpop.f32.mrb[12].mxu0  ;;  %v18991_v15 = vsel %vm1855_vm4, %v18968_v56, %v1869_v57  ;;  %v19003_v24 = vshrl.u32 %v18902_v58, 16  ;;  %v719_v1 = vrot.slane %v18971_v55, 1  ;;  %v861_v58 = vrot.slane %v18915_v4, 2  ;;  %1507 = vmatpush1.bf16.msra.mxu0 %v15995_v25  ;;  %v16004_v57 = vld [vmem:[#allocation2 + $0x150] ss:$24 sps:$4 sm:$0xff]  }
 0x202   :  { %v570_v40 = vpop.f32.mrb[13].mxu0  ;;  %v1864_v25 = vrot.slane %v18994_v18, 1  ;;  %1363 = vmatpush1.bf16.msra.mxu1 %v16004_v57 }
 0x203   :  { %v15760_v46 = vpop.f32.mrb[0].mxu1  ;;  %v15757_v47 = vpop.f32.mrb[14].mxu0  ;;  %v2056_v59 = vrot.slane %v19003_v24, 2 }
 0x204   :  { %2037 = vrot.lane.b32.xlu1 %v2022_v45, %s18588_s20  ;;  %v586_v53 = vpop.f32.mrb[1].mxu1  ;;  %v573_v54 = vpop.f32.mrb[15].mxu0  ;;  %v801_v45 = vrot.slane %v18951_v38, 2 }
 0x205   :  { %2166 = vrot.lane.b32.xlu0 %v2137_v51, %s18590_s7  ;;  %v18975_v60 = vpack.c.bf16 %v586_v53, %v15757_v47  ;;  %v15761_v62 = vpop.f32.mrb[2].mxu1  ;;  %v18977_v63 = vpack.c.bf16 %v573_v54, %v570_v40  ;;  %v706_v40 = vor.u32 %v705_v14, %v18986_v11  ;;  %v16003_v47 = vld [vmem:[#allocation2 + $0x164] ss:$24 sps:$4 sm:$0xff]   ;;  %v16001_v51 = vld [vmem:[#allocation2 + $0x160] ss:$24 sps:$4 sm:$0xff]   ;;  %v1962_v53 = vrot.slane %v19003_v24, 1 }
 0x206   :  { %v18981_v7 = vpack.c.bf16 %v15761_v62, %v15760_v46  ;;  %v18983_v9 = vpop.f32.mrb[3].mxu1  ;;  %v926_v46 = vrot.slane %v18939_v27, 4  ;;  %v1963_v54 = vrot.slane %v18994_v18, 2  ;;  %v19033_v27 = vor.u32 %v719_v1, %v19011_v30  ;;  %1508 = vmatprep.subr.bf16.mxu0 %v16003_v47 }
 0x207   :  { %21387 = vst [vmem:[#allocation28_spill] sm:$0xff] %v18975_v60  ;;  %v2057_v62 = vrot.slane %v18994_v18, 3  ;;  %v802_v5 = vor.u32 %v801_v45, %v800_v43  ;;  %v929_v14 = vrot.slane %v18951_v38, 4  ;;  %v1958_v1 = vor.u32 %v1957_v32, %v1956_v8  ;;  %1509 = vmatpush1.bf16.msra.mxu0 %v16001_v51 }
 0x208   :  { %2119 = vrot.lane.b32.xlu1 %v2104_v23, %s18589_s21  ;;  %v863_v23 = vor.u32 %v862_v29, %v861_v58  ;;  %v1964_v36 = vor.u32 %v1963_v54, %v1962_v53  ;;  %v2138_v11 = vrot.slane %v19003_v24, 3  ;;  %v2139_v38 = vrot.slane %v18994_v18, 4 }
 0x209   :  { %749 = vrot.lane.b32.xlu0 %v18997_v19, %s18591_s28  ;;  %v19050_v43 = vsel %vm1855_vm4, %v19033_v27, %v1874_v16  ;;  %v927_v32 = vor.u32 %v926_v46, %v925_v33  ;;  %v2058_v29 = vor.u32 %v2057_v62, %v2056_v59  ;;  %v2054_v8 = vor.u32 %v2053_v39, %v2052_v35 }
 0x20a   :  { %21388 = vst [vmem:[#allocation29_spill] sm:$0xff] %v19050_v43  ;;  %v866_v45 = vor.u32 %v865_v50, %v864_v49  ;;  %v930_v18 = vor.u32 %v929_v14, %v928_v6  ;;  %v19061_v47 = vsel %vm1855_vm4, %v18997_v19, %v1859_v26  ;;  %v19064_v51 = vsel %vm1953_vm5, %v799_v48, %v1958_v1 }
 0x20b   :  { %v1865_v53 = vsel %vm1855_vm4, %v706_v40, %v1864_v25  ;;  %v19068_v4 = vsel %vm2051_vm6, %v863_v23, %v2054_v8  ;;  %v21315_v33 = vrot.slane %v18891_v44, 2  ;;  %v1965_v35 = vsel %vm1953_vm5, %v802_v5, %v1964_v36 }
 0x20c   :  { %751 = vrot.lane.b32.xlu1 %v706_v40, %s18591_s28  ;;  %v2140_v19 = vor.u32 %v2139_v38, %v2138_v11  ;;  %v21309_v40 = vrot.slane %v18981_v7, 1  ;;  %v19083_v50 = vsel %vm2051_vm6, %v866_v45, %v2058_v29  ;;  %v19086_v57 = vshrl.u32 %v18981_v7, 16 }
 0x20d   :  { %821 = vrot.lane.b32.xlu0 %v799_v48, %s18581_s11  ;;  %v19076_v48 = vshll.u32 %v18981_v7, 16  ;;  %v19090_v59 = vpack.c.bf16 %v18948_v37, %v18948_v37  ;;  %v19097_v14 = vpack.c.bf16 %v18983_v9, %v18983_v9  ;;  %v867_v16 = vrot.slane %v18956_v42, 2 }
 0x20e   :  { %v870_v25 = vrot.slane %v19011_v30, 2  ;;  %v21310_v37 = vrot.slane %v18981_v7, 2  ;;  %v19105_v26 = vsel %vm2133_vm3, %v928_v6, %v2140_v19  ;;  %v871_v36 = vrot.slane %v18971_v55, 3 }
 0x20f   :  { %21389 = vst [vmem:[#allocation30_spill] sm:$0xff] %v19090_v59  ;;  %21390 = vst [vmem:[#allocation31_spill] sm:$0xff] %v19097_v14  ;;  %v740_v1 = vrot.slane %v19076_v48, 1  ;;  %v815_v9 = vrot.slane %v19086_v57, 1  ;;  %v816_v11 = vrot.slane %v19076_v48, 2  ;;  %v879_v38 = vrot.slane %v19086_v57, 2 }
 0x210   :  { %823 = vrot.lane.b32.xlu1 %v802_v5, %s18581_s11  ;;  %v19120_v6 = vshrl.u32 %v19090_v59, 16  ;;  %v19123_v29 = vshrl.u32 %v18921_v12, 16  ;;  %v19126_v8 = vshrl.u32 %v18977_v63, 16  ;;  %v19135_v19 = vshll.u32 %v18977_v63, 16 }
 0x211   :  { %885 = vrot.lane.b32.xlu0 %v863_v23, %s18592_s22  ;;  %v15764_v58 = vpop.f32.mrb[4].mxu1  ;;  %v868_v23 = vrot.slane %v18933_v22, 3  ;;  %v19138_v62 = vshrl.u32 %v19097_v14, 16  ;;  %v19142_v52 = vor.u32 %v740_v1, %v19086_v57  ;;  %v19145_v5 = vor.u32 %v871_v36, %v870_v25 }
 0x212   :  { %v19057_v24 = vpop.f32.mrb[5].mxu1  ;;  %21391 = vst [vmem:[#allocation32_spill] sm:$0xff] %v19126_v8  ;;  %21392 = vst [vmem:[#allocation33_spill] sm:$0xff] %v19135_v19  ;;  %v809_v1 = vrot.slane %v19126_v8, 1  ;;  %v873_v46 = vrot.slane %v19126_v8, 2  ;;  %v19161_v25 = vshrl.u32 %v18975_v60, 16 }
 0x213   :  { %v15765_v54 = vpop.f32.mrb[6].mxu1  ;;  %v2060_v36 = vrot.slane %v19123_v29, 2  ;;  %v21396_v20 = vrot.slane %v18981_v7, 3  ;;  %v1980_v43 = vrot.slane %v19120_v6, 1 }
 0x214   :  { %887 = vrot.lane.b32.xlu1 %v866_v45, %s18592_s22  ;;  %v605_v39 = vpop.f32.mrb[7].mxu1  ;;  %v19129_v45 = vshll.u32 %v19097_v14, 16  ;;  %21393 = vst [vmem:[#allocation34_spill] sm:$0xff] %v19161_v25  ;;  %v19181_v17 = vpack.c.bf16 %v15765_v54, %v15765_v54  ;;  %v21399_v54 = vrot.slane %v18930_v21, 2 }
 0x215   :  { %949 = vrot.lane.b32.xlu0 %v927_v32, %s18590_s7  ;;  %v19080_v49 = vpack.c.bf16 %v15764_v58, %v605_v39  ;;  %v880_v58 = vrot.slane %v19076_v48, 3  ;;  %v19117_v32 = vshll.u32 %v19090_v59, 16  ;;  %v19132_v39 = vor.u32 %v868_v23, %v867_v16 }
 0x216   :  { %v19150_v16 = vor.u32 %v816_v11, %v815_v9  ;;  %v19166_v9 = vshll.u32 %v18975_v60, 16 }
 0x217   :  { %v19152_v23 = vor.u32 %v880_v58, %v879_v38  ;;  %v2061_v38 = vrot.slane %v18942_v31, 3  ;;  %v19176_v58 = vpack.c.bf16 %v19057_v24, %v19057_v24 }
 0x218   :  { %951 = vrot.lane.b32.xlu1 %v930_v18, %s18590_s7  ;;  %21394 = vst [vmem:[#allocation35_spill] sm:$0xff] %v19166_v9  ;;  %v2025_v18 = vrot.slane %v19007_v28, 2 }
 0x219   :  { %793 = vrot.lane.b32.xlu0 %v21309_v40, %s18587_s1  ;;  %v726_v40 = vrot.slane %v19135_v19, 1  ;;  %v2062_v24 = vor.u32 %v2061_v38, %v2060_v36  ;;  %v810_v36 = vrot.slane %v19135_v19, 2  ;;  %v874_v38 = vrot.slane %v19135_v19, 3 }
 0x21a   :  { %v19201_v3 = vsel %vm2018_vm1, %v21399_v54, %v2025_v18  ;;  %v733_v54 = vrot.slane %v19166_v9, 1 }
 0x21b   :  { %21400 = vst [vmem:[#allocation38_spill] sm:$0xff] %v19201_v3  ;;  %v19210_v14 = vsel %vm2051_vm6, %v19132_v39, %v2062_v24  ;;  %v19219_v18 = vor.u32 %v726_v40, %v19126_v8  ;;  %v21402_v3 = vrot.slane %v18930_v21, 3  ;;  %v19233_v40 = vshll.u32 %v19181_v17, 16 }
 0x21c   :  { %1898 = vrot.lane.b32.xlu1 %v1865_v53, %s18591_s28  ;;  %v2023_v53 = vrot.slane %v18921_v12, 2  ;;  %21401 = vst [vmem:[#allocation39_spill] sm:$0xff] %v19210_v14  ;;  %v19244_v34 = vor.u32 %v810_v36, %v809_v1  ;;  %v19261_v1 = vor.u32 %v733_v54, %v19161_v25  ;;  %v877_v36 = vrot.slane %v19166_v9, 3 }
 0x21d   :  { %857 = vrot.lane.b32.xlu0 %v21310_v37, %s18588_s20  ;;  %v2105_v37 = vrot.slane %v18921_v12, 3  ;;  %v21410_v8 = vrot.slane %v18981_v7, 2 }
 0x21e   :  { %v19171_v11 = vsel %vm2018_vm1, %v21315_v33, %v2023_v53  ;;  %v19187_v53 = vshrl.u32 %v19080_v49, 16  ;;  %v19190_v33 = vshll.u32 %v19080_v49, 16 }
 0x21f   :  { %21395 = vst [vmem:[#allocation36_spill] sm:$0xff] %v19171_v11 }
 0x220   :  { %2004 = vrot.lane.b32.xlu1 %v1965_v35, %s18581_s11  ;;  %v21397_v35 = vrot.slane %v18891_v44, 3  ;;  %v747_v24 = vrot.slane %v19190_v33, 1  ;;  %v818_v59 = vrot.slane %v19187_v53, 1  ;;  %v882_v11 = vrot.slane %v19187_v53, 2 }
 0x221   :  { %921 = vrot.lane.b32.xlu0 %v21396_v20, %s18589_s21  ;;  %v2064_v20 = vrot.slane %v19155_v0, 2  ;;  %v883_v41 = vrot.slane %v19190_v33, 3 }
 0x222   :  { %v19196_v10 = vsel %vm2100_vm2, %v21397_v35, %v2105_v37  ;;  %v2107_v37 = vrot.slane %v19007_v28, 3  ;;  %v19214_v35 = vshll.u32 %v19176_v58, 16 }
 0x223   :  { %21398 = vst [vmem:[#allocation37_spill] sm:$0xff] %v19196_v10  ;;  %v2066_v13 = vor.u32 %v2065_v2, %v2064_v20  ;;  %v819_v10 = vrot.slane %v19190_v33, 2  ;;  %v844_v2 = vrot.slane %v19080_v49, 2  ;;  %v19256_v20 = vor.u32 %v747_v24, %v19187_v53 }
 0x224   :  { %2086 = vrot.lane.b32.xlu1 %v19083_v50, %s18592_s22  ;;  %v19230_v14 = vsel %vm2100_vm2, %v21402_v3, %v2107_v37  ;;  %v780_v50 = vrot.slane %v19080_v49, 1  ;;  %v19248_v3 = vor.u32 %v874_v38, %v873_v46  ;;  %v812_v37 = vrot.slane %v19161_v25, 1 }
 0x225   :  { %1896 = vrot.lane.b32.xlu0 %v19061_v47, %s18591_s28  ;;  %21403 = vst [vmem:[#allocation40_spill] sm:$0xff] %v19230_v14  ;;  %v19239_v47 = vsel %vm2051_vm6, %v19145_v5, %v2066_v13  ;;  %v813_v14 = vrot.slane %v19166_v9, 2  ;;  %v1889_v13 = vrot.slane %v19214_v35, 1  ;;  %v1933_v46 = vrot.slane %v19176_v58, 1 }
 0x226   :  { %21404 = vst [vmem:[#allocation41_spill] sm:$0xff] %v19239_v47  ;;  %v19258_v47 = vor.u32 %v819_v10, %v818_v59  ;;  %v19273_v24 = vor.u32 %v883_v41, %v882_v11  ;;  %v21406_v10 = vrot.slane %v18981_v7, 1  ;;  %v1993_v54 = vrot.slane %v19214_v35, 2 }
 0x227   :  { %v19268_v38 = vsel %vm1855_vm4, %v19142_v52, %v1889_v13  ;;  %v19283_v9 = vor.u32 %v813_v14, %v812_v37  ;;  %v2031_v41 = vrot.slane %v19176_v58, 2  ;;  %v1879_v14 = vrot.slane %v19117_v32, 1 }
 0x228   :  { %2168 = vrot.lane.b32.xlu1 %v19105_v26, %s18590_s7  ;;  %v876_v26 = vrot.slane %v19161_v25, 2  ;;  %21405 = vst [vmem:[#allocation42_spill] sm:$0xff] %v19268_v38  ;;  %v19278_v59 = vsel %vm1920_vm0, %v21406_v10, %v1933_v46  ;;  %v1894_v25 = vrot.slane %v19233_v40, 1  ;;  %v1935_v38 = vrot.slane %v19181_v17, 1 }
 0x229   :  { %2002 = vrot.lane.b32.xlu0 %v19064_v51, %s18581_s11  ;;  %v19271_v51 = vshrl.u32 %v19176_v58, 16  ;;  %21407 = vst [vmem:[#allocation43_spill] sm:$0xff] %v19278_v59  ;;  %v1996_v46 = vshrl.u32 %v19181_v17, 16  ;;  %v1999_v10 = vrot.slane %v19233_v40, 2 }
 0x22a   :  { %v19292_v11 = vsel %vm1855_vm4, %v19256_v20, %v1894_v25  ;;  %v19297_v37 = vor.u32 %v877_v36, %v876_v26  ;;  %v19300_v19 = vsel %vm1920_vm0, %v780_v50, %v1935_v38  ;;  %v19309_v25 = vsel %vm1855_vm4, %v19219_v18, %v1879_v14 }
 0x22b   :  { %v1992_v13 = vrot.slane %v19271_v51, 1  ;;  %21408 = vst [vmem:[#allocation44_spill] sm:$0xff] %v19292_v11  ;;  %21409 = vst [vmem:[#allocation45_spill] sm:$0xff] %v19300_v19  ;;  %v1998_v60 = vrot.slane %v1996_v46, 1  ;;  %v2033_v11 = vrot.slane %v19181_v17, 2  ;;  %v1981_v26 = vrot.slane %v19117_v32, 2 }
 0x22c   :  { %795 = vrot.lane.b32.xlu1 %v780_v50, %s18587_s1  ;;  %21412 = vst [vmem:[#allocation47_spill] sm:$0xff] %v19309_v25  ;;  %v2068_v36 = vrot.slane %v19120_v6, 2  ;;  %v21413_v38 = vrot.slane %v18891_v44, 1  ;;  %v1986_v14 = vrot.slane %v19138_v62, 1  ;;  %v2076_v19 = vrot.slane %v19271_v51, 2 }
 0x22d   :  { %2084 = vrot.lane.b32.xlu0 %v19068_v4, %s18592_s22  ;;  %v1994_v59 = vor.u32 %v1993_v54, %v1992_v13  ;;  %v19305_v4 = vsel %vm2018_vm1, %v21410_v8, %v2031_v41  ;;  %v1884_v8 = vrot.slane %v19129_v45, 1  ;;  %v2000_v54 = vor.u32 %v1999_v10, %v1998_v60 }
 0x22e   :  { %21411 = vst [vmem:[#allocation46_spill] sm:$0xff] %v19305_v4  ;;  %v19325_v13 = vsel %vm2018_vm1, %v844_v2, %v2033_v11  ;;  %v2069_v41 = vrot.slane %v19117_v32, 3  ;;  %v1987_v4 = vrot.slane %v19129_v45, 2  ;;  %v2072_v11 = vrot.slane %v19138_v62, 2 }
 0x22f   :  { %v19316_v50 = vsel %vm1953_vm5, %v19150_v16, %v1994_v59  ;;  %21414 = vst [vmem:[#allocation48_spill] sm:$0xff] %v19325_v13  ;;  %v1982_v59 = vor.u32 %v1981_v26, %v1980_v43  ;;  %v19331_v25 = vsel %vm1855_vm4, %v19261_v1, %v1884_v8  ;;  %v21416_v43 = vrot.slane %v19080_v49, 3 }
 0x230   :  { %859 = vrot.lane.b32.xlu1 %v844_v2, %s18588_s20  ;;  %21415 = vst [vmem:[#allocation49_spill] sm:$0xff] %v19331_v25  ;;  %v2070_v60 = vor.u32 %v2069_v41, %v2068_v36  ;;  %v2077_v2 = vrot.slane %v19214_v35, 3  ;;  %v1988_v26 = vor.u32 %v1987_v4, %v1986_v14  ;;  %v2073_v8 = vrot.slane %v19129_v45, 3 }
 0x231   :  { %785 = vrot.lane.b32.xlu0 %v21413_v38, %s18587_s1  ;;  %v19337_v38 = vsel %vm1953_vm5, %v19258_v47, %v2000_v54  ;;  %v19346_v10 = vsel %vm1953_vm5, %v19244_v34, %v1982_v59  ;;  %v2113_v25 = vrot.slane %v19176_v58, 3  ;;  %v21417_v36 = vrot.slane %v18891_v44, 2 }
 0x232   :  { %v19355_v54 = vsel %vm2051_vm6, %v19248_v3, %v2070_v60  ;;  %v2078_v41 = vor.u32 %v2077_v2, %v2076_v19  ;;  %v2080_v13 = vrot.slane %v1996_v46, 2  ;;  %v19360_v59 = vsel %vm1953_vm5, %v19283_v9, %v1988_v26 }
 0x233   :  { %21418 = vst [vmem:[#allocation50_spill] sm:$0xff] %v19355_v54  ;;  %v2074_v4 = vor.u32 %v2073_v8, %v2072_v11  ;;  %v21419_v14 = vrot.slane %v18981_v7, 3  ;;  %v2159_v2 = vrot.slane %v19214_v35, 4  ;;  %v2115_v54 = vrot.slane %v19181_v17, 3 }
 0x234   :  { %923 = vrot.lane.b32.xlu1 %v21416_v43, %s18589_s21  ;;  %v2081_v43 = vrot.slane %v19233_v40, 3  ;;  %v19370_v60 = vsel %vm2051_vm6, %v19152_v23, %v2078_v41  ;;  %v21420_v26 = vrot.slane %v18930_v21, 1  ;;  %v946_v11 = vrot.slane %v19187_v53, 3 }
 0x235   :  { %849 = vrot.lane.b32.xlu0 %v21417_v36, %s18588_s20  ;;  %v19365_v58 = vsel %vm2100_vm2, %v21419_v14, %v2113_v25  ;;  %v2158_v36 = vrot.slane %v19271_v51, 3  ;;  %v19380_v25 = vsel %vm2051_vm6, %v19297_v37, %v2074_v4  ;;  %v2162_v51 = vrot.slane %v1996_v46, 3 }
 0x236   :  { %v2082_v19 = vor.u32 %v2081_v43, %v2080_v13  ;;  %v2163_v8 = vrot.slane %v19233_v40, 4  ;;  %v21421_v13 = vrot.slane %v18891_v44, 3  ;;  %v21422_v41 = vrot.slane %v19080_v49, 3 }
 0x237   :  { %v2160_v35 = vor.u32 %v2159_v2, %v2158_v36  ;;  %v21423_v4 = vrot.slane %v19086_v57, 3  ;;  %v21424_v40 = vrot.slane %v18930_v21, 2  ;;  %v1927_v36 = vrot.slane %v19007_v28, 1 }
 0x238   :  { %787 = vrot.lane.b32.xlu1 %v21420_v26, %s18587_s1  ;;  %v19388_v17 = vsel %vm2051_vm6, %v19273_v24, %v2082_v19  ;;  %v19393_v53 = vsel %vm2100_vm2, %v21422_v41, %v2115_v54  ;;  %v2164_v43 = vor.u32 %v2163_v8, %v2162_v51  ;;  %v21425_v54 = vrot.slane %v18930_v21, 3 }
 0x239   :  { %913 = vrot.lane.b32.xlu0 %v21421_v13, %s18589_s21  ;;  %v19398_v46 = vsel %vm2133_vm3, %v21423_v4, %v2160_v35  ;;  %v21426_v19 = vmov %v21420_v26  ;;  %v944_v26 = vrot.slane %v19076_v48, 4  ;;  %v21427_v28 = vmov %v21423_v4 }
 0x23a   :  { %v19404_v14 = vsel %vm2133_vm3, %v946_v11, %v2164_v43  ;;  %v1928_v2 = vsel %vm1920_vm0, %v21426_v19, %v1927_v36  ;;  %v804_v51 = vrot.slane %v18933_v22, 2  ;;  %v947_v48 = vrot.slane %v19190_v33, 4 }
 0x23b   :  { %v932_v8 = vrot.slane %v18933_v22, 4  ;;  %v807_v33 = vrot.slane %v18971_v55, 2  ;;  %v1969_v35 = vrot.slane %v18942_v31, 2  ;;  %v934_v41 = vrot.slane %v19011_v30, 3 }
 0x23c   :  { %851 = vrot.lane.b32.xlu1 %v21424_v40, %s18588_s20  ;;  %v948_v57 = vor.u32 %v947_v48, %v946_v11  ;;  %v21428_v11 = vrot.slane %v18891_v44, 1  ;;  %v1974_v36 = vrot.slane %v19155_v0, 1  ;;  %v16009_v48 = vld [vmem:[#allocation2 + $0xc] ss:$24 sps:$4 sm:$0xff]   ;;  %vm3468_vm4 = vcmask 1047559  }
 0x23d   :  { %761 = vrot.lane.b32.xlu0 %v19142_v52, %s18591_s28  ;;  %v945_v52 = vor.u32 %v944_v26, %v21427_v28  ;;  %v21429_v26 = vld [vmem:[#allocation29_spill] sm:$0xff]  ;;  %1421 = vmatprep.subr.bf16.mxu1 %v16009_v48 }
 0x23e   :  { %2391 = vmatprep.subr.bf16.mxu0 %v16009_v48 }
 0x240   :  { %915 = vrot.lane.b32.xlu1 %v21425_v54, %s18589_s21  ;;  %v1975_v54 = vrot.slane %v19027_v61, 2 }
 0x241   :  { %833 = vrot.lane.b32.xlu0 %v19150_v16, %s18581_s11  ;;  %v803_v16 = vrot.slane %v18956_v42, 1 }
 0x244   :  { %1943 = vrot.lane.b32.xlu1 %v1928_v2, %s18587_s1  ;;  %v1976_v2 = vor.u32 %v1975_v54, %v1974_v36  ;;  %v21432_v36 = vld [vmem:[#allocation33_spill] sm:$0xff] }
 0x245   :  { %897 = vrot.lane.b32.xlu0 %v19152_v23, %s18592_s22  ;;  %v805_v23 = vor.u32 %v804_v51, %v803_v16  ;;  %v841_v16 = vrot.slane %v18977_v63, 2 }
 0x248   :  { %763 = vrot.lane.b32.xlu1 %v19256_v20, %s18591_s28  ;;  %v931_v20 = vrot.slane %v18956_v42, 3 }
 0x249   :  { %961 = vrot.lane.b32.xlu0 %v945_v52, %s18590_s7 }
 0x24c   :  { %835 = vrot.lane.b32.xlu1 %v19258_v47, %s18581_s11  ;;  %v933_v47 = vor.u32 %v932_v8, %v931_v20 }
 0x24d   :  { %753 = vrot.lane.b32.xlu0 %v18968_v56, %s18591_s28  ;;  %v806_v56 = vrot.slane %v19011_v30, 1  ;;  %v16021_v30 = vld [vmem:[#allocation2 + $0xcc] ss:$24 sps:$4 sm:$0xff]  }
 0x24f   :  { %v808_v22 = vor.u32 %v807_v33, %v806_v56  ;;  %v21344_v33 = vrot.slane %v18977_v63, 3 }
 0x250   :  { %899 = vrot.lane.b32.xlu1 %v19273_v24, %s18592_s22  ;;  %v1925_v24 = vrot.slane %v18921_v12, 1 }
 0x251   :  { %825 = vrot.lane.b32.xlu0 %v805_v23, %s18581_s11  ;;  %v1977_v51 = vsel %vm1953_vm5, %v808_v22, %v1976_v2 }
 0x252   :  { %v1926_v13 = vsel %vm1920_vm0, %v21428_v11, %v1925_v24 }
 0x254   :  { %963 = vrot.lane.b32.xlu1 %v948_v57, %s18590_s7  ;;  %v21430_v57 = vld [vmem:[#allocation28_spill] sm:$0xff] }
 0x255   :  { %889 = vrot.lane.b32.xlu0 %v19132_v39, %s18592_s22  ;;  %v1968_v39 = vrot.slane %v19123_v29, 1  ;;  %v21345_v8 = vrot.slane %v21430_v57, 1  ;;  %v21343_v24 = vrot.slane %v21430_v57, 2 }
 0x257   :  { %v1970_v43 = vor.u32 %v1969_v35, %v1968_v39 }
 0x258   :  { %755 = vrot.lane.b32.xlu1 %v19033_v27, %s18591_s28  ;;  %v935_v27 = vrot.slane %v18971_v55, 4 }
 0x259   :  { %953 = vrot.lane.b32.xlu0 %v933_v47, %s18590_s7  ;;  %v1971_v19 = vsel %vm1953_vm5, %v805_v23, %v1970_v43  ;;  %v21431_v43 = vld [vmem:[#allocation32_spill] sm:$0xff] }
 0x25a   :  { %v936_v4 = vor.u32 %v935_v27, %v934_v41 }
 0x25c   :  { %827 = vrot.lane.b32.xlu1 %v808_v22, %s18581_s11 }
 0x25d   :  { %1941 = vrot.lane.b32.xlu0 %v1926_v13, %s18587_s1  ;;  %v21342_v13 = vrot.slane %v21430_v57, 3 }
 0x25f   :  { %v782_v12 = vpop.permute.xlu0 %781 }
 0x260   :  { %891 = vrot.lane.b32.xlu1 %v19145_v5, %s18592_s22 }
 0x261   :  { %1900 = vrot.lane.b32.xlu0 %v18991_v15, %s18591_s28  ;;  %v777_v15 = vrot.slane %v18977_v63, 1 }
 0x263   :  { %v19464_v40 = vpop.permute.xlu0 %845 }
 0x264   :  { %955 = vrot.lane.b32.xlu1 %v936_v4, %s18590_s7  ;;  %v937_v4 = vrot.slane %v21431_v43, 3  ;;  %v16025_v43 = vld [vmem:[#allocation2 + $0x128] ss:$24 sps:$4 sm:$0xff]  }
 0x265   :  { %2006 = vrot.lane.b32.xlu0 %v1971_v19, %s18581_s11  ;;  %v21433_v19 = vld [vmem:[#allocation26_spill] sm:$0xff] }
 0x266   :  { %v784_v55 = vpop.permute.xlu1 %783 }
 0x267   :  { %v19471_v5 = vpop.permute.xlu0 %909 }
 0x268   :  { %1902 = vrot.lane.b32.xlu1 %v21429_v26, %s18591_s28  ;;  %v21434_v26 = vld [vmem:[#allocation27_spill] sm:$0xff] }
 0x269   :  { %789 = vrot.lane.b32.xlu0 %v777_v15, %s18587_s1 }
 0x26a   :  { %v848_v28 = vpop.permute.xlu1 %847 }
 0x26b   :  { %v19479_v52 = vpop.permute.xlu0 %1937 }
 0x26c   :  { %2008 = vrot.lane.b32.xlu1 %v1977_v51, %s18581_s11 }
 0x26d   :  { %853 = vrot.lane.b32.xlu0 %v841_v16, %s18588_s20 }
 0x26e   :  { %v912_v23 = vpop.permute.xlu1 %911 }
 0x26f   :  { %v19488_v56 = vpop.permute.xlu0 %2035 }
 0x270   :  { %791 = vrot.lane.b32.xlu1 %v21345_v8, %s18587_s1 }
 0x271   :  { %917 = vrot.lane.b32.xlu0 %v21344_v33, %s18589_s21 }
 0x272   :  { %v19497_v47 = vpop.permute.xlu1 %1939 }
 0x273   :  { %v19500_v22 = vpop.permute.xlu0 %2117 }
 0x274   :  { %855 = vrot.lane.b32.xlu1 %v21343_v24, %s18588_s20  ;;  %v21436_v24 = vld [vmem:[#allocation35_spill] sm:$0xff] }
 0x275   :  { %757 = vrot.lane.b32.xlu0 %v19219_v18, %s18591_s28  ;;  %v938_v18 = vrot.slane %v21432_v36, 4 }
 0x276   :  { %v19507_v11 = vpop.permute.xlu1 %2037 }
 0x277   :  { %v19510_v39 = vpop.permute.xlu0 %2166  ;;  %v939_v48 = vor.u32 %v938_v18, %v937_v4 }
 0x278   :  { %919 = vrot.lane.b32.xlu1 %v21342_v13, %s18589_s21 }
 0x279   :  { %829 = vrot.lane.b32.xlu0 %v19244_v34, %s18581_s11 }
 0x27a   :  { %v19517_v35 = vpop.permute.xlu1 %2119 }
 0x27b   :  { %v750_v27 = vpop.permute.xlu0 %749 }
 0x27c   :  { %759 = vrot.lane.b32.xlu1 %v19261_v1, %s18591_s28  ;;  %v967_v2 = vsel %vm965_vm7, %v21433_v19, %v750_v27  ;;  %v21435_v27 = vld [vmem:[#allocation34_spill] sm:$0xff] }
 0x27d   :  { %893 = vrot.lane.b32.xlu0 %v19248_v3, %s18592_s22  ;;  %v984_v3 = vsel %vm982_vm8, %v967_v2, %v782_v12  ;;  %v940_v13 = vrot.slane %v21435_v27, 3  ;;  %v18335_v27 = vld [vmem:[#allocation2 + $0x4] ss:$24 sps:$4 sm:$0xff]  }
 0x27e   :  { %v752_v54 = vpop.permute.xlu1 %751 }
 0x27f   :  { %v969_v34 = vsel %vm965_vm7, %v21434_v26, %v752_v54  ;;  %v822_v51 = vpop.permute.xlu0 %821  ;;  %v941_v54 = vrot.slane %v21436_v24, 4 }
 0x280   :  { %831 = vrot.lane.b32.xlu1 %v19283_v9, %s18581_s11  ;;  %v986_v1 = vsel %vm982_vm8, %v969_v34, %v784_v55  ;;  %v1001_v33 = vsel %vm999_vm9, %v984_v3, %v822_v51  ;;  %v21437_v9 = vld [vmem:[#allocation36_spill] sm:$0xff]  ;;  %v2143_v3 = vrot.slane %v18942_v31, 4  ;;  %v21439_v31 = vld [vmem:[#allocation38_spill] sm:$0xff] }
 0x281   :  { %957 = vrot.lane.b32.xlu0 %v939_v48, %s18590_s7  ;;  %v1018_v12 = vsel %vm1016_vm10, %v1001_v33, %v19464_v40  ;;  %v942_v24 = vor.u32 %v941_v54, %v940_v13  ;;  %v21438_v40 = vld [vmem:[#allocation39_spill] sm:$0xff] }
 0x282   :  { %v824_v36 = vpop.permute.xlu1 %823 }
 0x283   :  { %v1003_v8 = vsel %vm999_vm9, %v986_v1, %v824_v36  ;;  %v886_v18 = vpop.permute.xlu0 %885  ;;  %v16007_v1 = vld [vmem:[#allocation2 + $0x8] ss:$24 sps:$4 sm:$0xff]  }
 0x284   :  { %895 = vrot.lane.b32.xlu1 %v19297_v37, %s18592_s22  ;;  %v1020_v55 = vsel %vm1016_vm10, %v1003_v8, %v848_v28  ;;  %v1035_v34 = vsel %vm1033_vm11, %v1018_v12, %v886_v18  ;;  %v2142_v37 = vrot.slane %v19123_v29, 3  ;;  %v16012_v12 = vld [vmem:[#allocation2 + $0x3c] ss:$24 sps:$4 sm:$0xff]  }
 0x285   :  { %2039 = vrot.lane.b32.xlu0 %v21437_v9, %s18588_s20  ;;  %v1052_v28 = vsel %vm1050_vm12, %v1035_v34, %v19471_v5  ;;  %v2146_v34 = vrot.slane %v19155_v0, 3 }
 0x286   :  { %v888_v2 = vpop.permute.xlu1 %887  ;;  %v2144_v29 = vor.u32 %v2143_v3, %v2142_v37  ;;  %v21442_v3 = vld [vmem:[#allocation41_spill] sm:$0xff] }
 0x287   :  { %v1037_v51 = vsel %vm1033_vm11, %v1020_v55, %v888_v2  ;;  %v950_v48 = vpop.permute.xlu0 %949  ;;  %v21440_v55 = vld [vmem:[#allocation37_spill] sm:$0xff] }
 0x288   :  { %959 = vrot.lane.b32.xlu1 %v942_v24, %s18590_s7  ;;  %v1054_v8 = vsel %vm1050_vm12, %v1037_v51, %v912_v23  ;;  %v1069_v36 = vsel %vm1067_vm13, %v1052_v28, %v950_v48  ;;  %v16010_v23 = vld [vmem:[#allocation2 + $0x38] ss:$24 sps:$4 sm:$0xff]   ;;  %v2147_v51 = vrot.slane %v19027_v61, 4  ;;  %v21441_v48 = vmov 0  }
 0x289   :  { %2088 = vrot.lane.b32.xlu0 %v21438_v40, %s18592_s22  ;;  %v2145_v37 = vsel %vm2133_vm3, %v931_v20, %v2144_v29  ;;  %v21443_v40 = vld [vmem:[#allocation30_spill] sm:$0xff] }
 0x28a   :  { %v952_v33 = vpop.permute.xlu1 %951  ;;  %v1929_v28 = vrot.slane %v21443_v40, 1 }
 0x28b   :  { %v1071_v54 = vsel %vm1067_vm13, %v1054_v8, %v952_v33  ;;  %v19561_v18 = vpop.permute.xlu0 %793  ;;  %v16013_v8 = vld [vmem:[#allocation2 + $0x68] ss:$24 sps:$4 sm:$0xff]   ;;  %v2148_v33 = vor.u32 %v2147_v51, %v2146_v34 }
 0x28c   :  { %v19563_v9 = vcombine.low %v1069_v36, %v1071_v54  ;;  %2041 = vrot.lane.b32.xlu1 %v21439_v31, %s18588_s20  ;;  %v1930_v36 = vsel %vm1920_vm0, %v777_v15, %v1929_v28  ;;  %v21444_v54 = vld [vmem:[#allocation40_spill] sm:$0xff]  ;;  %v21445_v34 = vld [vmem:[#allocation31_spill] sm:$0xff] }
 0x28d   :  { %2121 = vrot.lane.b32.xlu0 %v21440_v55, %s18589_s21  ;;  %v1931_v51 = vrot.slane %v21445_v34, 1 }
 0x28e   :  { %v1899_v5 = vpop.permute.xlu1 %1898  ;;  %1381 = vmatmul.mubr.bf16.vlgmr.msra.gmra.mrb[8].mxu1 %v19563_v9  ;;  %1527 = vmatmul.mubr.bf16.vlgmr.msra.gmra.mrb[16].mxu0 %v19563_v9 }
 0x28f   :  { %v2185_v2 = vsel %vm965_vm7, %v21434_v26, %v1899_v5  ;;  %v19573_v24 = vpop.permute.xlu0 %857  ;;  %1390 = vmatprep.mubr.bf16.mxu1 %v21441_v48  ;;  %1536 = vmatprep.mubr.bf16.mxu0 %v21441_v48  ;;  %v16015_v26 = vld [vmem:[#allocation2 + $0x6c] ss:$24 sps:$4 sm:$0xff]   ;;  %v2149_v5 = vsel %vm2133_vm3, %v934_v41, %v2148_v33  ;;  %v16024_v33 = vld [vmem:[#allocation2 + $0xfc] ss:$24 sps:$4 sm:$0xff]  }
 0x290   :  { %2090 = vrot.lane.b32.xlu1 %v21442_v3, %s18592_s22  ;;  %1422 = vmatpush1.bf16.msra.mxu1 %v16007_v1  ;;  %v2201_v61 = vsel %vm982_vm8, %v2185_v2, %v19497_v47  ;;  %v16018_v47 = vld [vmem:[#allocation2 + $0x9c] ss:$24 sps:$4 sm:$0xff]   ;;  %v2109_v2 = vrot.slane %v21443_v40, 3  ;;  %v2151_v3 = vrot.slane %v19117_v32, 4  ;;  %v21446_v32 = vrot.slane %v21430_v57, 1 }
 0x291   :  { %2170 = vrot.lane.b32.xlu0 %v2145_v37, %s18590_s7  ;;  %2392 = vmatpush1.bf16.msra.mxu0 %v16007_v1  ;;  %v2027_v1 = vrot.slane %v21443_v40, 2  ;;  %v2150_v37 = vrot.slane %v19120_v6, 3 }
 0x292   :  { %v2005_v0 = vpop.permute.xlu1 %2004  ;;  %1423 = vmatprep.subr.bf16.mxu1 %v16012_v12  ;;  %2393 = vmatprep.subr.bf16.mxu0 %v16012_v12  ;;  %v16016_v12 = vld [vmem:[#allocation2 + $0x98] ss:$24 sps:$4 sm:$0xff]  }
 0x293   :  { %v2217_v42 = vsel %vm999_vm9, %v2201_v61, %v2005_v0  ;;  %v19589_v20 = vpop.permute.xlu0 %921  ;;  %v2029_v61 = vrot.slane %v21445_v34, 2 }
 0x294   :  { %2123 = vrot.lane.b32.xlu1 %v21444_v54, %s18589_s21  ;;  %1424 = vmatpush1.bf16.msra.mxu1 %v16010_v23  ;;  %v2233_v31 = vsel %vm1016_vm10, %v2217_v42, %v19507_v11  ;;  %v2028_v11 = vsel %vm2018_vm1, %v841_v16, %v2027_v1  ;;  %v2152_v42 = vor.u32 %v2151_v3, %v2150_v37  ;;  %v16022_v54 = vld [vmem:[#allocation2 + $0xf8] ss:$24 sps:$4 sm:$0xff]  }
 0x295   :  { %1945 = vrot.lane.b32.xlu0 %v1930_v36, %s18587_s1  ;;  %2394 = vmatpush1.bf16.msra.mxu0 %v16010_v23  ;;  %v2111_v36 = vrot.slane %v21445_v34, 3  ;;  %v16028_v3 = vld [vmem:[#allocation2 + $0x158] ss:$24 sps:$4 sm:$0xff]  }
 0x296   :  { %v2087_v29 = vpop.permute.xlu1 %2086  ;;  %1425 = vmatprep.subr.bf16.mxu1 %v16015_v26  ;;  %2395 = vmatprep.subr.bf16.mxu0 %v16015_v26  ;;  %v1932_v26 = vsel %vm1920_vm0, %v21446_v32, %v1931_v51  ;;  %v21449_v51 = vrot.slane %v21430_v57, 3  ;;  %vm3456_vm0 = vcmask 1043459  }
 0x297   :  { %v2249_v55 = vsel %vm1033_vm11, %v2233_v31, %v2087_v29  ;;  %v1897_v15 = vpop.permute.xlu0 %1896  ;;  %v21448_v31 = vrot.slane %v21430_v57, 2 }
 0x298   :  { %v2183_v23 = vsel %vm965_vm7, %v21433_v19, %v1897_v15  ;;  %2172 = vrot.lane.b32.xlu1 %v2149_v5, %s18590_s7  ;;  %1426 = vmatpush1.bf16.msra.mxu1 %v16013_v8  ;;  %v2265_v41 = vsel %vm1050_vm12, %v2249_v55, %v19517_v35  ;;  %v16019_v19 = vld [vmem:[#allocation2 + $0xc8] ss:$24 sps:$4 sm:$0xff]   ;;  %v21447_v35 = vrot.slane %v18977_v63, 3  ;;  %v2154_v55 = vrot.slane %v19138_v62, 3 }
 0x299   :  { %2043 = vrot.lane.b32.xlu0 %v2028_v11, %s18588_s20  ;;  %2396 = vmatpush1.bf16.msra.mxu0 %v16013_v8  ;;  %v2199_v28 = vsel %vm982_vm8, %v2183_v23, %v19479_v52  ;;  %v2030_v29 = vsel %vm2018_vm1, %v21448_v31, %v2029_v61  ;;  %v2155_v15 = vrot.slane %v19129_v45, 4  ;;  %v2153_v5 = vsel %vm2133_vm3, %v937_v4, %v2152_v42  ;;  %v16030_v11 = vld [vmem:[#allocation2 + $0x15c] ss:$24 sps:$4 sm:$0xff]   ;;  %v21454_v61 = vld [vmem:[#allocation46_spill] sm:$0xff]  ;;  %v21455_v42 = vld [vmem:[#allocation47_spill] sm:$0xff] }
 0x29a   :  { %v2169_v40 = vpop.permute.xlu1 %2168  ;;  %1427 = vmatprep.subr.bf16.mxu1 %v16018_v47  ;;  %2397 = vmatprep.subr.bf16.mxu0 %v16018_v47  ;;  %v2110_v8 = vsel %vm2100_vm2, %v21447_v35, %v2109_v2  ;;  %v16027_v2 = vld [vmem:[#allocation2 + $0x12c] ss:$24 sps:$4 sm:$0xff]   ;;  %v2112_v23 = vsel %vm2100_vm2, %v21449_v51, %v2111_v36  ;;  %vm3459_vm1 = vcmask 1044484   ;;  %vm3462_vm2 = vcmask 1045509  }
 0x29b   :  { %v2281_v16 = vsel %vm1067_vm13, %v2265_v41, %v2169_v40  ;;  %v2003_v6 = vpop.permute.xlu0 %2002  ;;  %v21451_v40 = vld [vmem:[#allocation43_spill] sm:$0xff] }
 0x29c   :  { %v2215_v0 = vsel %vm999_vm9, %v2199_v28, %v2003_v6  ;;  %1947 = vrot.lane.b32.xlu1 %v1932_v26, %s18587_s1  ;;  %1428 = vmatpush1.bf16.msra.mxu1 %v16016_v12  ;;  %v21452_v28 = vld [vmem:[#allocation44_spill] sm:$0xff]  ;;  %v21453_v26 = vld [vmem:[#allocation45_spill] sm:$0xff] }
 0x29d   :  { %2125 = vrot.lane.b32.xlu0 %v2110_v8, %s18589_s21  ;;  %2398 = vmatpush1.bf16.msra.mxu0 %v16016_v12  ;;  %v2231_v1 = vsel %vm1016_vm10, %v2215_v0, %v19488_v56 }
 0x29e   :  { %v19630_v52 = vpop.permute.xlu1 %795  ;;  %1429 = vmatprep.subr.bf16.mxu1 %v16021_v30  ;;  %2399 = vmatprep.subr.bf16.mxu0 %v16021_v30 }
 0x29f   :  { %v2085_v47 = vpop.permute.xlu0 %2084 }
 0x2a0   :  { %v2247_v12 = vsel %vm1033_vm11, %v2231_v1, %v2085_v47  ;;  %2045 = vrot.lane.b32.xlu1 %v2030_v29, %s18588_s20  ;;  %1430 = vmatpush1.bf16.msra.mxu1 %v16019_v19 }
 0x2a1   :  { %v2263_v56 = vsel %vm1050_vm12, %v2247_v12, %v19500_v22  ;;  %2174 = vrot.lane.b32.xlu0 %v2153_v5, %s18590_s7  ;;  %2400 = vmatpush1.bf16.msra.mxu0 %v16019_v19  ;;  %v2156_v22 = vor.u32 %v2155_v15, %v2154_v55  ;;  %v21457_v55 = vld [vmem:[#allocation49_spill] sm:$0xff]  ;;  %v21458_v12 = vld [vmem:[#allocation50_spill] sm:$0xff] }
 0x2a2   :  { %v2279_v62 = vsel %vm1067_vm13, %v2263_v56, %v19510_v39  ;;  %v19650_v45 = vpop.permute.xlu1 %859  ;;  %1431 = vmatprep.subr.bf16.mxu1 %v16024_v33  ;;  %2401 = vmatprep.subr.bf16.mxu0 %v16024_v33  ;;  %v21450_v39 = vld [vmem:[#allocation42_spill] sm:$0xff] }
 0x2a3   :  { %v19652_v34 = vcombine.high %v2279_v62, %v2281_v16  ;;  %v19654_v4 = vpop.permute.xlu0 %785  ;;  %v2157_v41 = vsel %vm2133_vm3, %v940_v13, %v2156_v22  ;;  %vm3465_vm3 = vcmask 1046534  }
 0x2a4   :  { %2127 = vrot.lane.b32.xlu1 %v2112_v23, %s18589_s21  ;;  %1432 = vmatpush1.bf16.msra.mxu1 %v16022_v54 }
 0x2a5   :  { %1908 = vrot.lane.b32.xlu0 %v21450_v39, %s18591_s28  ;;  %2402 = vmatpush1.bf16.msra.mxu0 %v16022_v54 }
 0x2a6   :  { %v924_v37 = vpop.permute.xlu1 %923  ;;  %1433 = vmatprep.subr.bf16.mxu1 %v16027_v2  ;;  %2403 = vmatprep.subr.bf16.mxu0 %v16027_v2 }
 0x2a7   :  { %v19662_v30 = vpop.permute.xlu0 %849 }
 0x2a8   :  { %2176 = vrot.lane.b32.xlu1 %v2157_v41, %s18590_s7  ;;  %1434 = vmatpush1.bf16.msra.mxu1 %v16025_v43 }
 0x2a9   :  { %1949 = vrot.lane.b32.xlu0 %v21451_v40, %s18587_s1  ;;  %2404 = vmatpush1.bf16.msra.mxu0 %v16025_v43 }
 0x2aa   :  { %v788_v19 = vpop.permute.xlu1 %787  ;;  %1435 = vmatprep.subr.bf16.mxu1 %v16030_v11  ;;  %2405 = vmatprep.subr.bf16.mxu0 %v16030_v11 }
 0x2ab   :  { %v19670_v16 = vpop.permute.xlu0 %913 }
 0x2ac   :  { %1910 = vrot.lane.b32.xlu1 %v21452_v28, %s18591_s28  ;;  %1436 = vmatpush1.bf16.msra.mxu1 %v16028_v3 }
 0x2ad   :  { %2014 = vrot.lane.b32.xlu0 %v19316_v50, %s18581_s11  ;;  %2406 = vmatpush1.bf16.msra.mxu0 %v16028_v3 }
 0x2ae   :  { %v852_v13 = vpop.permute.xlu1 %851  ;;  %2318 = vmatprep.subr.bf16.mxu1 %v18335_v27 }
 0x2af   :  { %v762_v6 = vpop.permute.xlu0 %761 }
 0x2b0   :  { %v979_v32 = vsel %vm965_vm7, %v18981_v7, %v762_v6  ;;  %1951 = vrot.lane.b32.xlu1 %v21453_v26, %s18587_s1 }
 0x2b1   :  { %2047 = vrot.lane.b32.xlu0 %v21454_v61, %s18588_s20  ;;  %v996_v0 = vsel %vm982_vm8, %v979_v32, %v19561_v18  ;;  %v21456_v18 = vld [vmem:[#allocation48_spill] sm:$0xff] }
 0x2b2   :  { %v916_v35 = vpop.permute.xlu1 %915 }
 0x2b3   :  { %v834_v8 = vpop.permute.xlu0 %833 }
 0x2b4   :  { %v1013_v50 = vsel %vm999_vm9, %v996_v0, %v834_v8  ;;  %2016 = vrot.lane.b32.xlu1 %v19337_v38, %s18581_s11 }
 0x2b5   :  { %1904 = vrot.lane.b32.xlu0 %v21455_v42, %s18591_s28  ;;  %v1030_v33 = vsel %vm1016_vm10, %v1013_v50, %v19573_v24 }
 0x2b6   :  { %v19691_v36 = vpop.permute.xlu1 %1943 }
 0x2b7   :  { %v898_v54 = vpop.permute.xlu0 %897 }
 0x2b8   :  { %v1047_v1 = vsel %vm1033_vm11, %v1030_v33, %v898_v54  ;;  %2049 = vrot.lane.b32.xlu1 %v21456_v18, %s18588_s20 }
 0x2b9   :  { %2010 = vrot.lane.b32.xlu0 %v19346_v10, %s18581_s11  ;;  %v1064_v38 = vsel %vm1050_vm12, %v1047_v1, %v19589_v20 }
 0x2ba   :  { %v764_v47 = vpop.permute.xlu1 %763 }
 0x2bb   :  { %v981_v31 = vsel %vm965_vm7, %v19080_v49, %v764_v47  ;;  %v962_v29 = vpop.permute.xlu0 %961 }
 0x2bc   :  { %v1081_v24 = vsel %vm1067_vm13, %v1064_v38, %v962_v29  ;;  %1906 = vrot.lane.b32.xlu1 %v21457_v55, %s18591_s28  ;;  %v998_v15 = vsel %vm982_vm8, %v981_v31, %v19630_v52 }
 0x2bd   :  { %2092 = vrot.lane.b32.xlu0 %v21458_v12, %s18592_s22 }
 0x2be   :  { %v836_v10 = vpop.permute.xlu1 %835 }
 0x2bf   :  { %v1015_v5 = vsel %vm999_vm9, %v998_v15, %v836_v10  ;;  %v754_v20 = vpop.permute.xlu0 %753 }
 0x2c0   :  { %2012 = vrot.lane.b32.xlu1 %v19360_v59, %s18581_s11  ;;  %v1032_v2 = vsel %vm1016_vm10, %v1015_v5, %v19650_v45 }
 0x2c1   :  { %2096 = vrot.lane.b32.xlu0 %v19370_v60, %s18592_s22 }
 0x2c2   :  { %v900_v56 = vpop.permute.xlu1 %899 }
 0x2c3   :  { %v1049_v62 = vsel %vm1033_vm11, %v1032_v2, %v900_v56  ;;  %v826_v52 = vpop.permute.xlu0 %825 }
 0x2c4   :  { %2094 = vrot.lane.b32.xlu1 %v19380_v25, %s18592_s22  ;;  %v1066_v43 = vsel %vm1050_vm12, %v1049_v62, %v924_v37  ;;  %v971_v25 = vsel %vm965_vm7, %v18891_v44, %v754_v20 }
 0x2c5   :  { %2129 = vrot.lane.b32.xlu0 %v19365_v58, %s18589_s21  ;;  %v988_v11 = vsel %vm982_vm8, %v971_v25, %v19654_v4 }
 0x2c6   :  { %v964_v51 = vpop.permute.xlu1 %963  ;;  %v1005_v37 = vsel %vm999_vm9, %v988_v11, %v826_v52 }
 0x2c7   :  { %v1083_v59 = vsel %vm1067_vm13, %v1066_v43, %v964_v51  ;;  %v890_v23 = vpop.permute.xlu0 %889  ;;  %v1022_v41 = vsel %vm1016_vm10, %v1005_v37, %v19662_v30 }
 0x2c8   :  { %v19723_v45 = vcombine.low %v1081_v24, %v1083_v59  ;;  %2098 = vrot.lane.b32.xlu1 %v19388_v17, %s18592_s22  ;;  %v1039_v4 = vsel %vm1033_vm11, %v1022_v41, %v890_v23 }
 0x2c9   :  { %2178 = vrot.lane.b32.xlu0 %v19398_v46, %s18590_s7  ;;  %v1056_v27 = vsel %vm1050_vm12, %v1039_v4, %v19670_v16 }
 0x2ca   :  { %v756_v60 = vpop.permute.xlu1 %755 }
 0x2cb   :  { %v973_v22 = vsel %vm965_vm7, %v18930_v21, %v756_v60  ;;  %v954_v58 = vpop.permute.xlu0 %953 }
 0x2cc   :  { %2131 = vrot.lane.b32.xlu1 %v19393_v53, %s18589_s21  ;;  %v990_v39 = vsel %vm982_vm8, %v973_v22, %v788_v19  ;;  %v1073_v26 = vsel %vm1067_vm13, %v1056_v27, %v954_v58 }
 0x2ce   :  { %v828_v17 = vpop.permute.xlu1 %827 }
 0x2cf   :  { %v1007_v46 = vsel %vm999_vm9, %v990_v39, %v828_v17  ;;  %v19740_v3 = vpop.permute.xlu0 %1941 }
 0x2d0   :  { %2180 = vrot.lane.b32.xlu1 %v19404_v14, %s18590_s7  ;;  %v1024_v53 = vsel %vm1016_vm10, %v1007_v46, %v852_v13 }
 0x2d2   :  { %v892_v40 = vpop.permute.xlu1 %891 }
 0x2d3   :  { %v1041_v19 = vsel %vm1033_vm11, %v1024_v53, %v892_v40  ;;  %v1901_v28 = vpop.permute.xlu0 %1900 }
 0x2d4   :  { %v1058_v6 = vsel %vm1050_vm12, %v1041_v19, %v916_v35  ;;  %v2187_v40 = vsel %vm965_vm7, %v18891_v44, %v1901_v28  ;;  %v18336_v28 = vld [vmem:[#allocation2] ss:$24 sps:$4 sm:$0xff]  }
 0x2d6   :  { %v956_v32 = vpop.permute.xlu1 %955 }
 0x2d7   :  { %v1075_v14 = vsel %vm1067_vm13, %v1058_v6, %v956_v32  ;;  %v19754_v61 = vpop.permute.xlu0 %2006  ;;  %v2203_v6 = vsel %vm982_vm8, %v2187_v40, %v19740_v3 }
 0x2d8   :  { %v19756_v30 = vcombine.low %v1073_v26, %v1075_v14  ;;  %v2219_v44 = vsel %vm999_vm9, %v2203_v6, %v19754_v61 }
 0x2da   :  { %v1903_v13 = vpop.permute.xlu1 %1902  ;;  %1391 = vmatmul.mubr.bf16.gmra.mrb[12].mxu1 %v19756_v30  ;;  %1537 = vmatmul.mubr.bf16.gmra.mrb[20].mxu0 %v19756_v30 }
 0x2db   :  { %v790_v0 = vpop.permute.xlu0 %789  ;;  %1400 = vmatprep.mubr.bf16.mxu1 %v21441_v48  ;;  %1546 = vmatprep.mubr.bf16.mxu0 %v21441_v48  ;;  %v2189_v41 = vsel %vm965_vm7, %v18930_v21, %v1903_v13  ;;  %v18337_v13 = vld [vmem:[#allocation2 + $0x34] ss:$24 sps:$4 sm:$0xff]  }
 0x2dc   :  { %v2205_v19 = vsel %vm982_vm8, %v2189_v41, %v19691_v36 }
 0x2de   :  { %v2009_v16 = vpop.permute.xlu1 %2008 }
 0x2df   :  { %v854_v35 = vpop.permute.xlu0 %853  ;;  %v2221_v27 = vsel %vm999_vm9, %v2205_v19, %v2009_v16  ;;  %v18354_v19 = vld [vmem:[#allocation2 + $0x40] ss:$24 sps:$4 sm:$0xff]  }
 0x2e2   :  { %v792_v8 = vpop.permute.xlu1 %791 }
 0x2e3   :  { %v918_v50 = vpop.permute.xlu0 %917 }
 0x2e6   :  { %v856_v42 = vpop.permute.xlu1 %855 }
 0x2e7   :  { %v758_v33 = vpop.permute.xlu0 %757 }
 0x2e8   :  { %v975_v38 = vsel %vm965_vm7, %v18977_v63, %v758_v33  ;;  %v18339_v33 = vld [vmem:[#allocation2 + $0x64] ss:$24 sps:$4 sm:$0xff]  }
 0x2e9   :  { %v992_v29 = vsel %vm982_vm8, %v975_v38, %v790_v0  ;;  %v18341_v38 = vld [vmem:[#allocation2 + $0x94] ss:$24 sps:$4 sm:$0xff]  }
 0x2ea   :  { %v920_v54 = vpop.permute.xlu1 %919 }
 0x2eb   :  { %v830_v1 = vpop.permute.xlu0 %829 }
 0x2ec   :  { %v1009_v15 = vsel %vm999_vm9, %v992_v29, %v830_v1  ;;  %v18340_v1 = vld [vmem:[#allocation2 + $0x60] ss:$24 sps:$4 sm:$0xff]  }
 0x2ed   :  { %v1026_v5 = vsel %vm1016_vm10, %v1009_v15, %v854_v35 }
 0x2ee   :  { %v760_v18 = vpop.permute.xlu1 %759 }
 0x2ef   :  { %v977_v47 = vsel %vm965_vm7, %v21430_v57, %v760_v18  ;;  %v894_v31 = vpop.permute.xlu0 %893 }
 0x2f0   :  { %v994_v24 = vsel %vm982_vm8, %v977_v47, %v792_v8  ;;  %v1043_v56 = vsel %vm1033_vm11, %v1026_v5, %v894_v31  ;;  %v18338_v8 = vld [vmem:[#allocation2 + $0x30] ss:$24 sps:$4 sm:$0xff]  }
 0x2f1   :  { %v1060_v43 = vsel %vm1050_vm12, %v1043_v56, %v918_v50  ;;  %v18342_v31 = vld [vmem:[#allocation2 + $0x90] ss:$24 sps:$4 sm:$0xff]  }
 0x2f2   :  { %v832_v55 = vpop.permute.xlu1 %831  ;;  %v18346_v5 = vld [vmem:[#allocation2 + $0xf0] ss:$24 sps:$4 sm:$0xff]  }
 0x2f3   :  { %v1011_v12 = vsel %vm999_vm9, %v994_v24, %v832_v55  ;;  %v958_v10 = vpop.permute.xlu0 %957  ;;  %v18343_v24 = vld [vmem:[#allocation2 + $0xc4] ss:$24 sps:$4 sm:$0xff]   ;;  %v18344_v55 = vld [vmem:[#allocation2 + $0xc0] ss:$24 sps:$4 sm:$0xff]  }
 0x2f4   :  { %v1028_v20 = vsel %vm1016_vm10, %v1011_v12, %v856_v42  ;;  %v1077_v23 = vsel %vm1067_vm13, %v1060_v43, %v958_v10  ;;  %v18345_v12 = vld [vmem:[#allocation2 + $0xf4] ss:$24 sps:$4 sm:$0xff]  }
 0x2f5   :  { %v18349_v43 = vld [vmem:[#allocation2 + $0x154] ss:$24 sps:$4 sm:$0xff]  }
 0x2f6   :  { %v896_v2 = vpop.permute.xlu1 %895 }
 0x2f7   :  { %v1045_v62 = vsel %vm1033_vm11, %v1028_v20, %v896_v2  ;;  %v2040_v52 = vpop.permute.xlu0 %2039  ;;  %v18347_v2 = vld [vmem:[#allocation2 + $0x124] ss:$24 sps:$4 sm:$0xff]  }
 0x2f8   :  { %v1062_v51 = vsel %vm1050_vm12, %v1045_v62, %v920_v54  ;;  %v2235_v3 = vsel %vm1016_vm10, %v2219_v44, %v2040_v52  ;;  %v18348_v62 = vld [vmem:[#allocation2 + $0x120] ss:$24 sps:$4 sm:$0xff]   ;;  %v18356_v44 = vld [vmem:[#allocation2 + $0x70] ss:$24 sps:$4 sm:$0xff]  }
 0x2fa   :  { %v960_v59 = vpop.permute.xlu1 %959 }
 0x2fb   :  { %v1079_v60 = vsel %vm1067_vm13, %v1062_v51, %v960_v59  ;;  %v2089_v25 = vpop.permute.xlu0 %2088 }
 0x2fc   :  { %v19778_v22 = vcombine.low %v1077_v23, %v1079_v60  ;;  %v18350_v23 = vld [vmem:[#allocation2 + $0x150] ss:$24 sps:$4 sm:$0xff]  }
 0x2fe   :  { %v2042_v58 = vpop.permute.xlu1 %2041  ;;  %1401 = vmatmul.mubr.bf16.gmra.mrb[16].mxu1 %v19778_v22  ;;  %1547 = vmatmul.mubr.bf16.gmra.mrb[24].mxu0 %v19778_v22 }
 0x2ff   :  { %v2122_v11 = vpop.permute.xlu0 %2121  ;;  %1410 = vmatprep.mubr.bf16.mxu1 %v21441_v48  ;;  %1556 = vmatprep.mubr.bf16.mxu0 %v21441_v48  ;;  %v2237_v32 = vsel %vm1016_vm10, %v2221_v27, %v2042_v58  ;;  %v18355_v27 = vld [vmem:[#allocation2 + $0x74] ss:$24 sps:$4 sm:$0xff]  }
 0x302   :  { %v2091_v39 = vpop.permute.xlu1 %2090 }
 0x303   :  { %v2171_v17 = vpop.permute.xlu0 %2170  ;;  %v2253_v21 = vsel %vm1033_vm11, %v2237_v32, %v2091_v39 }
 0x306   :  { %v2124_v37 = vpop.permute.xlu1 %2123  ;;  %1411 = vmatmul.mubr.bf16.gmra.mrb[20].mxu1 %v19723_v45  ;;  %1557 = vmatmul.mubr.bf16.gmra.mrb[28].mxu0 %v19723_v45 }
 0x307   :  { %v19786_v46 = vpop.permute.xlu0 %1945  ;;  %1453 = vmatprep.mubr.bf16.mxu1 %v21441_v48  ;;  %2423 = vmatprep.mubr.bf16.mxu0 %v21441_v48  ;;  %v2269_v14 = vsel %vm1050_vm12, %v2253_v21, %v2124_v37 }
 0x30a   :  { %v2173_v53 = vpop.permute.xlu1 %2172 }
 0x30b   :  { %v19794_v4 = vpop.permute.xlu0 %2043  ;;  %v2285_v61 = vsel %vm1067_vm13, %v2269_v14, %v2173_v53 }
 0x30e   :  { %v19802_v26 = vpop.permute.xlu1 %1947  ;;  %1454 = vmatmul.mubr.bf16.vlgmr.msra.gmra.mrb[24].mxu1 %v19563_v9  ;;  %2424 = vmatmul.mubr.bf16.vlgmr.msra.gmra.mrb[32].mxu0 %v19652_v34  ;;  %v2251_v9 = vsel %vm1033_vm11, %v2235_v3, %v2089_v25  ;;  %v18351_v25 = vld [vmem:[#allocation2 + $0x14] ss:$24 sps:$4 sm:$0xff]  }
 0x30f   :  { %2319 = vmatpush1.bf16.msra.mxu1 %v18336_v28  ;;  %v19809_v36 = vpop.permute.xlu0 %2125  ;;  %1463 = vmatprep.mubr.bf16.mxu1 %v21441_v48  ;;  %v2267_v0 = vsel %vm1050_vm12, %v2251_v9, %v2122_v11  ;;  %v18357_v28 = vld [vmem:[#allocation2 + $0xa4] ss:$24 sps:$4 sm:$0xff]  }
 0x310   :  { %2320 = vmatprep.subr.bf16.mxu1 %v18337_v13  ;;  %2433 = vmatprep.mubr.bf16.mxu0 %v21441_v48  ;;  %v2283_v35 = vsel %vm1067_vm13, %v2267_v0, %v2171_v17  ;;  %v18352_v17 = vld [vmem:[#allocation2 + $0x10] ss:$24 sps:$4 sm:$0xff]   ;;  %v18359_v0 = vld [vmem:[#allocation2 + $0xd4] ss:$24 sps:$4 sm:$0xff]  }
 0x311   :  { %v19823_v42 = vcombine.high %v2283_v35, %v2285_v61  ;;  %v18358_v61 = vld [vmem:[#allocation2 + $0xa0] ss:$24 sps:$4 sm:$0xff]  }
 0x312   :  { %v19818_v16 = vpop.permute.xlu1 %2045 }
 0x313   :  { %2321 = vmatpush1.bf16.msra.mxu1 %v18338_v8  ;;  %v19821_v50 = vpop.permute.xlu0 %2174 }
 0x314   :  { %2322 = vmatprep.subr.bf16.mxu1 %v18339_v33 }
 0x316   :  { %v19825_v54 = vpop.permute.xlu1 %2127  ;;  %1464 = vmatmul.mubr.bf16.gmra.mrb[28].mxu1 %v19756_v30  ;;  %2434 = vmatmul.mubr.bf16.gmra.mrb[36].mxu0 %v19823_v42 }
 0x317   :  { %2323 = vmatpush1.bf16.msra.mxu1 %v18340_v1  ;;  %v19829_v18 = vpop.permute.xlu0 %1908  ;;  %1473 = vmatprep.mubr.bf16.mxu1 %v21441_v48  ;;  %v18360_v1 = vld [vmem:[#allocation2 + $0xd0] ss:$24 sps:$4 sm:$0xff]  }
 0x318   :  { %2324 = vmatprep.subr.bf16.mxu1 %v18341_v38  ;;  %2443 = vmatprep.mubr.bf16.mxu0 %v21441_v48 }
 0x31a   :  { %v19833_v47 = vpop.permute.xlu1 %2176 }
 0x31b   :  { %2325 = vmatpush1.bf16.msra.mxu1 %v18342_v31  ;;  %v19835_v29 = vpop.permute.xlu0 %1949 }
 0x31c   :  { %2326 = vmatprep.subr.bf16.mxu1 %v18343_v24 }
 0x31e   :  { %v19837_v30 = vpop.permute.xlu1 %1910  ;;  %1474 = vmatmul.mubr.bf16.gmra.mrb[32].mxu1 %v19778_v22 }
 0x31f   :  { %2327 = vmatpush1.bf16.msra.mxu1 %v18344_v55  ;;  %v19840_v15 = vpop.permute.xlu0 %2014  ;;  %1483 = vmatprep.mubr.bf16.mxu1 %v21441_v48  ;;  %v2197_v35 = vsel %vm965_vm7, %v19080_v49, %v19837_v30 }
 0x320   :  { %2328 = vmatprep.subr.bf16.mxu1 %v18345_v12 }
 0x322   :  { %v19843_v10 = vpop.permute.xlu1 %1951 }
 0x323   :  { %2329 = vmatpush1.bf16.msra.mxu1 %v18346_v5  ;;  %v19845_v20 = vpop.permute.xlu0 %2047 }
 0x324   :  { %2330 = vmatprep.subr.bf16.mxu1 %v18347_v2  ;;  %v18364_v2 = vld [vmem:[#allocation2 + $0x130] ss:$24 sps:$4 sm:$0xff]  }
 0x326   :  { %v19847_v56 = vpop.permute.xlu1 %2016  ;;  %1484 = vmatmul.mubr.bf16.gmra.mrb[36].mxu1 %v19723_v45 }
 0x327   :  { %2331 = vmatpush1.bf16.msra.mxu1 %v18348_v62  ;;  %v1905_v52 = vpop.permute.xlu0 %1904  ;;  %2350 = vmatprep.mubr.bf16.mxu1 %v21441_v48  ;;  %v18366_v62 = vld [vmem:[#allocation2 + $0x160] ss:$24 sps:$4 sm:$0xff]  }
 0x328   :  { %2332 = vmatprep.subr.bf16.mxu1 %v18349_v43  ;;  %v2191_v59 = vsel %vm965_vm7, %v18977_v63, %v1905_v52  ;;  %v18353_v63 = vld [vmem:[#allocation2 + $0x44] ss:$24 sps:$4 sm:$0xff]  }
 0x329   :  { %v2207_v45 = vsel %vm982_vm8, %v2191_v59, %v19786_v46 }
 0x32a   :  { %v19851_v51 = vpop.permute.xlu1 %2049 }
 0x32b   :  { %2333 = vmatpush1.bf16.msra.mxu1 %v18350_v23  ;;  %v2011_v60 = vpop.permute.xlu0 %2010 }
 0x32c   :  { %2464 = vmatprep.subr.bf16.mxu1 %v18351_v25  ;;  %v2223_v58 = vsel %vm999_vm9, %v2207_v45, %v2011_v60 }
 0x32d   :  { %v2239_v37 = vsel %vm1016_vm10, %v2223_v58, %v19794_v4  ;;  %v16031_v58 = vld [vmem:[#allocation7] ss:$24 sps:$4 sm:$0xff]  }
 0x32e   :  { %v1907_v22 = vpop.permute.xlu1 %1906  ;;  %2351 = vmatmul.mubr.bf16.vlgmr.msra.gmra.mrb[40].mxu1 %v19652_v34 }
 0x32f   :  { %v2193_v11 = vsel %vm965_vm7, %v21430_v57, %v1907_v22  ;;  %v2093_v39 = vpop.permute.xlu0 %2092  ;;  %2465 = vmatpush1.bf16.msra.mxu1 %v18352_v17  ;;  %2360 = vmatprep.mubr.bf16.mxu1 %v21441_v48  ;;  %v16033_v22 = vld [vmem:[#allocation7 + $0x4] ss:$24 sps:$4 sm:$0xff]   ;;  %v16040_v17 = vld [vmem:[#allocation7 + $0x330] ss:$24 sps:$4 sm:$0xff]  }
 0x330   :  { %2466 = vmatprep.subr.bf16.mxu1 %v18353_v63  ;;  %v2209_v46 = vsel %vm982_vm8, %v2193_v11, %v19802_v26  ;;  %v2255_v53 = vsel %vm1033_vm11, %v2239_v37, %v2093_v39  ;;  %v16034_v11 = vld [vmem:[#allocation7 + $0x300] ss:$24 sps:$4 sm:$0xff]   ;;  %v16042_v39 = vld [vmem:[#allocation7 + $0x334] ss:$24 sps:$4 sm:$0xff]  }
 0x331   :  { %v2271_v6 = vsel %vm1050_vm12, %v2255_v53, %v19809_v36  ;;  %v19913_v63 = vld [vmem:[#allocation6] sm:$0xff] }
 0x332   :  { %v2013_v41 = vpop.permute.xlu1 %2012  ;;  %v2287_v36 = vsel %vm1067_vm13, %v2271_v6, %v19821_v50  ;;  %v2213_v50 = vsel %vm982_vm8, %v2197_v35, %v19843_v10  ;;  %v18362_v10 = vld [vmem:[#allocation2 + $0x100] ss:$24 sps:$4 sm:$0xff]   ;;  %v19915_v37 = vld [vmem:[#allocation6 + $0x20] sm:$0xff] }
 0x333   :  { %v2225_v40 = vsel %vm999_vm9, %v2209_v46, %v2013_v41  ;;  %2467 = vmatpush1.bf16.msra.mxu1 %v18354_v19  ;;  %v2097_v57 = vpop.permute.xlu0 %2096  ;;  %v16045_v19 = vld [vmem:[#allocation7 + $0x64] ss:$24 sps:$4 sm:$0xff]   ;;  %v16052_v35 = vld [vmem:[#allocation7 + $0x390] ss:$24 sps:$4 sm:$0xff]  }
 0x334   :  { %2468 = vmatprep.subr.bf16.mxu1 %v18355_v27  ;;  %v2241_v32 = vsel %vm1016_vm10, %v2225_v40, %v19818_v16  ;;  %v2195_v16 = vsel %vm965_vm7, %v18981_v7, %v19829_v18  ;;  %v2229_v7 = vsel %vm999_vm9, %v2213_v50, %v19847_v56  ;;  %v18365_v56 = vld [vmem:[#allocation2 + $0x164] ss:$24 sps:$4 sm:$0xff]  }
 0x335   :  { %v2211_v8 = vsel %vm982_vm8, %v2195_v16, %v19835_v29  ;;  %v2245_v18 = vsel %vm1016_vm10, %v2229_v7, %v19851_v51  ;;  %v16049_v16 = vld [vmem:[#allocation7 + $0x90] ss:$24 sps:$4 sm:$0xff]  }
 0x336   :  { %v2095_v4 = vpop.permute.xlu1 %2094  ;;  %2361 = vmatmul.mubr.bf16.gmra.mrb[44].mxu1 %v19823_v42 }
 0x337   :  { %v2257_v26 = vsel %vm1033_vm11, %v2241_v32, %v2095_v4  ;;  %2469 = vmatpush1.bf16.msra.mxu1 %v18356_v44  ;;  %2370 = vmatprep.mubr.bf16.mxu1 %v21441_v48  ;;  %v2130_v14 = vpop.permute.xlu0 %2129  ;;  %v16043_v32 = vld [vmem:[#allocation7 + $0x60] ss:$24 sps:$4 sm:$0xff]  }
 0x338   :  { %v2273_v21 = vsel %vm1050_vm12, %v2257_v26, %v19825_v54  ;;  %2470 = vmatprep.subr.bf16.mxu1 %v18357_v28  ;;  %v2227_v54 = vsel %vm999_vm9, %v2211_v8, %v19840_v15  ;;  %v16046_v4 = vld [vmem:[#allocation7 + $0x360] ss:$24 sps:$4 sm:$0xff]   ;;  %v19919_v28 = vld [vmem:[#allocation6 + $0x28] sm:$0xff] }
 0x339   :  { %v2289_v3 = vsel %vm1067_vm13, %v2273_v21, %v19833_v47  ;;  %v2243_v49 = vsel %vm1016_vm10, %v2227_v54, %v19845_v20  ;;  %v18361_v47 = vld [vmem:[#allocation2 + $0x104] ss:$24 sps:$4 sm:$0xff]   ;;  %v18363_v20 = vld [vmem:[#allocation2 + $0x134] ss:$24 sps:$4 sm:$0xff]  }
 0x33a   :  { %v2099_v13 = vpop.permute.xlu1 %2098  ;;  %v14240_v9 = vcombine.high %v2287_v36, %v2289_v3  ;;  %v2259_v31 = vsel %vm1033_vm11, %v2243_v49, %v2097_v57  ;;  %v16048_v57 = vld [vmem:[#allocation7 + $0x364] ss:$24 sps:$4 sm:$0xff]   ;;  %v19917_v21 = vld [vmem:[#allocation6 + $0x8] sm:$0xff] }
 0x33b   :  { %2471 = vmatpush1.bf16.msra.mxu1 %v18358_v61  ;;  %v2179_v38 = vpop.permute.xlu0 %2178  ;;  %v2261_v29 = vsel %vm1033_vm11, %v2245_v18, %v2099_v13  ;;  %v2275_v24 = vsel %vm1050_vm12, %v2259_v31, %v2130_v14  ;;  %v16051_v14 = vld [vmem:[#allocation7 + $0x94] ss:$24 sps:$4 sm:$0xff]  }
 0x33c   :  { %2444 = vmatmul.mubr.bf16.gmra.mrb[40].mxu0 %v14240_v9  ;;  %2472 = vmatprep.subr.bf16.mxu1 %v18359_v0  ;;  %v2291_v15 = vsel %vm1067_vm13, %v2275_v24, %v2179_v38  ;;  %v16054_v13 = vld [vmem:[#allocation7 + $0x394] ss:$24 sps:$4 sm:$0xff]  }
 0x33d   :  { %2453 = vmatprep.mubr.bf16.mxu0 %v21441_v48 }
 0x33e   :  { %v2132_v33 = vpop.permute.xlu1 %2131  ;;  %2371 = vmatmul.mubr.bf16.gmra.mrb[48].mxu1 %v14240_v9 }
 0x33f   :  { %2473 = vmatpush1.bf16.msra.mxu1 %v18360_v1  ;;  %2380 = vmatprep.mubr.bf16.mxu1 %v21441_v48  ;;  %v2277_v30 = vsel %vm1050_vm12, %v2261_v29, %v2132_v33 }
 0x340   :  { %2474 = vmatprep.subr.bf16.mxu1 %v18361_v47 }
 0x342   :  { %v2181_v55 = vpop.permute.xlu1 %2180 }
 0x343   :  { %v2293_v12 = vsel %vm1067_vm13, %v2277_v30, %v2181_v55  ;;  %2475 = vmatpush1.bf16.msra.mxu1 %v18362_v10 }
 0x344   :  { %v14241_v5 = vcombine.high %v2291_v15, %v2293_v12  ;;  %2476 = vmatprep.subr.bf16.mxu1 %v18363_v20 }
 0x346   :  { %2381 = vmatmul.mubr.bf16.gmra.mrb[52].mxu1 %v14241_v5  ;;  %2454 = vmatmul.mubr.bf16.gmra.mrb[44].mxu0 %v14241_v5 }
 0x347   :  { %2477 = vmatpush1.bf16.msra.mxu1 %v18364_v2  ;;  %2496 = vmatprep.mubr.bf16.mxu1 %v21441_v48 }
 0x348   :  { %2478 = vmatprep.subr.bf16.mxu1 %v18365_v56 }
 0x34b   :  { %2479 = vmatpush1.bf16.msra.mxu1 %v18366_v62 }
 0x34c   :  { %4992 = vmatprep.subr.bf16.mxu1 %v16033_v22 }
 0x34e   :  { %2497 = vmatmul.mubr.bf16.vlgmr.msra.gmra.mrb[56].mxu1 %v19652_v34  ;;  %v16036_v34 = vld [vmem:[#allocation7 + $0x304] ss:$24 sps:$4 sm:$0xff]  }
 0x34f   :  { %2506 = vmatprep.mubr.bf16.mxu1 %v21441_v48  ;;  %5033 = vmatprep.subr.bf16.mxu0 %v16036_v34 }
 0x350   :  { %4993 = vmatpush1.bf16.msra.mxu1 %v16031_v58  ;;  %5034 = vmatpush1.bf16.msra.mxu0 %v16034_v11 }
 0x351   :  { %5035 = vmatprep.subr.bf16.mxu0 %v16042_v39 }
 0x354   :  { %5036 = vmatpush1.bf16.msra.mxu0 %v16040_v17 }
 0x355   :  { %5037 = vmatprep.subr.bf16.mxu0 %v16048_v57 }
 0x356   :  { %2507 = vmatmul.mubr.bf16.gmra.mrb[60].mxu1 %v19823_v42  ;;  %v16039_v42 = vld [vmem:[#allocation7 + $0x34] ss:$24 sps:$4 sm:$0xff]  }
 0x357   :  { %2516 = vmatprep.mubr.bf16.mxu1 %v21441_v48  ;;  %4994 = vmatprep.subr.bf16.mxu1 %v16039_v42 }
 0x358   :  { %5038 = vmatpush1.bf16.msra.mxu0 %v16046_v4 }
 0x359   :  { %5039 = vmatprep.subr.bf16.mxu0 %v16054_v13 }
 0x35c   :  { %5040 = vmatpush1.bf16.msra.mxu0 %v16052_v35 }
 0x35e   :  { %2517 = vmatmul.mubr.bf16.gmra.mrb[64].mxu1 %v14240_v9 }
 0x35f   :  { %2526 = vmatprep.mubr.bf16.mxu1 %v21441_v48  ;;  %v16037_v48 = vld [vmem:[#allocation7 + $0x30] ss:$24 sps:$4 sm:$0xff]  }
 0x360   :  { %4995 = vmatpush1.bf16.msra.mxu1 %v16037_v48 }
 0x361   :  { %v1382_v52 = vpop.f32.mrb[8].mxu1  ;;  %v1528_v43 = vpop.f32.mrb[16].mxu0  ;;  %4996 = vmatprep.subr.bf16.mxu1 %v16045_v19 }
 0x362   :  { %v1384_v51 = vpop.f32.mrb[9].mxu1  ;;  %v1530_v59 = vpop.f32.mrb[17].mxu0  ;;  %v1383_v36 = vadd.f32 %v1382_v52, %v19913_v63  ;;  %v1529_v3 = vadd.f32 %v1528_v43, %v19915_v37 }
 0x363   :  { %v1386_v23 = vpop.f32.mrb[10].mxu1  ;;  %v1532_v60 = vpop.f32.mrb[18].mxu0  ;;  %v1385_v9 = vadd.f32 %v1384_v51, %v19917_v21  ;;  %v1531_v61 = vadd.f32 %v1530_v59, %v19919_v28 }
 0x364   :  { %v1388_v25 = vpop.f32.mrb[11].mxu1  ;;  %v1534_v45 = vpop.f32.mrb[19].mxu0  ;;  %4997 = vmatpush1.bf16.msra.mxu1 %v16043_v32  ;;  %v1387_v0 = vadd.f32 %v1386_v23, %v19913_v63  ;;  %v1533_v8 = vadd.f32 %v1532_v60, %v19915_v37  ;;  %v1567_v50 = vrot.slane %v1383_v36, 4  ;;  %v1591_v33 = vrot.slane %v1529_v3, 4 }
 0x365   :  { %4998 = vmatprep.subr.bf16.mxu1 %v16051_v14  ;;  %v1389_v54 = vadd.f32 %v1388_v25, %v19917_v21  ;;  %v1535_v7 = vadd.f32 %v1534_v45, %v19919_v28  ;;  %v1573_v1 = vrot.slane %v1385_v9, 4  ;;  %v1597_v49 = vrot.slane %v1531_v61, 4 }
 0x366   :  { %2527 = vmatmul.mubr.bf16.gmra.mrb[68].mxu1 %v14241_v5  ;;  %v1603_v18 = vrot.slane %v1387_v0, 4  ;;  %v1627_v47 = vrot.slane %v1533_v8, 4  ;;  %v1568_v30 = vmax.f32 %v1383_v36, %v1567_v50  ;;  %v1592_v55 = vmax.f32 %v1529_v3, %v1591_v33 }
 0x367   :  { %v1609_v15 = vrot.slane %v1389_v54, 4  ;;  %v1633_v12 = vrot.slane %v1535_v7, 4  ;;  %v1574_v20 = vmax.f32 %v1385_v9, %v1573_v1  ;;  %v1598_v2 = vmax.f32 %v1531_v61, %v1597_v49 }
 0x368   :  { %4999 = vmatpush1.bf16.msra.mxu1 %v16049_v16  ;;  %v1604_v56 = vmax.f32 %v1387_v0, %v1603_v18  ;;  %v1628_v52 = vmax.f32 %v1533_v8, %v1627_v47  ;;  %v1569_v23 = vrot.slane %v1568_v30, 2  ;;  %v1593_v60 = vrot.slane %v1592_v55, 2 }
 0x369   :  { %v1610_v22 = vmax.f32 %v1389_v54, %v1609_v15  ;;  %v1634_v34 = vmax.f32 %v1535_v7, %v1633_v12  ;;  %v1575_v42 = vrot.slane %v1574_v20, 2  ;;  %v1599_v39 = vrot.slane %v1598_v2, 2 }
 0x36a   :  { %v1605_v48 = vrot.slane %v1604_v56, 2  ;;  %v1570_v19 = vmax.f32 %v1568_v30, %v1569_v23  ;;  %v1594_v57 = vmax.f32 %v1592_v55, %v1593_v60 }
 0x36b   :  { %v1611_v32 = vrot.slane %v1610_v22, 2  ;;  %v1635_v4 = vrot.slane %v1634_v34, 2  ;;  %v1576_v36 = vmax.f32 %v1574_v20, %v1575_v42  ;;  %v1600_v3 = vmax.f32 %v1598_v2, %v1599_v39 }
 0x36c   :  { %v1606_v14 = vmax.f32 %v1604_v56, %v1605_v48  ;;  %v1571_v35 = vrot.slane %v1570_v19, 1  ;;  %v1595_v8 = vrot.slane %v1594_v57, 1 }
 0x36d   :  { %v1612_v54 = vmax.f32 %v1610_v22, %v1611_v32  ;;  %v1636_v7 = vmax.f32 %v1634_v34, %v1635_v4  ;;  %v1577_v18 = vrot.slane %v1576_v36, 1  ;;  %v21463_v4 = vld [vmem:[#allocation20_spill] sm:$0xff] }
 0x36e   :  { %v1607_v47 = vrot.slane %v1606_v14, 1 }
 0x36f   :  { %v1613_v20 = vrot.slane %v1612_v54, 1  ;;  %v1637_v2 = vrot.slane %v1636_v7, 1  ;;  %v19941_v23 = vmax.f32 %v1576_v36, %v1577_v18 }
 0x370   :  { %v19945_v42 = vmax.f32 %v1606_v14, %v1607_v47 }
 0x3ad   :  { %v1392_v46 = vpop.f32.mrb[12].mxu1  ;;  %v1538_v41 = vpop.f32.mrb[20].mxu0 }
 0x3ae   :  { %v1394_v53 = vpop.f32.mrb[13].mxu1  ;;  %v1540_v40 = vpop.f32.mrb[21].mxu0  ;;  %v1393_v38 = vadd.f32 %v1392_v46, %v19913_v63  ;;  %v1539_v31 = vadd.f32 %v1538_v41, %v19915_v37  ;;  %v1629_v46 = vrot.slane %v1628_v52, 2 }
 0x3af   :  { %v1396_v27 = vpop.f32.mrb[14].mxu1  ;;  %v1542_v6 = vpop.f32.mrb[22].mxu0  ;;  %v1395_v29 = vadd.f32 %v1394_v53, %v19917_v21  ;;  %v1541_v24 = vadd.f32 %v1540_v40, %v19919_v28 }
 0x3b0   :  { %v1398_v26 = vpop.f32.mrb[15].mxu1  ;;  %v1544_v44 = vpop.f32.mrb[23].mxu0  ;;  %v1397_v10 = vadd.f32 %v1396_v27, %v19913_v63  ;;  %v1543_v5 = vadd.f32 %v1542_v6, %v19915_v37  ;;  %v1639_v62 = vrot.slane %v1393_v38, 4  ;;  %v1663_v43 = vrot.slane %v1539_v31, 4 }
 0x3b1   :  { %v1645_v51 = vrot.slane %v1395_v29, 4  ;;  %v1669_v59 = vrot.slane %v1541_v24, 4  ;;  %v1399_v25 = vadd.f32 %v1398_v26, %v19917_v21  ;;  %v1545_v45 = vadd.f32 %v1544_v44, %v19919_v28 }
 0x3b2   :  { %v1675_v58 = vrot.slane %v1397_v10, 4  ;;  %v1699_v11 = vrot.slane %v1543_v5, 4  ;;  %v1640_v17 = vmax.f32 %v1393_v38, %v1639_v62  ;;  %v1664_v41 = vmax.f32 %v1539_v31, %v1663_v43  ;;  %v16058_v43 = vld [vmem:[#allocation7 + $0x3c0] ss:$24 sps:$4 sm:$0xff]  }
 0x3b3   :  { %v1646_v53 = vmax.f32 %v1395_v29, %v1645_v51  ;;  %v1670_v40 = vmax.f32 %v1541_v24, %v1669_v59  ;;  %v1681_v27 = vrot.slane %v1399_v25, 4  ;;  %v1705_v6 = vrot.slane %v1545_v45, 4 }
 0x3b4   :  { %v1676_v26 = vmax.f32 %v1397_v10, %v1675_v58  ;;  %v1700_v44 = vmax.f32 %v1543_v5, %v1699_v11  ;;  %v1641_v13 = vrot.slane %v1640_v17, 2  ;;  %v1630_v9 = vmax.f32 %v1628_v52, %v1629_v46  ;;  %v16057_v10 = vld [vmem:[#allocation7 + $0xc4] ss:$24 sps:$4 sm:$0xff]   ;;  %v16055_v52 = vld [vmem:[#allocation7 + $0xc0] ss:$24 sps:$4 sm:$0xff]   ;;  %v146_v11 = vld [vmem:[#allocation4 + $0x18] sm:$0xff] }
 0x3b5   :  { %v1665_v61 = vrot.slane %v1664_v41, 2  ;;  %v1647_v0 = vrot.slane %v1646_v53, 2  ;;  %v1671_v16 = vrot.slane %v1670_v40, 2  ;;  %v1682_v50 = vmax.f32 %v1399_v25, %v1681_v27  ;;  %v16060_v5 = vld [vmem:[#allocation7 + $0x3c4] ss:$24 sps:$4 sm:$0xff]   ;;  %5000 = vmatprep.subr.bf16.mxu1 %v16057_v10 }
 0x3b6   :  { %v1706_v33 = vmax.f32 %v1545_v45, %v1705_v6  ;;  %v1677_v1 = vrot.slane %v1676_v26, 2  ;;  %v1701_v49 = vrot.slane %v1700_v44, 2  ;;  %v1601_v38 = vrot.slane %v1600_v3, 1  ;;  %5041 = vmatprep.subr.bf16.mxu0 %v16060_v5  ;;  %v145_v58 = vld [vmem:[#allocation4 + $0x10] sm:$0xff]  ;;  %5001 = vmatpush1.bf16.msra.mxu1 %v16055_v52  ;;  %v16063_v46 = vld [vmem:[#allocation7 + $0xf4] ss:$24 sps:$4 sm:$0xff]  }
 0x3b7   :  { %v1642_v31 = vmax.f32 %v1640_v17, %v1641_v13  ;;  %v1631_v29 = vrot.slane %v1630_v9, 1  ;;  %v1666_v24 = vmax.f32 %v1664_v41, %v1665_v61  ;;  %v1648_v30 = vmax.f32 %v1646_v53, %v1647_v0  ;;  %5042 = vmatpush1.bf16.msra.mxu0 %v16058_v43  ;;  %v16066_v41 = vld [vmem:[#allocation7 + $0x3f4] ss:$24 sps:$4 sm:$0xff]   ;;  %v16061_v27 = vld [vmem:[#allocation7 + $0xf0] ss:$24 sps:$4 sm:$0xff]   ;;  %5002 = vmatprep.subr.bf16.mxu1 %v16063_v46 }
 0x3b8   :  { %v1672_v55 = vmax.f32 %v1670_v40, %v1671_v16  ;;  %v1683_v15 = vrot.slane %v1682_v50, 2  ;;  %v1707_v12 = vrot.slane %v1706_v33, 2  ;;  %v1678_v56 = vmax.f32 %v1676_v26, %v1677_v1  ;;  %v16064_v6 = vld [vmem:[#allocation7 + $0x3f0] ss:$24 sps:$4 sm:$0xff]   ;;  %5043 = vmatprep.subr.bf16.mxu0 %v16066_v41 }
 0x3b9   :  { %v1702_v62 = vmax.f32 %v1700_v44, %v1701_v49  ;;  %v19937_v51 = vmax.f32 %v1570_v19, %v1571_v35  ;;  %v19939_v59 = vmax.f32 %v1594_v57, %v1595_v8  ;;  %v1643_v60 = vrot.slane %v1642_v31, 1 }
 0x3ba   :  { %v19943_v25 = vmax.f32 %v1600_v3, %v1601_v38  ;;  %v1667_v45 = vrot.slane %v1666_v24, 1  ;;  %v1649_v22 = vrot.slane %v1648_v30, 1  ;;  %v1673_v34 = vrot.slane %v1672_v55, 1  ;;  %5003 = vmatpush1.bf16.msra.mxu1 %v16061_v27 }
 0x3bb   :  { %21459 = vst [vmem:[#allocation29_spill] sm:$0xff] %v19939_v59  ;;  %v19947_v39 = vmax.f32 %v1630_v9, %v1631_v29  ;;  %v19949_v48 = vmax.f32 %v1682_v50, %v1683_v15  ;;  %v19951_v17 = vmax.f32 %v1706_v33, %v1707_v12  ;;  %v19953_v53 = vmax.f32 %v1612_v54, %v1613_v20 }
 0x3bc   :  { %21460 = vst [vmem:[#allocation28_spill] sm:$0xff] %v19943_v25  ;;  %v19955_v40 = vmax.f32 %v1636_v7, %v1637_v2  ;;  %v1679_v19 = vrot.slane %v1678_v56, 1  ;;  %v1703_v57 = vrot.slane %v1702_v62, 1  ;;  %v19957_v32 = vmax.f32 %v1642_v31, %v1643_v60  ;;  %5044 = vmatpush1.bf16.msra.mxu0 %v16064_v6 }
 0x3bd   :  { %21461 = vst [vmem:[#allocation32_spill] sm:$0xff] %v19947_v39  ;;  %v19960_v26 = vrot.slane %v145_v58, %v21463_v4  ;;  %v19963_v44 = vrot.slane %v146_v11, %v21463_v4  ;;  %v19965_v36 = vmax.f32 %v1666_v24, %v1667_v45  ;;  %v19967_v3 = vmax.f32 %v1648_v30, %v1649_v22 }
 0x3be   :  { %21462 = vst [vmem:[#allocation33_spill] sm:$0xff] %v19955_v40  ;;  %v19969_v14 = vmax.f32 %v1672_v55, %v1673_v34  ;;  %v1685_v61 = vrot.slane %v19949_v48, 1  ;;  %v1709_v0 = vrot.slane %v19951_v17, 1  ;;  %v19975_v33 = vmax.f32 %v1678_v56, %v1679_v19 }
 0x3bf   :  { %21464 = vst [vmem:[#allocation26_spill] sm:$0xff] %v19965_v36  ;;  %v19977_v54 = vmax.f32 %v1702_v62, %v1703_v57 }
 0x3c0   :  { %21465 = vst [vmem:[#allocation27_spill] sm:$0xff] %v19969_v14 }
 0x3c1   :  { %21466 = vst [vmem:[#allocation34_spill] sm:$0xff] %v19977_v54 }
 0x3d1   :  { %v1402_v13 = vpop.f32.mrb[16].mxu1  ;;  %v1548_v9 = vpop.f32.mrb[24].mxu0 }
 0x3d2   :  { %v1403_v16 = vadd.f32 %v1402_v13, %v19913_v63  ;;  %v1549_v35 = vadd.f32 %v1548_v9, %v19915_v37  ;;  %v1404_v8 = vpop.f32.mrb[17].mxu1  ;;  %v1550_v50 = vpop.f32.mrb[25].mxu0 }
 0x3d3   :  { %v1405_v7 = vadd.f32 %v1404_v8, %v19917_v21  ;;  %v1551_v1 = vadd.f32 %v1550_v50, %v19919_v28  ;;  %v1406_v49 = vpop.f32.mrb[18].mxu1  ;;  %v1552_v18 = vpop.f32.mrb[26].mxu0 }
 0x3d4   :  { %v1711_v38 = vrot.slane %v1403_v16, 4  ;;  %v1735_v47 = vrot.slane %v1549_v35, 4  ;;  %v1407_v31 = vadd.f32 %v1406_v49, %v19913_v63  ;;  %v1553_v29 = vadd.f32 %v1552_v18, %v19915_v37  ;;  %v1408_v24 = vpop.f32.mrb[19].mxu1  ;;  %v1554_v30 = vpop.f32.mrb[27].mxu0 }
 0x3d5   :  { %v1717_v55 = vrot.slane %v1405_v7, 4  ;;  %v1741_v15 = vrot.slane %v1551_v1, 4  ;;  %v1409_v12 = vadd.f32 %v1408_v24, %v19917_v21  ;;  %v1555_v10 = vadd.f32 %v1554_v30, %v19919_v28 }
 0x3d6   :  { %v1712_v5 = vmax.f32 %v1403_v16, %v1711_v38  ;;  %v1736_v20 = vmax.f32 %v1549_v35, %v1735_v47  ;;  %v1747_v2 = vrot.slane %v1407_v31, 4  ;;  %v1771_v56 = vrot.slane %v1553_v29, 4  ;;  %v143_v47 = vld [vmem:[#allocation4] sm:$0xff] }
 0x3d7   :  { %v1718_v62 = vmax.f32 %v1405_v7, %v1717_v55  ;;  %v1742_v52 = vmax.f32 %v1551_v1, %v1741_v15  ;;  %v1753_v43 = vrot.slane %v1409_v12, 4  ;;  %v1777_v60 = vrot.slane %v1555_v10, 4 }
 0x3d8   :  { %v1713_v45 = vrot.slane %v1712_v5, 2  ;;  %v1737_v22 = vrot.slane %v1736_v20, 2  ;;  %v1748_v34 = vmax.f32 %v1407_v31, %v1747_v2  ;;  %v1772_v58 = vmax.f32 %v1553_v29, %v1771_v56  ;;  %v144_v31 = vld [vmem:[#allocation4 + $0x8] sm:$0xff] }
 0x3d9   :  { %v1719_v11 = vrot.slane %v1718_v62, 2  ;;  %v1743_v46 = vrot.slane %v1742_v52, 2  ;;  %v1754_v41 = vmax.f32 %v1409_v12, %v1753_v43  ;;  %v1778_v19 = vmax.f32 %v1555_v10, %v1777_v60  ;;  %v1412_v57 = vpop.f32.mrb[20].mxu1  ;;  %v1558_v27 = vpop.f32.mrb[28].mxu0  ;;  %v16069_v60 = vld [vmem:[#allocation7 + $0x124] ss:$24 sps:$4 sm:$0xff]  }
 0x3da   :  { %v1714_v6 = vmax.f32 %v1712_v5, %v1713_v45  ;;  %v1738_v13 = vmax.f32 %v1736_v20, %v1737_v22  ;;  %v1749_v9 = vrot.slane %v1748_v34, 2  ;;  %v1773_v16 = vrot.slane %v1772_v58, 2  ;;  %v1414_v35 = vpop.f32.mrb[21].mxu1  ;;  %v1560_v8 = vpop.f32.mrb[29].mxu0  ;;  %v16072_v45 = vld [vmem:[#allocation7 + $0x424] ss:$24 sps:$4 sm:$0xff]   ;;  %5004 = vmatprep.subr.bf16.mxu1 %v16069_v60 }
 0x3db   :  { %v1720_v50 = vmax.f32 %v1718_v62, %v1719_v11  ;;  %v1744_v7 = vmax.f32 %v1742_v52, %v1743_v46  ;;  %v1755_v1 = vrot.slane %v1754_v41, 2  ;;  %v1779_v49 = vrot.slane %v1778_v19, 2  ;;  %v1416_v18 = vpop.f32.mrb[22].mxu1  ;;  %v1562_v38 = vpop.f32.mrb[30].mxu0  ;;  %v16070_v11 = vld [vmem:[#allocation7 + $0x420] ss:$24 sps:$4 sm:$0xff]   ;;  %5045 = vmatprep.subr.bf16.mxu0 %v16072_v45 }
 0x3dc   :  { %v1715_v29 = vrot.slane %v1714_v6, 1  ;;  %v1739_v24 = vrot.slane %v1738_v13, 1  ;;  %v19985_v30 = vmax.f32 %v1748_v34, %v1749_v9  ;;  %v19987_v55 = vmax.f32 %v1772_v58, %v1773_v16  ;;  %v1418_v15 = vpop.f32.mrb[23].mxu1  ;;  %v1564_v12 = vpop.f32.mrb[31].mxu0  ;;  %v16067_v58 = vld [vmem:[#allocation7 + $0x120] ss:$24 sps:$4 sm:$0xff]   ;;  %5046 = vmatpush1.bf16.msra.mxu0 %v16070_v11 }
 0x3dd   :  { %v1721_v10 = vrot.slane %v1720_v50, 1  ;;  %v1745_v5 = vrot.slane %v1744_v7, 1  ;;  %v19989_v20 = vmax.f32 %v1754_v41, %v1755_v1  ;;  %v19991_v2 = vmax.f32 %v1778_v19, %v1779_v49  ;;  %5005 = vmatpush1.bf16.msra.mxu1 %v16067_v58  ;;  %v16073_v58 = vld [vmem:[#allocation7 + $0x150] ss:$24 sps:$4 sm:$0xff]  }
 0x3de   :  { %v19996_v56 = vmax.f32 %v19949_v48, %v1685_v61  ;;  %v20001_v62 = vmax.f32 %v19951_v17, %v1709_v0  ;;  %v20004_v52 = vrot.slane %v143_v47, %v21463_v4  ;;  %v20007_v43 = vrot.slane %v144_v31, %v21463_v4 }
 0x3df   :  { %v20009_v22 = vmax.f32 %v1714_v6, %v1715_v29  ;;  %v20011_v34 = vmax.f32 %v1738_v13, %v1739_v24  ;;  %v20015_v17 = vmax.f32 %v1720_v50, %v1721_v10  ;;  %v20017_v0 = vmax.f32 %v1744_v7, %v1745_v5  ;;  %v16075_v5 = vld [vmem:[#allocation7 + $0x154] ss:$24 sps:$4 sm:$0xff]  }
 0x3e0   :  { %21467 = vst [vmem:[#allocation35_spill] sm:$0xff] %v20001_v62  ;;  %v1413_v46 = vadd.f32 %v1412_v57, %v19913_v63  ;;  %v1559_v41 = vadd.f32 %v1558_v27, %v19915_v37  ;;  %v1415_v13 = vadd.f32 %v1414_v35, %v19917_v21  ;;  %v1561_v9 = vadd.f32 %v1560_v8, %v19919_v28 }
 0x3e1   :  { %21468 = vst [vmem:[#allocation36_spill] sm:$0xff] %v20009_v22  ;;  %21469 = vst [vmem:[#allocation39_spill] sm:$0xff] %v20011_v34  ;;  %v20025_v16 = vpop.f32.mrb[24].mxu1  ;;  %v20027_v1 = vpop.f32.mrb[32].mxu0  ;;  %v1417_v57 = vadd.f32 %v1416_v18, %v19913_v63  ;;  %v1563_v27 = vadd.f32 %v1562_v38, %v19915_v37  ;;  %v1419_v8 = vadd.f32 %v1418_v15, %v19917_v21  ;;  %5006 = vmatprep.subr.bf16.mxu1 %v16075_v5  ;;  %v16078_v15 = vld [vmem:[#allocation7 + $0x454] ss:$24 sps:$4 sm:$0xff]  }
 0x3e2   :  { %21470 = vst [vmem:[#allocation38_spill] sm:$0xff] %v20015_v17  ;;  %21471 = vst [vmem:[#allocation37_spill] sm:$0xff] %v20017_v0  ;;  %v1783_v50 = vrot.slane %v1413_v46, 4  ;;  %v1807_v7 = vrot.slane %v1559_v41, 4  ;;  %v20031_v49 = vpop.f32.mrb[25].mxu1  ;;  %v20033_v47 = vpop.f32.mrb[33].mxu0  ;;  %v1565_v29 = vadd.f32 %v1564_v12, %v19919_v28  ;;  %5007 = vmatpush1.bf16.msra.mxu1 %v16073_v58  ;;  %5047 = vmatprep.subr.bf16.mxu0 %v16078_v15 }
 0x3e3   :  { %v1789_v35 = vrot.slane %v1415_v13, 4  ;;  %v1813_v31 = vrot.slane %v1561_v9, 4  ;;  %v20037_v24 = vpop.f32.mrb[26].mxu1  ;;  %v20039_v10 = vpop.f32.mrb[34].mxu0  ;;  %v1819_v37 = vrot.slane %v1417_v57, 4  ;;  %v1843_v38 = vrot.slane %v1563_v27, 4 }
 0x3e4   :  { %v1784_v63 = vmax.f32 %v1413_v46, %v1783_v50  ;;  %v1808_v18 = vmax.f32 %v1559_v41, %v1807_v7  ;;  %v20041_v60 = vpop.f32.mrb[27].mxu1  ;;  %v20043_v45 = vpop.f32.mrb[35].mxu0  ;;  %v1825_v19 = vrot.slane %v1419_v8, 4  ;;  %v1849_v21 = vrot.slane %v1565_v29, 4  ;;  %v16076_v28 = vld [vmem:[#allocation7 + $0x450] ss:$24 sps:$4 sm:$0xff]  }
 0x3e5   :  { %v1790_v11 = vmax.f32 %v1415_v13, %v1789_v35  ;;  %v1814_v6 = vmax.f32 %v1561_v9, %v1813_v31  ;;  %v1820_v48 = vmax.f32 %v1417_v57, %v1819_v37  ;;  %v1844_v0 = vmax.f32 %v1563_v27, %v1843_v38  ;;  %5048 = vmatpush1.bf16.msra.mxu0 %v16076_v28  ;;  %v20061_v38 = vld [vmem:[#allocation6 + $0x10] sm:$0xff]  ;;  %v20063_v58 = vld [vmem:[#allocation6 + $0x40] sm:$0xff] }
 0x3e6   :  { %v1785_v12 = vrot.slane %v1784_v63, 2  ;;  %v1809_v61 = vrot.slane %v1808_v18, 2  ;;  %v1826_v50 = vmax.f32 %v1419_v8, %v1825_v19  ;;  %v1850_v7 = vmax.f32 %v1565_v29, %v1849_v21 }
 0x3e7   :  { %v1791_v46 = vrot.slane %v1790_v11, 2  ;;  %v1815_v41 = vrot.slane %v1814_v6, 2  ;;  %v1821_v54 = vrot.slane %v1820_v48, 2  ;;  %v1845_v13 = vrot.slane %v1844_v0, 2 }
 0x3e8   :  { %v1786_v34 = vmax.f32 %v1784_v63, %v1785_v12  ;;  %v1810_v62 = vmax.f32 %v1808_v18, %v1809_v61  ;;  %v1827_v31 = vrot.slane %v1826_v50, 2  ;;  %v1851_v5 = vrot.slane %v1850_v7, 2 }
 0x3e9   :  { %v1792_v9 = vmax.f32 %v1790_v11, %v1791_v46  ;;  %v1816_v35 = vmax.f32 %v1814_v6, %v1815_v41  ;;  %v20045_v14 = vpop.f32.mrb[28].mxu1  ;;  %v20047_v36 = vpop.f32.mrb[36].mxu0  ;;  %v20049_v37 = vmax.f32 %v1820_v48, %v1821_v54  ;;  %v20051_v19 = vmax.f32 %v1844_v0, %v1845_v13 }
 0x3ea   :  { %v1787_v57 = vrot.slane %v1786_v34, 1  ;;  %v1811_v27 = vrot.slane %v1810_v62, 1  ;;  %v20053_v8 = vpop.f32.mrb[29].mxu1  ;;  %v20055_v61 = vpop.f32.mrb[37].mxu0  ;;  %v20057_v18 = vmax.f32 %v1826_v50, %v1827_v31  ;;  %v20059_v6 = vmax.f32 %v1850_v7, %v1851_v5  ;;  %v20089_v50 = vld [vmem:[#allocation6 + $0x18] sm:$0xff]  ;;  %v20091_v7 = vld [vmem:[#allocation6 + $0x48] sm:$0xff] }
 0x3eb   :  { %v1793_v29 = vrot.slane %v1792_v9, 1  ;;  %v1817_v63 = vrot.slane %v1816_v35, 1  ;;  %v20065_v11 = vpop.f32.mrb[30].mxu1  ;;  %v20067_v54 = vpop.f32.mrb[38].mxu0  ;;  %v21472_v48 = vrot.slane %v19985_v30, 1  ;;  %v21474_v21 = vrot.slane %v19987_v55, 1 }
 0x3ec   :  { %v21476_v15 = vrot.slane %v19989_v20, 1  ;;  %v21478_v46 = vrot.slane %v19991_v2, 1  ;;  %v20095_v13 = vpop.f32.mrb[39].mxu0  ;;  %v20099_v31 = vmax.f32 %v1810_v62, %v1811_v27  ;;  %v1458_v62 = vadd.f32 %v20031_v49, %v20089_v50 }
 0x3ed   :  { %v20072_v0 = vmax.f32 %v19985_v30, %v21472_v48  ;;  %v20077_v28 = vmax.f32 %v19987_v55, %v21474_v21  ;;  %v20093_v30 = vpop.f32.mrb[31].mxu1  ;;  %v20097_v55 = vmax.f32 %v1786_v34, %v1787_v57  ;;  %v20103_v48 = vmax.f32 %v1792_v9, %v1793_v29  ;;  %v16081_v29 = vld [vmem:[#allocation7 + $0x184] ss:$24 sps:$4 sm:$0xff]  }
 0x3ee   :  { %v20082_v12 = vmax.f32 %v19989_v20, %v21476_v15  ;;  %v20087_v41 = vmax.f32 %v19991_v2, %v21478_v46  ;;  %21481 = vst [vmem:[#allocation43_spill] sm:$0xff] %v20099_v31  ;;  %v20105_v2 = vmax.f32 %v1816_v35, %v1817_v63  ;;  %v1456_v21 = vadd.f32 %v20025_v16, %v20061_v38 }
 0x3ef   :  { %21473 = vst [vmem:[#allocation41_spill] sm:$0xff] %v20072_v0  ;;  %21475 = vst [vmem:[#allocation30_spill] sm:$0xff] %v20077_v28  ;;  %v2426_v15 = vadd.f32 %v20027_v1, %v20063_v58  ;;  %v2428_v57 = vadd.f32 %v20033_v47, %v20091_v7  ;;  %v1460_v35 = vadd.f32 %v20037_v24, %v20061_v38  ;;  %v16084_v1 = vld [vmem:[#allocation7 + $0x484] ss:$24 sps:$4 sm:$0xff]   ;;  %v1585_v63 = vrot.slane %v1458_v62, 4 }
 0x3f0   :  { %21477 = vst [vmem:[#allocation40_spill] sm:$0xff] %v20082_v12  ;;  %21479 = vst [vmem:[#allocation31_spill] sm:$0xff] %v20087_v41  ;;  %v1579_v9 = vrot.slane %v1456_v21, 4  ;;  %v2430_v16 = vadd.f32 %v20039_v10, %v20063_v58  ;;  %v1462_v34 = vadd.f32 %v20041_v60, %v20089_v50  ;;  %v2432_v49 = vadd.f32 %v20043_v45, %v20091_v7  ;;  %v16079_v47 = vld [vmem:[#allocation7 + $0x180] ss:$24 sps:$4 sm:$0xff]  }
 0x3f1   :  { %21480 = vst [vmem:[#allocation42_spill] sm:$0xff] %v20097_v55  ;;  %21482 = vst [vmem:[#allocation44_spill] sm:$0xff] %v20103_v48  ;;  %v2549_v27 = vrot.slane %v2426_v15, 4  ;;  %v2555_v46 = vrot.slane %v2428_v57, 4  ;;  %v20125_v5 = vpop.f32.mrb[32].mxu1  ;;  %v1615_v31 = vrot.slane %v1460_v35, 4  ;;  %5008 = vmatprep.subr.bf16.mxu1 %v16081_v29  ;;  %5049 = vmatprep.subr.bf16.mxu0 %v16084_v1  ;;  %v1586_v28 = vmax.f32 %v1458_v62, %v1585_v63 }
 0x3f2   :  { %21483 = vst [vmem:[#allocation45_spill] sm:$0xff] %v20105_v2  ;;  %v1580_v20 = vmax.f32 %v1456_v21, %v1579_v9  ;;  %v2585_v24 = vrot.slane %v2430_v16, 4  ;;  %v20127_v41 = vpop.f32.mrb[33].mxu1  ;;  %v16082_v10 = vld [vmem:[#allocation7 + $0x480] ss:$24 sps:$4 sm:$0xff]   ;;  %v1621_v39 = vrot.slane %v1462_v34, 4  ;;  %5009 = vmatpush1.bf16.msra.mxu1 %v16079_v47 }
 0x3f3   :  { %v2550_v2 = vmax.f32 %v2426_v15, %v2549_v27  ;;  %v2556_v40 = vmax.f32 %v2428_v57, %v2555_v46  ;;  %v2591_v25 = vrot.slane %v2432_v49, 4  ;;  %v20129_v60 = vpop.f32.mrb[34].mxu1  ;;  %v1616_v4 = vmax.f32 %v1460_v35, %v1615_v31  ;;  %5050 = vmatpush1.bf16.msra.mxu0 %v16082_v10  ;;  %v16087_v15 = vld [vmem:[#allocation7 + $0x1b4] ss:$24 sps:$4 sm:$0xff]   ;;  %v16085_v1 = vld [vmem:[#allocation7 + $0x1b0] ss:$24 sps:$4 sm:$0xff]  }
 0x3f4   :  { %v1581_v45 = vrot.slane %v1580_v20, 2  ;;  %v2586_v48 = vmax.f32 %v2430_v16, %v2585_v24  ;;  %v20131_v21 = vpop.f32.mrb[35].mxu1  ;;  %v1587_v9 = vrot.slane %v1586_v28, 2  ;;  %v1622_v29 = vmax.f32 %v1462_v34, %v1621_v39  ;;  %5010 = vmatprep.subr.bf16.mxu1 %v16087_v15  ;;  %v16088_v12 = vld [vmem:[#allocation7 + $0x4b0] ss:$24 sps:$4 sm:$0xff]  }
 0x3f5   :  { %v2551_v59 = vrot.slane %v2550_v2, 2  ;;  %v2557_v27 = vrot.slane %v2556_v40, 2  ;;  %v2592_v55 = vmax.f32 %v2432_v49, %v2591_v25  ;;  %v1617_v57 = vrot.slane %v1616_v4, 2  ;;  %v16090_v47 = vld [vmem:[#allocation7 + $0x4b4] ss:$24 sps:$4 sm:$0xff]  }
 0x3f6   :  { %v1582_v62 = vmax.f32 %v1580_v20, %v1581_v45  ;;  %v2587_v63 = vrot.slane %v2586_v48, 2  ;;  %v1588_v0 = vmax.f32 %v1586_v28, %v1587_v9  ;;  %v1623_v31 = vrot.slane %v1622_v29, 2  ;;  %5011 = vmatpush1.bf16.msra.mxu1 %v16085_v1  ;;  %5051 = vmatprep.subr.bf16.mxu0 %v16090_v47  ;;  %v16093_v39 = vld [vmem:[#allocation7 + $0x1e4] ss:$24 sps:$4 sm:$0xff]   ;;  %v16091_v49 = vld [vmem:[#allocation7 + $0x1e0] ss:$24 sps:$4 sm:$0xff]  }
 0x3f7   :  { %v2552_v46 = vmax.f32 %v2550_v2, %v2551_v59  ;;  %v2558_v17 = vmax.f32 %v2556_v40, %v2557_v27  ;;  %v2593_v35 = vrot.slane %v2592_v55, 2  ;;  %v1618_v10 = vmax.f32 %v1616_v4, %v1617_v57  ;;  %5052 = vmatpush1.bf16.msra.mxu0 %v16088_v12  ;;  %5012 = vmatprep.subr.bf16.mxu1 %v16093_v39  ;;  %v16094_v27 = vld [vmem:[#allocation7 + $0x4e0] ss:$24 sps:$4 sm:$0xff]  }
 0x3f8   :  { %v1583_v16 = vrot.slane %v1582_v62, 1  ;;  %v2588_v22 = vmax.f32 %v2586_v48, %v2587_v63  ;;  %v1589_v25 = vrot.slane %v1588_v0, 1  ;;  %v1624_v20 = vmax.f32 %v1622_v29, %v1623_v31  ;;  %v16096_v29 = vld [vmem:[#allocation7 + $0x4e4] ss:$24 sps:$4 sm:$0xff]  }
 0x3f9   :  { %v2553_v24 = vrot.slane %v2552_v46, 1  ;;  %v2559_v34 = vrot.slane %v2558_v17, 1  ;;  %v2594_v59 = vmax.f32 %v2592_v55, %v2593_v35  ;;  %v20133_v2 = vpop.f32.mrb[36].mxu1  ;;  %v1619_v40 = vrot.slane %v1618_v10, 1  ;;  %5053 = vmatprep.subr.bf16.mxu0 %v16096_v29 }
 0x3fa   :  { %v1584_v45 = vmax.f32 %v1582_v62, %v1583_v16  ;;  %v2589_v15 = vrot.slane %v2588_v22, 1  ;;  %v20135_v9 = vpop.f32.mrb[37].mxu1  ;;  %v1590_v4 = vmax.f32 %v1588_v0, %v1589_v25  ;;  %v1625_v1 = vrot.slane %v1624_v20, 1  ;;  %5013 = vmatpush1.bf16.msra.mxu1 %v16091_v49 }
 0x3fb   :  { %v2554_v28 = vmax.f32 %v2552_v46, %v2553_v24  ;;  %v2560_v48 = vmax.f32 %v2558_v17, %v2559_v34  ;;  %v2595_v57 = vrot.slane %v2594_v59, 1  ;;  %v20137_v63 = vpop.f32.mrb[38].mxu1  ;;  %v1620_v47 = vmax.f32 %v1618_v10, %v1619_v40  ;;  %5054 = vmatpush1.bf16.msra.mxu0 %v16094_v27 }
 0x3fc   :  { %v2590_v12 = vmax.f32 %v2588_v22, %v2589_v15  ;;  %v1466_v62 = vadd.f32 %v20045_v14, %v20061_v38  ;;  %v20141_v46 = vpop.f32.mrb[39].mxu1  ;;  %v1626_v35 = vmax.f32 %v1624_v20, %v1625_v1  ;;  %v2436_v17 = vadd.f32 %v20047_v36, %v20063_v58  ;;  %v16102_v15 = vld [vmem:[#allocation7 + $0x514] ss:$24 sps:$4 sm:$0xff]   ;;  %v16097_v1 = vld [vmem:[#allocation7 + $0x210] ss:$24 sps:$4 sm:$0xff]  }
 0x3fd   :  { %v2827_v55 = vmax.f32 %v1584_v45, %v2554_v28  ;;  %v2828_v31 = vmax.f32 %v1590_v4, %v2560_v48  ;;  %v2596_v16 = vmax.f32 %v2594_v59, %v2595_v57  ;;  %v1468_v10 = vadd.f32 %v20053_v8, %v20089_v50  ;;  %v16099_v8 = vld [vmem:[#allocation7 + $0x214] ss:$24 sps:$4 sm:$0xff]   ;;  %v16100_v57 = vld [vmem:[#allocation7 + $0x510] ss:$24 sps:$4 sm:$0xff]   ;;  %5055 = vmatprep.subr.bf16.mxu0 %v16102_v15 }
 0x3fe   :  { %v2833_v24 = vmax.f32 %v1620_v47, %v2590_v12  ;;  %v1651_v39 = vrot.slane %v1466_v62, 4  ;;  %v2621_v25 = vrot.slane %v2436_v17, 4  ;;  %v2438_v34 = vadd.f32 %v20055_v61, %v20091_v7  ;;  %5014 = vmatprep.subr.bf16.mxu1 %v16099_v8 }
 0x3ff   :  { %v2899_v0 = vadd.f32 %v19960_v26, %v2827_v55  ;;  %v2900_v22 = vadd.f32 %v19963_v44, %v2828_v31  ;;  %v2834_v14 = vmax.f32 %v1626_v35, %v2596_v16  ;;  %v1657_v59 = vrot.slane %v1468_v10, 4  ;;  %5015 = vmatpush1.bf16.msra.mxu1 %v16097_v1  ;;  %5056 = vmatpush1.bf16.msra.mxu0 %v16100_v57  ;;  %v16105_v57 = vld [vmem:[#allocation7 + $0x244] ss:$24 sps:$4 sm:$0xff]  }
 0x400   :  { %v2905_v20 = vadd.f32 %v19960_v26, %v2833_v24  ;;  %v1652_v36 = vmax.f32 %v1466_v62, %v1651_v39  ;;  %v2622_v45 = vmax.f32 %v2436_v17, %v2621_v25  ;;  %v2627_v28 = vrot.slane %v2438_v34, 4  ;;  %5016 = vmatprep.subr.bf16.mxu1 %v16105_v57 }
 0x401   :  { %18191 = vtanh.f32 %v2899_v0  ;;  %v2906_v49 = vadd.f32 %v19963_v44, %v2834_v14  ;;  %v20153_v40 = vpop.f32.mrb[40].mxu1  ;;  %v1658_v4 = vmax.f32 %v1468_v10, %v1657_v59  ;;  %v1470_v61 = vadd.f32 %v20065_v11, %v20061_v38 }
 0x402   :  { %18193 = vtanh.f32 %v2900_v22  ;;  %v1653_v27 = vrot.slane %v1652_v36, 2  ;;  %v20157_v48 = vpop.f32.mrb[41].mxu1  ;;  %v2623_v29 = vrot.slane %v2622_v45, 2  ;;  %v2628_v55 = vmax.f32 %v2438_v34, %v2627_v28 }
 0x403   :  { %18195 = vtanh.f32 %v2905_v20  ;;  %v2440_v47 = vadd.f32 %v20067_v54, %v20063_v58  ;;  %v20161_v12 = vpop.f32.mrb[42].mxu1  ;;  %v1659_v31 = vrot.slane %v1658_v4, 2  ;;  %v1687_v35 = vrot.slane %v1470_v61, 4 }
 0x404   :  { %18197 = vtanh.f32 %v2906_v49  ;;  %v1654_v62 = vmax.f32 %v1652_v36, %v1653_v27  ;;  %v1472_v11 = vadd.f32 %v20093_v30, %v20089_v50  ;;  %v20165_v16 = vpop.f32.mrb[43].mxu1  ;;  %v2624_v17 = vmax.f32 %v2622_v45, %v2623_v29 }
 0x405   :  { %v2629_v0 = vrot.slane %v2628_v55, 2  ;;  %v2657_v24 = vrot.slane %v2440_v47, 4  ;;  %v2442_v54 = vadd.f32 %v20095_v13, %v20091_v7  ;;  %v1660_v10 = vmax.f32 %v1658_v4, %v1659_v31  ;;  %v16103_v31 = vld [vmem:[#allocation7 + $0x240] ss:$24 sps:$4 sm:$0xff]  }
 0x406   :  { %v1655_v39 = vrot.slane %v1654_v62, 1  ;;  %v1688_v22 = vmax.f32 %v1470_v61, %v1687_v35  ;;  %v1693_v14 = vrot.slane %v1472_v11, 4  ;;  %v2625_v25 = vrot.slane %v2624_v17, 1  ;;  %v16106_v35 = vld [vmem:[#allocation7 + $0x540] ss:$24 sps:$4 sm:$0xff]   ;;  %5017 = vmatpush1.bf16.msra.mxu1 %v16103_v31 }
 0x407   :  { %v2630_v34 = vmax.f32 %v2628_v55, %v2629_v0  ;;  %v2658_v20 = vmax.f32 %v2440_v47, %v2657_v24  ;;  %v2663_v36 = vrot.slane %v2442_v54, 4  ;;  %v1661_v30 = vrot.slane %v1660_v10, 1  ;;  %v16114_v31 = vld [vmem:[#allocation7 + $0x574] ss:$24 sps:$4 sm:$0xff]  }
 0x408   :  { %v1656_v59 = vmax.f32 %v1654_v62, %v1655_v39  ;;  %v1689_v49 = vrot.slane %v1688_v22, 2  ;;  %v1694_v28 = vmax.f32 %v1472_v11, %v1693_v14  ;;  %v2626_v8 = vmax.f32 %v2624_v17, %v2625_v25 }
 0x409   :  { %v2631_v15 = vrot.slane %v2630_v34, 1  ;;  %v2659_v45 = vrot.slane %v2658_v20, 2  ;;  %v2664_v27 = vmax.f32 %v2442_v54, %v2663_v36  ;;  %v20169_v1 = vpop.f32.mrb[44].mxu1  ;;  %v21485_v4 = vrot.slane %v20049_v37, 1 }
 0x40a   :  { %v1662_v29 = vmax.f32 %v1660_v10, %v1661_v30  ;;  %v1690_v55 = vmax.f32 %v1688_v22, %v1689_v49  ;;  %v1695_v47 = vrot.slane %v1694_v28, 2  ;;  %v20178_v62 = vpop.f32.mrb[45].mxu1  ;;  %v2839_v0 = vmax.f32 %v1656_v59, %v2626_v8 }
 0x40b   :  { %v20171_v13 = vpop.eup %18191  ;;  %v20176_v61 = vmax.f32 %v20049_v37, %v21485_v4  ;;  %v2632_v24 = vmax.f32 %v2630_v34, %v2631_v15  ;;  %v2660_v54 = vmax.f32 %v2658_v20, %v2659_v45  ;;  %v20184_v39 = vpop.f32.mrb[46].mxu1  ;;  %v16108_v37 = vld [vmem:[#allocation7 + $0x544] ss:$24 sps:$4 sm:$0xff]   ;;  %v21489_v10 = vrot.slane %v20051_v19, 1 }
 0x40c   :  { %21484 = vst [vmem:[#allocation46_spill] sm:$0xff] %v20171_v13  ;;  %v20180_v11 = vpop.eup %18193  ;;  %v2995_v17 = vpack.c.bf16 %v20171_v13, %v20171_v13  ;;  %v1691_v25 = vrot.slane %v1690_v55, 1  ;;  %v1696_v36 = vmax.f32 %v1694_v28, %v1695_v47  ;;  %v2665_v30 = vrot.slane %v2664_v27, 2  ;;  %v20193_v49 = vpop.f32.mrb[47].mxu1  ;;  %5057 = vmatprep.subr.bf16.mxu0 %v16108_v37  ;;  %v16111_v47 = vld [vmem:[#allocation7 + $0x274] ss:$24 sps:$4 sm:$0xff]  }
 0x40d   :  { %21486 = vst [vmem:[#allocation47_spill] sm:$0xff] %v20176_v61  ;;  %21487 = vst [vmem:[#allocation48_spill] sm:$0xff] %v20180_v11  ;;  %v20186_v14 = vpop.eup %18195  ;;  %v20191_v22 = vmax.f32 %v20051_v19, %v21489_v10  ;;  %v21492_v34 = vrot.slane %v20057_v18, 1  ;;  %v2911_v15 = vadd.f32 %v19960_v26, %v2839_v0  ;;  %v1476_v19 = vadd.f32 %v20125_v5, %v20061_v38 }
 0x40e   :  { %21488 = vst [vmem:[#allocation49_spill] sm:$0xff] %v20186_v14  ;;  %v20195_v59 = vpop.eup %18197  ;;  %v3001_v8 = vpack.c.bf16 %v20186_v14, %v20186_v14  ;;  %v21494_v28 = vrot.slane %v20059_v6, 1  ;;  %v20212_v57 = vunpack.c.l.b16 %v2995_v17  ;;  %v2840_v4 = vmax.f32 %v1662_v29, %v2632_v24  ;;  %5058 = vmatpush1.bf16.msra.mxu0 %v16106_v35  ;;  %5018 = vmatprep.subr.bf16.mxu1 %v16111_v47 }
 0x40f   :  { %21490 = vst [vmem:[#allocation50_spill] sm:$0xff] %v20191_v22  ;;  %21491 = vst [vmem:[#allocation51_spill] sm:$0xff] %v20195_v59  ;;  %v20200_v20 = vmax.f32 %v20057_v18, %v21492_v34  ;;  %v2996_v18 = vpack.c.bf16 %v20180_v11, %v20180_v11  ;;  %v3002_v0 = vpack.c.bf16 %v20195_v59, %v20195_v59  ;;  %18199 = vtanh.f32 %v2911_v15  ;;  %v20218_v10 = vpop.f32.mrb[40].mxu0  ;;  %v16109_v34 = vld [vmem:[#allocation7 + $0x270] ss:$24 sps:$4 sm:$0xff]  }
 0x410   :  { %v20210_v45 = vmax.f32 %v20059_v6, %v21494_v28  ;;  %v1692_v5 = vmax.f32 %v1690_v55, %v1691_v25  ;;  %v2661_v37 = vrot.slane %v2660_v54, 1  ;;  %v16112_v6 = vld [vmem:[#allocation7 + $0x570] ss:$24 sps:$4 sm:$0xff]   ;;  %v20220_v28 = vunpack.c.l.b16 %v3001_v8  ;;  %v20223_v29 = vpop.f32.mrb[41].mxu0  ;;  %5059 = vmatprep.subr.bf16.mxu0 %v16114_v31  ;;  %5019 = vmatpush1.bf16.msra.mxu1 %v16109_v34 }
 0x411   :  { %21493 = vst [vmem:[#allocation52_spill] sm:$0xff] %v20200_v20  ;;  %v2912_v17 = vadd.f32 %v19963_v44, %v2840_v4  ;;  %v1697_v13 = vrot.slane %v1696_v36, 1  ;;  %v2666_v11 = vmax.f32 %v2664_v27, %v2665_v30  ;;  %v1723_v15 = vrot.slane %v1476_v19, 4  ;;  %v20228_v25 = vpop.f32.mrb[48].mxu1 }
 0x412   :  { %21495 = vst [vmem:[#allocation53_spill] sm:$0xff] %v20210_v45  ;;  %v2662_v24 = vmax.f32 %v2660_v54, %v2661_v37  ;;  %v1478_v55 = vadd.f32 %v20127_v41, %v20089_v50  ;;  %v20230_v45 = vpop.f32.mrb[42].mxu0  ;;  %v20232_v8 = vunpack.c.l.b16 %v2996_v18  ;;  %v20234_v4 = vpop.f32.mrb[49].mxu1  ;;  %5060 = vmatpush1.bf16.msra.mxu0 %v16112_v6  ;;  %v20238_v54 = vunpack.c.l.b16 %v3002_v0 }
 0x413   :  { %18201 = vtanh.f32 %v2912_v17  ;;  %v1698_v27 = vmax.f32 %v1696_v36, %v1697_v13  ;;  %v2667_v30 = vrot.slane %v2666_v11, 1  ;;  %v20236_v47 = vpop.f32.mrb[43].mxu0  ;;  %v1724_v41 = vmax.f32 %v1476_v19, %v1723_v15  ;;  %v20240_v35 = vpop.f32.mrb[50].mxu1 }
 0x414   :  { %v2845_v31 = vmax.f32 %v1692_v5, %v2662_v24  ;;  %v1729_v37 = vrot.slane %v1478_v55, 4  ;;  %v3484_v34 = vrot.slane %v20220_v28, 7  ;;  %v1480_v17 = vadd.f32 %v20129_v60, %v20061_v38  ;;  %v20247_v36 = vpop.f32.mrb[51].mxu1 }
 0x415   :  { %v2668_v18 = vmax.f32 %v2666_v11, %v2667_v30  ;;  %v1482_v13 = vadd.f32 %v20131_v21, %v20089_v50  ;;  %v1725_v0 = vrot.slane %v1724_v41, 2  ;;  %v1486_v19 = vadd.f32 %v20133_v2, %v20061_v38 }
 0x416   :  { %v2917_v6 = vadd.f32 %v19960_v26, %v2845_v31  ;;  %v1730_v14 = vmax.f32 %v1478_v55, %v1729_v37  ;;  %v1759_v24 = vrot.slane %v1480_v17, 4  ;;  %v1488_v11 = vadd.f32 %v20135_v9, %v20089_v50  ;;  %v16117_v55 = vld [vmem:[#allocation7 + $0x2a4] ss:$24 sps:$4 sm:$0xff]  }
 0x417   :  { %v2846_v5 = vmax.f32 %v1698_v27, %v2668_v18  ;;  %v1765_v15 = vrot.slane %v1482_v13, 4  ;;  %v1726_v60 = vmax.f32 %v1724_v41, %v1725_v0  ;;  %v1795_v21 = vrot.slane %v1486_v19, 4  ;;  %v16120_v37 = vld [vmem:[#allocation7 + $0x5a4] ss:$24 sps:$4 sm:$0xff]   ;;  %v16115_v0 = vld [vmem:[#allocation7 + $0x2a0] ss:$24 sps:$4 sm:$0xff]   ;;  %5020 = vmatprep.subr.bf16.mxu1 %v16117_v55 }
 0x418   :  { %18203 = vtanh.f32 %v2917_v6  ;;  %v1731_v28 = vrot.slane %v1730_v14, 2  ;;  %v1760_v22 = vmax.f32 %v1480_v17, %v1759_v24  ;;  %v1801_v20 = vrot.slane %v1488_v11, 4  ;;  %5061 = vmatprep.subr.bf16.mxu0 %v16120_v37  ;;  %5021 = vmatpush1.bf16.msra.mxu1 %v16115_v0 }
 0x419   :  { %v2918_v30 = vadd.f32 %v19963_v44, %v2846_v5  ;;  %v1766_v31 = vmax.f32 %v1482_v13, %v1765_v15  ;;  %v20255_v61 = vpop.eup %18199  ;;  %v3498_v2 = vrot.slane %v20238_v54, 7  ;;  %v1796_v18 = vmax.f32 %v1486_v19, %v1795_v21  ;;  %v20261_v41 = vpop.f32.mrb[52].mxu1  ;;  %v16118_v19 = vld [vmem:[#allocation7 + $0x5a0] ss:$24 sps:$4 sm:$0xff]  }
 0x41a   :  { %21496 = vst [vmem:[#allocation54_spill] sm:$0xff] %v20255_v61  ;;  %v1490_v9 = vadd.f32 %v20137_v63, %v20061_v38  ;;  %21497 = vst [vmem:[#allocation55_spill] sm:$0xff] %v20261_v41  ;;  %v20263_v6 = vpop.f32.mrb[44].mxu0  ;;  %v3007_v17 = vpack.c.bf16 %v20255_v61, %v20255_v61  ;;  %v1732_v13 = vmax.f32 %v1730_v14, %v1731_v28  ;;  %v1761_v5 = vrot.slane %v1760_v22, 2  ;;  %v20267_v24 = vpop.f32.mrb[53].mxu1 }
 0x41b   :  { %21498 = vst [vmem:[#allocation56_spill] sm:$0xff] %v20263_v6  ;;  %18205 = vtanh.f32 %v2918_v30  ;;  %21499 = vst [vmem:[#allocation57_spill] sm:$0xff] %v20267_v24  ;;  %v20269_v54 = vpop.f32.mrb[45].mxu0  ;;  %v3485_v38 = vsel %vm3450_vm14, %v3484_v34, %v20212_v57  ;;  %v1727_v63 = vrot.slane %v1726_v60, 1  ;;  %v1767_v15 = vrot.slane %v1766_v31, 2  ;;  %v20273_v27 = vpop.f32.mrb[54].mxu1  ;;  %5062 = vmatpush1.bf16.msra.mxu0 %v16118_v19 }
 0x41c   :  { %21500 = vst [vmem:[#allocation58_spill] sm:$0xff] %v20269_v54  ;;  %v1797_v21 = vrot.slane %v1796_v18, 2  ;;  %21501 = vst [vmem:[#allocation59_spill] sm:$0xff] %v20273_v27  ;;  %v20275_v59 = vpop.f32.mrb[46].mxu0  ;;  %v3415_v28 = vunpack.c.l.b16 %v3007_v17  ;;  %v1762_v30 = vmax.f32 %v1760_v22, %v1761_v5  ;;  %v1802_v24 = vmax.f32 %v1488_v11, %v1801_v20  ;;  %v20279_v55 = vpop.f32.mrb[55].mxu1 }
 0x41d   :  { %21502 = vst [vmem:[#allocation60_spill] sm:$0xff] %v20275_v59  ;;  %v20277_v14 = vpop.eup %18201  ;;  %v1831_v54 = vrot.slane %v1490_v9, 4  ;;  %21504 = vst [vmem:[#allocation62_spill] sm:$0xff] %v20279_v55  ;;  %v20281_v37 = vpop.f32.mrb[47].mxu0  ;;  %v16123_v57 = vld [vmem:[#allocation7 + $0x2d4] ss:$24 sps:$4 sm:$0xff]   ;;  %v3499_v34 = vsel %vm3450_vm14, %v3498_v2, %v20232_v8  ;;  %v1768_v59 = vmax.f32 %v1766_v31, %v1767_v15  ;;  %v20288_v19 = vmax.f32 %v1726_v60, %v1727_v63 }
 0x41e   :  { %21503 = vst [vmem:[#allocation61_spill] sm:$0xff] %v20277_v14  ;;  %21505 = vst [vmem:[#allocation63_spill] sm:$0xff] %v20281_v37  ;;  %v3008_v0 = vpack.c.bf16 %v20277_v14, %v20277_v14  ;;  %v16121_v6 = vld [vmem:[#allocation7 + $0x2d0] ss:$24 sps:$4 sm:$0xff]   ;;  %v3486_v22 = vrot.slane %v3415_v28, 6  ;;  %v1733_v20 = vrot.slane %v1732_v13, 1  ;;  %v1798_v11 = vmax.f32 %v1796_v18, %v1797_v21  ;;  %5022 = vmatprep.subr.bf16.mxu1 %v16123_v57 }
 0x41f   :  { %v16124_v17 = vld [vmem:[#allocation7 + $0x5d0] ss:$24 sps:$4 sm:$0xff]   ;;  %v1803_v5 = vrot.slane %v1802_v24, 2  ;;  %v16126_v55 = vld [vmem:[#allocation7 + $0x5d4] ss:$24 sps:$4 sm:$0xff]   ;;  %v1832_v41 = vmax.f32 %v1490_v9, %v1831_v54  ;;  %v1492_v8 = vadd.f32 %v20141_v46, %v20089_v50  ;;  %5023 = vmatpush1.bf16.msra.mxu1 %v16121_v6  ;;  %v1763_v15 = vrot.slane %v1762_v30, 1 }
 0x420   :  { %v3416_v37 = vunpack.c.l.b16 %v3008_v0  ;;  %v20292_v2 = vld [vmem:[#allocation6 + $0x30] sm:$0xff]  ;;  %v20295_v31 = vsel %vm3453_vm15, %v3486_v22, %v3485_v38  ;;  %v1769_v28 = vrot.slane %v1768_v59, 1  ;;  %v20297_v18 = vld [vmem:[#allocation6 + $0x38] sm:$0xff]  ;;  %5063 = vmatprep.subr.bf16.mxu0 %v16126_v55  ;;  %v20306_v6 = vmax.f32 %v1732_v13, %v1733_v20 }
 0x421   :  { %21506 = vst [vmem:[#allocation64_spill] sm:$0xff] %v20295_v31  ;;  %v1804_v27 = vmax.f32 %v1802_v24, %v1803_v5  ;;  %v1833_v54 = vrot.slane %v1832_v41, 2  ;;  %v1837_v63 = vrot.slane %v1492_v8, 4  ;;  %v20302_v50 = vpop.f32.mrb[56].mxu1  ;;  %5064 = vmatpush1.bf16.msra.mxu0 %v16124_v17  ;;  %v1799_v38 = vrot.slane %v1798_v11, 1 }
 0x422   :  { %v20299_v21 = vpop.eup %18203  ;;  %v3500_v60 = vrot.slane %v3416_v37, 6  ;;  %v2353_v24 = vadd.f32 %v20153_v40, %v20292_v2  ;;  %v20310_v55 = vpop.f32.mrb[57].mxu1  ;;  %v2355_v22 = vadd.f32 %v20157_v48, %v20297_v18  ;;  %v20321_v13 = vmax.f32 %v1762_v30, %v1763_v15 }
 0x423   :  { %21507 = vst [vmem:[#allocation65_spill] sm:$0xff] %v20299_v21  ;;  %v3013_v46 = vpack.c.bf16 %v20299_v21, %v20299_v21  ;;  %21508 = vst [vmem:[#allocation66_spill] sm:$0xff] %v20310_v55  ;;  %v1805_v57 = vrot.slane %v1804_v27, 1  ;;  %v1838_v0 = vmax.f32 %v1492_v8, %v1837_v63  ;;  %v20317_v17 = vpop.f32.mrb[58].mxu1  ;;  %v20323_v20 = vmax.f32 %v1768_v59, %v1769_v28 }
 0x424   :  { %v20313_v37 = vsel %vm3453_vm15, %v3500_v60, %v3499_v34  ;;  %21510 = vst [vmem:[#allocation68_spill] sm:$0xff] %v20317_v17  ;;  %v2537_v9 = vrot.slane %v2353_v24, 4  ;;  %v2357_v40 = vadd.f32 %v20161_v12, %v20292_v2  ;;  %v20327_v14 = vpop.f32.mrb[59].mxu1  ;;  %v20331_v8 = vmax.f32 %v1832_v41, %v1833_v54 }
 0x425   :  { %21509 = vst [vmem:[#allocation67_spill] sm:$0xff] %v20313_v37  ;;  %v20319_v5 = vpop.eup %18205  ;;  %21512 = vst [vmem:[#allocation70_spill] sm:$0xff] %v20327_v14  ;;  %v1839_v48 = vrot.slane %v1838_v0, 2  ;;  %v2543_v60 = vrot.slane %v2355_v22, 4  ;;  %v20333_v63 = vmax.f32 %v1798_v11, %v1799_v38  ;;  %v2359_v59 = vadd.f32 %v20165_v16, %v20297_v18 }
 0x426   :  { %21511 = vst [vmem:[#allocation69_spill] sm:$0xff] %v20319_v5  ;;  %v3014_v34 = vpack.c.bf16 %v20319_v5, %v20319_v5  ;;  %v2538_v21 = vmax.f32 %v2353_v24, %v2537_v9  ;;  %v2573_v30 = vrot.slane %v2357_v40, 4  ;;  %v20337_v15 = vunpack.c.l.b16 %v3013_v46 }
 0x427   :  { %v20339_v28 = vmax.f32 %v1804_v27, %v1805_v57  ;;  %v20341_v12 = vmax.f32 %v1838_v0, %v1839_v48  ;;  %v2544_v61 = vmax.f32 %v2355_v22, %v2543_v60  ;;  %v2579_v41 = vrot.slane %v2359_v59, 4 }
 0x428   :  { %v2539_v31 = vrot.slane %v2538_v21, 2  ;;  %v2574_v5 = vmax.f32 %v2357_v40, %v2573_v30  ;;  %v2363_v54 = vadd.f32 %v20169_v1, %v20292_v2  ;;  %v20345_v11 = vunpack.c.l.b16 %v3014_v34 }
 0x429   :  { %21513 = vst [vmem:[#allocation71_spill] sm:$0xff] %v20339_v28  ;;  %v2545_v38 = vrot.slane %v2544_v61, 2  ;;  %v2365_v16 = vadd.f32 %v20178_v62, %v20297_v18  ;;  %v20350_v46 = vpop.f32.mrb[60].mxu1  ;;  %v2580_v57 = vmax.f32 %v2359_v59, %v2579_v41  ;;  %v2367_v34 = vadd.f32 %v20184_v39, %v20292_v2 }
 0x42a   :  { %21514 = vst [vmem:[#allocation72_spill] sm:$0xff] %v20350_v46  ;;  %v2540_v27 = vmax.f32 %v2538_v21, %v2539_v31  ;;  %v2575_v24 = vrot.slane %v2574_v5, 2  ;;  %v2609_v0 = vrot.slane %v2363_v54, 4  ;;  %v20352_v22 = vpop.f32.mrb[61].mxu1  ;;  %v2369_v41 = vadd.f32 %v20193_v49, %v20297_v18 }
 0x42b   :  { %21515 = vst [vmem:[#allocation73_spill] sm:$0xff] %v20352_v22  ;;  %v2546_v48 = vmax.f32 %v2544_v61, %v2545_v38  ;;  %v2615_v1 = vrot.slane %v2365_v16, 4  ;;  %v20357_v60 = vpop.f32.mrb[62].mxu1  ;;  %v2581_v62 = vrot.slane %v2580_v57, 2  ;;  %v2645_v59 = vrot.slane %v2367_v34, 4 }
 0x42c   :  { %21516 = vst [vmem:[#allocation74_spill] sm:$0xff] %v20357_v60  ;;  %v2541_v30 = vrot.slane %v2540_v27, 1  ;;  %v2576_v9 = vmax.f32 %v2574_v5, %v2575_v24  ;;  %v2610_v37 = vmax.f32 %v2363_v54, %v2609_v0  ;;  %v20359_v46 = vpop.f32.mrb[63].mxu1  ;;  %v2651_v60 = vrot.slane %v2369_v41, 4 }
 0x42d   :  { %21517 = vst [vmem:[#allocation75_spill] sm:$0xff] %v20359_v46  ;;  %v2547_v31 = vrot.slane %v2546_v48, 1  ;;  %v2616_v21 = vmax.f32 %v2365_v16, %v2615_v1  ;;  %v2582_v38 = vmax.f32 %v2580_v57, %v2581_v62  ;;  %v2646_v17 = vmax.f32 %v2367_v34, %v2645_v59 }
 0x42e   :  { %v2542_v40 = vmax.f32 %v2540_v27, %v2541_v30  ;;  %v2577_v61 = vrot.slane %v2576_v9, 1  ;;  %v2611_v22 = vrot.slane %v2610_v37, 2  ;;  %v2652_v55 = vmax.f32 %v2369_v41, %v2651_v60 }
 0x42f   :  { %v2548_v14 = vmax.f32 %v2546_v48, %v2547_v31  ;;  %v2617_v39 = vrot.slane %v2616_v21, 2  ;;  %v2583_v54 = vrot.slane %v2582_v38, 1  ;;  %v2647_v1 = vrot.slane %v2646_v17, 2 }
 0x430   :  { %v2825_v5 = vmax.f32 %v19937_v51, %v2542_v40  ;;  %v2578_v24 = vmax.f32 %v2576_v9, %v2577_v61  ;;  %v2612_v0 = vmax.f32 %v2610_v37, %v2611_v22  ;;  %v2653_v37 = vrot.slane %v2652_v55, 2 }
 0x431   :  { %v2826_v46 = vmax.f32 %v19941_v23, %v2548_v14  ;;  %v2618_v16 = vmax.f32 %v2616_v21, %v2617_v39  ;;  %v20365_v28 = vpop.f32.mrb[64].mxu1  ;;  %v2584_v57 = vmax.f32 %v2582_v38, %v2583_v54  ;;  %v2648_v40 = vmax.f32 %v2646_v17, %v2647_v1 }
 0x432   :  { %v2897_v49 = vadd.f32 %v20004_v52, %v2825_v5  ;;  %v2831_v27 = vmax.f32 %v19945_v42, %v2578_v24  ;;  %v2613_v48 = vrot.slane %v2612_v0, 1  ;;  %v20369_v34 = vpop.f32.mrb[65].mxu1  ;;  %v2654_v31 = vmax.f32 %v2652_v55, %v2653_v37 }
 0x433   :  { %v2898_v51 = vadd.f32 %v20007_v43, %v2826_v46  ;;  %v2619_v9 = vrot.slane %v2618_v16, 1  ;;  %v20372_v22 = vpop.f32.mrb[66].mxu1  ;;  %v2832_v14 = vmax.f32 %v19953_v53, %v2584_v57  ;;  %v2649_v62 = vrot.slane %v2648_v40, 1 }
 0x434   :  { %18207 = vtanh.f32 %v2897_v49  ;;  %v2903_v23 = vadd.f32 %v20004_v52, %v2831_v27  ;;  %v2614_v60 = vmax.f32 %v2612_v0, %v2613_v48  ;;  %v20376_v30 = vpop.f32.mrb[67].mxu1  ;;  %v2446_v21 = vadd.f32 %v20218_v10, %v20063_v58 }
 0x435   :  { %18209 = vtanh.f32 %v2898_v51  ;;  %v2620_v42 = vmax.f32 %v2618_v16, %v2619_v9  ;;  %v2904_v46 = vadd.f32 %v20007_v43, %v2832_v14  ;;  %v2650_v41 = vmax.f32 %v2648_v40, %v2649_v62 }
 0x436   :  { %18211 = vtanh.f32 %v2903_v23  ;;  %v2837_v17 = vmax.f32 %v19957_v32, %v2614_v60  ;;  %v2655_v61 = vrot.slane %v2654_v31, 1  ;;  %v2448_v53 = vadd.f32 %v20223_v29, %v20091_v7 }
 0x437   :  { %v2838_v59 = vmax.f32 %v19967_v3, %v2620_v42  ;;  %18213 = vtanh.f32 %v2904_v46  ;;  %v2693_v39 = vrot.slane %v2446_v21, 4  ;;  %v2373_v55 = vadd.f32 %v20228_v25, %v20292_v2 }
 0x438   :  { %v2909_v38 = vadd.f32 %v20004_v52, %v2837_v17  ;;  %v2843_v32 = vmax.f32 %v19975_v33, %v2650_v41  ;;  %v2656_v24 = vmax.f32 %v2654_v31, %v2655_v61  ;;  %v2699_v10 = vrot.slane %v2448_v53, 4  ;;  %v16129_v33 = vld [vmem:[#allocation7 + $0x604] ss:$24 sps:$4 sm:$0xff]  }
 0x439   :  { %v2910_v5 = vadd.f32 %v20007_v43, %v2838_v59  ;;  %v20390_v54 = vpop.f32.mrb[68].mxu1  ;;  %v2694_v3 = vmax.f32 %v2446_v21, %v2693_v39  ;;  %v2681_v0 = vrot.slane %v2373_v55, 4  ;;  %v2450_v29 = vadd.f32 %v20230_v45, %v20063_v58  ;;  %5074 = vmatprep.subr.bf16.mxu0 %v16129_v33 }
 0x43a   :  { %18215 = vtanh.f32 %v2909_v38  ;;  %v20394_v16 = vpop.f32.mrb[69].mxu1  ;;  %v2915_v1 = vadd.f32 %v20004_v52, %v2843_v32  ;;  %v2844_v25 = vmax.f32 %v19996_v56, %v2656_v24  ;;  %v2700_v49 = vmax.f32 %v2448_v53, %v2699_v10  ;;  %v16132_v56 = vld [vmem:[#allocation7 + $0xc] ss:$24 sps:$4 sm:$0xff]  }
 0x43b   :  { %18217 = vtanh.f32 %v2910_v5  ;;  %v20398_v27 = vpop.f32.mrb[70].mxu1  ;;  %v2695_v48 = vrot.slane %v2694_v3, 2  ;;  %v2682_v51 = vmax.f32 %v2373_v55, %v2681_v0  ;;  %v2729_v9 = vrot.slane %v2450_v29, 4  ;;  %5115 = vmatprep.subr.bf16.mxu1 %v16132_v56 }
 0x43c   :  { %v20401_v40 = vpop.f32.mrb[71].mxu1  ;;  %18219 = vtanh.f32 %v2915_v1  ;;  %v2916_v58 = vadd.f32 %v20007_v43, %v2844_v25  ;;  %v2701_v45 = vrot.slane %v2700_v49, 2  ;;  %v2375_v37 = vadd.f32 %v20234_v4, %v20297_v18 }
 0x43d   :  { %v21518_v14 = vrot.slane %v20331_v8, 1  ;;  %v2696_v42 = vmax.f32 %v2694_v3, %v2695_v48  ;;  %v2683_v62 = vrot.slane %v2682_v51, 2  ;;  %v2730_v31 = vmax.f32 %v2450_v29, %v2729_v9 }
 0x43e   :  { %v20406_v23 = vpop.eup %18207  ;;  %v21520_v21 = vrot.slane %v20341_v12, 1  ;;  %v2702_v59 = vmax.f32 %v2700_v49, %v2701_v45  ;;  %v2452_v41 = vadd.f32 %v20236_v47, %v20091_v7  ;;  %18221 = vtanh.f32 %v2916_v58 }
 0x43f   :  { %v20411_v60 = vmax.f32 %v20331_v8, %v21518_v14  ;;  %v20413_v46 = vpop.eup %18209  ;;  %v2993_v8 = vpack.c.bf16 %v20406_v23, %v20406_v23  ;;  %v2697_v53 = vrot.slane %v2696_v42, 1  ;;  %v2684_v38 = vmax.f32 %v2682_v51, %v2683_v62 }
 0x440   :  { %21519 = vst [vmem:[#allocation76_spill] sm:$0xff] %v20413_v46  ;;  %v20419_v4 = vmax.f32 %v20341_v12, %v21520_v21  ;;  %v20423_v61 = vpop.eup %18211  ;;  %v2731_v39 = vrot.slane %v2730_v31, 2  ;;  %v2703_v5 = vrot.slane %v2702_v59, 1  ;;  %v2687_v12 = vrot.slane %v2375_v37, 4 }
 0x441   :  { %v2999_v55 = vpack.c.bf16 %v20423_v61, %v20423_v61  ;;  %v20429_v32 = vpop.eup %18213  ;;  %v2994_v7 = vpack.c.bf16 %v20413_v46, %v20413_v46  ;;  %v2698_v47 = vmax.f32 %v2696_v42, %v2697_v53  ;;  %v2685_v24 = vrot.slane %v2684_v38, 1  ;;  %v21523_v53 = vld [vmem:[#allocation36_spill] sm:$0xff] }
 0x442   :  { %21521 = vst [vmem:[#allocation77_spill] sm:$0xff] %v20429_v32  ;;  %v2732_v10 = vmax.f32 %v2730_v31, %v2731_v39  ;;  %v3000_v0 = vpack.c.bf16 %v20429_v32, %v20429_v32  ;;  %v2704_v29 = vmax.f32 %v2702_v59, %v2703_v5  ;;  %v2735_v1 = vrot.slane %v2452_v41, 4 }
 0x443   :  { %v3407_v3 = vunpack.c.l.b16 %v2999_v55  ;;  %v3401_v49 = vunpack.c.l.b16 %v2993_v8  ;;  %v2851_v48 = vmax.f32 %v20288_v19, %v2698_v47  ;;  %v2686_v51 = vmax.f32 %v2684_v38, %v2685_v24  ;;  %v21529_v55 = vld [vmem:[#allocation38_spill] sm:$0xff] }
 0x444   :  { %v20435_v25 = vpop.eup %18215  ;;  %v3408_v45 = vunpack.c.l.b16 %v3000_v0  ;;  %v2733_v14 = vrot.slane %v2732_v10, 1  ;;  %v3402_v42 = vunpack.c.l.b16 %v2994_v7  ;;  %v2852_v21 = vmax.f32 %v20306_v6, %v2704_v29 }
 0x445   :  { %v20439_v9 = vpop.eup %18217  ;;  %v3449_v58 = vrot.slane %v3407_v3, 7  ;;  %v3005_v56 = vpack.c.bf16 %v20435_v25, %v20435_v25  ;;  %v2923_v31 = vadd.f32 %v19960_v26, %v2851_v48  ;;  %v2849_v38 = vmax.f32 %v21523_v53, %v2686_v51  ;;  %v20477_v53 = vld [vmem:[#allocation6 + $0x40] sm:$0xff] }
 0x446   :  { %21522 = vst [vmem:[#allocation78_spill] sm:$0xff] %v20439_v9  ;;  %v3006_v62 = vpack.c.bf16 %v20439_v9, %v20439_v9  ;;  %v20447_v59 = vpop.eup %18219  ;;  %v3470_v19 = vrot.slane %v3408_v45, 7  ;;  %v2688_v39 = vmax.f32 %v2375_v37, %v2687_v12  ;;  %v2924_v7 = vadd.f32 %v19963_v44, %v2852_v21  ;;  %v148_v9 = vld [vmem:[#allocation4 + $0x28] sm:$0xff] }
 0x447   :  { %v3413_v8 = vunpack.c.l.b16 %v3005_v56  ;;  %18223 = vtanh.f32 %v2923_v31  ;;  %v3451_v47 = vsel %vm3450_vm14, %v3449_v58, %v3401_v49  ;;  %v2921_v3 = vadd.f32 %v20004_v52, %v2849_v38  ;;  %v21526_v38 = vld [vmem:[#allocation56_spill] sm:$0xff] }
 0x448   :  { %v3414_v5 = vunpack.c.l.b16 %v3006_v62  ;;  %v2734_v0 = vmax.f32 %v2732_v10, %v2733_v14  ;;  %v3471_v6 = vsel %vm3450_vm14, %v3470_v19, %v3402_v42  ;;  %v3011_v48 = vpack.c.bf16 %v20447_v59, %v20447_v59  ;;  %v20457_v37 = vpop.eup %18221  ;;  %v21525_v19 = vld [vmem:[#allocation55_spill] sm:$0xff] }
 0x449   :  { %v3452_v24 = vrot.slane %v3413_v8, 6  ;;  %18225 = vtanh.f32 %v2924_v7  ;;  %21524 = vst [vmem:[#allocation36_spill] sm:$0xff] %v20457_v37  ;;  %v2689_v49 = vrot.slane %v2688_v39, 2  ;;  %v2736_v56 = vmax.f32 %v2452_v41, %v2735_v1 }
 0x44a   :  { %v3472_v29 = vrot.slane %v3414_v5, 6  ;;  %18227 = vtanh.f32 %v2921_v3  ;;  %v2857_v51 = vmax.f32 %v20321_v13, %v2734_v0  ;;  %v2377_v62 = vadd.f32 %v20240_v35, %v20292_v2 }
 0x44b   :  { %v20460_v12 = vsel %vm3453_vm15, %v3452_v24, %v3451_v47  ;;  %v2690_v42 = vmax.f32 %v2688_v39, %v2689_v49  ;;  %v2379_v31 = vadd.f32 %v20247_v36, %v20297_v18  ;;  %v20473_v21 = vunpack.c.l.b16 %v3011_v48  ;;  %v21527_v24 = vld [vmem:[#allocation57_spill] sm:$0xff] }
 0x44c   :  { %v20465_v10 = vsel %vm3453_vm15, %v3472_v29, %v3471_v6  ;;  %v2929_v14 = vadd.f32 %v19960_v26, %v2857_v51  ;;  %v2737_v13 = vrot.slane %v2736_v56, 2  ;;  %v2383_v8 = vadd.f32 %v21525_v19, %v20292_v2 }
 0x44d   :  { %v2456_v41 = vadd.f32 %v20477_v53, %v21526_v38  ;;  %v3012_v1 = vpack.c.bf16 %v20457_v37, %v20457_v37  ;;  %v2691_v39 = vrot.slane %v2690_v42, 1  ;;  %v2717_v5 = vrot.slane %v2377_v62, 4 }
 0x44e   :  { %v2723_v35 = vrot.slane %v2379_v31, 4  ;;  %v2738_v7 = vmax.f32 %v2736_v56, %v2737_v13  ;;  %v2753_v47 = vrot.slane %v2383_v8, 4  ;;  %v2385_v3 = vadd.f32 %v21527_v24, %v20297_v18 }
 0x44f   :  { %v2765_v36 = vrot.slane %v2456_v41, 4  ;;  %18229 = vtanh.f32 %v2929_v14  ;;  %v2692_v0 = vmax.f32 %v2690_v42, %v2691_v39  ;;  %v2718_v6 = vmax.f32 %v2377_v62, %v2717_v5 }
 0x450   :  { %v2724_v29 = vmax.f32 %v2379_v31, %v2723_v35  ;;  %v2739_v51 = vrot.slane %v2738_v7, 1  ;;  %v2754_v49 = vmax.f32 %v2383_v8, %v2753_v47  ;;  %v2759_v38 = vrot.slane %v2385_v3, 4 }
 0x451   :  { %v20485_v48 = vpop.eup %18223  ;;  %v2766_v19 = vmax.f32 %v2456_v41, %v2765_v36  ;;  %v2850_v56 = vmax.f32 %v21529_v55, %v2692_v0  ;;  %v2719_v13 = vrot.slane %v2718_v6, 2  ;;  %v20492_v24 = vunpack.c.l.b16 %v3012_v1  ;;  %v21533_v1 = vld [vmem:[#allocation41_spill] sm:$0xff] }
 0x452   :  { %21528 = vst [vmem:[#allocation55_spill] sm:$0xff] %v20485_v48  ;;  %v3019_v45 = vpack.c.bf16 %v20485_v48, %v20485_v48  ;;  %v2725_v58 = vrot.slane %v2724_v29, 2  ;;  %v2740_v14 = vmax.f32 %v2738_v7, %v2739_v51  ;;  %v2755_v42 = vrot.slane %v2754_v49, 2  ;;  %v18368_v51 = vld [vmem:[#allocation6 + $0x48] sm:$0xff]  ;;  %v21534_v48 = vld [vmem:[#allocation40_spill] sm:$0xff] }
 0x453   :  { %v20490_v33 = vpop.eup %18225  ;;  %v2767_v62 = vrot.slane %v2766_v19, 2  ;;  %v2922_v8 = vadd.f32 %v20007_v43, %v2850_v56  ;;  %v2720_v41 = vmax.f32 %v2718_v6, %v2719_v13  ;;  %v2760_v5 = vmax.f32 %v2385_v3, %v2759_v38 }
 0x454   :  { %21530 = vst [vmem:[#allocation56_spill] sm:$0xff] %v20490_v33  ;;  %v20494_v31 = vpop.eup %18227  ;;  %v20496_v39 = vunpack.c.l.b16 %v3019_v45  ;;  %v3020_v55 = vpack.c.bf16 %v20490_v33, %v20490_v33  ;;  %v2858_v35 = vmax.f32 %v20323_v20, %v2740_v14  ;;  %v2726_v47 = vmax.f32 %v2724_v29, %v2725_v58  ;;  %v21531_v45 = vld [vmem:[#allocation58_spill] sm:$0xff] }
 0x455   :  { %v2756_v36 = vmax.f32 %v2754_v49, %v2755_v42  ;;  %v3017_v7 = vpack.c.bf16 %v20494_v31, %v20494_v31  ;;  %v2721_v0 = vrot.slane %v2720_v41, 1  ;;  %v2458_v57 = vadd.f32 %v18368_v51, %v21531_v45 }
 0x456   :  { %18231 = vtanh.f32 %v2922_v8  ;;  %v2930_v6 = vadd.f32 %v19963_v44, %v2858_v35  ;;  %v2727_v3 = vrot.slane %v2726_v47, 1  ;;  %v2768_v20 = vmax.f32 %v2766_v19, %v2767_v62  ;;  %v21535_v19 = vld [vmem:[#allocation59_spill] sm:$0xff] }
 0x457   :  { %v2757_v38 = vrot.slane %v2756_v36, 1  ;;  %v2722_v13 = vmax.f32 %v2720_v41, %v2721_v0  ;;  %v2761_v58 = vrot.slane %v2760_v5, 2  ;;  %v20509_v49 = vunpack.c.l.b16 %v3020_v55  ;;  %v21536_v0 = vld [vmem:[#allocation42_spill] sm:$0xff] }
 0x458   :  { %18233 = vtanh.f32 %v2930_v6  ;;  %v2728_v14 = vmax.f32 %v2726_v47, %v2727_v3  ;;  %v2769_v17 = vrot.slane %v2768_v20, 1  ;;  %v20514_v33 = vunpack.c.l.b16 %v3017_v7 }
 0x459   :  { %v20511_v42 = vpop.eup %18229  ;;  %v2855_v45 = vmax.f32 %v21533_v1, %v2722_v13  ;;  %v2758_v8 = vmax.f32 %v2756_v36, %v2757_v38  ;;  %v2762_v35 = vmax.f32 %v2760_v5, %v2761_v58  ;;  %v2771_v41 = vrot.slane %v2458_v57, 4 }
 0x45a   :  { %21532 = vst [vmem:[#allocation57_spill] sm:$0xff] %v20511_v42  ;;  %v2856_v56 = vmax.f32 %v21534_v48, %v2728_v14  ;;  %v2387_v62 = vadd.f32 %v21535_v19, %v20292_v2  ;;  %v2770_v47 = vmax.f32 %v2768_v20, %v2769_v17  ;;  %v3025_v1 = vpack.c.bf16 %v20511_v42, %v20511_v42  ;;  %v21537_v14 = vld [vmem:[#allocation60_spill] sm:$0xff]  ;;  %v147_v19 = vld [vmem:[#allocation4 + $0x20] sm:$0xff] }
 0x45b   :  { %v2927_v55 = vadd.f32 %v20004_v52, %v2855_v45  ;;  %v2861_v6 = vmax.f32 %v21536_v0, %v2758_v8  ;;  %v2763_v3 = vrot.slane %v2762_v35, 1  ;;  %v2772_v5 = vmax.f32 %v2458_v57, %v2771_v41  ;;  %v21538_v45 = vld [vmem:[#allocation44_spill] sm:$0xff]  ;;  %v21539_v57 = vld [vmem:[#allocation62_spill] sm:$0xff] }
 0x45c   :  { %v2928_v36 = vadd.f32 %v20007_v43, %v2856_v56  ;;  %v2789_v7 = vrot.slane %v2387_v62, 4  ;;  %v2863_v38 = vmax.f32 %v20333_v63, %v2770_v47  ;;  %v2460_v17 = vadd.f32 %v20477_v53, %v21537_v14  ;;  %v21541_v53 = vld [vmem:[#allocation63_spill] sm:$0xff] }
 0x45d   :  { %18235 = vtanh.f32 %v2927_v55  ;;  %v2933_v48 = vadd.f32 %v20004_v52, %v2861_v6  ;;  %v2764_v13 = vmax.f32 %v2762_v35, %v2763_v3  ;;  %v2773_v2 = vrot.slane %v2772_v5, 2 }
 0x45e   :  { %18237 = vtanh.f32 %v2928_v36  ;;  %v2790_v58 = vmax.f32 %v2387_v62, %v2789_v7  ;;  %v2935_v20 = vadd.f32 %v19960_v26, %v2863_v38  ;;  %v2389_v56 = vadd.f32 %v21539_v57, %v20297_v18  ;;  %v21543_v57 = vld [vmem:[#allocation71_spill] sm:$0xff] }
 0x45f   :  { %18239 = vtanh.f32 %v2933_v48  ;;  %v2862_v8 = vmax.f32 %v21538_v45, %v2764_v13  ;;  %v2774_v63 = vmax.f32 %v2772_v5, %v2773_v2  ;;  %v2801_v55 = vrot.slane %v2460_v17, 4  ;;  %v20541_v48 = vld [vmem:[#allocation6 + $0x50] sm:$0xff] }
 0x460   :  { %v20532_v41 = vpop.eup %18231  ;;  %v2791_v35 = vrot.slane %v2790_v58, 2  ;;  %18241 = vtanh.f32 %v2935_v20  ;;  %v2795_v0 = vrot.slane %v2389_v56, 4  ;;  %v2462_v6 = vadd.f32 %v18368_v51, %v21541_v53 }
 0x461   :  { %21540 = vst [vmem:[#allocation38_spill] sm:$0xff] %v20532_v41  ;;  %v2934_v62 = vadd.f32 %v20007_v43, %v2862_v8  ;;  %v20539_v3 = vunpack.c.l.b16 %v3025_v1  ;;  %v2775_v36 = vrot.slane %v2774_v63, 1  ;;  %v2802_v18 = vmax.f32 %v2460_v17, %v2801_v55 }
 0x462   :  { %v20537_v47 = vpop.eup %18233  ;;  %v2792_v7 = vmax.f32 %v2790_v58, %v2791_v35  ;;  %v3018_v5 = vpack.c.bf16 %v20532_v41, %v20532_v41  ;;  %v2796_v13 = vmax.f32 %v2389_v56, %v2795_v0  ;;  %v2807_v2 = vrot.slane %v2462_v6, 4 }
 0x463   :  { %21542 = vst [vmem:[#allocation58_spill] sm:$0xff] %v20537_v47  ;;  %18243 = vtanh.f32 %v2934_v62  ;;  %v2776_v14 = vmax.f32 %v2774_v63, %v2775_v36  ;;  %v2803_v51 = vrot.slane %v2802_v18, 2  ;;  %v3026_v1 = vpack.c.bf16 %v20537_v47, %v20537_v47 }
 0x464   :  { %v2793_v20 = vrot.slane %v2792_v7, 1  ;;  %v2797_v45 = vrot.slane %v2796_v13, 2  ;;  %v2808_v8 = vmax.f32 %v2462_v6, %v2807_v2  ;;  %v2499_v58 = vadd.f32 %v20302_v50, %v20541_v48  ;;  %v21545_v2 = vld [vmem:[#allocation47_spill] sm:$0xff] }
 0x465   :  { %v2864_v35 = vmax.f32 %v21543_v57, %v2776_v14  ;;  %v2804_v53 = vmax.f32 %v2802_v18, %v2803_v51  ;;  %v20554_v62 = vunpack.c.l.b16 %v3018_v5 }
 0x466   :  { %v2794_v55 = vmax.f32 %v2792_v7, %v2793_v20  ;;  %v2798_v63 = vmax.f32 %v2796_v13, %v2797_v45  ;;  %v2809_v0 = vrot.slane %v2808_v8, 2  ;;  %v2561_v36 = vrot.slane %v2499_v58, 4 }
 0x467   :  { %v20552_v56 = vpop.eup %18235  ;;  %v2936_v50 = vadd.f32 %v19963_v44, %v2864_v35  ;;  %v2805_v38 = vrot.slane %v2804_v53, 1  ;;  %v20564_v7 = vunpack.c.l.b16 %v3026_v1 }
 0x468   :  { %v20556_v29 = vpop.eup %18237  ;;  %v3023_v6 = vpack.c.bf16 %v20552_v56, %v20552_v56  ;;  %v2867_v17 = vmax.f32 %v21545_v2, %v2794_v55  ;;  %v2799_v5 = vrot.slane %v2798_v63, 1  ;;  %v2810_v13 = vmax.f32 %v2808_v8, %v2809_v0  ;;  %v20581_v0 = vld [vmem:[#allocation6 + $0x58] sm:$0xff] }
 0x469   :  { %21544 = vst [vmem:[#allocation41_spill] sm:$0xff] %v20556_v29  ;;  %v20562_v14 = vpop.eup %18239  ;;  %v3024_v18 = vpack.c.bf16 %v20556_v29, %v20556_v29  ;;  %18245 = vtanh.f32 %v2936_v50  ;;  %v2562_v45 = vmax.f32 %v2499_v58, %v2561_v36  ;;  %v2806_v55 = vmax.f32 %v2804_v53, %v2805_v38 }
 0x46a   :  { %21546 = vst [vmem:[#allocation40_spill] sm:$0xff] %v20562_v14  ;;  %v3029_v20 = vpack.c.bf16 %v20562_v14, %v20562_v14  ;;  %v2939_v51 = vadd.f32 %v20004_v52, %v2867_v17  ;;  %v20571_v57 = vpop.eup %18241  ;;  %v20573_v35 = vunpack.c.l.b16 %v3023_v6  ;;  %v2800_v2 = vmax.f32 %v2798_v63, %v2799_v5  ;;  %v21548_v17 = vld [vmem:[#allocation52_spill] sm:$0xff] }
 0x46b   :  { %21547 = vst [vmem:[#allocation59_spill] sm:$0xff] %v20571_v57  ;;  %v2811_v1 = vrot.slane %v2810_v13, 1  ;;  %v20575_v47 = vunpack.c.l.b16 %v3024_v18  ;;  %v3031_v8 = vpack.c.bf16 %v20571_v57, %v20571_v57  ;;  %v2869_v58 = vmax.f32 %v20411_v60, %v2806_v55  ;;  %v21550_v18 = vld [vmem:[#allocation20_spill] sm:$0xff]  ;;  %v21551_v60 = vld [vmem:[#allocation66_spill] sm:$0xff]  ;;  %v21556_v57 = vld [vmem:[#allocation73_spill] sm:$0xff] }
 0x46c   :  { %v20577_v42 = vunpack.c.l.b16 %v3029_v20  ;;  %18247 = vtanh.f32 %v2939_v51  ;;  %v2868_v36 = vmax.f32 %v21548_v17, %v2800_v2  ;;  %v2563_v50 = vrot.slane %v2562_v45, 2 }
 0x46d   :  { %v2812_v38 = vmax.f32 %v2810_v13, %v2811_v1  ;;  %v20586_v53 = vpop.eup %18243  ;;  %v20589_v6 = vunpack.c.l.b16 %v3031_v8  ;;  %v20592_v5 = vrot.slane %v147_v19, %v21550_v18  ;;  %v2941_v20 = vadd.f32 %v19960_v26, %v2869_v58 }
 0x46e   :  { %21549 = vst [vmem:[#allocation42_spill] sm:$0xff] %v20586_v53  ;;  %v2940_v51 = vadd.f32 %v20007_v43, %v2868_v36  ;;  %v2501_v55 = vadd.f32 %v21551_v60, %v20581_v0  ;;  %v2564_v8 = vmax.f32 %v2562_v45, %v2563_v50  ;;  %v3030_v19 = vpack.c.bf16 %v20586_v53, %v20586_v53  ;;  %v21552_v43 = vld [vmem:[#allocation68_spill] sm:$0xff] }
 0x46f   :  { %v2870_v52 = vmax.f32 %v20419_v4, %v2812_v38  ;;  %v2503_v58 = vadd.f32 %v21552_v43, %v20541_v48  ;;  %18249 = vtanh.f32 %v2941_v20  ;;  %v21553_v38 = vld [vmem:[#allocation70_spill] sm:$0xff]  ;;  %v21554_v45 = vld [vmem:[#allocation72_spill] sm:$0xff]  ;;  %v2511_v43 = vadd.f32 %v21556_v57, %v20581_v0 }
 0x470   :  { %v2567_v26 = vrot.slane %v2501_v55, 4  ;;  %v2565_v36 = vrot.slane %v2564_v8, 1  ;;  %v2505_v60 = vadd.f32 %v21553_v38, %v20581_v0  ;;  %18251 = vtanh.f32 %v2940_v51  ;;  %v21557_v20 = vld [vmem:[#allocation74_spill] sm:$0xff] }
 0x471   :  { %v2942_v4 = vadd.f32 %v19963_v44, %v2870_v52  ;;  %v2597_v1 = vrot.slane %v2503_v58, 4  ;;  %v2509_v50 = vadd.f32 %v21554_v45, %v20541_v48  ;;  %v2513_v44 = vadd.f32 %v21557_v20, %v20541_v48  ;;  %v21559_v45 = vld [vmem:[#allocation29_spill] sm:$0xff] }
 0x472   :  { %v2568_v13 = vmax.f32 %v2501_v55, %v2567_v26  ;;  %v2566_v63 = vmax.f32 %v2564_v8, %v2565_v36  ;;  %v2603_v2 = vrot.slane %v2505_v60, 4  ;;  %v20622_v53 = vunpack.c.l.b16 %v3030_v19 }
 0x473   :  { %v20612_v17 = vpop.eup %18245  ;;  %v2598_v51 = vmax.f32 %v2503_v58, %v2597_v1  ;;  %v2633_v55 = vrot.slane %v2509_v50, 4  ;;  %v2639_v36 = vrot.slane %v2511_v43, 4  ;;  %18253 = vtanh.f32 %v2942_v4 }
 0x474   :  { %21555 = vst [vmem:[#allocation60_spill] sm:$0xff] %v20612_v17  ;;  %v3032_v52 = vpack.c.bf16 %v20612_v17, %v20612_v17  ;;  %v2569_v38 = vrot.slane %v2568_v13, 2  ;;  %v2829_v29 = vmax.f32 %v21559_v45, %v2566_v63  ;;  %v2604_v8 = vmax.f32 %v2505_v60, %v2603_v2 }
 0x475   :  { %v2599_v57 = vrot.slane %v2598_v51, 2  ;;  %v2669_v37 = vrot.slane %v2513_v44, 4  ;;  %v2634_v17 = vmax.f32 %v2509_v50, %v2633_v55  ;;  %v2640_v46 = vmax.f32 %v2511_v43, %v2639_v36 }
 0x476   :  { %v20620_v26 = vpop.eup %18247  ;;  %v2570_v41 = vmax.f32 %v2568_v13, %v2569_v38  ;;  %v2901_v20 = vadd.f32 %v20592_v5, %v2829_v29  ;;  %v2605_v32 = vrot.slane %v2604_v8, 2  ;;  %v20626_v1 = vunpack.c.l.b16 %v3032_v52 }
 0x477   :  { %21558 = vst [vmem:[#allocation44_spill] sm:$0xff] %v20620_v26  ;;  %v3035_v19 = vpack.c.bf16 %v20620_v26, %v20620_v26  ;;  %v2600_v14 = vmax.f32 %v2598_v51, %v2599_v57  ;;  %v2635_v2 = vrot.slane %v2634_v17, 2  ;;  %v2641_v4 = vrot.slane %v2640_v46, 2  ;;  %v21562_v51 = vld [vmem:[#allocation28_spill] sm:$0xff] }
 0x478   :  { %v2571_v58 = vrot.slane %v2570_v41, 1  ;;  %18255 = vtanh.f32 %v2901_v20  ;;  %v2606_v63 = vmax.f32 %v2604_v8, %v2605_v32  ;;  %v20631_v60 = vrot.slane %v148_v9, %v21550_v18 }
 0x479   :  { %v2601_v29 = vrot.slane %v2600_v14, 1  ;;  %v2670_v38 = vmax.f32 %v2513_v44, %v2669_v37  ;;  %v20633_v45 = vpop.eup %18249  ;;  %v2636_v52 = vmax.f32 %v2634_v17, %v2635_v2  ;;  %v2642_v55 = vmax.f32 %v2640_v46, %v2641_v4  ;;  %v21564_v17 = vld [vmem:[#allocation32_spill] sm:$0xff] }
 0x47a   :  { %v2572_v13 = vmax.f32 %v2570_v41, %v2571_v58  ;;  %21560 = vst [vmem:[#allocation62_spill] sm:$0xff] %v20633_v45  ;;  %v2607_v43 = vrot.slane %v2606_v63, 1  ;;  %v20636_v36 = vpop.eup %18251  ;;  %v21563_v41 = vld [vmem:[#allocation75_spill] sm:$0xff]  ;;  %v20642_v18 = vunpack.c.l.b16 %v3035_v19  ;;  %v3037_v58 = vpack.c.bf16 %v20633_v45, %v20633_v45 }
 0x47b   :  { %21561 = vst [vmem:[#allocation63_spill] sm:$0xff] %v20636_v36  ;;  %v2602_v32 = vmax.f32 %v2600_v14, %v2601_v29  ;;  %v2671_v8 = vrot.slane %v2670_v38, 2  ;;  %v2515_v20 = vadd.f32 %v21563_v41, %v20581_v0  ;;  %v2637_v44 = vrot.slane %v2636_v52, 1 }
 0x47c   :  { %v2830_v57 = vmax.f32 %v21562_v51, %v2572_v13  ;;  %v2608_v37 = vmax.f32 %v2606_v63, %v2607_v43  ;;  %v2643_v4 = vrot.slane %v2642_v55, 1  ;;  %v3036_v14 = vpack.c.bf16 %v20636_v36, %v20636_v36  ;;  %v21565_v13 = vld [vmem:[#allocation33_spill] sm:$0xff]  ;;  %v21568_v36 = vld [vmem:[#allocation27_spill] sm:$0xff] }
 0x47d   :  { %v2835_v2 = vmax.f32 %v21564_v17, %v2602_v32  ;;  %v2638_v51 = vmax.f32 %v2636_v52, %v2637_v44  ;;  %v2672_v41 = vmax.f32 %v2670_v38, %v2671_v8  ;;  %v20651_v9 = vpop.eup %18253  ;;  %v2675_v43 = vrot.slane %v2515_v20, 4 }
 0x47e   :  { %v2902_v46 = vadd.f32 %v20631_v60, %v2830_v57  ;;  %v2836_v29 = vmax.f32 %v21565_v13, %v2608_v37  ;;  %21566 = vst [vmem:[#allocation71_spill] sm:$0xff] %v20651_v9  ;;  %v2644_v63 = vmax.f32 %v2642_v55, %v2643_v4  ;;  %v21567_v57 = vld [vmem:[#allocation26_spill] sm:$0xff]  ;;  %v2519_v17 = vadd.f32 %v20365_v28, %v20541_v48 }
 0x47f   :  { %v2907_v19 = vadd.f32 %v20592_v5, %v2835_v2  ;;  %v2841_v45 = vmax.f32 %v21567_v57, %v2638_v51  ;;  %v2673_v32 = vrot.slane %v2672_v41, 1  ;;  %v2676_v52 = vmax.f32 %v2515_v20, %v2675_v43 }
 0x480   :  { %18257 = vtanh.f32 %v2902_v46  ;;  %v2908_v50 = vadd.f32 %v20631_v60, %v2836_v29  ;;  %v2842_v37 = vmax.f32 %v21568_v36, %v2644_v63  ;;  %v2521_v38 = vadd.f32 %v20369_v34, %v20581_v0  ;;  %v21570_v36 = vld [vmem:[#allocation34_spill] sm:$0xff] }
 0x481   :  { %18259 = vtanh.f32 %v2907_v19  ;;  %v2913_v55 = vadd.f32 %v20592_v5, %v2841_v45  ;;  %v2674_v44 = vmax.f32 %v2672_v41, %v2673_v32  ;;  %v2705_v46 = vrot.slane %v2519_v17, 4 }
 0x482   :  { %v20661_v8 = vpop.eup %18255  ;;  %18261 = vtanh.f32 %v2908_v50  ;;  %v3038_v2 = vpack.c.bf16 %v20651_v9, %v20651_v9  ;;  %v2914_v4 = vadd.f32 %v20631_v60, %v2842_v37  ;;  %v2677_v28 = vrot.slane %v2676_v52, 2 }
 0x483   :  { %21569 = vst [vmem:[#allocation47_spill] sm:$0xff] %v20661_v8  ;;  %v2711_v13 = vrot.slane %v2521_v38, 4  ;;  %18263 = vtanh.f32 %v2913_v55  ;;  %v2847_v20 = vmax.f32 %v21570_v36, %v2674_v44  ;;  %v2706_v29 = vmax.f32 %v2519_v17, %v2705_v46 }
 0x484   :  { %v2523_v34 = vadd.f32 %v20372_v22, %v20541_v48  ;;  %v2997_v50 = vpack.c.bf16 %v20661_v8, %v20661_v8  ;;  %18265 = vtanh.f32 %v2914_v4  ;;  %v2678_v45 = vmax.f32 %v2676_v52, %v2677_v28 }
 0x485   :  { %v2712_v51 = vmax.f32 %v2521_v38, %v2711_v13  ;;  %v2919_v41 = vadd.f32 %v20592_v5, %v2847_v20  ;;  %v2707_v19 = vrot.slane %v2706_v29, 2  ;;  %v2525_v43 = vadd.f32 %v20376_v30, %v20581_v0 }
 0x486   :  { %v2741_v63 = vrot.slane %v2523_v34, 4  ;;  %v2679_v57 = vrot.slane %v2678_v45, 1  ;;  %v2529_v17 = vadd.f32 %v20390_v54, %v20541_v48  ;;  %v2531_v22 = vadd.f32 %v20394_v16, %v20581_v0  ;;  %v21573_v16 = vld [vmem:[#allocation35_spill] sm:$0xff] }
 0x487   :  { %v2713_v32 = vrot.slane %v2712_v51, 2  ;;  %18267 = vtanh.f32 %v2919_v41  ;;  %v2708_v37 = vmax.f32 %v2706_v29, %v2707_v19  ;;  %v2747_v52 = vrot.slane %v2525_v43, 4 }
 0x488   :  { %v2742_v55 = vmax.f32 %v2523_v34, %v2741_v63  ;;  %v20681_v44 = vunpack.c.l.b16 %v3037_v58  ;;  %v2680_v46 = vmax.f32 %v2678_v45, %v2679_v57  ;;  %v2777_v28 = vrot.slane %v2529_v17, 4 }
 0x489   :  { %v2714_v4 = vmax.f32 %v2712_v51, %v2713_v32  ;;  %v20683_v30 = vunpack.c.l.b16 %v3036_v14  ;;  %v2709_v13 = vrot.slane %v2708_v37, 1  ;;  %v2748_v20 = vmax.f32 %v2525_v43, %v2747_v52 }
 0x48a   :  { %v20679_v38 = vpop.eup %18257  ;;  %v2743_v36 = vrot.slane %v2742_v55, 2  ;;  %v20687_v8 = vunpack.c.l.b16 %v3038_v2  ;;  %v2848_v29 = vmax.f32 %v21573_v16, %v2680_v46  ;;  %v2783_v41 = vrot.slane %v2531_v22, 4  ;;  %v21575_v46 = vld [vmem:[#allocation39_spill] sm:$0xff] }
 0x48b   :  { %21571 = vst [vmem:[#allocation52_spill] sm:$0xff] %v20679_v38  ;;  %v20685_v54 = vpop.eup %18259  ;;  %v2715_v34 = vrot.slane %v2714_v4, 1  ;;  %v3405_v58 = vunpack.c.l.b16 %v2997_v50  ;;  %v2998_v45 = vpack.c.bf16 %v20679_v38, %v20679_v38  ;;  %v2710_v51 = vmax.f32 %v2708_v37, %v2709_v13 }
 0x48c   :  { %21572 = vst [vmem:[#allocation20_spill] sm:$0xff] %v20685_v54  ;;  %v20690_v19 = vpop.eup %18261  ;;  %v3003_v14 = vpack.c.bf16 %v20685_v54, %v20685_v54  ;;  %v2920_v2 = vadd.f32 %v20631_v60, %v2848_v29  ;;  %v2778_v57 = vmax.f32 %v2529_v17, %v2777_v28  ;;  %v2744_v50 = vmax.f32 %v2742_v55, %v2743_v36 }
 0x48d   :  { %21574 = vst [vmem:[#allocation66_spill] sm:$0xff] %v20690_v19  ;;  %v3004_v63 = vpack.c.bf16 %v20690_v19, %v20690_v19  ;;  %v2716_v43 = vmax.f32 %v2714_v4, %v2715_v34  ;;  %v20699_v32 = vpop.eup %18263  ;;  %v2853_v16 = vmax.f32 %v21575_v46, %v2710_v51  ;;  %v2749_v9 = vrot.slane %v2748_v20, 2  ;;  %v21576_v34 = vld [vmem:[#allocation37_spill] sm:$0xff] }
 0x48e   :  { %v3411_v52 = vunpack.c.l.b16 %v3003_v14  ;;  %v20702_v26 = vpop.eup %18265  ;;  %v3009_v37 = vpack.c.bf16 %v20699_v32, %v20699_v32  ;;  %18269 = vtanh.f32 %v2920_v2  ;;  %v2784_v13 = vmax.f32 %v2531_v22, %v2783_v41 }
 0x48f   :  { %v3412_v38 = vunpack.c.l.b16 %v3004_v63  ;;  %v3406_v19 = vunpack.c.l.b16 %v2998_v45  ;;  %v3010_v17 = vpack.c.bf16 %v20702_v26, %v20702_v26  ;;  %v2925_v4 = vadd.f32 %v20592_v5, %v2853_v16 }
 0x490   :  { %v3512_v54 = vrot.slane %v3411_v52, 7  ;;  %v3417_v29 = vunpack.c.l.b16 %v3009_v37  ;;  %v2854_v55 = vmax.f32 %v21576_v34, %v2716_v43  ;;  %v2745_v36 = vrot.slane %v2744_v50, 1 }
 0x491   :  { %v3526_v28 = vrot.slane %v3412_v38, 7  ;;  %v20710_v14 = vpop.eup %18267  ;;  %v3418_v63 = vunpack.c.l.b16 %v3010_v17  ;;  %18271 = vtanh.f32 %v2925_v4  ;;  %v2750_v2 = vmax.f32 %v2748_v20, %v2749_v9  ;;  %v21577_v20 = vld [vmem:[#allocation30_spill] sm:$0xff] }
 0x492   :  { %v3513_v51 = vsel %vm3450_vm14, %v3512_v54, %v3405_v58  ;;  %v3514_v41 = vrot.slane %v3417_v29, 6  ;;  %v3015_v45 = vpack.c.bf16 %v20710_v14, %v20710_v14  ;;  %v2926_v52 = vadd.f32 %v20631_v60, %v2854_v55 }
 0x493   :  { %v3527_v22 = vsel %vm3450_vm14, %v3526_v28, %v3406_v19  ;;  %v3528_v38 = vrot.slane %v3418_v63, 6  ;;  %v2746_v46 = vmax.f32 %v2744_v50, %v2745_v36  ;;  %v2751_v16 = vrot.slane %v2750_v2, 1  ;;  %v21578_v36 = vld [vmem:[#allocation31_spill] sm:$0xff] }
 0x494   :  { %v2779_v43 = vrot.slane %v2778_v57, 2  ;;  %v20718_v37 = vsel %vm3453_vm15, %v3514_v41, %v3513_v51  ;;  %v20720_v34 = vunpack.c.l.b16 %v3015_v45  ;;  %18273 = vtanh.f32 %v2926_v52 }
 0x495   :  { %v2785_v54 = vrot.slane %v2784_v13, 2  ;;  %v20723_v9 = vsel %vm3453_vm15, %v3528_v38, %v3527_v22  ;;  %v2859_v19 = vmax.f32 %v21577_v20, %v2746_v46  ;;  %v2752_v58 = vmax.f32 %v2750_v2, %v2751_v16  ;;  %v21579_v46 = vld [vmem:[#allocation43_spill] sm:$0xff] }
 0x496   :  { %v2780_v17 = vmax.f32 %v2778_v57, %v2779_v43  ;;  %v3516_v4 = vrot.slane %v20720_v34, 5  ;;  %v2533_v50 = vadd.f32 %v20398_v27, %v20541_v48  ;;  %v2535_v29 = vadd.f32 %v20401_v40, %v20581_v0  ;;  %v16133_v34 = vld [vmem:[#allocation7 + $0x630] ss:$24 sps:$4 sm:$0xff]  }
 0x497   :  { %v2786_v28 = vmax.f32 %v2784_v13, %v2785_v54  ;;  %v2931_v55 = vadd.f32 %v20592_v5, %v2859_v19  ;;  %v2860_v51 = vmax.f32 %v21578_v36, %v2752_v58  ;;  %v21580_v54 = vld [vmem:[#allocation45_spill] sm:$0xff] }
 0x498   :  { %v2781_v63 = vrot.slane %v2780_v17, 1  ;;  %v20733_v22 = vpop.eup %18269  ;;  %v2813_v2 = vrot.slane %v2533_v50, 4  ;;  %v2819_v57 = vrot.slane %v2535_v29, 4 }
 0x499   :  { %v2787_v41 = vrot.slane %v2786_v28, 1  ;;  %v3016_v13 = vpack.c.bf16 %v20733_v22, %v20733_v22  ;;  %18275 = vtanh.f32 %v2931_v55  ;;  %v2932_v27 = vadd.f32 %v20631_v60, %v2860_v51 }
 0x49a   :  { %v2782_v48 = vmax.f32 %v2780_v17, %v2781_v63  ;;  %v2814_v0 = vmax.f32 %v2533_v50, %v2813_v2  ;;  %v2820_v45 = vmax.f32 %v2535_v29, %v2819_v57  ;;  %v21581_v50 = vrot.slane %v20492_v24, 5 }
 0x49b   :  { %v2788_v40 = vmax.f32 %v2786_v28, %v2787_v41  ;;  %v20738_v52 = vpop.eup %18271  ;;  %v20740_v38 = vunpack.c.l.b16 %v3016_v13  ;;  %18277 = vtanh.f32 %v2932_v27  ;;  %v21582_v57 = vrot.slane %v20554_v62, 4 }
 0x49c   :  { %v2865_v16 = vmax.f32 %v21579_v46, %v2782_v48  ;;  %v3021_v43 = vpack.c.bf16 %v20738_v52, %v20738_v52  ;;  %v2815_v19 = vrot.slane %v2814_v0, 2  ;;  %v2821_v58 = vrot.slane %v2820_v45, 2 }
 0x49d   :  { %v2866_v20 = vmax.f32 %v21580_v54, %v2788_v40  ;;  %v3530_v17 = vrot.slane %v20740_v38, 5  ;;  %v3475_v29 = vsel %vm3456_vm0, %v21581_v50, %v20465_v10  ;;  %v3482_v24 = vrot.slane %v20683_v30, 1 }
 0x49e   :  { %v2937_v28 = vadd.f32 %v20592_v5, %v2865_v16  ;;  %v20752_v55 = vpop.eup %18273  ;;  %v20754_v36 = vunpack.c.l.b16 %v3021_v43  ;;  %v2816_v63 = vmax.f32 %v2814_v0, %v2815_v19  ;;  %v2822_v41 = vmax.f32 %v2820_v45, %v2821_v58  ;;  %v21584_v45 = vld [vmem:[#allocation67_spill] sm:$0xff] }
 0x49f   :  { %v2938_v51 = vadd.f32 %v20631_v60, %v2866_v20  ;;  %v3022_v2 = vpack.c.bf16 %v20752_v55, %v20752_v55  ;;  %v3477_v13 = vsel %vm3459_vm1, %v21582_v57, %v3475_v29  ;;  %v21583_v38 = vrot.slane %v20575_v47, 3 }
 0x4a0   :  { %18279 = vtanh.f32 %v2937_v28  ;;  %v3518_v10 = vrot.slane %v20754_v36, 4  ;;  %v2817_v27 = vrot.slane %v2816_v63, 1  ;;  %v2823_v48 = vrot.slane %v2822_v41, 1 }
 0x4a1   :  { %18281 = vtanh.f32 %v2938_v51  ;;  %v3430_v40 = vunpack.c.l.b16 %v3022_v2  ;;  %v3479_v0 = vsel %vm3462_vm2, %v21583_v38, %v3477_v13  ;;  %v21585_v46 = vrot.slane %v20345_v11, 5 }
 0x4a2   :  { %v3510_v62 = vrot.slane %v20687_v8, 1  ;;  %v2818_v43 = vmax.f32 %v2816_v63, %v2817_v27  ;;  %v2824_v54 = vmax.f32 %v2822_v41, %v2823_v48  ;;  %v21586_v30 = vrot.slane %v20622_v53, 2  ;;  %v21591_v41 = vld [vmem:[#allocation53_spill] sm:$0xff]  ;;  %v21594_v48 = vld [vmem:[#allocation64_spill] sm:$0xff] }
 0x4a3   :  { %v3503_v16 = vsel %vm3456_vm0, %v21585_v46, %v21584_v45  ;;  %v21587_v19 = vrot.slane %v20509_v49, 4  ;;  %v20778_v47 = vpop.eup %18275  ;;  %v3532_v28 = vrot.slane %v3430_v40, 4  ;;  %v21588_v11 = vrot.slane %v20564_v7, 3  ;;  %v21590_v49 = vld [vmem:[#allocation50_spill] sm:$0xff] }
 0x4a4   :  { %v3481_v20 = vsel %vm3465_vm3, %v21586_v30, %v3479_v0  ;;  %v21589_v8 = vrot.slane %v20473_v21, 5  ;;  %v3027_v51 = vpack.c.bf16 %v20778_v47, %v20778_v47  ;;  %v2871_v63 = vmax.f32 %v21590_v49, %v2818_v43 }
 0x4a5   :  { %v3505_v58 = vsel %vm3459_vm1, %v21587_v19, %v3503_v16  ;;  %v3483_v50 = vsel %vm3468_vm4, %v3482_v24, %v3481_v20  ;;  %v2872_v2 = vmax.f32 %v21591_v41, %v2824_v54  ;;  %v20794_v13 = vpop.eup %18277  ;;  %v21592_v7 = vrot.slane %v20626_v1, 2 }
 0x4a6   :  { %v3507_v29 = vsel %vm3462_vm2, %v21588_v11, %v3505_v58  ;;  %v3457_v53 = vsel %vm3456_vm0, %v21589_v8, %v20460_v12  ;;  %v20792_v57 = vpack.c.b16 %v3483_v50, %v3483_v50  ;;  %v21593_v27 = vrot.slane %v20514_v33, 4 }
 0x4a7   :  { %v3509_v24 = vsel %vm3465_vm3, %v21592_v7, %v3507_v29  ;;  %v3467_v12 = vrot.slane %v20642_v18, 1  ;;  %v21595_v40 = vrot.slane %v20337_v15, 5  ;;  %v3435_v0 = vunpack.c.l.b16 %v3027_v51  ;;  %v16130_v29 = vld [vmem:[#allocation7 + $0x8] ss:$24 sps:$4 sm:$0xff]   ;;  %v16138_v7 = vld [vmem:[#allocation7 + $0x3c] ss:$24 sps:$4 sm:$0xff]  }
 0x4a8   :  { %v3460_v21 = vsel %vm3459_vm1, %v21593_v27, %v3457_v53  ;;  %v3028_v45 = vpack.c.bf16 %v20794_v13, %v20794_v13  ;;  %v2943_v46 = vadd.f32 %v20592_v5, %v2871_v63  ;;  %v2944_v1 = vadd.f32 %v20631_v60, %v2872_v2  ;;  %5024 = vmatprep.mubr.bf16.mxu1 %v20792_v57  ;;  %v16127_v51 = vld [vmem:[#allocation7 + $0x600] ss:$24 sps:$4 sm:$0xff]   ;;  %v16135_v2 = vld [vmem:[#allocation7 + $0x634] ss:$24 sps:$4 sm:$0xff]  }
 0x4a9   :  { %v3489_v38 = vsel %vm3456_vm0, %v21595_v40, %v21594_v48  ;;  %v3511_v33 = vsel %vm3468_vm4, %v3510_v62, %v3509_v24  ;;  %v21596_v16 = vrot.slane %v20573_v35, 3  ;;  %v21597_v15 = vrot.slane %v20496_v39, 4 }
 0x4aa   :  { %v3496_v54 = vrot.slane %v20681_v44, 1  ;;  %v3520_v30 = vrot.slane %v3435_v0, 3  ;;  %v3436_v20 = vunpack.c.l.b16 %v3028_v45  ;;  %18283 = vtanh.f32 %v2943_v46  ;;  %v20822_v60 = vpop.eup %18279  ;;  %v21603_v45 = vld [vmem:[#allocation40_spill] sm:$0xff] }
 0x4ab   :  { %v3463_v18 = vsel %vm3462_vm2, %v21596_v16, %v3460_v21  ;;  %v3491_v43 = vsel %vm3459_vm1, %v21597_v15, %v3489_v38  ;;  %v20820_v5 = vpack.c.b16 %v3511_v33, %v3511_v33  ;;  %18285 = vtanh.f32 %v2944_v1  ;;  %v20832_v44 = vpop.eup %18281  ;;  %v21604_v1 = vld [vmem:[#allocation20_spill] sm:$0xff]  ;;  %v21606_v15 = vld [vmem:[#allocation77_spill] sm:$0xff] }
 0x4ac   :  { %v21598_v62 = vrot.slane %v20577_v42, 2  ;;  %v21599_v19 = vrot.slane %v20539_v3, 3  ;;  %v3531_v58 = vsel %vm3456_vm0, %v3530_v17, %v20723_v9  ;;  %v3534_v50 = vrot.slane %v3436_v20, 3  ;;  %v21608_v20 = vld [vmem:[#allocation44_spill] sm:$0xff] }
 0x4ad   :  { %v3033_v11 = vpack.c.bf16 %v20822_v60, %v20822_v60  ;;  %5065 = vmatprep.mubr.bf16.mxu0 %v20820_v5  ;;  %v21600_v8 = vrot.slane %v20589_v6, 2  ;;  %v3034_v53 = vpack.c.bf16 %v20832_v44, %v20832_v44  ;;  %v3533_v49 = vsel %vm3459_vm1, %v3532_v28, %v3531_v58 }
 0x4ae   :  { %v3466_v35 = vsel %vm3465_vm3, %v21598_v62, %v3463_v18  ;;  %v3493_v39 = vsel %vm3462_vm2, %v21599_v19, %v3491_v43  ;;  %v3535_v24 = vsel %vm3462_vm2, %v3534_v50, %v3533_v49  ;;  %v3517_v6 = vsel %vm3456_vm0, %v3516_v4, %v20718_v37  ;;  %v16136_v37 = vld [vmem:[#allocation7 + $0x38] ss:$24 sps:$4 sm:$0xff]   ;;  %v21605_v18 = vld [vmem:[#allocation76_spill] sm:$0xff] }
 0x4af   :  { %v3469_v42 = vsel %vm3468_vm4, %v3467_v12, %v3466_v35  ;;  %v3495_v3 = vsel %vm3465_vm3, %v21600_v8, %v3493_v39  ;;  %v3441_v63 = vunpack.c.l.b16 %v3033_v11  ;;  %v3442_v27 = vunpack.c.l.b16 %v3034_v53  ;;  %v21609_v35 = vld [vmem:[#allocation78_spill] sm:$0xff]  ;;  %v16142_v50 = vld [vmem:[#allocation7 + $0x68] ss:$24 sps:$4 sm:$0xff]  }
 0x4b0   :  { %v20843_v9 = vpack.c.b16 %v3469_v42, %v3469_v42  ;;  %v3497_v17 = vsel %vm3468_vm4, %v3496_v54, %v3495_v3  ;;  %v3519_v21 = vsel %vm3459_vm1, %v3518_v10, %v3517_v6  ;;  %v21601_v28 = vrot.slane %v20423_v61, 7  ;;  %v21612_v8 = vld [vmem:[#allocation38_spill] sm:$0xff]  ;;  %v21613_v53 = vld [vmem:[#allocation41_spill] sm:$0xff] }
 0x4b1   :  { %v20847_v41 = vpack.c.b16 %v3497_v17, %v3497_v17  ;;  %v7588_v48 = vrot.slane %v20447_v59, 5  ;;  %v3522_v40 = vrot.slane %v3441_v63, 2  ;;  %v3521_v4 = vsel %vm3462_vm2, %v3520_v30, %v3519_v21  ;;  %v21614_v49 = vld [vmem:[#allocation66_spill] sm:$0xff]  ;;  %v21616_v21 = vld [vmem:[#allocation49_spill] sm:$0xff] }
 0x4b2   :  { %5025 = vmatmul.mubr.bf16.vlgmr.msra.gmra.mrb[72].mxu1 %v20843_v9  ;;  %v7585_v12 = vsel %vm3450_vm14, %v21601_v28, %v20406_v23  ;;  %v21602_v38 = vrot.slane %v20435_v25, 6  ;;  %v7590_v10 = vrot.slane %v20494_v31, 4  ;;  %v3536_v0 = vrot.slane %v3442_v27, 2  ;;  %v16144_v23 = vld [vmem:[#allocation7 + $0x6c] ss:$24 sps:$4 sm:$0xff]   ;;  %v21615_v27 = vld [vmem:[#allocation46_spill] sm:$0xff] }
 0x4b3   :  { %5066 = vmatmul.mubr.bf16.vlgmr.msra.gmra.mrb[48].mxu0 %v20847_v41  ;;  %5116 = vmatpush1.bf16.msra.mxu1 %v16130_v29  ;;  %v7592_v59 = vrot.slane %v20552_v56, 3  ;;  %v7594_v46 = vrot.slane %v21603_v45, 2  ;;  %v7640_v33 = vrot.slane %v21604_v1, 7  ;;  %v16141_v25 = vld [vmem:[#allocation7 + $0x664] ss:$24 sps:$4 sm:$0xff]   ;;  %v3523_v16 = vsel %vm3465_vm3, %v3522_v40, %v3521_v4  ;;  %v21618_v4 = vld [vmem:[#allocation42_spill] sm:$0xff] }
 0x4b4   :  { %v7587_v36 = vsel %vm3453_vm15, %v21602_v38, %v7585_v12  ;;  %5075 = vmatpush1.bf16.msra.mxu0 %v16127_v51  ;;  %5147 = vmatprep.mubr.bf16.mxu1 %v20792_v57  ;;  %v21607_v43 = vrot.slane %v21606_v15, 7  ;;  %v3537_v30 = vsel %vm3465_vm3, %v3536_v0, %v3535_v24  ;;  %v7596_v62 = vrot.slane %v21608_v20, 1  ;;  %v20886_v58 = vpop.eup %18283  ;;  %v21611_v29 = vld [vmem:[#allocation36_spill] sm:$0xff]  ;;  %v16150_v24 = vld [vmem:[#allocation7 + $0x9c] ss:$24 sps:$4 sm:$0xff]   ;;  %v21622_v45 = vld [vmem:[#allocation65_spill] sm:$0xff] }
 0x4b5   :  { %v7589_v61 = vsel %vm3456_vm0, %v7588_v48, %v7587_v36  ;;  %5076 = vmatprep.subr.bf16.mxu0 %v16135_v2  ;;  %5117 = vmatprep.subr.bf16.mxu1 %v16138_v7  ;;  %v21610_v19 = vrot.slane %v21609_v35, 6  ;;  %v7602_v42 = vrot.slane %v21611_v29, 5  ;;  %v7604_v3 = vrot.slane %v21612_v8, 4  ;;  %v20892_v17 = vpop.eup %18285  ;;  %v16139_v7 = vld [vmem:[#allocation7 + $0x660] ss:$24 sps:$4 sm:$0xff]  }
 0x4b6   :  { %v7591_v31 = vsel %vm3459_vm1, %v7590_v10, %v7589_v61  ;;  %v7599_v54 = vsel %vm3450_vm14, %v21607_v43, %v21605_v18  ;;  %v7606_v51 = vrot.slane %v21613_v53, 3  ;;  %v7654_v63 = vrot.slane %v21614_v49, 7  ;;  %v16147_v40 = vld [vmem:[#allocation7 + $0x694] ss:$24 sps:$4 sm:$0xff]   ;;  %v21619_v38 = vld [vmem:[#allocation63_spill] sm:$0xff] }
 0x4b7   :  { %v7593_v56 = vsel %vm3462_vm2, %v7592_v59, %v7591_v31  ;;  %v7601_v39 = vsel %vm3453_vm15, %v21610_v19, %v7599_v54  ;;  %5118 = vmatpush1.bf16.msra.mxu1 %v16136_v37  ;;  %v3039_v2 = vpack.c.bf16 %v20886_v58, %v20886_v58  ;;  %v21617_v28 = vrot.slane %v21616_v21, 7  ;;  %v16148_v18 = vld [vmem:[#allocation7 + $0x98] ss:$24 sps:$4 sm:$0xff]   ;;  %v21624_v54 = vld [vmem:[#allocation57_spill] sm:$0xff] }
 0x4b8   :  { %v7595_v11 = vsel %vm3465_vm3, %v7594_v46, %v7593_v56  ;;  %5077 = vmatpush1.bf16.msra.mxu0 %v16133_v34  ;;  %5119 = vmatprep.subr.bf16.mxu1 %v16144_v23  ;;  %v3040_v48 = vpack.c.bf16 %v20892_v17, %v20892_v17  ;;  %v7603_v37 = vsel %vm3456_vm0, %v7602_v42, %v7601_v39  ;;  %v7608_v34 = vrot.slane %v21618_v4, 2  ;;  %v21620_v23 = vld [vmem:[#allocation54_spill] sm:$0xff]  ;;  %v21623_v15 = vld [vmem:[#allocation55_spill] sm:$0xff]  ;;  %v16168_v1 = vld [vmem:[#allocation7 + $0x12c] ss:$24 sps:$4 sm:$0xff]  }
 0x4b9   :  { %v20898_v6 = vsel %vm3468_vm4, %v7596_v62, %v7595_v11  ;;  %v7613_v12 = vsel %vm3450_vm14, %v21617_v28, %v21615_v27  ;;  %5078 = vmatprep.subr.bf16.mxu0 %v16141_v25  ;;  %v7610_v36 = vrot.slane %v21619_v38, 1  ;;  %v3447_v10 = vunpack.c.l.b16 %v3039_v2  ;;  %v16145_v20 = vld [vmem:[#allocation7 + $0x690] ss:$24 sps:$4 sm:$0xff]   ;;  %v16156_v62 = vld [vmem:[#allocation7 + $0xcc] ss:$24 sps:$4 sm:$0xff]   ;;  %v21625_v11 = vld [vmem:[#allocation59_spill] sm:$0xff] }
 0x4ba   :  { %v7605_v0 = vsel %vm3459_vm1, %v7604_v3, %v7603_v37  ;;  %v21621_v61 = vrot.slane %v21620_v23, 6  ;;  %v7616_v46 = vrot.slane %v21622_v45, 5  ;;  %v3448_v31 = vunpack.c.l.b16 %v3040_v48  ;;  %v21626_v53 = vld [vmem:[#allocation62_spill] sm:$0xff]  ;;  %v21628_v27 = vld [vmem:[#allocation51_spill] sm:$0xff]  ;;  %v16154_v37 = vld [vmem:[#allocation7 + $0xc8] ss:$24 sps:$4 sm:$0xff]  }
 0x4bb   :  { %5120 = vmatpush1.bf16.msra.mxu1 %v16142_v50  ;;  %v7607_v25 = vsel %vm3462_vm2, %v7606_v51, %v7605_v0  ;;  %v7618_v43 = vrot.slane %v21623_v15, 4  ;;  %v7620_v56 = vrot.slane %v21624_v54, 3  ;;  %v3524_v35 = vrot.slane %v3447_v10, 1  ;;  %v16153_v50 = vld [vmem:[#allocation7 + $0x6c4] ss:$24 sps:$4 sm:$0xff]   ;;  %v21631_v38 = vld [vmem:[#allocation61_spill] sm:$0xff] }
 0x4bc   :  { %v7615_v59 = vsel %vm3453_vm15, %v21621_v61, %v7613_v12  ;;  %5079 = vmatpush1.bf16.msra.mxu0 %v16139_v7  ;;  %5121 = vmatprep.subr.bf16.mxu1 %v16150_v24  ;;  %v7609_v19 = vsel %vm3465_vm3, %v7608_v34, %v7607_v25  ;;  %v7622_v29 = vrot.slane %v21625_v11, 2  ;;  %v3538_v42 = vrot.slane %v3448_v31, 1  ;;  %v21627_v24 = vld [vmem:[#allocation48_spill] sm:$0xff]  ;;  %v21630_v12 = vld [vmem:[#allocation69_spill] sm:$0xff]  ;;  %v16162_v23 = vld [vmem:[#allocation7 + $0xfc] ss:$24 sps:$4 sm:$0xff]  }
 0x4bd   :  { %v7617_v39 = vsel %vm3456_vm0, %v7616_v46, %v7615_v59  ;;  %5080 = vmatprep.subr.bf16.mxu0 %v16147_v40  ;;  %v20921_v8 = vsel %vm3468_vm4, %v7610_v36, %v7609_v19  ;;  %v7624_v51 = vrot.slane %v21626_v53, 1  ;;  %v20926_v2 = vsel %vm3468_vm4, %v3524_v35, %v3523_v16  ;;  %v16151_v0 = vld [vmem:[#allocation7 + $0x6c0] ss:$24 sps:$4 sm:$0xff]   ;;  %v21634_v31 = vld [vmem:[#allocation58_spill] sm:$0xff] }
 0x4be   :  { %v7619_v3 = vsel %vm3459_vm1, %v7618_v43, %v7617_v39  ;;  %v21629_v21 = vrot.slane %v21628_v27, 7  ;;  %v7630_v48 = vrot.slane %v21630_v12, 5  ;;  %v7642_v40 = vrot.slane %v20699_v32, 6  ;;  %v21633_v45 = vld [vmem:[#allocation56_spill] sm:$0xff]  ;;  %v21637_v54 = vld [vmem:[#allocation47_spill] sm:$0xff] }
 0x4bf   :  { %v7621_v7 = vsel %vm3462_vm2, %v7620_v56, %v7619_v3  ;;  %5122 = vmatpush1.bf16.msra.mxu1 %v16148_v18  ;;  %v3539_v4 = vsel %vm3468_vm4, %v3538_v42, %v3537_v30  ;;  %v21632_v16 = vrot.slane %v21631_v38, 6  ;;  %v7656_v10 = vrot.slane %v20702_v26, 6  ;;  %v16159_v30 = vld [vmem:[#allocation7 + $0x6f4] ss:$24 sps:$4 sm:$0xff]   ;;  %v21635_v25 = vld [vmem:[#allocation60_spill] sm:$0xff]  ;;  %v21636_v26 = vld [vmem:[#allocation71_spill] sm:$0xff] }
 0x4c0   :  { %v7627_v28 = vsel %vm3450_vm14, %v21629_v21, %v21627_v24  ;;  %v7623_v34 = vsel %vm3465_vm3, %v7622_v29, %v7621_v7  ;;  %5081 = vmatpush1.bf16.msra.mxu0 %v16145_v20  ;;  %5123 = vmatprep.subr.bf16.mxu1 %v16156_v62  ;;  %v20941_v61 = vpack.c.b16 %v3539_v4, %v3539_v4  ;;  %v7632_v46 = vrot.slane %v21633_v45, 4  ;;  %v16160_v19 = vld [vmem:[#allocation7 + $0xf8] ss:$24 sps:$4 sm:$0xff]   ;;  %v21638_v42 = vld [vmem:[#allocation52_spill] sm:$0xff] }
 0x4c1   :  { %v7629_v36 = vsel %vm3453_vm15, %v21632_v16, %v7627_v28  ;;  %v20944_v32 = vsel %vm3468_vm4, %v7624_v51, %v7623_v34  ;;  %5082 = vmatprep.subr.bf16.mxu0 %v16153_v50  ;;  %v7634_v18 = vrot.slane %v21634_v31, 3  ;;  %v7636_v15 = vrot.slane %v21635_v25, 2  ;;  %v16157_v50 = vld [vmem:[#allocation7 + $0x6f0] ss:$24 sps:$4 sm:$0xff]   ;;  %v16165_v3 = vld [vmem:[#allocation7 + $0x724] ss:$24 sps:$4 sm:$0xff]  }
 0x4c2   :  { %v7631_v59 = vsel %vm3456_vm0, %v7630_v48, %v7629_v36  ;;  %v7638_v43 = vrot.slane %v21636_v26, 1  ;;  %5106 = vmatprep.mubr.bf16.mxu0 %v20941_v61  ;;  %v7641_v56 = vsel %vm3450_vm14, %v7640_v33, %v21637_v54  ;;  %v7644_v20 = vrot.slane %v20710_v14, 5  ;;  %v16172_v38 = vld [vmem:[#allocation7 + $0x158] ss:$24 sps:$4 sm:$0xff]   ;;  %v16180_v16 = vld [vmem:[#allocation7 + $0x18c] ss:$24 sps:$4 sm:$0xff]  }
 0x4c3   :  { %v7646_v62 = vrot.slane %v20738_v52, 4  ;;  %v7648_v35 = vrot.slane %v20778_v47, 3  ;;  %5124 = vmatpush1.bf16.msra.mxu1 %v16154_v37  ;;  %v7633_v39 = vsel %vm3459_vm1, %v7632_v46, %v7631_v59  ;;  %v7643_v11 = vsel %vm3453_vm15, %v7642_v40, %v7641_v56  ;;  %v16174_v40 = vld [vmem:[#allocation7 + $0x15c] ss:$24 sps:$4 sm:$0xff]   ;;  %v16181_v45 = vld [vmem:[#allocation7 + $0x7b0] ss:$24 sps:$4 sm:$0xff]  }
 0x4c4   :  { %v7650_v29 = vrot.slane %v20822_v60, 2  ;;  %5083 = vmatpush1.bf16.msra.mxu0 %v16151_v0  ;;  %5125 = vmatprep.subr.bf16.mxu1 %v16162_v23  ;;  %v7635_v33 = vsel %vm3462_vm2, %v7634_v18, %v7633_v39  ;;  %v7645_v14 = vsel %vm3456_vm0, %v7644_v20, %v7643_v11  ;;  %v7652_v52 = vrot.slane %v20886_v58, 1  ;;  %v16177_v36 = vld [vmem:[#allocation7 + $0x784] ss:$24 sps:$4 sm:$0xff]   ;;  %v16175_v0 = vld [vmem:[#allocation7 + $0x780] ss:$24 sps:$4 sm:$0xff]  }
 0x4c5   :  { %v7655_v47 = vsel %vm3450_vm14, %v7654_v63, %v21638_v42  ;;  %5084 = vmatprep.subr.bf16.mxu0 %v16159_v30  ;;  %v7637_v53 = vsel %vm3465_vm3, %v7636_v15, %v7635_v33  ;;  %v7647_v60 = vsel %vm3459_vm1, %v7646_v62, %v7645_v14  ;;  %v7658_v7 = vrot.slane %v20733_v22, 5  ;;  %v16166_v63 = vld [vmem:[#allocation7 + $0x128] ss:$24 sps:$4 sm:$0xff]   ;;  %v16186_v23 = vld [vmem:[#allocation7 + $0x1bc] ss:$24 sps:$4 sm:$0xff]  }
 0x4c6   :  { %v7657_v51 = vsel %vm3453_vm15, %v7656_v10, %v7655_v47  ;;  %v20974_v24 = vsel %vm3468_vm4, %v7638_v43, %v7637_v53  ;;  %v7649_v58 = vsel %vm3462_vm2, %v7648_v35, %v7647_v60  ;;  %v7660_v27 = vrot.slane %v20752_v55, 4  ;;  %v16163_v22 = vld [vmem:[#allocation7 + $0x720] ss:$24 sps:$4 sm:$0xff]   ;;  %v16183_v59 = vld [vmem:[#allocation7 + $0x7b4] ss:$24 sps:$4 sm:$0xff]  }
 0x4c7   :  { %v7662_v49 = vrot.slane %v20794_v13, 3  ;;  %5126 = vmatpush1.bf16.msra.mxu1 %v16160_v19  ;;  %v7651_v21 = vsel %vm3465_vm3, %v7650_v29, %v7649_v58  ;;  %v7659_v28 = vsel %vm3456_vm0, %v7658_v7, %v7657_v51  ;;  %v7664_v12 = vrot.slane %v20832_v44, 2  ;;  %v16171_v13 = vld [vmem:[#allocation7 + $0x754] ss:$24 sps:$4 sm:$0xff]   ;;  %v16178_v10 = vld [vmem:[#allocation7 + $0x188] ss:$24 sps:$4 sm:$0xff]  }
 0x4c8   :  { %v7666_v48 = vrot.slane %v20892_v17, 1  ;;  %5085 = vmatpush1.bf16.msra.mxu0 %v16157_v50  ;;  %5127 = vmatprep.subr.bf16.mxu1 %v16168_v1  ;;  %v20984_v37 = vsel %vm3468_vm4, %v7652_v52, %v7651_v21  ;;  %v7661_v55 = vsel %vm3459_vm1, %v7660_v27, %v7659_v28  ;;  %v16169_v17 = vld [vmem:[#allocation7 + $0x750] ss:$24 sps:$4 sm:$0xff]   ;;  %v16192_v46 = vld [vmem:[#allocation7 + $0x1ec] ss:$24 sps:$4 sm:$0xff]   ;;  %v20994_v58 = vpack.c.b16 %v20926_v2, %v20926_v2 }
 0x4c9   :  { %5086 = vmatprep.subr.bf16.mxu0 %v16165_v3  ;;  %v7663_v4 = vsel %vm3462_vm2, %v7662_v49, %v7661_v55  ;;  %v16184_v30 = vld [vmem:[#allocation7 + $0x1b8] ss:$24 sps:$4 sm:$0xff]   ;;  %v16189_v31 = vld [vmem:[#allocation7 + $0x7e4] ss:$24 sps:$4 sm:$0xff]   ;;  %v16190_v18 = vld [vmem:[#allocation7 + $0x1e8] ss:$24 sps:$4 sm:$0xff]  }
 0x4ca   :  { %v7665_v34 = vsel %vm3465_vm3, %v7664_v12, %v7663_v4  ;;  %v16187_v25 = vld [vmem:[#allocation7 + $0x7e0] ss:$24 sps:$4 sm:$0xff]   ;;  %v16198_v15 = vld [vmem:[#allocation7 + $0x21c] ss:$24 sps:$4 sm:$0xff]   ;;  %v16193_v54 = vld [vmem:[#allocation7 + $0x810] ss:$24 sps:$4 sm:$0xff]  }
 0x4cb   :  { %5128 = vmatpush1.bf16.msra.mxu1 %v16166_v63  ;;  %v20990_v44 = vsel %vm3468_vm4, %v7666_v48, %v7665_v34  ;;  %v16195_v26 = vld [vmem:[#allocation7 + $0x814] ss:$24 sps:$4 sm:$0xff]   ;;  %v16196_v43 = vld [vmem:[#allocation7 + $0x218] ss:$24 sps:$4 sm:$0xff]   ;;  %v16201_v20 = vld [vmem:[#allocation7 + $0x844] ss:$24 sps:$4 sm:$0xff]  }
 0x4cc   :  { %5087 = vmatpush1.bf16.msra.mxu0 %v16163_v22  ;;  %5129 = vmatprep.subr.bf16.mxu1 %v16174_v40  ;;  %v16204_v56 = vld [vmem:[#allocation7 + $0x24c] ss:$24 sps:$4 sm:$0xff]   ;;  %v16202_v62 = vld [vmem:[#allocation7 + $0x248] ss:$24 sps:$4 sm:$0xff]   ;;  %v16210_v19 = vld [vmem:[#allocation7 + $0x27c] ss:$24 sps:$4 sm:$0xff]  }
 0x4cd   :  { %5088 = vmatprep.subr.bf16.mxu0 %v16171_v13  ;;  %v16199_v35 = vld [vmem:[#allocation7 + $0x840] ss:$24 sps:$4 sm:$0xff]   ;;  %v16207_v39 = vld [vmem:[#allocation7 + $0x874] ss:$24 sps:$4 sm:$0xff]   ;;  %v16205_v29 = vld [vmem:[#allocation7 + $0x870] ss:$24 sps:$4 sm:$0xff]  }
 0x4ce   :  { %v16208_v11 = vld [vmem:[#allocation7 + $0x278] ss:$24 sps:$4 sm:$0xff]   ;;  %v16216_v50 = vld [vmem:[#allocation7 + $0x2ac] ss:$24 sps:$4 sm:$0xff]   ;;  %v16214_v33 = vld [vmem:[#allocation7 + $0x2a8] ss:$24 sps:$4 sm:$0xff]  }
 0x4cf   :  { %5130 = vmatpush1.bf16.msra.mxu1 %v16172_v38  ;;  %v16213_v1 = vld [vmem:[#allocation7 + $0x8a4] ss:$24 sps:$4 sm:$0xff]   ;;  %v16211_v14 = vld [vmem:[#allocation7 + $0x8a0] ss:$24 sps:$4 sm:$0xff]   ;;  %v16219_v42 = vld [vmem:[#allocation7 + $0x8d4] ss:$24 sps:$4 sm:$0xff]  }
 0x4d0   :  { %5089 = vmatpush1.bf16.msra.mxu0 %v16169_v17  ;;  %5131 = vmatprep.subr.bf16.mxu1 %v16180_v16  ;;  %v16222_v52 = vld [vmem:[#allocation7 + $0x2dc] ss:$24 sps:$4 sm:$0xff]   ;;  %v16220_v47 = vld [vmem:[#allocation7 + $0x2d8] ss:$24 sps:$4 sm:$0xff]   ;;  %v16225_v53 = vld [vmem:[#allocation7 + $0x30c] ss:$24 sps:$4 sm:$0xff]  }
 0x4d1   :  { %5090 = vmatprep.subr.bf16.mxu0 %v16177_v36  ;;  %v16217_v3 = vld [vmem:[#allocation7 + $0x8d0] ss:$24 sps:$4 sm:$0xff]   ;;  %v16228_v60 = vld [vmem:[#allocation7 + $0x14] ss:$24 sps:$4 sm:$0xff]   ;;  %v16234_v49 = vld [vmem:[#allocation7 + $0x44] ss:$24 sps:$4 sm:$0xff]  }
 0x4d2   :  { %v16223_v51 = vld [vmem:[#allocation7 + $0x308] ss:$24 sps:$4 sm:$0xff]   ;;  %v16231_v27 = vld [vmem:[#allocation7 + $0x33c] ss:$24 sps:$4 sm:$0xff]   ;;  %v16229_v63 = vld [vmem:[#allocation7 + $0x338] ss:$24 sps:$4 sm:$0xff]  }
 0x4d3   :  { %5132 = vmatpush1.bf16.msra.mxu1 %v16178_v10  ;;  %v16226_v7 = vld [vmem:[#allocation7 + $0x10] ss:$24 sps:$4 sm:$0xff]   ;;  %v16232_v21 = vld [vmem:[#allocation7 + $0x40] ss:$24 sps:$4 sm:$0xff]   ;;  %v16237_v28 = vld [vmem:[#allocation7 + $0x36c] ss:$24 sps:$4 sm:$0xff]  }
 0x4d4   :  { %5091 = vmatpush1.bf16.msra.mxu0 %v16175_v0  ;;  %5133 = vmatprep.subr.bf16.mxu1 %v16186_v23  ;;  %v16240_v12 = vld [vmem:[#allocation7 + $0x74] ss:$24 sps:$4 sm:$0xff]   ;;  %v16235_v2 = vld [vmem:[#allocation7 + $0x368] ss:$24 sps:$4 sm:$0xff]   ;;  %v16246_v40 = vld [vmem:[#allocation7 + $0xa4] ss:$24 sps:$4 sm:$0xff]  }
 0x4d5   :  { %5092 = vmatprep.subr.bf16.mxu0 %v16183_v59  ;;  %v16238_v48 = vld [vmem:[#allocation7 + $0x70] ss:$24 sps:$4 sm:$0xff]   ;;  %v16243_v22 = vld [vmem:[#allocation7 + $0x39c] ss:$24 sps:$4 sm:$0xff]   ;;  %v16244_v13 = vld [vmem:[#allocation7 + $0xa0] ss:$24 sps:$4 sm:$0xff]  }
 0x4d6   :  { %v16241_v55 = vld [vmem:[#allocation7 + $0x398] ss:$24 sps:$4 sm:$0xff]   ;;  %v16249_v4 = vld [vmem:[#allocation7 + $0x3cc] ss:$24 sps:$4 sm:$0xff]   ;;  %v16247_v38 = vld [vmem:[#allocation7 + $0x3c8] ss:$24 sps:$4 sm:$0xff]  }
 0x4d7   :  { %5134 = vmatpush1.bf16.msra.mxu1 %v16184_v30  ;;  %v16252_v34 = vld [vmem:[#allocation7 + $0xd4] ss:$24 sps:$4 sm:$0xff]   ;;  %v16250_v17 = vld [vmem:[#allocation7 + $0xd0] ss:$24 sps:$4 sm:$0xff]   ;;  %v16258_v36 = vld [vmem:[#allocation7 + $0x104] ss:$24 sps:$4 sm:$0xff]  }
 0x4d8   :  { %5093 = vmatpush1.bf16.msra.mxu0 %v16181_v45  ;;  %5135 = vmatprep.subr.bf16.mxu1 %v16192_v46  ;;  %v16255_v16 = vld [vmem:[#allocation7 + $0x3fc] ss:$24 sps:$4 sm:$0xff]   ;;  %v16253_v10 = vld [vmem:[#allocation7 + $0x3f8] ss:$24 sps:$4 sm:$0xff]   ;;  %v16261_v23 = vld [vmem:[#allocation7 + $0x42c] ss:$24 sps:$4 sm:$0xff]  }
 0x4d9   :  { %5094 = vmatprep.subr.bf16.mxu0 %v16189_v31  ;;  %v16256_v0 = vld [vmem:[#allocation7 + $0x100] ss:$24 sps:$4 sm:$0xff]   ;;  %v16264_v59 = vld [vmem:[#allocation7 + $0x134] ss:$24 sps:$4 sm:$0xff]   ;;  %v16262_v45 = vld [vmem:[#allocation7 + $0x130] ss:$24 sps:$4 sm:$0xff]  }
 0x4da   :  { %v16259_v30 = vld [vmem:[#allocation7 + $0x428] ss:$24 sps:$4 sm:$0xff]   ;;  %v16267_v46 = vld [vmem:[#allocation7 + $0x45c] ss:$24 sps:$4 sm:$0xff]  }
 0x4db   :  { %5136 = vmatpush1.bf16.msra.mxu1 %v16190_v18  ;;  %v16270_v31 = vld [vmem:[#allocation7 + $0x164] ss:$24 sps:$4 sm:$0xff]   ;;  %v16265_v18 = vld [vmem:[#allocation7 + $0x458] ss:$24 sps:$4 sm:$0xff]  }
 0x4dc   :  { %5095 = vmatpush1.bf16.msra.mxu0 %v16187_v25  ;;  %5137 = vmatprep.subr.bf16.mxu1 %v16198_v15  ;;  %v16268_v25 = vld [vmem:[#allocation7 + $0x160] ss:$24 sps:$4 sm:$0xff]   ;;  %v16273_v15 = vld [vmem:[#allocation7 + $0x48c] ss:$24 sps:$4 sm:$0xff]  }
 0x4dd   :  { %5096 = vmatprep.subr.bf16.mxu0 %v16195_v26  ;;  %v16276_v26 = vld [vmem:[#allocation7 + $0x194] ss:$24 sps:$4 sm:$0xff]  }
 0x4df   :  { %5138 = vmatpush1.bf16.msra.mxu1 %v16196_v43  ;;  %v16271_v43 = vld [vmem:[#allocation7 + $0x488] ss:$24 sps:$4 sm:$0xff]  }
 0x4e0   :  { %5097 = vmatpush1.bf16.msra.mxu0 %v16193_v54  ;;  %5139 = vmatprep.subr.bf16.mxu1 %v16204_v56  ;;  %v16274_v54 = vld [vmem:[#allocation7 + $0x190] ss:$24 sps:$4 sm:$0xff]   ;;  %v16279_v56 = vld [vmem:[#allocation7 + $0x4bc] ss:$24 sps:$4 sm:$0xff]  }
 0x4e1   :  { %5098 = vmatprep.subr.bf16.mxu0 %v16201_v20  ;;  %v16282_v20 = vld [vmem:[#allocation7 + $0x1c4] ss:$24 sps:$4 sm:$0xff]  }
 0x4e3   :  { %5140 = vmatpush1.bf16.msra.mxu1 %v16202_v62  ;;  %v16277_v62 = vld [vmem:[#allocation7 + $0x4b8] ss:$24 sps:$4 sm:$0xff]  }
 0x4e4   :  { %5099 = vmatpush1.bf16.msra.mxu0 %v16199_v35  ;;  %5141 = vmatprep.subr.bf16.mxu1 %v16210_v19  ;;  %v16280_v35 = vld [vmem:[#allocation7 + $0x1c0] ss:$24 sps:$4 sm:$0xff]   ;;  %v16285_v19 = vld [vmem:[#allocation7 + $0x4ec] ss:$24 sps:$4 sm:$0xff]  }
 0x4e5   :  { %5100 = vmatprep.subr.bf16.mxu0 %v16207_v39  ;;  %v16288_v39 = vld [vmem:[#allocation7 + $0x1f4] ss:$24 sps:$4 sm:$0xff]  }
 0x4e7   :  { %5142 = vmatpush1.bf16.msra.mxu1 %v16208_v11  ;;  %v16283_v11 = vld [vmem:[#allocation7 + $0x4e8] ss:$24 sps:$4 sm:$0xff]  }
 0x4e8   :  { %5101 = vmatpush1.bf16.msra.mxu0 %v16205_v29  ;;  %5143 = vmatprep.subr.bf16.mxu1 %v16216_v50  ;;  %v16286_v29 = vld [vmem:[#allocation7 + $0x1f0] ss:$24 sps:$4 sm:$0xff]   ;;  %v16291_v50 = vld [vmem:[#allocation7 + $0x51c] ss:$24 sps:$4 sm:$0xff]  }
 0x4e9   :  { %5102 = vmatprep.subr.bf16.mxu0 %v16213_v1  ;;  %v16294_v1 = vld [vmem:[#allocation7 + $0x224] ss:$24 sps:$4 sm:$0xff]  }
 0x4eb   :  { %5144 = vmatpush1.bf16.msra.mxu1 %v16214_v33  ;;  %v16289_v33 = vld [vmem:[#allocation7 + $0x518] ss:$24 sps:$4 sm:$0xff]  }
 0x4ec   :  { %5103 = vmatpush1.bf16.msra.mxu0 %v16211_v14  ;;  %5145 = vmatprep.subr.bf16.mxu1 %v16222_v52  ;;  %v16292_v14 = vld [vmem:[#allocation7 + $0x220] ss:$24 sps:$4 sm:$0xff]   ;;  %v16297_v52 = vld [vmem:[#allocation7 + $0x54c] ss:$24 sps:$4 sm:$0xff]  }
 0x4ed   :  { %5104 = vmatprep.subr.bf16.mxu0 %v16219_v42  ;;  %v16300_v42 = vld [vmem:[#allocation7 + $0x254] ss:$24 sps:$4 sm:$0xff]  }
 0x4ef   :  { %5146 = vmatpush1.bf16.msra.mxu1 %v16220_v47  ;;  %v16295_v47 = vld [vmem:[#allocation7 + $0x548] ss:$24 sps:$4 sm:$0xff]  }
 0x4f0   :  { %5105 = vmatpush1.bf16.msra.mxu0 %v16217_v3  ;;  %5156 = vmatprep.subr.bf16.mxu1 %v16225_v53  ;;  %v16298_v3 = vld [vmem:[#allocation7 + $0x250] ss:$24 sps:$4 sm:$0xff]   ;;  %v16303_v53 = vld [vmem:[#allocation7 + $0x57c] ss:$24 sps:$4 sm:$0xff]  }
 0x4f1   :  { %5238 = vmatprep.subr.bf16.mxu0 %v16228_v60  ;;  %v16306_v60 = vld [vmem:[#allocation7 + $0x284] ss:$24 sps:$4 sm:$0xff]  }
 0x4f2   :  { %5148 = vmatmul.mubr.bf16.vlgmr.msra.gmra.mrb[76].mxu1 %v20843_v9 }
 0x4f3   :  { %5107 = vmatmul.mubr.bf16.vlgmr.msra.gmra.mrb[48].mxu0 %v20994_v58  ;;  %5157 = vmatpush1.bf16.msra.mxu1 %v16223_v51  ;;  %v16301_v51 = vld [vmem:[#allocation7 + $0x578] ss:$24 sps:$4 sm:$0xff]  }
 0x4f4   :  { %5188 = vmatprep.mubr.bf16.mxu1 %v20820_v5  ;;  %5239 = vmatpush1.bf16.msra.mxu0 %v16226_v7  ;;  %v16304_v7 = vld [vmem:[#allocation7 + $0x280] ss:$24 sps:$4 sm:$0xff]  }
 0x4f5   :  { %5270 = vmatprep.mubr.bf16.mxu0 %v20792_v57  ;;  %5158 = vmatprep.subr.bf16.mxu1 %v16231_v27  ;;  %v16309_v27 = vld [vmem:[#allocation7 + $0x5ac] ss:$24 sps:$4 sm:$0xff]  }
 0x4f6   :  { %5240 = vmatprep.subr.bf16.mxu0 %v16234_v49  ;;  %v16312_v49 = vld [vmem:[#allocation7 + $0x2b4] ss:$24 sps:$4 sm:$0xff]  }
 0x4f7   :  { %5159 = vmatpush1.bf16.msra.mxu1 %v16229_v63  ;;  %v16307_v63 = vld [vmem:[#allocation7 + $0x5a8] ss:$24 sps:$4 sm:$0xff]  }
 0x4f8   :  { %5241 = vmatpush1.bf16.msra.mxu0 %v16232_v21  ;;  %5160 = vmatprep.subr.bf16.mxu1 %v16237_v28  ;;  %v16310_v21 = vld [vmem:[#allocation7 + $0x2b0] ss:$24 sps:$4 sm:$0xff]   ;;  %v16315_v28 = vld [vmem:[#allocation7 + $0x5dc] ss:$24 sps:$4 sm:$0xff]  }
 0x4f9   :  { %5242 = vmatprep.subr.bf16.mxu0 %v16240_v12  ;;  %v16318_v12 = vld [vmem:[#allocation7 + $0x2e4] ss:$24 sps:$4 sm:$0xff]  }
 0x4fb   :  { %5161 = vmatpush1.bf16.msra.mxu1 %v16235_v2  ;;  %v16313_v2 = vld [vmem:[#allocation7 + $0x5d8] ss:$24 sps:$4 sm:$0xff]  }
 0x4fc   :  { %5243 = vmatpush1.bf16.msra.mxu0 %v16238_v48  ;;  %5162 = vmatprep.subr.bf16.mxu1 %v16243_v22  ;;  %v16316_v48 = vld [vmem:[#allocation7 + $0x2e0] ss:$24 sps:$4 sm:$0xff]   ;;  %v16321_v22 = vld [vmem:[#allocation7 + $0x60c] ss:$24 sps:$4 sm:$0xff]  }
 0x4fd   :  { %5244 = vmatprep.subr.bf16.mxu0 %v16246_v40  ;;  %v16324_v40 = vld [vmem:[#allocation7 + $0x314] ss:$24 sps:$4 sm:$0xff]  }
 0x4ff   :  { %5163 = vmatpush1.bf16.msra.mxu1 %v16241_v55  ;;  %v16319_v55 = vld [vmem:[#allocation7 + $0x608] ss:$24 sps:$4 sm:$0xff]  }
 0x500   :  { %5245 = vmatpush1.bf16.msra.mxu0 %v16244_v13  ;;  %5164 = vmatprep.subr.bf16.mxu1 %v16249_v4  ;;  %v16322_v13 = vld [vmem:[#allocation7 + $0x310] ss:$24 sps:$4 sm:$0xff]   ;;  %v16327_v4 = vld [vmem:[#allocation7 + $0x63c] ss:$24 sps:$4 sm:$0xff]  }
 0x501   :  { %5246 = vmatprep.subr.bf16.mxu0 %v16252_v34  ;;  %v16330_v34 = vld [vmem:[#allocation7 + $0x344] ss:$24 sps:$4 sm:$0xff]  }
 0x503   :  { %5165 = vmatpush1.bf16.msra.mxu1 %v16247_v38  ;;  %v16325_v38 = vld [vmem:[#allocation7 + $0x638] ss:$24 sps:$4 sm:$0xff]  }
 0x504   :  { %5247 = vmatpush1.bf16.msra.mxu0 %v16250_v17  ;;  %5166 = vmatprep.subr.bf16.mxu1 %v16255_v16  ;;  %v16328_v17 = vld [vmem:[#allocation7 + $0x340] ss:$24 sps:$4 sm:$0xff]   ;;  %v16333_v16 = vld [vmem:[#allocation7 + $0x66c] ss:$24 sps:$4 sm:$0xff]  }
 0x505   :  { %5248 = vmatprep.subr.bf16.mxu0 %v16258_v36  ;;  %v16336_v36 = vld [vmem:[#allocation7 + $0x374] ss:$24 sps:$4 sm:$0xff]  }
 0x507   :  { %5167 = vmatpush1.bf16.msra.mxu1 %v16253_v10  ;;  %v16331_v10 = vld [vmem:[#allocation7 + $0x668] ss:$24 sps:$4 sm:$0xff]  }
 0x508   :  { %5249 = vmatpush1.bf16.msra.mxu0 %v16256_v0  ;;  %5168 = vmatprep.subr.bf16.mxu1 %v16261_v23  ;;  %v16334_v0 = vld [vmem:[#allocation7 + $0x370] ss:$24 sps:$4 sm:$0xff]   ;;  %v16339_v23 = vld [vmem:[#allocation7 + $0x69c] ss:$24 sps:$4 sm:$0xff]  }
 0x509   :  { %5250 = vmatprep.subr.bf16.mxu0 %v16264_v59  ;;  %v16342_v59 = vld [vmem:[#allocation7 + $0x3a4] ss:$24 sps:$4 sm:$0xff]  }
 0x50b   :  { %5169 = vmatpush1.bf16.msra.mxu1 %v16259_v30  ;;  %v16337_v30 = vld [vmem:[#allocation7 + $0x698] ss:$24 sps:$4 sm:$0xff]  }
 0x50c   :  { %5251 = vmatpush1.bf16.msra.mxu0 %v16262_v45  ;;  %5170 = vmatprep.subr.bf16.mxu1 %v16267_v46  ;;  %v16340_v45 = vld [vmem:[#allocation7 + $0x3a0] ss:$24 sps:$4 sm:$0xff]   ;;  %v16345_v46 = vld [vmem:[#allocation7 + $0x6cc] ss:$24 sps:$4 sm:$0xff]  }
 0x50d   :  { %5252 = vmatprep.subr.bf16.mxu0 %v16270_v31  ;;  %v16348_v31 = vld [vmem:[#allocation7 + $0x3d4] ss:$24 sps:$4 sm:$0xff]  }
 0x50f   :  { %5171 = vmatpush1.bf16.msra.mxu1 %v16265_v18  ;;  %v16343_v18 = vld [vmem:[#allocation7 + $0x6c8] ss:$24 sps:$4 sm:$0xff]  }
 0x510   :  { %5253 = vmatpush1.bf16.msra.mxu0 %v16268_v25  ;;  %5172 = vmatprep.subr.bf16.mxu1 %v16273_v15  ;;  %v16346_v25 = vld [vmem:[#allocation7 + $0x3d0] ss:$24 sps:$4 sm:$0xff]   ;;  %v16351_v15 = vld [vmem:[#allocation7 + $0x6fc] ss:$24 sps:$4 sm:$0xff]  }
 0x511   :  { %5254 = vmatprep.subr.bf16.mxu0 %v16276_v26  ;;  %v16354_v26 = vld [vmem:[#allocation7 + $0x404] ss:$24 sps:$4 sm:$0xff]  }
 0x513   :  { %5173 = vmatpush1.bf16.msra.mxu1 %v16271_v43  ;;  %v16349_v43 = vld [vmem:[#allocation7 + $0x6f8] ss:$24 sps:$4 sm:$0xff]  }
 0x514   :  { %5255 = vmatpush1.bf16.msra.mxu0 %v16274_v54  ;;  %5174 = vmatprep.subr.bf16.mxu1 %v16279_v56  ;;  %v16352_v54 = vld [vmem:[#allocation7 + $0x400] ss:$24 sps:$4 sm:$0xff]   ;;  %v16357_v56 = vld [vmem:[#allocation7 + $0x72c] ss:$24 sps:$4 sm:$0xff]  }
 0x515   :  { %5256 = vmatprep.subr.bf16.mxu0 %v16282_v20  ;;  %v16360_v20 = vld [vmem:[#allocation7 + $0x434] ss:$24 sps:$4 sm:$0xff]  }
 0x517   :  { %5175 = vmatpush1.bf16.msra.mxu1 %v16277_v62  ;;  %v16355_v62 = vld [vmem:[#allocation7 + $0x728] ss:$24 sps:$4 sm:$0xff]  }
 0x518   :  { %5257 = vmatpush1.bf16.msra.mxu0 %v16280_v35  ;;  %5176 = vmatprep.subr.bf16.mxu1 %v16285_v19  ;;  %v16358_v35 = vld [vmem:[#allocation7 + $0x430] ss:$24 sps:$4 sm:$0xff]   ;;  %v16363_v19 = vld [vmem:[#allocation7 + $0x75c] ss:$24 sps:$4 sm:$0xff]  }
 0x519   :  { %5258 = vmatprep.subr.bf16.mxu0 %v16288_v39  ;;  %v16366_v39 = vld [vmem:[#allocation7 + $0x464] ss:$24 sps:$4 sm:$0xff]  }
 0x51b   :  { %5177 = vmatpush1.bf16.msra.mxu1 %v16283_v11  ;;  %v16361_v11 = vld [vmem:[#allocation7 + $0x758] ss:$24 sps:$4 sm:$0xff]  }
 0x51c   :  { %5259 = vmatpush1.bf16.msra.mxu0 %v16286_v29  ;;  %5178 = vmatprep.subr.bf16.mxu1 %v16291_v50  ;;  %v16364_v29 = vld [vmem:[#allocation7 + $0x460] ss:$24 sps:$4 sm:$0xff]   ;;  %v16369_v50 = vld [vmem:[#allocation7 + $0x78c] ss:$24 sps:$4 sm:$0xff]  }
 0x51d   :  { %5260 = vmatprep.subr.bf16.mxu0 %v16294_v1  ;;  %v16372_v1 = vld [vmem:[#allocation7 + $0x494] ss:$24 sps:$4 sm:$0xff]  }
 0x51f   :  { %5179 = vmatpush1.bf16.msra.mxu1 %v16289_v33  ;;  %v16367_v33 = vld [vmem:[#allocation7 + $0x788] ss:$24 sps:$4 sm:$0xff]  }
 0x520   :  { %5261 = vmatpush1.bf16.msra.mxu0 %v16292_v14  ;;  %5180 = vmatprep.subr.bf16.mxu1 %v16297_v52  ;;  %v16370_v14 = vld [vmem:[#allocation7 + $0x490] ss:$24 sps:$4 sm:$0xff]   ;;  %v16375_v52 = vld [vmem:[#allocation7 + $0x7bc] ss:$24 sps:$4 sm:$0xff]  }
 0x521   :  { %5262 = vmatprep.subr.bf16.mxu0 %v16300_v42  ;;  %v16378_v42 = vld [vmem:[#allocation7 + $0x4c4] ss:$24 sps:$4 sm:$0xff]  }
 0x523   :  { %5181 = vmatpush1.bf16.msra.mxu1 %v16295_v47  ;;  %v16373_v47 = vld [vmem:[#allocation7 + $0x7b8] ss:$24 sps:$4 sm:$0xff]  }
 0x524   :  { %5263 = vmatpush1.bf16.msra.mxu0 %v16298_v3  ;;  %5182 = vmatprep.subr.bf16.mxu1 %v16303_v53  ;;  %v16376_v3 = vld [vmem:[#allocation7 + $0x4c0] ss:$24 sps:$4 sm:$0xff]   ;;  %v16381_v53 = vld [vmem:[#allocation7 + $0x7ec] ss:$24 sps:$4 sm:$0xff]  }
 0x525   :  { %5264 = vmatprep.subr.bf16.mxu0 %v16306_v60  ;;  %v16384_v60 = vld [vmem:[#allocation7 + $0x4f4] ss:$24 sps:$4 sm:$0xff]  }
 0x527   :  { %5183 = vmatpush1.bf16.msra.mxu1 %v16301_v51  ;;  %v16379_v51 = vld [vmem:[#allocation7 + $0x7e8] ss:$24 sps:$4 sm:$0xff]  }
 0x528   :  { %5265 = vmatpush1.bf16.msra.mxu0 %v16304_v7  ;;  %5184 = vmatprep.subr.bf16.mxu1 %v16309_v27  ;;  %v16382_v7 = vld [vmem:[#allocation7 + $0x4f0] ss:$24 sps:$4 sm:$0xff]   ;;  %v16387_v27 = vld [vmem:[#allocation7 + $0x81c] ss:$24 sps:$4 sm:$0xff]  }
 0x529   :  { %5266 = vmatprep.subr.bf16.mxu0 %v16312_v49  ;;  %v16390_v49 = vld [vmem:[#allocation7 + $0x524] ss:$24 sps:$4 sm:$0xff]  }
 0x52b   :  { %5185 = vmatpush1.bf16.msra.mxu1 %v16307_v63  ;;  %v16385_v63 = vld [vmem:[#allocation7 + $0x818] ss:$24 sps:$4 sm:$0xff]  }
 0x52c   :  { %5267 = vmatpush1.bf16.msra.mxu0 %v16310_v21  ;;  %5186 = vmatprep.subr.bf16.mxu1 %v16315_v28  ;;  %v16388_v21 = vld [vmem:[#allocation7 + $0x520] ss:$24 sps:$4 sm:$0xff]   ;;  %v16393_v28 = vld [vmem:[#allocation7 + $0x84c] ss:$24 sps:$4 sm:$0xff]  }
 0x52d   :  { %5268 = vmatprep.subr.bf16.mxu0 %v16318_v12  ;;  %v16396_v12 = vld [vmem:[#allocation7 + $0x554] ss:$24 sps:$4 sm:$0xff]  }
 0x52f   :  { %5187 = vmatpush1.bf16.msra.mxu1 %v16313_v2  ;;  %v16391_v2 = vld [vmem:[#allocation7 + $0x848] ss:$24 sps:$4 sm:$0xff]  }
 0x530   :  { %5269 = vmatpush1.bf16.msra.mxu0 %v16316_v48  ;;  %5197 = vmatprep.subr.bf16.mxu1 %v16321_v22  ;;  %v16394_v48 = vld [vmem:[#allocation7 + $0x550] ss:$24 sps:$4 sm:$0xff]   ;;  %v16399_v22 = vld [vmem:[#allocation7 + $0x87c] ss:$24 sps:$4 sm:$0xff]  }
 0x531   :  { %5279 = vmatprep.subr.bf16.mxu0 %v16324_v40  ;;  %v16402_v40 = vld [vmem:[#allocation7 + $0x584] ss:$24 sps:$4 sm:$0xff]  }
 0x532   :  { %5189 = vmatmul.mubr.bf16.vlgmr.msra.gmra.mrb[76].mxu1 %v20847_v41 }
 0x533   :  { %5271 = vmatmul.mubr.bf16.vlgmr.msra.gmra.mrb[52].mxu0 %v20843_v9  ;;  %5198 = vmatpush1.bf16.msra.mxu1 %v16319_v55  ;;  %v16397_v55 = vld [vmem:[#allocation7 + $0x878] ss:$24 sps:$4 sm:$0xff]  }
 0x534   :  { %5229 = vmatprep.mubr.bf16.mxu1 %v20941_v61  ;;  %5280 = vmatpush1.bf16.msra.mxu0 %v16322_v13  ;;  %v16400_v13 = vld [vmem:[#allocation7 + $0x580] ss:$24 sps:$4 sm:$0xff]  }
 0x535   :  { %5311 = vmatprep.mubr.bf16.mxu0 %v20820_v5  ;;  %5199 = vmatprep.subr.bf16.mxu1 %v16327_v4  ;;  %v16405_v4 = vld [vmem:[#allocation7 + $0x8ac] ss:$24 sps:$4 sm:$0xff]  }
 0x536   :  { %5281 = vmatprep.subr.bf16.mxu0 %v16330_v34  ;;  %v16408_v34 = vld [vmem:[#allocation7 + $0x5b4] ss:$24 sps:$4 sm:$0xff]  }
 0x537   :  { %5200 = vmatpush1.bf16.msra.mxu1 %v16325_v38  ;;  %v16403_v38 = vld [vmem:[#allocation7 + $0x8a8] ss:$24 sps:$4 sm:$0xff]  }
 0x538   :  { %5282 = vmatpush1.bf16.msra.mxu0 %v16328_v17  ;;  %5201 = vmatprep.subr.bf16.mxu1 %v16333_v16  ;;  %v16406_v17 = vld [vmem:[#allocation7 + $0x5b0] ss:$24 sps:$4 sm:$0xff]   ;;  %v16411_v16 = vld [vmem:[#allocation7 + $0x8dc] ss:$24 sps:$4 sm:$0xff]  }
 0x539   :  { %5283 = vmatprep.subr.bf16.mxu0 %v16336_v36  ;;  %v16414_v36 = vld [vmem:[#allocation7 + $0x5e4] ss:$24 sps:$4 sm:$0xff]  }
 0x53b   :  { %5202 = vmatpush1.bf16.msra.mxu1 %v16331_v10  ;;  %v16409_v10 = vld [vmem:[#allocation7 + $0x8d8] ss:$24 sps:$4 sm:$0xff]  }
 0x53c   :  { %5284 = vmatpush1.bf16.msra.mxu0 %v16334_v0  ;;  %5203 = vmatprep.subr.bf16.mxu1 %v16339_v23  ;;  %v16412_v0 = vld [vmem:[#allocation7 + $0x5e0] ss:$24 sps:$4 sm:$0xff]   ;;  %v16420_v23 = vld [vmem:[#allocation9 + $0x4] ss:$24 sps:$4 sm:$0xff]  }
 0x53d   :  { %5285 = vmatprep.subr.bf16.mxu0 %v16342_v59  ;;  %v16417_v59 = vld [vmem:[#allocation7 + $0x614] ss:$24 sps:$4 sm:$0xff]  }
 0x53f   :  { %5204 = vmatpush1.bf16.msra.mxu1 %v16337_v30  ;;  %v16418_v30 = vld [vmem:[#allocation9] ss:$24 sps:$4 sm:$0xff]  }
 0x540   :  { %5286 = vmatpush1.bf16.msra.mxu0 %v16340_v45  ;;  %5205 = vmatprep.subr.bf16.mxu1 %v16345_v46  ;;  %v16415_v45 = vld [vmem:[#allocation7 + $0x610] ss:$24 sps:$4 sm:$0xff]   ;;  %v16423_v46 = vld [vmem:[#allocation7 + $0x644] ss:$24 sps:$4 sm:$0xff]  }
 0x541   :  { %5287 = vmatprep.subr.bf16.mxu0 %v16348_v31  ;;  %v16426_v31 = vld [vmem:[#allocation9 + $0x34] ss:$24 sps:$4 sm:$0xff]  }
 0x543   :  { %5206 = vmatpush1.bf16.msra.mxu1 %v16343_v18  ;;  %v16424_v18 = vld [vmem:[#allocation9 + $0x30] ss:$24 sps:$4 sm:$0xff]  }
 0x544   :  { %5288 = vmatpush1.bf16.msra.mxu0 %v16346_v25  ;;  %5207 = vmatprep.subr.bf16.mxu1 %v16351_v15  ;;  %v16421_v25 = vld [vmem:[#allocation7 + $0x640] ss:$24 sps:$4 sm:$0xff]   ;;  %v16432_v15 = vld [vmem:[#allocation9 + $0x64] ss:$24 sps:$4 sm:$0xff]  }
 0x545   :  { %5289 = vmatprep.subr.bf16.mxu0 %v16354_v26  ;;  %v16429_v26 = vld [vmem:[#allocation7 + $0x674] ss:$24 sps:$4 sm:$0xff]  }
 0x547   :  { %5208 = vmatpush1.bf16.msra.mxu1 %v16349_v43  ;;  %v16430_v43 = vld [vmem:[#allocation9 + $0x60] ss:$24 sps:$4 sm:$0xff]  }
 0x548   :  { %5290 = vmatpush1.bf16.msra.mxu0 %v16352_v54  ;;  %5209 = vmatprep.subr.bf16.mxu1 %v16357_v56  ;;  %v16427_v54 = vld [vmem:[#allocation7 + $0x670] ss:$24 sps:$4 sm:$0xff]   ;;  %v16438_v56 = vld [vmem:[#allocation9 + $0x94] ss:$24 sps:$4 sm:$0xff]  }
 0x549   :  { %5291 = vmatprep.subr.bf16.mxu0 %v16360_v20  ;;  %v16435_v20 = vld [vmem:[#allocation7 + $0x6a4] ss:$24 sps:$4 sm:$0xff]  }
 0x54b   :  { %5210 = vmatpush1.bf16.msra.mxu1 %v16355_v62  ;;  %v16436_v62 = vld [vmem:[#allocation9 + $0x90] ss:$24 sps:$4 sm:$0xff]  }
 0x54c   :  { %5292 = vmatpush1.bf16.msra.mxu0 %v16358_v35  ;;  %5211 = vmatprep.subr.bf16.mxu1 %v16363_v19  ;;  %v16433_v35 = vld [vmem:[#allocation7 + $0x6a0] ss:$24 sps:$4 sm:$0xff]   ;;  %v16444_v19 = vld [vmem:[#allocation9 + $0xc4] ss:$24 sps:$4 sm:$0xff]  }
 0x54d   :  { %5293 = vmatprep.subr.bf16.mxu0 %v16366_v39  ;;  %v16441_v39 = vld [vmem:[#allocation7 + $0x6d4] ss:$24 sps:$4 sm:$0xff]  }
 0x54f   :  { %5212 = vmatpush1.bf16.msra.mxu1 %v16361_v11  ;;  %v16442_v11 = vld [vmem:[#allocation9 + $0xc0] ss:$24 sps:$4 sm:$0xff]  }
 0x550   :  { %5294 = vmatpush1.bf16.msra.mxu0 %v16364_v29  ;;  %5213 = vmatprep.subr.bf16.mxu1 %v16369_v50  ;;  %v16439_v29 = vld [vmem:[#allocation7 + $0x6d0] ss:$24 sps:$4 sm:$0xff]   ;;  %v16450_v50 = vld [vmem:[#allocation9 + $0xf4] ss:$24 sps:$4 sm:$0xff]  }
 0x551   :  { %5295 = vmatprep.subr.bf16.mxu0 %v16372_v1  ;;  %v16447_v1 = vld [vmem:[#allocation7 + $0x704] ss:$24 sps:$4 sm:$0xff]  }
 0x553   :  { %5214 = vmatpush1.bf16.msra.mxu1 %v16367_v33  ;;  %v16448_v33 = vld [vmem:[#allocation9 + $0xf0] ss:$24 sps:$4 sm:$0xff]  }
 0x554   :  { %5296 = vmatpush1.bf16.msra.mxu0 %v16370_v14  ;;  %5215 = vmatprep.subr.bf16.mxu1 %v16375_v52  ;;  %v16445_v14 = vld [vmem:[#allocation7 + $0x700] ss:$24 sps:$4 sm:$0xff]   ;;  %v16456_v52 = vld [vmem:[#allocation9 + $0x124] ss:$24 sps:$4 sm:$0xff]  }
 0x555   :  { %5297 = vmatprep.subr.bf16.mxu0 %v16378_v42 }
 0x557   :  { %5216 = vmatpush1.bf16.msra.mxu1 %v16373_v47  ;;  %v16453_v47 = vld [vmem:[#allocation7 + $0x734] ss:$24 sps:$4 sm:$0xff]  }
 0x558   :  { %5298 = vmatpush1.bf16.msra.mxu0 %v16376_v3  ;;  %5217 = vmatprep.subr.bf16.mxu1 %v16381_v53 }
 0x559   :  { %5299 = vmatprep.subr.bf16.mxu0 %v16384_v60  ;;  %v16454_v60 = vld [vmem:[#allocation9 + $0x120] ss:$24 sps:$4 sm:$0xff]  }
 0x55b   :  { %5218 = vmatpush1.bf16.msra.mxu1 %v16379_v51 }
 0x55c   :  { %5300 = vmatpush1.bf16.msra.mxu0 %v16382_v7  ;;  %5219 = vmatprep.subr.bf16.mxu1 %v16387_v27  ;;  %v16451_v7 = vld [vmem:[#allocation7 + $0x730] ss:$24 sps:$4 sm:$0xff]   ;;  %v16462_v27 = vld [vmem:[#allocation9 + $0x154] ss:$24 sps:$4 sm:$0xff]  }
 0x55d   :  { %5301 = vmatprep.subr.bf16.mxu0 %v16390_v49  ;;  %v16459_v49 = vld [vmem:[#allocation7 + $0x764] ss:$24 sps:$4 sm:$0xff]  }
 0x55f   :  { %5220 = vmatpush1.bf16.msra.mxu1 %v16385_v63  ;;  %v16460_v63 = vld [vmem:[#allocation9 + $0x150] ss:$24 sps:$4 sm:$0xff]  }
 0x560   :  { %5302 = vmatpush1.bf16.msra.mxu0 %v16388_v21  ;;  %5221 = vmatprep.subr.bf16.mxu1 %v16393_v28  ;;  %v16457_v21 = vld [vmem:[#allocation7 + $0x760] ss:$24 sps:$4 sm:$0xff]   ;;  %v16468_v28 = vld [vmem:[#allocation9 + $0x184] ss:$24 sps:$4 sm:$0xff]  }
 0x561   :  { %5303 = vmatprep.subr.bf16.mxu0 %v16396_v12  ;;  %v16465_v12 = vld [vmem:[#allocation7 + $0x794] ss:$24 sps:$4 sm:$0xff]  }
 0x563   :  { %5222 = vmatpush1.bf16.msra.mxu1 %v16391_v2  ;;  %v16466_v2 = vld [vmem:[#allocation9 + $0x180] ss:$24 sps:$4 sm:$0xff]  }
 0x564   :  { %5304 = vmatpush1.bf16.msra.mxu0 %v16394_v48  ;;  %5223 = vmatprep.subr.bf16.mxu1 %v16399_v22  ;;  %v16463_v48 = vld [vmem:[#allocation7 + $0x790] ss:$24 sps:$4 sm:$0xff]   ;;  %v16474_v22 = vld [vmem:[#allocation9 + $0x1b4] ss:$24 sps:$4 sm:$0xff]  }
 0x565   :  { %5305 = vmatprep.subr.bf16.mxu0 %v16402_v40  ;;  %v16471_v40 = vld [vmem:[#allocation7 + $0x7c4] ss:$24 sps:$4 sm:$0xff]  }
 0x567   :  { %5224 = vmatpush1.bf16.msra.mxu1 %v16397_v55  ;;  %v16472_v55 = vld [vmem:[#allocation9 + $0x1b0] ss:$24 sps:$4 sm:$0xff]  }
 0x568   :  { %5306 = vmatpush1.bf16.msra.mxu0 %v16400_v13  ;;  %5225 = vmatprep.subr.bf16.mxu1 %v16405_v4  ;;  %v16469_v13 = vld [vmem:[#allocation7 + $0x7c0] ss:$24 sps:$4 sm:$0xff]   ;;  %v16480_v4 = vld [vmem:[#allocation9 + $0x1e4] ss:$24 sps:$4 sm:$0xff]  }
 0x569   :  { %5307 = vmatprep.subr.bf16.mxu0 %v16408_v34  ;;  %v16477_v34 = vld [vmem:[#allocation7 + $0x7f4] ss:$24 sps:$4 sm:$0xff]  }
 0x56b   :  { %5226 = vmatpush1.bf16.msra.mxu1 %v16403_v38  ;;  %v16478_v38 = vld [vmem:[#allocation9 + $0x1e0] ss:$24 sps:$4 sm:$0xff]  }
 0x56c   :  { %5308 = vmatpush1.bf16.msra.mxu0 %v16406_v17  ;;  %5227 = vmatprep.subr.bf16.mxu1 %v16411_v16  ;;  %v16475_v17 = vld [vmem:[#allocation7 + $0x7f0] ss:$24 sps:$4 sm:$0xff]   ;;  %v16486_v16 = vld [vmem:[#allocation9 + $0x214] ss:$24 sps:$4 sm:$0xff]  }
 0x56d   :  { %5309 = vmatprep.subr.bf16.mxu0 %v16414_v36  ;;  %v16483_v36 = vld [vmem:[#allocation7 + $0x824] ss:$24 sps:$4 sm:$0xff]  }
 0x56f   :  { %5228 = vmatpush1.bf16.msra.mxu1 %v16409_v10  ;;  %v16484_v10 = vld [vmem:[#allocation9 + $0x210] ss:$24 sps:$4 sm:$0xff]  }
 0x570   :  { %5310 = vmatpush1.bf16.msra.mxu0 %v16412_v0  ;;  %7149 = vmatprep.subr.bf16.mxu1 %v16420_v23  ;;  %v16481_v0 = vld [vmem:[#allocation7 + $0x820] ss:$24 sps:$4 sm:$0xff]   ;;  %v16492_v23 = vld [vmem:[#allocation9 + $0x244] ss:$24 sps:$4 sm:$0xff]  }
 0x571   :  { %5320 = vmatprep.subr.bf16.mxu0 %v16417_v59  ;;  %v16489_v59 = vld [vmem:[#allocation7 + $0x854] ss:$24 sps:$4 sm:$0xff]  }
 0x572   :  { %5230 = vmatmul.mubr.bf16.vlgmr.msra.gmra.mrb[76].mxu1 %v20994_v58 }
 0x573   :  { %5312 = vmatmul.mubr.bf16.vlgmr.msra.gmra.mrb[52].mxu0 %v20847_v41  ;;  %7150 = vmatpush1.bf16.msra.mxu1 %v16418_v30  ;;  %v16490_v30 = vld [vmem:[#allocation9 + $0x240] ss:$24 sps:$4 sm:$0xff]  }
 0x574   :  { %5321 = vmatpush1.bf16.msra.mxu0 %v16415_v45  ;;  %5352 = vmatprep.mubr.bf16.mxu0 %v20941_v61  ;;  %v16487_v45 = vld [vmem:[#allocation7 + $0x850] ss:$24 sps:$4 sm:$0xff]  }
 0x575   :  { %7181 = vmatprep.mubr.bf16.mxu1 %v20792_v57  ;;  %5322 = vmatprep.subr.bf16.mxu0 %v16423_v46  ;;  %v16498_v46 = vld [vmem:[#allocation9 + $0x274] ss:$24 sps:$4 sm:$0xff]  }
 0x576   :  { %7151 = vmatprep.subr.bf16.mxu1 %v16426_v31  ;;  %v16495_v31 = vld [vmem:[#allocation7 + $0x884] ss:$24 sps:$4 sm:$0xff]  }
 0x577   :  { %7152 = vmatpush1.bf16.msra.mxu1 %v16424_v18  ;;  %v16496_v18 = vld [vmem:[#allocation9 + $0x270] ss:$24 sps:$4 sm:$0xff]  }
 0x578   :  { %5323 = vmatpush1.bf16.msra.mxu0 %v16421_v25  ;;  %7153 = vmatprep.subr.bf16.mxu1 %v16432_v15  ;;  %v16493_v25 = vld [vmem:[#allocation7 + $0x880] ss:$24 sps:$4 sm:$0xff]   ;;  %v16504_v15 = vld [vmem:[#allocation9 + $0x2a4] ss:$24 sps:$4 sm:$0xff]  }
 0x579   :  { %5324 = vmatprep.subr.bf16.mxu0 %v16429_v26  ;;  %v16501_v26 = vld [vmem:[#allocation7 + $0x8b4] ss:$24 sps:$4 sm:$0xff]  }
 0x57b   :  { %7154 = vmatpush1.bf16.msra.mxu1 %v16430_v43  ;;  %v16502_v43 = vld [vmem:[#allocation9 + $0x2a0] ss:$24 sps:$4 sm:$0xff]  }
 0x57c   :  { %5325 = vmatpush1.bf16.msra.mxu0 %v16427_v54  ;;  %7155 = vmatprep.subr.bf16.mxu1 %v16438_v56  ;;  %v16499_v54 = vld [vmem:[#allocation7 + $0x8b0] ss:$24 sps:$4 sm:$0xff]   ;;  %v16510_v56 = vld [vmem:[#allocation9 + $0x2d4] ss:$24 sps:$4 sm:$0xff]  }
 0x57d   :  { %5326 = vmatprep.subr.bf16.mxu0 %v16435_v20  ;;  %v16507_v20 = vld [vmem:[#allocation7 + $0x8e4] ss:$24 sps:$4 sm:$0xff]  }
 0x57f   :  { %7156 = vmatpush1.bf16.msra.mxu1 %v16436_v62  ;;  %v16508_v62 = vld [vmem:[#allocation9 + $0x2d0] ss:$24 sps:$4 sm:$0xff]  }
 0x580   :  { %5327 = vmatpush1.bf16.msra.mxu0 %v16433_v35  ;;  %7157 = vmatprep.subr.bf16.mxu1 %v16444_v19  ;;  %v16505_v35 = vld [vmem:[#allocation7 + $0x8e0] ss:$24 sps:$4 sm:$0xff]   ;;  %v16513_v19 = vld [vmem:[#allocation9 + $0x304] ss:$24 sps:$4 sm:$0xff]  }
 0x581   :  { %5328 = vmatprep.subr.bf16.mxu0 %v16441_v39  ;;  %v16516_v39 = vld [vmem:[#allocation9 + $0xc] ss:$24 sps:$4 sm:$0xff]  }
 0x583   :  { %7158 = vmatpush1.bf16.msra.mxu1 %v16442_v11  ;;  %v16511_v11 = vld [vmem:[#allocation9 + $0x300] ss:$24 sps:$4 sm:$0xff]  }
 0x584   :  { %5329 = vmatpush1.bf16.msra.mxu0 %v16439_v29  ;;  %7159 = vmatprep.subr.bf16.mxu1 %v16450_v50  ;;  %v16514_v29 = vld [vmem:[#allocation9 + $0x8] ss:$24 sps:$4 sm:$0xff]   ;;  %v16519_v50 = vld [vmem:[#allocation9 + $0x334] ss:$24 sps:$4 sm:$0xff]  }
 0x585   :  { %v21008_v42 = vpop.f32.mrb[72].mxu1  ;;  %5330 = vmatprep.subr.bf16.mxu0 %v16447_v1  ;;  %v16522_v1 = vld [vmem:[#allocation9 + $0x3c] ss:$24 sps:$4 sm:$0xff]  }
 0x586   :  { %v21010_v3 = vpop.f32.mrb[73].mxu1 }
 0x587   :  { %7160 = vmatpush1.bf16.msra.mxu1 %v16448_v33  ;;  %v5030_v53 = vpop.f32.mrb[74].mxu1  ;;  %v16517_v33 = vld [vmem:[#allocation9 + $0x330] ss:$24 sps:$4 sm:$0xff]  }
 0x588   :  { %5331 = vmatpush1.bf16.msra.mxu0 %v16445_v14  ;;  %v5031_v51 = vpop.f32.mrb[75].mxu1  ;;  %7161 = vmatprep.subr.bf16.mxu1 %v16456_v52  ;;  %v16520_v14 = vld [vmem:[#allocation9 + $0x38] ss:$24 sps:$4 sm:$0xff]   ;;  %v16525_v52 = vld [vmem:[#allocation9 + $0x364] ss:$24 sps:$4 sm:$0xff]  }
 0x589   :  { %5332 = vmatprep.subr.bf16.mxu0 %v16453_v47  ;;  %v16528_v47 = vld [vmem:[#allocation9 + $0x6c] ss:$24 sps:$4 sm:$0xff]   ;;  %v16523_v53 = vld [vmem:[#allocation9 + $0x360] ss:$24 sps:$4 sm:$0xff]  }
 0x58a   :  { %v16531_v51 = vld [vmem:[#allocation9 + $0x394] ss:$24 sps:$4 sm:$0xff]  }
 0x58b   :  { %7162 = vmatpush1.bf16.msra.mxu1 %v16454_v60  ;;  %v16526_v60 = vld [vmem:[#allocation9 + $0x68] ss:$24 sps:$4 sm:$0xff]  }
 0x58c   :  { %5333 = vmatpush1.bf16.msra.mxu0 %v16451_v7  ;;  %7163 = vmatprep.subr.bf16.mxu1 %v16462_v27  ;;  %v16534_v7 = vld [vmem:[#allocation9 + $0x9c] ss:$24 sps:$4 sm:$0xff]   ;;  %v16529_v27 = vld [vmem:[#allocation9 + $0x390] ss:$24 sps:$4 sm:$0xff]  }
 0x58d   :  { %5334 = vmatprep.subr.bf16.mxu0 %v16459_v49  ;;  %v16532_v49 = vld [vmem:[#allocation9 + $0x98] ss:$24 sps:$4 sm:$0xff]  }
 0x58f   :  { %7164 = vmatpush1.bf16.msra.mxu1 %v16460_v63  ;;  %v16537_v63 = vld [vmem:[#allocation9 + $0x3c4] ss:$24 sps:$4 sm:$0xff]  }
 0x590   :  { %5335 = vmatpush1.bf16.msra.mxu0 %v16457_v21  ;;  %7165 = vmatprep.subr.bf16.mxu1 %v16468_v28  ;;  %v16540_v21 = vld [vmem:[#allocation9 + $0xcc] ss:$24 sps:$4 sm:$0xff]   ;;  %v16535_v28 = vld [vmem:[#allocation9 + $0x3c0] ss:$24 sps:$4 sm:$0xff]  }
 0x591   :  { %5336 = vmatprep.subr.bf16.mxu0 %v16465_v12  ;;  %v16538_v12 = vld [vmem:[#allocation9 + $0xc8] ss:$24 sps:$4 sm:$0xff]  }
 0x593   :  { %7166 = vmatpush1.bf16.msra.mxu1 %v16466_v2  ;;  %v16543_v2 = vld [vmem:[#allocation9 + $0x3f4] ss:$24 sps:$4 sm:$0xff]  }
 0x594   :  { %5337 = vmatpush1.bf16.msra.mxu0 %v16463_v48  ;;  %7167 = vmatprep.subr.bf16.mxu1 %v16474_v22  ;;  %v18369_v48 = vld [vmem:[#allocation4] sm:$0xff]  ;;  %v21639_v22 = vld [vmem:[#allocation21_spill] sm:$0xff] }
 0x595   :  { %5338 = vmatprep.subr.bf16.mxu0 %v16471_v40  ;;  %v3332_v40 = vrot.slane %v18369_v48, %v21639_v22 }
 0x597   :  { %7168 = vmatpush1.bf16.msra.mxu1 %v16472_v55  ;;  %v16546_v55 = vld [vmem:[#allocation9 + $0xfc] ss:$24 sps:$4 sm:$0xff]  }
 0x598   :  { %5339 = vmatpush1.bf16.msra.mxu0 %v16469_v13  ;;  %7169 = vmatprep.subr.bf16.mxu1 %v16480_v4  ;;  %v18370_v13 = vld [vmem:[#allocation4 + $0x8] sm:$0xff] }
 0x599   :  { %5340 = vmatprep.subr.bf16.mxu0 %v16477_v34  ;;  %v3336_v4 = vrot.slane %v18370_v13, %v21639_v22  ;;  %v16541_v34 = vld [vmem:[#allocation9 + $0x3f0] ss:$24 sps:$4 sm:$0xff]  }
 0x59b   :  { %7170 = vmatpush1.bf16.msra.mxu1 %v16478_v38  ;;  %v16544_v38 = vld [vmem:[#allocation9 + $0xf8] ss:$24 sps:$4 sm:$0xff]  }
 0x59c   :  { %5341 = vmatpush1.bf16.msra.mxu0 %v16475_v17  ;;  %7171 = vmatprep.subr.bf16.mxu1 %v16486_v16  ;;  %v16549_v17 = vld [vmem:[#allocation9 + $0x424] ss:$24 sps:$4 sm:$0xff]   ;;  %v5027_v16 = vadd.f32 %v21008_v42, %v3332_v40 }
 0x59d   :  { %5342 = vmatprep.subr.bf16.mxu0 %v16483_v36  ;;  %v16552_v36 = vld [vmem:[#allocation9 + $0x12c] ss:$24 sps:$4 sm:$0xff]  }
 0x59f   :  { %7172 = vmatpush1.bf16.msra.mxu1 %v16484_v10  ;;  %v5029_v10 = vadd.f32 %v21010_v3, %v3336_v4  ;;  %v16556_v3 = vld [vmem:[#allocation9 + $0x158] ss:$24 sps:$4 sm:$0xff]  }
 0x5a0   :  { %5343 = vmatpush1.bf16.msra.mxu0 %v16481_v0  ;;  %7173 = vmatprep.subr.bf16.mxu1 %v16492_v23  ;;  %v16592_v4 = vld [vmem:[#allocation9 + $0x278] ss:$24 sps:$4 sm:$0xff]  }
 0x5a1   :  { %5344 = vmatprep.subr.bf16.mxu0 %v16489_v59 }
 0x5a3   :  { %7174 = vmatpush1.bf16.msra.mxu1 %v16490_v30  ;;  %v16547_v30 = vld [vmem:[#allocation9 + $0x420] ss:$24 sps:$4 sm:$0xff]  }
 0x5a4   :  { %5345 = vmatpush1.bf16.msra.mxu0 %v16487_v45  ;;  %7175 = vmatprep.subr.bf16.mxu1 %v16498_v46 }
 0x5a5   :  { %5346 = vmatprep.subr.bf16.mxu0 %v16495_v31  ;;  %v16550_v31 = vld [vmem:[#allocation9 + $0x128] ss:$24 sps:$4 sm:$0xff]  }
 0x5a7   :  { %7176 = vmatpush1.bf16.msra.mxu1 %v16496_v18  ;;  %v16555_v18 = vld [vmem:[#allocation9 + $0x454] ss:$24 sps:$4 sm:$0xff]  }
 0x5a8   :  { %5347 = vmatpush1.bf16.msra.mxu0 %v16493_v25  ;;  %7177 = vmatprep.subr.bf16.mxu1 %v16504_v15 }
 0x5a9   :  { %5348 = vmatprep.subr.bf16.mxu0 %v16501_v26  ;;  %v16558_v26 = vld [vmem:[#allocation9 + $0x15c] ss:$24 sps:$4 sm:$0xff]  }
 0x5ab   :  { %7178 = vmatpush1.bf16.msra.mxu1 %v16502_v43  ;;  %v16553_v43 = vld [vmem:[#allocation9 + $0x450] ss:$24 sps:$4 sm:$0xff]  }
 0x5ac   :  { %5349 = vmatpush1.bf16.msra.mxu0 %v16499_v54  ;;  %7179 = vmatprep.subr.bf16.mxu1 %v16510_v56  ;;  %v16561_v54 = vld [vmem:[#allocation9 + $0x484] ss:$24 sps:$4 sm:$0xff]  }
 0x5ad   :  { %5350 = vmatprep.subr.bf16.mxu0 %v16507_v20  ;;  %v16564_v56 = vld [vmem:[#allocation9 + $0x18c] ss:$24 sps:$4 sm:$0xff]   ;;  %v16559_v20 = vld [vmem:[#allocation9 + $0x480] ss:$24 sps:$4 sm:$0xff]  }
 0x5af   :  { %7180 = vmatpush1.bf16.msra.mxu1 %v16508_v62  ;;  %v16562_v62 = vld [vmem:[#allocation9 + $0x188] ss:$24 sps:$4 sm:$0xff]  }
 0x5b0   :  { %5351 = vmatpush1.bf16.msra.mxu0 %v16505_v35  ;;  %7190 = vmatprep.subr.bf16.mxu1 %v16513_v19  ;;  %v16567_v35 = vld [vmem:[#allocation9 + $0x4b4] ss:$24 sps:$4 sm:$0xff]  }
 0x5b1   :  { %7272 = vmatprep.subr.bf16.mxu0 %v16516_v39  ;;  %v16570_v19 = vld [vmem:[#allocation9 + $0x1bc] ss:$24 sps:$4 sm:$0xff]   ;;  %v16565_v39 = vld [vmem:[#allocation9 + $0x4b0] ss:$24 sps:$4 sm:$0xff]  }
 0x5b2   :  { %7182 = vmatmul.mubr.bf16.vlgmr.msra.gmra.mrb[80].mxu1 %v20843_v9 }
 0x5b3   :  { %5353 = vmatmul.mubr.bf16.vlgmr.msra.gmra.mrb[52].mxu0 %v20994_v58  ;;  %7191 = vmatpush1.bf16.msra.mxu1 %v16511_v11  ;;  %v16568_v11 = vld [vmem:[#allocation9 + $0x1b8] ss:$24 sps:$4 sm:$0xff]  }
 0x5b4   :  { %7222 = vmatprep.mubr.bf16.mxu1 %v20820_v5  ;;  %7273 = vmatpush1.bf16.msra.mxu0 %v16514_v29  ;;  %v16573_v29 = vld [vmem:[#allocation9 + $0x4e4] ss:$24 sps:$4 sm:$0xff]  }
 0x5b5   :  { %7304 = vmatprep.mubr.bf16.mxu0 %v20792_v57  ;;  %7192 = vmatprep.subr.bf16.mxu1 %v16519_v50 }
 0x5b6   :  { %7274 = vmatprep.subr.bf16.mxu0 %v16522_v1  ;;  %v16576_v1 = vld [vmem:[#allocation9 + $0x1ec] ss:$24 sps:$4 sm:$0xff]  }
 0x5b7   :  { %7193 = vmatpush1.bf16.msra.mxu1 %v16517_v33 }
 0x5b8   :  { %7275 = vmatpush1.bf16.msra.mxu0 %v16520_v14  ;;  %7194 = vmatprep.subr.bf16.mxu1 %v16525_v52 }
 0x5b9   :  { %7276 = vmatprep.subr.bf16.mxu0 %v16528_v47  ;;  %v16571_v47 = vld [vmem:[#allocation9 + $0x4e0] ss:$24 sps:$4 sm:$0xff]  }
 0x5bb   :  { %7195 = vmatpush1.bf16.msra.mxu1 %v16523_v53  ;;  %v16574_v53 = vld [vmem:[#allocation9 + $0x1e8] ss:$24 sps:$4 sm:$0xff]  }
 0x5bc   :  { %7277 = vmatpush1.bf16.msra.mxu0 %v16526_v60  ;;  %7196 = vmatprep.subr.bf16.mxu1 %v16531_v51  ;;  %v16579_v60 = vld [vmem:[#allocation9 + $0x514] ss:$24 sps:$4 sm:$0xff]  }
 0x5bd   :  { %7278 = vmatprep.subr.bf16.mxu0 %v16534_v7  ;;  %v16582_v51 = vld [vmem:[#allocation9 + $0x21c] ss:$24 sps:$4 sm:$0xff]   ;;  %v16577_v7 = vld [vmem:[#allocation9 + $0x510] ss:$24 sps:$4 sm:$0xff]  }
 0x5bf   :  { %7197 = vmatpush1.bf16.msra.mxu1 %v16529_v27  ;;  %v16580_v27 = vld [vmem:[#allocation9 + $0x218] ss:$24 sps:$4 sm:$0xff]  }
 0x5c0   :  { %7279 = vmatpush1.bf16.msra.mxu0 %v16532_v49  ;;  %7198 = vmatprep.subr.bf16.mxu1 %v16537_v63  ;;  %v16585_v49 = vld [vmem:[#allocation9 + $0x544] ss:$24 sps:$4 sm:$0xff]  }
 0x5c1   :  { %7280 = vmatprep.subr.bf16.mxu0 %v16540_v21  ;;  %v16588_v63 = vld [vmem:[#allocation9 + $0x24c] ss:$24 sps:$4 sm:$0xff]   ;;  %v16583_v21 = vld [vmem:[#allocation9 + $0x540] ss:$24 sps:$4 sm:$0xff]  }
 0x5c3   :  { %7199 = vmatpush1.bf16.msra.mxu1 %v16535_v28  ;;  %v16586_v28 = vld [vmem:[#allocation9 + $0x248] ss:$24 sps:$4 sm:$0xff]  }
 0x5c4   :  { %7281 = vmatpush1.bf16.msra.mxu0 %v16538_v12  ;;  %7200 = vmatprep.subr.bf16.mxu1 %v16543_v2  ;;  %v16591_v12 = vld [vmem:[#allocation9 + $0x574] ss:$24 sps:$4 sm:$0xff]  }
 0x5c5   :  { %7282 = vmatprep.subr.bf16.mxu0 %v16546_v55  ;;  %v16594_v2 = vld [vmem:[#allocation9 + $0x27c] ss:$24 sps:$4 sm:$0xff]   ;;  %v16589_v55 = vld [vmem:[#allocation9 + $0x570] ss:$24 sps:$4 sm:$0xff]  }
 0x5c6   :  { %v5108_v0 = vpop.f32.mrb[48].mxu0 }
 0x5c7   :  { %v15783_v23 = vadd.f32 %v5108_v0, %v5027_v16  ;;  %v5110_v59 = vpop.f32.mrb[49].mxu0  ;;  %7201 = vmatpush1.bf16.msra.mxu1 %v16541_v34  ;;  %v16597_v34 = vld [vmem:[#allocation9 + $0x5a4] ss:$24 sps:$4 sm:$0xff]   ;;  %v16598_v0 = vld [vmem:[#allocation9 + $0x2a8] ss:$24 sps:$4 sm:$0xff]  }
 0x5c8   :  { %v15785_v45 = vadd.f32 %v5110_v59, %v5029_v10  ;;  %v5112_v46 = vpop.f32.mrb[50].mxu0  ;;  %7283 = vmatpush1.bf16.msra.mxu0 %v16544_v38  ;;  %7202 = vmatprep.subr.bf16.mxu1 %v16549_v17  ;;  %v16600_v17 = vld [vmem:[#allocation9 + $0x2ac] ss:$24 sps:$4 sm:$0xff]   ;;  %v16595_v10 = vld [vmem:[#allocation9 + $0x5a0] ss:$24 sps:$4 sm:$0xff]  }
 0x5c9   :  { %v14530_v25 = vmul.f32 -1.442695, %v15783_v23  ;;  %v5113_v15 = vpop.f32.mrb[51].mxu0  ;;  %7284 = vmatprep.subr.bf16.mxu0 %v16552_v36  ;;  %v16603_v23 = vld [vmem:[#allocation9 + $0x5d4] ss:$24 sps:$4 sm:$0xff]  }
 0x5ca   :  { %v14531_v42 = vmul.f32 -1.442695, %v15785_v45  ;;  %v16606_v59 = vld [vmem:[#allocation9 + $0x2dc] ss:$24 sps:$4 sm:$0xff]   ;;  %v16604_v45 = vld [vmem:[#allocation9 + $0x2d8] ss:$24 sps:$4 sm:$0xff]  }
 0x5cb   :  { %18287 = vpow2.f32 %v14530_v25  ;;  %7203 = vmatpush1.bf16.msra.mxu1 %v16547_v30  ;;  %v16601_v30 = vld [vmem:[#allocation9 + $0x5d0] ss:$24 sps:$4 sm:$0xff]   ;;  %v16609_v46 = vld [vmem:[#allocation9 + $0x604] ss:$24 sps:$4 sm:$0xff]  }
 0x5cc   :  { %18289 = vpow2.f32 %v14531_v42  ;;  %7285 = vmatpush1.bf16.msra.mxu0 %v16550_v31  ;;  %7204 = vmatprep.subr.bf16.mxu1 %v16555_v18  ;;  %v16607_v31 = vld [vmem:[#allocation9 + $0x600] ss:$24 sps:$4 sm:$0xff]   ;;  %v16615_v18 = vld [vmem:[#allocation9 + $0x634] ss:$24 sps:$4 sm:$0xff]   ;;  %v16613_v15 = vld [vmem:[#allocation9 + $0x630] ss:$24 sps:$4 sm:$0xff]  }
 0x5cd   :  { %7286 = vmatprep.subr.bf16.mxu0 %v16558_v26  ;;  %v16618_v25 = vld [vmem:[#allocation9 + $0x33c] ss:$24 sps:$4 sm:$0xff]   ;;  %v16616_v26 = vld [vmem:[#allocation9 + $0x338] ss:$24 sps:$4 sm:$0xff]  }
 0x5ce   :  { %v16621_v42 = vld [vmem:[#allocation9 + $0x664] ss:$24 sps:$4 sm:$0xff]  }
 0x5cf   :  { %7205 = vmatpush1.bf16.msra.mxu1 %v16553_v43  ;;  %v16624_v43 = vld [vmem:[#allocation9 + $0x36c] ss:$24 sps:$4 sm:$0xff]  }
 0x5d0   :  { %7287 = vmatpush1.bf16.msra.mxu0 %v16556_v3  ;;  %7206 = vmatprep.subr.bf16.mxu1 %v16561_v54  ;;  %v16619_v3 = vld [vmem:[#allocation9 + $0x660] ss:$24 sps:$4 sm:$0xff]  }
 0x5d1   :  { %7288 = vmatprep.subr.bf16.mxu0 %v16564_v56  ;;  %v16622_v54 = vld [vmem:[#allocation9 + $0x368] ss:$24 sps:$4 sm:$0xff]   ;;  %v16627_v56 = vld [vmem:[#allocation9 + $0x694] ss:$24 sps:$4 sm:$0xff]  }
 0x5d3   :  { %7207 = vmatpush1.bf16.msra.mxu1 %v16559_v20  ;;  %v16630_v20 = vld [vmem:[#allocation9 + $0x39c] ss:$24 sps:$4 sm:$0xff]  }
 0x5d4   :  { %7289 = vmatpush1.bf16.msra.mxu0 %v16562_v62  ;;  %7208 = vmatprep.subr.bf16.mxu1 %v16567_v35  ;;  %v16625_v62 = vld [vmem:[#allocation9 + $0x690] ss:$24 sps:$4 sm:$0xff]  }
 0x5d5   :  { %v18288_v50 = vpop.eup %18287  ;;  %7290 = vmatprep.subr.bf16.mxu0 %v16570_v19  ;;  %v16628_v35 = vld [vmem:[#allocation9 + $0x398] ss:$24 sps:$4 sm:$0xff]   ;;  %v16633_v19 = vld [vmem:[#allocation9 + $0x6c4] ss:$24 sps:$4 sm:$0xff]  }
 0x5d6   :  { %v18290_v33 = vpop.eup %18289  ;;  %v5379_v14 = vadd.f32 1.0, %v18288_v50  ;;  %v16639_v50 = vld [vmem:[#allocation9 + $0x6f4] ss:$24 sps:$4 sm:$0xff]  }
 0x5d7   :  { %v5380_v52 = vadd.f32 1.0, %v18290_v33  ;;  %7209 = vmatpush1.bf16.msra.mxu1 %v16565_v39  ;;  %v16636_v39 = vld [vmem:[#allocation9 + $0x3cc] ss:$24 sps:$4 sm:$0xff]   ;;  %v16637_v33 = vld [vmem:[#allocation9 + $0x6f0] ss:$24 sps:$4 sm:$0xff]  }
 0x5d8   :  { %18291 = vrcp.f32 %v5379_v14  ;;  %7291 = vmatpush1.bf16.msra.mxu0 %v16568_v11  ;;  %7210 = vmatprep.subr.bf16.mxu1 %v16573_v29  ;;  %v16631_v11 = vld [vmem:[#allocation9 + $0x6c0] ss:$24 sps:$4 sm:$0xff]  }
 0x5d9   :  { %18293 = vrcp.f32 %v5380_v52  ;;  %7292 = vmatprep.subr.bf16.mxu0 %v16576_v1  ;;  %v16634_v29 = vld [vmem:[#allocation9 + $0x3c8] ss:$24 sps:$4 sm:$0xff]   ;;  %v16642_v1 = vld [vmem:[#allocation9 + $0x3fc] ss:$24 sps:$4 sm:$0xff]   ;;  %v16640_v14 = vld [vmem:[#allocation9 + $0x3f8] ss:$24 sps:$4 sm:$0xff]  }
 0x5da   :  { %v16645_v52 = vld [vmem:[#allocation9 + $0x724] ss:$24 sps:$4 sm:$0xff]  }
 0x5db   :  { %7211 = vmatpush1.bf16.msra.mxu1 %v16571_v47  ;;  %v16648_v47 = vld [vmem:[#allocation9 + $0x42c] ss:$24 sps:$4 sm:$0xff]  }
 0x5dc   :  { %7293 = vmatpush1.bf16.msra.mxu0 %v16574_v53  ;;  %7212 = vmatprep.subr.bf16.mxu1 %v16579_v60  ;;  %v16643_v53 = vld [vmem:[#allocation9 + $0x720] ss:$24 sps:$4 sm:$0xff]  }
 0x5dd   :  { %7294 = vmatprep.subr.bf16.mxu0 %v16582_v51  ;;  %v16646_v60 = vld [vmem:[#allocation9 + $0x428] ss:$24 sps:$4 sm:$0xff]   ;;  %v16651_v51 = vld [vmem:[#allocation9 + $0x754] ss:$24 sps:$4 sm:$0xff]  }
 0x5df   :  { %7213 = vmatpush1.bf16.msra.mxu1 %v16577_v7  ;;  %v16654_v7 = vld [vmem:[#allocation9 + $0x45c] ss:$24 sps:$4 sm:$0xff]  }
 0x5e0   :  { %7295 = vmatpush1.bf16.msra.mxu0 %v16580_v27  ;;  %7214 = vmatprep.subr.bf16.mxu1 %v16585_v49  ;;  %v16649_v27 = vld [vmem:[#allocation9 + $0x750] ss:$24 sps:$4 sm:$0xff]  }
 0x5e1   :  { %7296 = vmatprep.subr.bf16.mxu0 %v16588_v63  ;;  %v16652_v49 = vld [vmem:[#allocation9 + $0x458] ss:$24 sps:$4 sm:$0xff]   ;;  %v16657_v63 = vld [vmem:[#allocation9 + $0x784] ss:$24 sps:$4 sm:$0xff]  }
 0x5e2   :  { %v21020_v48 = vpop.eup %18291 }
 0x5e3   :  { %v21022_v40 = vpop.eup %18293  ;;  %7215 = vmatpush1.bf16.msra.mxu1 %v16583_v21  ;;  %v7530_v13 = vsub.f32 1.0, %v21020_v48  ;;  %v16660_v21 = vld [vmem:[#allocation9 + $0x48c] ss:$24 sps:$4 sm:$0xff]  }
 0x5e4   :  { %7297 = vmatpush1.bf16.msra.mxu0 %v16586_v28  ;;  %7216 = vmatprep.subr.bf16.mxu1 %v16591_v12  ;;  %v7531_v38 = vsub.f32 1.0, %v21022_v40  ;;  %v16655_v28 = vld [vmem:[#allocation9 + $0x780] ss:$24 sps:$4 sm:$0xff]  }
 0x5e5   :  { %7298 = vmatprep.subr.bf16.mxu0 %v16594_v2  ;;  %v21027_v16 = vmul.f32 %v20898_v6, %v7530_v13  ;;  %v16612_v6 = vld [vmem:[#allocation9 + $0x30c] ss:$24 sps:$4 sm:$0xff]   ;;  %v16658_v12 = vld [vmem:[#allocation9 + $0x488] ss:$24 sps:$4 sm:$0xff]  }
 0x5e6   :  { %v21030_v36 = vmul.f32 %v20921_v8, %v7531_v38  ;;  %v16610_v8 = vld [vmem:[#allocation9 + $0x308] ss:$24 sps:$4 sm:$0xff]   ;;  %v16663_v2 = vld [vmem:[#allocation9 + $0x7b4] ss:$24 sps:$4 sm:$0xff]  }
 0x5e7   :  { %7217 = vmatpush1.bf16.msra.mxu1 %v16589_v55  ;;  %v16666_v55 = vld [vmem:[#allocation9 + $0x4bc] ss:$24 sps:$4 sm:$0xff]   ;;  %v16661_v13 = vld [vmem:[#allocation9 + $0x7b0] ss:$24 sps:$4 sm:$0xff]   ;;  %v16672_v38 = vld [vmem:[#allocation9 + $0x4ec] ss:$24 sps:$4 sm:$0xff]  }
 0x5e8   :  { %7299 = vmatpush1.bf16.msra.mxu0 %v16592_v4  ;;  %7218 = vmatprep.subr.bf16.mxu1 %v16597_v34  ;;  %v16664_v4 = vld [vmem:[#allocation9 + $0x4b8] ss:$24 sps:$4 sm:$0xff]   ;;  %v16669_v34 = vld [vmem:[#allocation9 + $0x7e4] ss:$24 sps:$4 sm:$0xff]  }
 0x5e9   :  { %7300 = vmatprep.subr.bf16.mxu0 %v16600_v17  ;;  %v16667_v17 = vld [vmem:[#allocation9 + $0x7e0] ss:$24 sps:$4 sm:$0xff]  }
 0x5eb   :  { %7219 = vmatpush1.bf16.msra.mxu1 %v16595_v10  ;;  %v16670_v10 = vld [vmem:[#allocation9 + $0x4e8] ss:$24 sps:$4 sm:$0xff]  }
 0x5ec   :  { %7301 = vmatpush1.bf16.msra.mxu0 %v16598_v0  ;;  %7220 = vmatprep.subr.bf16.mxu1 %v16603_v23  ;;  %v16675_v0 = vld [vmem:[#allocation9 + $0x814] ss:$24 sps:$4 sm:$0xff]  }
 0x5ed   :  { %7302 = vmatprep.subr.bf16.mxu0 %v16606_v59  ;;  %v16678_v23 = vld [vmem:[#allocation9 + $0x51c] ss:$24 sps:$4 sm:$0xff]   ;;  %v16673_v59 = vld [vmem:[#allocation9 + $0x810] ss:$24 sps:$4 sm:$0xff]  }
 0x5ef   :  { %7221 = vmatpush1.bf16.msra.mxu1 %v16601_v30  ;;  %v16676_v30 = vld [vmem:[#allocation9 + $0x518] ss:$24 sps:$4 sm:$0xff]  }
 0x5f0   :  { %7303 = vmatpush1.bf16.msra.mxu0 %v16604_v45  ;;  %7231 = vmatprep.subr.bf16.mxu1 %v16609_v46  ;;  %v16681_v45 = vld [vmem:[#allocation9 + $0x844] ss:$24 sps:$4 sm:$0xff]  }
 0x5f1   :  { %7313 = vmatprep.subr.bf16.mxu0 %v16612_v6  ;;  %v16684_v46 = vld [vmem:[#allocation9 + $0x54c] ss:$24 sps:$4 sm:$0xff]   ;;  %v16679_v6 = vld [vmem:[#allocation9 + $0x840] ss:$24 sps:$4 sm:$0xff]  }
 0x5f2   :  { %7223 = vmatmul.mubr.bf16.vlgmr.msra.gmra.mrb[80].mxu1 %v20847_v41 }
 0x5f3   :  { %7305 = vmatmul.mubr.bf16.vlgmr.msra.gmra.mrb[56].mxu0 %v20843_v9  ;;  %7232 = vmatpush1.bf16.msra.mxu1 %v16607_v31  ;;  %v16682_v31 = vld [vmem:[#allocation9 + $0x548] ss:$24 sps:$4 sm:$0xff]  }
 0x5f4   :  { %7263 = vmatprep.mubr.bf16.mxu1 %v20941_v61  ;;  %7314 = vmatpush1.bf16.msra.mxu0 %v16610_v8  ;;  %v16687_v8 = vld [vmem:[#allocation9 + $0x874] ss:$24 sps:$4 sm:$0xff]  }
 0x5f5   :  { %7345 = vmatprep.mubr.bf16.mxu0 %v20820_v5  ;;  %7233 = vmatprep.subr.bf16.mxu1 %v16615_v18  ;;  %v16690_v18 = vld [vmem:[#allocation9 + $0x57c] ss:$24 sps:$4 sm:$0xff]  }
 0x5f6   :  { %7315 = vmatprep.subr.bf16.mxu0 %v16618_v25  ;;  %v16685_v25 = vld [vmem:[#allocation9 + $0x870] ss:$24 sps:$4 sm:$0xff]  }
 0x5f7   :  { %7234 = vmatpush1.bf16.msra.mxu1 %v16613_v15  ;;  %v16688_v15 = vld [vmem:[#allocation9 + $0x578] ss:$24 sps:$4 sm:$0xff]  }
 0x5f8   :  { %7316 = vmatpush1.bf16.msra.mxu0 %v16616_v26  ;;  %7235 = vmatprep.subr.bf16.mxu1 %v16621_v42  ;;  %v16693_v26 = vld [vmem:[#allocation9 + $0x8a4] ss:$24 sps:$4 sm:$0xff]  }
 0x5f9   :  { %7317 = vmatprep.subr.bf16.mxu0 %v16624_v43  ;;  %v16696_v42 = vld [vmem:[#allocation9 + $0x5ac] ss:$24 sps:$4 sm:$0xff]   ;;  %v16691_v43 = vld [vmem:[#allocation9 + $0x8a0] ss:$24 sps:$4 sm:$0xff]  }
 0x5fb   :  { %7236 = vmatpush1.bf16.msra.mxu1 %v16619_v3  ;;  %v16694_v3 = vld [vmem:[#allocation9 + $0x5a8] ss:$24 sps:$4 sm:$0xff]  }
 0x5fc   :  { %7318 = vmatpush1.bf16.msra.mxu0 %v16622_v54  ;;  %7237 = vmatprep.subr.bf16.mxu1 %v16627_v56  ;;  %v16699_v54 = vld [vmem:[#allocation9 + $0x8d4] ss:$24 sps:$4 sm:$0xff]  }
 0x5fd   :  { %7319 = vmatprep.subr.bf16.mxu0 %v16630_v20  ;;  %v16702_v56 = vld [vmem:[#allocation9 + $0x5dc] ss:$24 sps:$4 sm:$0xff]   ;;  %v16697_v20 = vld [vmem:[#allocation9 + $0x8d0] ss:$24 sps:$4 sm:$0xff]  }
 0x5ff   :  { %7238 = vmatpush1.bf16.msra.mxu1 %v16625_v62  ;;  %v16700_v62 = vld [vmem:[#allocation9 + $0x5d8] ss:$24 sps:$4 sm:$0xff]  }
 0x600   :  { %7320 = vmatpush1.bf16.msra.mxu0 %v16628_v35  ;;  %7239 = vmatprep.subr.bf16.mxu1 %v16633_v19  ;;  %v16708_v35 = vld [vmem:[#allocation9 + $0x14] ss:$24 sps:$4 sm:$0xff]  }
 0x601   :  { %7321 = vmatprep.subr.bf16.mxu0 %v16636_v39  ;;  %v16705_v19 = vld [vmem:[#allocation9 + $0x60c] ss:$24 sps:$4 sm:$0xff]   ;;  %v16706_v39 = vld [vmem:[#allocation9 + $0x10] ss:$24 sps:$4 sm:$0xff]  }
 0x603   :  { %7240 = vmatpush1.bf16.msra.mxu1 %v16631_v11  ;;  %v16703_v11 = vld [vmem:[#allocation9 + $0x608] ss:$24 sps:$4 sm:$0xff]  }
 0x604   :  { %7322 = vmatpush1.bf16.msra.mxu0 %v16634_v29  ;;  %7241 = vmatprep.subr.bf16.mxu1 %v16639_v50  ;;  %v16711_v29 = vld [vmem:[#allocation9 + $0x63c] ss:$24 sps:$4 sm:$0xff]  }
 0x605   :  { %7323 = vmatprep.subr.bf16.mxu0 %v16642_v1  ;;  %v16714_v50 = vld [vmem:[#allocation9 + $0x44] ss:$24 sps:$4 sm:$0xff]   ;;  %v16712_v1 = vld [vmem:[#allocation9 + $0x40] ss:$24 sps:$4 sm:$0xff]  }
 0x607   :  { %7242 = vmatpush1.bf16.msra.mxu1 %v16637_v33  ;;  %v16709_v33 = vld [vmem:[#allocation9 + $0x638] ss:$24 sps:$4 sm:$0xff]  }
 0x608   :  { %7324 = vmatpush1.bf16.msra.mxu0 %v16640_v14  ;;  %7243 = vmatprep.subr.bf16.mxu1 %v16645_v52  ;;  %v16720_v14 = vld [vmem:[#allocation9 + $0x74] ss:$24 sps:$4 sm:$0xff]  }
 0x609   :  { %7325 = vmatprep.subr.bf16.mxu0 %v16648_v47  ;;  %v16717_v52 = vld [vmem:[#allocation9 + $0x66c] ss:$24 sps:$4 sm:$0xff]   ;;  %v16718_v47 = vld [vmem:[#allocation9 + $0x70] ss:$24 sps:$4 sm:$0xff]  }
 0x60b   :  { %7244 = vmatpush1.bf16.msra.mxu1 %v16643_v53  ;;  %v16715_v53 = vld [vmem:[#allocation9 + $0x668] ss:$24 sps:$4 sm:$0xff]  }
 0x60c   :  { %7326 = vmatpush1.bf16.msra.mxu0 %v16646_v60  ;;  %7245 = vmatprep.subr.bf16.mxu1 %v16651_v51  ;;  %v16726_v60 = vld [vmem:[#allocation9 + $0xa4] ss:$24 sps:$4 sm:$0xff]  }
 0x60d   :  { %7327 = vmatprep.subr.bf16.mxu0 %v16654_v7  ;;  %v16723_v51 = vld [vmem:[#allocation9 + $0x69c] ss:$24 sps:$4 sm:$0xff]   ;;  %v16724_v7 = vld [vmem:[#allocation9 + $0xa0] ss:$24 sps:$4 sm:$0xff]  }
 0x60f   :  { %7246 = vmatpush1.bf16.msra.mxu1 %v16649_v27  ;;  %v16721_v27 = vld [vmem:[#allocation9 + $0x698] ss:$24 sps:$4 sm:$0xff]  }
 0x610   :  { %7328 = vmatpush1.bf16.msra.mxu0 %v16652_v49  ;;  %7247 = vmatprep.subr.bf16.mxu1 %v16657_v63  ;;  %v16732_v49 = vld [vmem:[#allocation9 + $0xd4] ss:$24 sps:$4 sm:$0xff]  }
 0x611   :  { %7329 = vmatprep.subr.bf16.mxu0 %v16660_v21  ;;  %v16729_v63 = vld [vmem:[#allocation9 + $0x6cc] ss:$24 sps:$4 sm:$0xff]   ;;  %v16727_v21 = vld [vmem:[#allocation9 + $0x6c8] ss:$24 sps:$4 sm:$0xff]  }
 0x613   :  { %7248 = vmatpush1.bf16.msra.mxu1 %v16655_v28  ;;  %v16738_v28 = vld [vmem:[#allocation9 + $0x104] ss:$24 sps:$4 sm:$0xff]  }
 0x614   :  { %7330 = vmatpush1.bf16.msra.mxu0 %v16658_v12  ;;  %7249 = vmatprep.subr.bf16.mxu1 %v16663_v2  ;;  %v16735_v12 = vld [vmem:[#allocation9 + $0x6fc] ss:$24 sps:$4 sm:$0xff]   ;;  %v21040_v2 = vld [vmem:[#allocation4 + $0x10] sm:$0xff] }
 0x615   :  { %7331 = vmatprep.subr.bf16.mxu0 %v16666_v55  ;;  %v3340_v55 = vrot.slane %v21040_v2, %v21639_v22 }
 0x617   :  { %7250 = vmatpush1.bf16.msra.mxu1 %v16661_v13  ;;  %v21044_v13 = vld [vmem:[#allocation4 + $0x18] sm:$0xff] }
 0x618   :  { %7332 = vmatpush1.bf16.msra.mxu0 %v16664_v4  ;;  %7251 = vmatprep.subr.bf16.mxu1 %v16669_v34  ;;  %v3344_v4 = vrot.slane %v21044_v13, %v21639_v22  ;;  %v16736_v34 = vld [vmem:[#allocation9 + $0x100] ss:$24 sps:$4 sm:$0xff]  }
 0x619   :  { %7333 = vmatprep.subr.bf16.mxu0 %v16672_v38  ;;  %v16733_v38 = vld [vmem:[#allocation9 + $0x6f8] ss:$24 sps:$4 sm:$0xff]  }
 0x61b   :  { %7252 = vmatpush1.bf16.msra.mxu1 %v16667_v17  ;;  %v16744_v17 = vld [vmem:[#allocation9 + $0x134] ss:$24 sps:$4 sm:$0xff]  }
 0x61c   :  { %7334 = vmatpush1.bf16.msra.mxu0 %v16670_v10  ;;  %7253 = vmatprep.subr.bf16.mxu1 %v16675_v0  ;;  %v16741_v0 = vld [vmem:[#allocation9 + $0x72c] ss:$24 sps:$4 sm:$0xff]  }
 0x61d   :  { %7335 = vmatprep.subr.bf16.mxu0 %v16678_v23 }
 0x61f   :  { %7254 = vmatpush1.bf16.msra.mxu1 %v16673_v59 }
 0x620   :  { %7336 = vmatpush1.bf16.msra.mxu0 %v16676_v30  ;;  %7255 = vmatprep.subr.bf16.mxu1 %v16681_v45 }
 0x621   :  { %7337 = vmatprep.subr.bf16.mxu0 %v16684_v46  ;;  %v16739_v46 = vld [vmem:[#allocation9 + $0x728] ss:$24 sps:$4 sm:$0xff]  }
 0x623   :  { %7256 = vmatpush1.bf16.msra.mxu1 %v16679_v6  ;;  %v16742_v6 = vld [vmem:[#allocation9 + $0x130] ss:$24 sps:$4 sm:$0xff]  }
 0x624   :  { %7338 = vmatpush1.bf16.msra.mxu0 %v16682_v31  ;;  %7257 = vmatprep.subr.bf16.mxu1 %v16687_v8 }
 0x625   :  { %7339 = vmatprep.subr.bf16.mxu0 %v16690_v18  ;;  %v16750_v18 = vld [vmem:[#allocation9 + $0x164] ss:$24 sps:$4 sm:$0xff]  }
 0x627   :  { %7258 = vmatpush1.bf16.msra.mxu1 %v16685_v25 }
 0x628   :  { %7340 = vmatpush1.bf16.msra.mxu0 %v16688_v15  ;;  %7259 = vmatprep.subr.bf16.mxu1 %v16693_v26  ;;  %v16747_v15 = vld [vmem:[#allocation9 + $0x75c] ss:$24 sps:$4 sm:$0xff]   ;;  %v16748_v26 = vld [vmem:[#allocation9 + $0x160] ss:$24 sps:$4 sm:$0xff]  }
 0x629   :  { %7341 = vmatprep.subr.bf16.mxu0 %v16696_v42  ;;  %v16745_v42 = vld [vmem:[#allocation9 + $0x758] ss:$24 sps:$4 sm:$0xff]  }
 0x62b   :  { %7260 = vmatpush1.bf16.msra.mxu1 %v16691_v43  ;;  %v16756_v43 = vld [vmem:[#allocation9 + $0x194] ss:$24 sps:$4 sm:$0xff]  }
 0x62c   :  { %7342 = vmatpush1.bf16.msra.mxu0 %v16694_v3  ;;  %7261 = vmatprep.subr.bf16.mxu1 %v16699_v54  ;;  %v16753_v3 = vld [vmem:[#allocation9 + $0x78c] ss:$24 sps:$4 sm:$0xff]   ;;  %v16754_v54 = vld [vmem:[#allocation9 + $0x190] ss:$24 sps:$4 sm:$0xff]  }
 0x62d   :  { %7343 = vmatprep.subr.bf16.mxu0 %v16702_v56  ;;  %v16751_v56 = vld [vmem:[#allocation9 + $0x788] ss:$24 sps:$4 sm:$0xff]  }
 0x62f   :  { %7262 = vmatpush1.bf16.msra.mxu1 %v16697_v20  ;;  %v16762_v20 = vld [vmem:[#allocation9 + $0x1c4] ss:$24 sps:$4 sm:$0xff]  }
 0x630   :  { %7344 = vmatpush1.bf16.msra.mxu0 %v16700_v62  ;;  %7395 = vmatprep.subr.bf16.mxu1 %v16708_v35  ;;  %v16759_v62 = vld [vmem:[#allocation9 + $0x7bc] ss:$24 sps:$4 sm:$0xff]   ;;  %v16760_v35 = vld [vmem:[#allocation9 + $0x1c0] ss:$24 sps:$4 sm:$0xff]  }
 0x631   :  { %7354 = vmatprep.subr.bf16.mxu0 %v16705_v19 }
 0x632   :  { %7264 = vmatmul.mubr.bf16.vlgmr.msra.gmra.mrb[80].mxu1 %v20994_v58 }
 0x633   :  { %7346 = vmatmul.mubr.bf16.vlgmr.msra.gmra.mrb[56].mxu0 %v20847_v41  ;;  %7396 = vmatpush1.bf16.msra.mxu1 %v16706_v39  ;;  %v16757_v39 = vld [vmem:[#allocation9 + $0x7b8] ss:$24 sps:$4 sm:$0xff]  }
 0x634   :  { %7355 = vmatpush1.bf16.msra.mxu0 %v16703_v11  ;;  %7386 = vmatprep.mubr.bf16.mxu0 %v20941_v61  ;;  %v16768_v11 = vld [vmem:[#allocation9 + $0x1f4] ss:$24 sps:$4 sm:$0xff]  }
 0x635   :  { %7427 = vmatprep.mubr.bf16.mxu1 %v20792_v57  ;;  %7356 = vmatprep.subr.bf16.mxu0 %v16711_v29  ;;  %v16730_v57 = vld [vmem:[#allocation9 + $0xd0] ss:$24 sps:$4 sm:$0xff]  }
 0x636   :  { %7397 = vmatprep.subr.bf16.mxu1 %v16714_v50 }
 0x637   :  { %7398 = vmatpush1.bf16.msra.mxu1 %v16712_v1  ;;  %v16765_v1 = vld [vmem:[#allocation9 + $0x7ec] ss:$24 sps:$4 sm:$0xff]  }
 0x638   :  { %7357 = vmatpush1.bf16.msra.mxu0 %v16709_v33  ;;  %7399 = vmatprep.subr.bf16.mxu1 %v16720_v14  ;;  %v16766_v14 = vld [vmem:[#allocation9 + $0x1f0] ss:$24 sps:$4 sm:$0xff]  }
 0x639   :  { %7358 = vmatprep.subr.bf16.mxu0 %v16717_v52  ;;  %v16763_v52 = vld [vmem:[#allocation9 + $0x7e8] ss:$24 sps:$4 sm:$0xff]  }
 0x63b   :  { %7400 = vmatpush1.bf16.msra.mxu1 %v16718_v47  ;;  %v16774_v47 = vld [vmem:[#allocation9 + $0x224] ss:$24 sps:$4 sm:$0xff]  }
 0x63c   :  { %7359 = vmatpush1.bf16.msra.mxu0 %v16715_v53  ;;  %7401 = vmatprep.subr.bf16.mxu1 %v16726_v60  ;;  %v16771_v53 = vld [vmem:[#allocation9 + $0x81c] ss:$24 sps:$4 sm:$0xff]   ;;  %v16772_v60 = vld [vmem:[#allocation9 + $0x220] ss:$24 sps:$4 sm:$0xff]  }
 0x63d   :  { %7360 = vmatprep.subr.bf16.mxu0 %v16723_v51  ;;  %v16769_v51 = vld [vmem:[#allocation9 + $0x818] ss:$24 sps:$4 sm:$0xff]  }
 0x63f   :  { %7402 = vmatpush1.bf16.msra.mxu1 %v16724_v7  ;;  %v16780_v7 = vld [vmem:[#allocation9 + $0x254] ss:$24 sps:$4 sm:$0xff]  }
 0x640   :  { %7361 = vmatpush1.bf16.msra.mxu0 %v16721_v27  ;;  %7403 = vmatprep.subr.bf16.mxu1 %v16732_v49  ;;  %v16777_v27 = vld [vmem:[#allocation9 + $0x84c] ss:$24 sps:$4 sm:$0xff]   ;;  %v16778_v49 = vld [vmem:[#allocation9 + $0x250] ss:$24 sps:$4 sm:$0xff]  }
 0x641   :  { %7362 = vmatprep.subr.bf16.mxu0 %v16729_v63  ;;  %v16775_v63 = vld [vmem:[#allocation9 + $0x848] ss:$24 sps:$4 sm:$0xff]  }
 0x643   :  { %7404 = vmatpush1.bf16.msra.mxu1 %v16730_v57  ;;  %v16786_v57 = vld [vmem:[#allocation9 + $0x284] ss:$24 sps:$4 sm:$0xff]  }
 0x644   :  { %7363 = vmatpush1.bf16.msra.mxu0 %v16727_v21  ;;  %7405 = vmatprep.subr.bf16.mxu1 %v16738_v28  ;;  %v16783_v28 = vld [vmem:[#allocation9 + $0x87c] ss:$24 sps:$4 sm:$0xff]  }
 0x645   :  { %v5231_v10 = vpop.f32.mrb[76].mxu1  ;;  %7364 = vmatprep.subr.bf16.mxu0 %v16735_v12 }
 0x646   :  { %v15786_v23 = vadd.f32 %v5231_v10, %v3340_v55  ;;  %v5233_v59 = vpop.f32.mrb[77].mxu1 }
 0x647   :  { %v15787_v30 = vadd.f32 %v5233_v59, %v3344_v4  ;;  %v5235_v45 = vpop.f32.mrb[78].mxu1  ;;  %7406 = vmatpush1.bf16.msra.mxu1 %v16736_v34  ;;  %v16784_v4 = vld [vmem:[#allocation9 + $0x280] ss:$24 sps:$4 sm:$0xff]   ;;  %v16790_v59 = vld [vmem:[#allocation9 + $0x2b0] ss:$24 sps:$4 sm:$0xff]  }
 0x648   :  { %v14532_v31 = vmul.f32 -1.442695, %v15786_v23  ;;  %7365 = vmatpush1.bf16.msra.mxu0 %v16733_v38  ;;  %v5236_v8 = vpop.f32.mrb[79].mxu1  ;;  %7407 = vmatprep.subr.bf16.mxu1 %v16744_v17  ;;  %v16781_v38 = vld [vmem:[#allocation9 + $0x878] ss:$24 sps:$4 sm:$0xff]  }
 0x649   :  { %v14533_v25 = vmul.f32 -1.442695, %v15787_v30  ;;  %7366 = vmatprep.subr.bf16.mxu0 %v16741_v0  ;;  %v16792_v17 = vld [vmem:[#allocation9 + $0x2b4] ss:$24 sps:$4 sm:$0xff]   ;;  %v16787_v30 = vld [vmem:[#allocation9 + $0x8a8] ss:$24 sps:$4 sm:$0xff]  }
 0x64a   :  { %18295 = vpow2.f32 %v14532_v31  ;;  %v16789_v0 = vld [vmem:[#allocation9 + $0x8ac] ss:$24 sps:$4 sm:$0xff]   ;;  %v16793_v31 = vld [vmem:[#allocation9 + $0x8d8] ss:$24 sps:$4 sm:$0xff]  }
 0x64b   :  { %18297 = vpow2.f32 %v14533_v25  ;;  %7408 = vmatpush1.bf16.msra.mxu1 %v16742_v6  ;;  %v16798_v45 = vld [vmem:[#allocation9 + $0x2e4] ss:$24 sps:$4 sm:$0xff]   ;;  %v16796_v6 = vld [vmem:[#allocation9 + $0x2e0] ss:$24 sps:$4 sm:$0xff]  }
 0x64c   :  { %7367 = vmatpush1.bf16.msra.mxu0 %v16739_v46  ;;  %7409 = vmatprep.subr.bf16.mxu1 %v16750_v18  ;;  %v16795_v46 = vld [vmem:[#allocation9 + $0x8dc] ss:$24 sps:$4 sm:$0xff]   ;;  %v16799_v18 = vld [vmem:[#allocation9 + $0x310] ss:$24 sps:$4 sm:$0xff]   ;;  %v16874_v25 = vld [vmem:[#allocation10] ss:$24 sps:$4 sm:$0xff]  }
 0x64d   :  { %7368 = vmatprep.subr.bf16.mxu0 %v16747_v15  ;;  %v16876_v8 = vld [vmem:[#allocation10 + $0x4] ss:$24 sps:$4 sm:$0xff]   ;;  %v16882_v15 = vld [vmem:[#allocation10 + $0x34] ss:$24 sps:$4 sm:$0xff]  }
 0x64f   :  { %7410 = vmatpush1.bf16.msra.mxu1 %v16748_v26  ;;  %v16802_v26 = vld [vmem:[#allocation9 + $0x340] ss:$24 sps:$4 sm:$0xff]  }
 0x650   :  { %7369 = vmatpush1.bf16.msra.mxu0 %v16745_v42  ;;  %7411 = vmatprep.subr.bf16.mxu1 %v16756_v43  ;;  %v16807_v42 = vld [vmem:[#allocation9 + $0x374] ss:$24 sps:$4 sm:$0xff]   ;;  %v16880_v43 = vld [vmem:[#allocation10 + $0x30] ss:$24 sps:$4 sm:$0xff]  }
 0x651   :  { %7370 = vmatprep.subr.bf16.mxu0 %v16753_v3  ;;  %v16888_v3 = vld [vmem:[#allocation10 + $0x64] ss:$24 sps:$4 sm:$0xff]  }
 0x653   :  { %7412 = vmatpush1.bf16.msra.mxu1 %v16754_v54  ;;  %v16805_v54 = vld [vmem:[#allocation9 + $0x370] ss:$24 sps:$4 sm:$0xff]  }
 0x654   :  { %v18296_v19 = vpop.eup %18295  ;;  %7371 = vmatpush1.bf16.msra.mxu0 %v16751_v56  ;;  %7413 = vmatprep.subr.bf16.mxu1 %v16762_v20  ;;  %v16810_v56 = vld [vmem:[#allocation9 + $0x3a4] ss:$24 sps:$4 sm:$0xff]   ;;  %v16886_v20 = vld [vmem:[#allocation10 + $0x60] ss:$24 sps:$4 sm:$0xff]  }
 0x655   :  { %v18298_v29 = vpop.eup %18297  ;;  %v5381_v50 = vadd.f32 1.0, %v18296_v19  ;;  %7372 = vmatprep.subr.bf16.mxu0 %v16759_v62  ;;  %v16808_v62 = vld [vmem:[#allocation9 + $0x3a0] ss:$24 sps:$4 sm:$0xff]   ;;  %v16900_v19 = vld [vmem:[#allocation10 + $0xc4] ss:$24 sps:$4 sm:$0xff]  }
 0x656   :  { %v5382_v33 = vadd.f32 1.0, %v18298_v29  ;;  %v16898_v29 = vld [vmem:[#allocation10 + $0xc0] ss:$24 sps:$4 sm:$0xff]  }
 0x657   :  { %18299 = vrcp.f32 %v5381_v50  ;;  %7414 = vmatpush1.bf16.msra.mxu1 %v16760_v35  ;;  %v16813_v35 = vld [vmem:[#allocation9 + $0x3d4] ss:$24 sps:$4 sm:$0xff]  }
 0x658   :  { %18301 = vrcp.f32 %v5382_v33  ;;  %7373 = vmatpush1.bf16.msra.mxu0 %v16757_v39  ;;  %7415 = vmatprep.subr.bf16.mxu1 %v16768_v11  ;;  %v16811_v39 = vld [vmem:[#allocation9 + $0x3d0] ss:$24 sps:$4 sm:$0xff]   ;;  %v16816_v11 = vld [vmem:[#allocation9 + $0x404] ss:$24 sps:$4 sm:$0xff]   ;;  %v16906_v50 = vld [vmem:[#allocation10 + $0xf4] ss:$24 sps:$4 sm:$0xff]  }
 0x659   :  { %7374 = vmatprep.subr.bf16.mxu0 %v16765_v1  ;;  %v18373_v1 = vld [vmem:[#allocation4 + $0x20] sm:$0xff] }
 0x65a   :  { %v3348_v33 = vrot.slane %v18373_v1, %v21639_v22 }
 0x65b   :  { %7416 = vmatpush1.bf16.msra.mxu1 %v16766_v14  ;;  %v16814_v14 = vld [vmem:[#allocation9 + $0x400] ss:$24 sps:$4 sm:$0xff]  }
 0x65c   :  { %7375 = vmatpush1.bf16.msra.mxu0 %v16763_v52  ;;  %7417 = vmatprep.subr.bf16.mxu1 %v16774_v47  ;;  %v18374_v52 = vld [vmem:[#allocation4 + $0x28] sm:$0xff] }
 0x65d   :  { %7376 = vmatprep.subr.bf16.mxu0 %v16771_v53  ;;  %v3352_v47 = vrot.slane %v18374_v52, %v21639_v22  ;;  %v16819_v53 = vld [vmem:[#allocation9 + $0x434] ss:$24 sps:$4 sm:$0xff]  }
 0x65e   :  { %v16843_v52 = vld [vmem:[#allocation9 + $0x5b4] ss:$24 sps:$4 sm:$0xff]  }
 0x65f   :  { %7418 = vmatpush1.bf16.msra.mxu1 %v16772_v60  ;;  %v16904_v60 = vld [vmem:[#allocation10 + $0xf0] ss:$24 sps:$4 sm:$0xff]  }
 0x660   :  { %7377 = vmatpush1.bf16.msra.mxu0 %v16769_v51  ;;  %7419 = vmatprep.subr.bf16.mxu1 %v16780_v7  ;;  %v16912_v7 = vld [vmem:[#allocation10 + $0x124] ss:$24 sps:$4 sm:$0xff]  }
 0x661   :  { %v21048_v21 = vpop.eup %18299  ;;  %7378 = vmatprep.subr.bf16.mxu0 %v16777_v27 }
 0x662   :  { %v21050_v12 = vpop.eup %18301  ;;  %v7532_v55 = vsub.f32 1.0, %v21048_v21 }
 0x663   :  { %7420 = vmatpush1.bf16.msra.mxu1 %v16778_v49  ;;  %v7533_v34 = vsub.f32 1.0, %v21050_v12 }
 0x664   :  { %7379 = vmatpush1.bf16.msra.mxu0 %v16775_v63  ;;  %7421 = vmatprep.subr.bf16.mxu1 %v16786_v57  ;;  %v21055_v10 = vmul.f32 %v20944_v32, %v7532_v55  ;;  %v16801_v32 = vld [vmem:[#allocation9 + $0x314] ss:$24 sps:$4 sm:$0xff]   ;;  %v16817_v63 = vld [vmem:[#allocation9 + $0x430] ss:$24 sps:$4 sm:$0xff]   ;;  %v16822_v55 = vld [vmem:[#allocation9 + $0x464] ss:$24 sps:$4 sm:$0xff]  }
 0x665   :  { %7380 = vmatprep.subr.bf16.mxu0 %v16783_v28  ;;  %v21058_v23 = vmul.f32 %v20974_v24, %v7533_v34  ;;  %v16804_v24 = vld [vmem:[#allocation9 + $0x344] ss:$24 sps:$4 sm:$0xff]  }
 0x667   :  { %7422 = vmatpush1.bf16.msra.mxu1 %v16784_v4 }
 0x668   :  { %7381 = vmatpush1.bf16.msra.mxu0 %v16781_v38  ;;  %7423 = vmatprep.subr.bf16.mxu1 %v16792_v17  ;;  %v16910_v38 = vld [vmem:[#allocation10 + $0x120] ss:$24 sps:$4 sm:$0xff]   ;;  %v16918_v17 = vld [vmem:[#allocation10 + $0x154] ss:$24 sps:$4 sm:$0xff]  }
 0x669   :  { %7382 = vmatprep.subr.bf16.mxu0 %v16789_v0  ;;  %v16820_v0 = vld [vmem:[#allocation9 + $0x460] ss:$24 sps:$4 sm:$0xff]  }
 0x66b   :  { %7424 = vmatpush1.bf16.msra.mxu1 %v16790_v59  ;;  %v16825_v59 = vld [vmem:[#allocation9 + $0x494] ss:$24 sps:$4 sm:$0xff]  }
 0x66c   :  { %7383 = vmatpush1.bf16.msra.mxu0 %v16787_v30  ;;  %7425 = vmatprep.subr.bf16.mxu1 %v16798_v45  ;;  %v16916_v30 = vld [vmem:[#allocation10 + $0x150] ss:$24 sps:$4 sm:$0xff]   ;;  %v16921_v45 = vld [vmem:[#allocation10 + $0x184] ss:$24 sps:$4 sm:$0xff]  }
 0x66d   :  { %7384 = vmatprep.subr.bf16.mxu0 %v16795_v46  ;;  %v16823_v46 = vld [vmem:[#allocation9 + $0x490] ss:$24 sps:$4 sm:$0xff]  }
 0x66f   :  { %7426 = vmatpush1.bf16.msra.mxu1 %v16796_v6  ;;  %v16828_v6 = vld [vmem:[#allocation9 + $0x4c4] ss:$24 sps:$4 sm:$0xff]  }
 0x670   :  { %7385 = vmatpush1.bf16.msra.mxu0 %v16793_v31  ;;  %7436 = vmatprep.subr.bf16.mxu1 %v16801_v32  ;;  %v16919_v31 = vld [vmem:[#allocation10 + $0x180] ss:$24 sps:$4 sm:$0xff]   ;;  %v16927_v32 = vld [vmem:[#allocation10 + $0x1b4] ss:$24 sps:$4 sm:$0xff]  }
 0x671   :  { %9444 = vmatprep.subr.bf16.mxu0 %v16876_v8  ;;  %v16826_v8 = vld [vmem:[#allocation9 + $0x4c0] ss:$24 sps:$4 sm:$0xff]  }
 0x672   :  { %7428 = vmatmul.mubr.bf16.vlgmr.msra.gmra.mrb[84].mxu1 %v20843_v9  ;;  %v16894_v9 = vld [vmem:[#allocation10 + $0x94] ss:$24 sps:$4 sm:$0xff]  }
 0x673   :  { %7387 = vmatmul.mubr.bf16.vlgmr.msra.gmra.mrb[56].mxu0 %v20994_v58  ;;  %7437 = vmatpush1.bf16.msra.mxu1 %v16799_v18  ;;  %v16831_v18 = vld [vmem:[#allocation9 + $0x4f4] ss:$24 sps:$4 sm:$0xff]  }
 0x674   :  { %7468 = vmatprep.mubr.bf16.mxu1 %v20820_v5  ;;  %7438 = vmatprep.subr.bf16.mxu1 %v16804_v24  ;;  %v16892_v5 = vld [vmem:[#allocation10 + $0x90] ss:$24 sps:$4 sm:$0xff]  }
 0x675   :  { %9445 = vmatpush1.bf16.msra.mxu0 %v16874_v25  ;;  %v16925_v25 = vld [vmem:[#allocation10 + $0x1b0] ss:$24 sps:$4 sm:$0xff]  }
 0x676   :  { %9446 = vmatprep.subr.bf16.mxu0 %v16882_v15 }
 0x677   :  { %7439 = vmatpush1.bf16.msra.mxu1 %v16802_v26 }
 0x678   :  { %7440 = vmatprep.subr.bf16.mxu1 %v16807_v42  ;;  %v16933_v42 = vld [vmem:[#allocation10 + $0x1e4] ss:$24 sps:$4 sm:$0xff]  }
 0x679   :  { %9447 = vmatpush1.bf16.msra.mxu0 %v16880_v43 }
 0x67a   :  { %9448 = vmatprep.subr.bf16.mxu0 %v16888_v3  ;;  %v16829_v3 = vld [vmem:[#allocation9 + $0x4f0] ss:$24 sps:$4 sm:$0xff]  }
 0x67b   :  { %7441 = vmatpush1.bf16.msra.mxu1 %v16805_v54  ;;  %v16834_v54 = vld [vmem:[#allocation9 + $0x524] ss:$24 sps:$4 sm:$0xff]  }
 0x67c   :  { %7442 = vmatprep.subr.bf16.mxu1 %v16810_v56  ;;  %v16931_v56 = vld [vmem:[#allocation10 + $0x1e0] ss:$24 sps:$4 sm:$0xff]  }
 0x67d   :  { %9449 = vmatpush1.bf16.msra.mxu0 %v16886_v20  ;;  %v16939_v20 = vld [vmem:[#allocation10 + $0x214] ss:$24 sps:$4 sm:$0xff]  }
 0x67e   :  { %9450 = vmatprep.subr.bf16.mxu0 %v16894_v9  ;;  %v16832_v9 = vld [vmem:[#allocation9 + $0x520] ss:$24 sps:$4 sm:$0xff]  }
 0x67f   :  { %7443 = vmatpush1.bf16.msra.mxu1 %v16808_v62  ;;  %v16837_v62 = vld [vmem:[#allocation9 + $0x554] ss:$24 sps:$4 sm:$0xff]  }
 0x680   :  { %7444 = vmatprep.subr.bf16.mxu1 %v16813_v35  ;;  %v16937_v35 = vld [vmem:[#allocation10 + $0x210] ss:$24 sps:$4 sm:$0xff]  }
 0x681   :  { %9451 = vmatpush1.bf16.msra.mxu0 %v16892_v5  ;;  %v16945_v5 = vld [vmem:[#allocation10 + $0x244] ss:$24 sps:$4 sm:$0xff]  }
 0x682   :  { %9452 = vmatprep.subr.bf16.mxu0 %v16900_v19  ;;  %v16835_v19 = vld [vmem:[#allocation9 + $0x550] ss:$24 sps:$4 sm:$0xff]  }
 0x683   :  { %7445 = vmatpush1.bf16.msra.mxu1 %v16811_v39  ;;  %v16840_v39 = vld [vmem:[#allocation9 + $0x584] ss:$24 sps:$4 sm:$0xff]  }
 0x684   :  { %7446 = vmatprep.subr.bf16.mxu1 %v16816_v11  ;;  %v16943_v11 = vld [vmem:[#allocation10 + $0x240] ss:$24 sps:$4 sm:$0xff]  }
 0x685   :  { %9453 = vmatpush1.bf16.msra.mxu0 %v16898_v29 }
 0x686   :  { %v5354_v51 = vpop.f32.mrb[52].mxu0  ;;  %9454 = vmatprep.subr.bf16.mxu0 %v16906_v50  ;;  %v16951_v50 = vld [vmem:[#allocation10 + $0x274] ss:$24 sps:$4 sm:$0xff]  }
 0x687   :  { %v15788_v27 = vadd.f32 %v5354_v51, %v3348_v33  ;;  %v5356_v49 = vpop.f32.mrb[53].mxu0  ;;  %7447 = vmatpush1.bf16.msra.mxu1 %v16814_v14  ;;  %v16838_v33 = vld [vmem:[#allocation9 + $0x580] ss:$24 sps:$4 sm:$0xff]   ;;  %v16957_v51 = vld [vmem:[#allocation10 + $0x2a4] ss:$24 sps:$4 sm:$0xff]  }
 0x688   :  { %v15789_v57 = vadd.f32 %v5356_v49, %v3352_v47  ;;  %v5358_v28 = vpop.f32.mrb[54].mxu0  ;;  %7448 = vmatprep.subr.bf16.mxu1 %v16819_v53  ;;  %v16949_v53 = vld [vmem:[#allocation10 + $0x270] ss:$24 sps:$4 sm:$0xff]   ;;  %v16846_v49 = vld [vmem:[#allocation9 + $0x5e4] ss:$24 sps:$4 sm:$0xff]  }
 0x689   :  { %v14534_v4 = vmul.f32 -1.442695, %v15788_v27  ;;  %v5359_v34 = vpop.f32.mrb[55].mxu0  ;;  %9455 = vmatpush1.bf16.msra.mxu0 %v16904_v60  ;;  %v16841_v27 = vld [vmem:[#allocation9 + $0x5b0] ss:$24 sps:$4 sm:$0xff]  }
 0x68a   :  { %v14535_v22 = vmul.f32 -1.442695, %v15789_v57  ;;  %9456 = vmatprep.subr.bf16.mxu0 %v16912_v7  ;;  %v16963_v57 = vld [vmem:[#allocation10 + $0x2d4] ss:$24 sps:$4 sm:$0xff]   ;;  %v16844_v28 = vld [vmem:[#allocation9 + $0x5e0] ss:$24 sps:$4 sm:$0xff]  }
 0x68b   :  { %18303 = vpow2.f32 %v14534_v4  ;;  %7449 = vmatpush1.bf16.msra.mxu1 %v16817_v63  ;;  %v16955_v63 = vld [vmem:[#allocation10 + $0x2a0] ss:$24 sps:$4 sm:$0xff]   ;;  %v16969_v4 = vld [vmem:[#allocation10 + $0x304] ss:$24 sps:$4 sm:$0xff]   ;;  %v16847_v34 = vld [vmem:[#allocation9 + $0x610] ss:$24 sps:$4 sm:$0xff]  }
 0x68c   :  { %18305 = vpow2.f32 %v14535_v22  ;;  %7450 = vmatprep.subr.bf16.mxu1 %v16822_v55  ;;  %v16849_v55 = vld [vmem:[#allocation9 + $0x614] ss:$24 sps:$4 sm:$0xff]  }
 0x68d   :  { %9457 = vmatpush1.bf16.msra.mxu0 %v16910_v38  ;;  %v16850_v38 = vld [vmem:[#allocation9 + $0x640] ss:$24 sps:$4 sm:$0xff]   ;;  %v16855_v22 = vld [vmem:[#allocation9 + $0x674] ss:$24 sps:$4 sm:$0xff]  }
 0x68e   :  { %9458 = vmatprep.subr.bf16.mxu0 %v16918_v17  ;;  %v16853_v17 = vld [vmem:[#allocation9 + $0x670] ss:$24 sps:$4 sm:$0xff]  }
 0x68f   :  { %7451 = vmatpush1.bf16.msra.mxu1 %v16820_v0  ;;  %v16858_v0 = vld [vmem:[#allocation9 + $0x6a4] ss:$24 sps:$4 sm:$0xff]  }
 0x690   :  { %7452 = vmatprep.subr.bf16.mxu1 %v16825_v59  ;;  %v16856_v59 = vld [vmem:[#allocation9 + $0x6a0] ss:$24 sps:$4 sm:$0xff]  }
 0x691   :  { %9459 = vmatpush1.bf16.msra.mxu0 %v16916_v30  ;;  %v16861_v30 = vld [vmem:[#allocation9 + $0x6d4] ss:$24 sps:$4 sm:$0xff]  }
 0x692   :  { %9460 = vmatprep.subr.bf16.mxu0 %v16921_v45  ;;  %v16859_v45 = vld [vmem:[#allocation9 + $0x6d0] ss:$24 sps:$4 sm:$0xff]  }
 0x693   :  { %7453 = vmatpush1.bf16.msra.mxu1 %v16823_v46  ;;  %v16864_v46 = vld [vmem:[#allocation9 + $0x704] ss:$24 sps:$4 sm:$0xff]  }
 0x694   :  { %7454 = vmatprep.subr.bf16.mxu1 %v16828_v6  ;;  %v16867_v6 = vld [vmem:[#allocation9 + $0x734] ss:$24 sps:$4 sm:$0xff]  }
 0x695   :  { %v18304_v24 = vpop.eup %18303  ;;  %9461 = vmatpush1.bf16.msra.mxu0 %v16919_v31  ;;  %v16870_v31 = vld [vmem:[#allocation9 + $0x764] ss:$24 sps:$4 sm:$0xff]  }
 0x696   :  { %v18306_v15 = vpop.eup %18305  ;;  %v5383_v26 = vadd.f32 1.0, %v18304_v24  ;;  %9462 = vmatprep.subr.bf16.mxu0 %v16927_v32  ;;  %v16868_v32 = vld [vmem:[#allocation9 + $0x760] ss:$24 sps:$4 sm:$0xff]   ;;  %v16879_v24 = vld [vmem:[#allocation9 + $0x7c4] ss:$24 sps:$4 sm:$0xff]  }
 0x697   :  { %v5384_v43 = vadd.f32 1.0, %v18306_v15  ;;  %7455 = vmatpush1.bf16.msra.mxu1 %v16826_v8  ;;  %v16873_v8 = vld [vmem:[#allocation9 + $0x794] ss:$24 sps:$4 sm:$0xff]  }
 0x698   :  { %18307 = vrcp.f32 %v5383_v26  ;;  %7456 = vmatprep.subr.bf16.mxu1 %v16831_v18  ;;  %v16871_v18 = vld [vmem:[#allocation9 + $0x790] ss:$24 sps:$4 sm:$0xff]   ;;  %v16885_v15 = vld [vmem:[#allocation9 + $0x7f4] ss:$24 sps:$4 sm:$0xff]  }
 0x699   :  { %18309 = vrcp.f32 %v5384_v43  ;;  %9463 = vmatpush1.bf16.msra.mxu0 %v16925_v25  ;;  %v16877_v25 = vld [vmem:[#allocation9 + $0x7c0] ss:$24 sps:$4 sm:$0xff]   ;;  %v16883_v26 = vld [vmem:[#allocation9 + $0x7f0] ss:$24 sps:$4 sm:$0xff]  }
 0x69a   :  { %9464 = vmatprep.subr.bf16.mxu0 %v16933_v42  ;;  %v16891_v42 = vld [vmem:[#allocation9 + $0x824] ss:$24 sps:$4 sm:$0xff]   ;;  %v16889_v43 = vld [vmem:[#allocation9 + $0x820] ss:$24 sps:$4 sm:$0xff]  }
 0x69b   :  { %7457 = vmatpush1.bf16.msra.mxu1 %v16829_v3  ;;  %v16897_v3 = vld [vmem:[#allocation9 + $0x854] ss:$24 sps:$4 sm:$0xff]  }
 0x69c   :  { %7458 = vmatprep.subr.bf16.mxu1 %v16834_v54  ;;  %v16895_v54 = vld [vmem:[#allocation9 + $0x850] ss:$24 sps:$4 sm:$0xff]  }
 0x69d   :  { %9465 = vmatpush1.bf16.msra.mxu0 %v16931_v56  ;;  %v16903_v56 = vld [vmem:[#allocation9 + $0x884] ss:$24 sps:$4 sm:$0xff]  }
 0x69e   :  { %9466 = vmatprep.subr.bf16.mxu0 %v16939_v20  ;;  %v16901_v20 = vld [vmem:[#allocation9 + $0x880] ss:$24 sps:$4 sm:$0xff]  }
 0x69f   :  { %7459 = vmatpush1.bf16.msra.mxu1 %v16832_v9  ;;  %v16909_v9 = vld [vmem:[#allocation9 + $0x8b4] ss:$24 sps:$4 sm:$0xff]  }
 0x6a0   :  { %7460 = vmatprep.subr.bf16.mxu1 %v16837_v62  ;;  %v16907_v62 = vld [vmem:[#allocation9 + $0x8b0] ss:$24 sps:$4 sm:$0xff]  }
 0x6a1   :  { %9467 = vmatpush1.bf16.msra.mxu0 %v16937_v35  ;;  %v16915_v35 = vld [vmem:[#allocation9 + $0x8e4] ss:$24 sps:$4 sm:$0xff]  }
 0x6a2   :  { %v21065_v29 = vpop.eup %18307  ;;  %9468 = vmatprep.subr.bf16.mxu0 %v16945_v5  ;;  %v16913_v5 = vld [vmem:[#allocation9 + $0x8e0] ss:$24 sps:$4 sm:$0xff]  }
 0x6a3   :  { %v21067_v1 = vpop.eup %18309  ;;  %7461 = vmatpush1.bf16.msra.mxu1 %v16835_v19  ;;  %v7534_v14 = vsub.f32 1.0, %v21065_v29  ;;  %v16924_v19 = vld [vmem:[#allocation10 + $0xc] ss:$24 sps:$4 sm:$0xff]  }
 0x6a4   :  { %7462 = vmatprep.subr.bf16.mxu1 %v16840_v39  ;;  %v7535_v47 = vsub.f32 1.0, %v21067_v1  ;;  %v16922_v39 = vld [vmem:[#allocation10 + $0x8] ss:$24 sps:$4 sm:$0xff]  }
 0x6a5   :  { %9469 = vmatpush1.bf16.msra.mxu0 %v16943_v11  ;;  %v21072_v60 = vmul.f32 %v20984_v37, %v7534_v14  ;;  %v16961_v37 = vld [vmem:[#allocation10 + $0x2d0] ss:$24 sps:$4 sm:$0xff]   ;;  %v16930_v11 = vld [vmem:[#allocation10 + $0x3c] ss:$24 sps:$4 sm:$0xff]  }
 0x6a6   :  { %9470 = vmatprep.subr.bf16.mxu0 %v16951_v50  ;;  %v21075_v7 = vmul.f32 %v20990_v44, %v7535_v47  ;;  %v16852_v44 = vld [vmem:[#allocation9 + $0x644] ss:$24 sps:$4 sm:$0xff]   ;;  %v16928_v50 = vld [vmem:[#allocation10 + $0x38] ss:$24 sps:$4 sm:$0xff]   ;;  %v16934_v14 = vld [vmem:[#allocation10 + $0x68] ss:$24 sps:$4 sm:$0xff]  }
 0x6a7   :  { %7463 = vmatpush1.bf16.msra.mxu1 %v16838_v33  ;;  %v16936_v33 = vld [vmem:[#allocation10 + $0x6c] ss:$24 sps:$4 sm:$0xff]   ;;  %v16940_v47 = vld [vmem:[#allocation10 + $0x98] ss:$24 sps:$4 sm:$0xff]  }
 0x6a8   :  { %7464 = vmatprep.subr.bf16.mxu1 %v16843_v52  ;;  %v16942_v52 = vld [vmem:[#allocation10 + $0x9c] ss:$24 sps:$4 sm:$0xff]  }
 0x6a9   :  { %9471 = vmatpush1.bf16.msra.mxu0 %v16949_v53  ;;  %v16948_v53 = vld [vmem:[#allocation10 + $0xcc] ss:$24 sps:$4 sm:$0xff]  }
 0x6aa   :  { %9472 = vmatprep.subr.bf16.mxu0 %v16957_v51  ;;  %v16946_v51 = vld [vmem:[#allocation10 + $0xc8] ss:$24 sps:$4 sm:$0xff]  }
 0x6ab   :  { %7465 = vmatpush1.bf16.msra.mxu1 %v16841_v27  ;;  %v16954_v27 = vld [vmem:[#allocation10 + $0xfc] ss:$24 sps:$4 sm:$0xff]  }
 0x6ac   :  { %7466 = vmatprep.subr.bf16.mxu1 %v16846_v49  ;;  %v18375_v49 = vld [vmem:[#allocation4] sm:$0xff] }
 0x6ad   :  { %9473 = vmatpush1.bf16.msra.mxu0 %v16955_v63  ;;  %v21640_v63 = vld [vmem:[#allocation22_spill] sm:$0xff] }
 0x6ae   :  { %9474 = vmatprep.subr.bf16.mxu0 %v16963_v57  ;;  %v5688_v57 = vrot.slane %v18375_v49, %v21640_v63  ;;  %v17012_v49 = vld [vmem:[#allocation10 + $0x2d8] ss:$24 sps:$4 sm:$0xff]  }
 0x6af   :  { %7467 = vmatpush1.bf16.msra.mxu1 %v16844_v28 }
 0x6b0   :  { %7477 = vmatprep.subr.bf16.mxu1 %v16849_v55  ;;  %v16952_v55 = vld [vmem:[#allocation10 + $0xf8] ss:$24 sps:$4 sm:$0xff]  }
 0x6b1   :  { %9475 = vmatpush1.bf16.msra.mxu0 %v16961_v37  ;;  %v16960_v37 = vld [vmem:[#allocation10 + $0x12c] ss:$24 sps:$4 sm:$0xff]  }
 0x6b2   :  { %7469 = vmatmul.mubr.bf16.vlgmr.msra.gmra.mrb[84].mxu1 %v20847_v41  ;;  %9485 = vmatprep.subr.bf16.mxu0 %v16969_v4  ;;  %v16862_v41 = vld [vmem:[#allocation9 + $0x700] ss:$24 sps:$4 sm:$0xff]  }
 0x6b3   :  { %7478 = vmatpush1.bf16.msra.mxu1 %v16847_v34  ;;  %7509 = vmatprep.mubr.bf16.mxu1 %v20941_v61  ;;  %v16865_v61 = vld [vmem:[#allocation9 + $0x730] ss:$24 sps:$4 sm:$0xff]  }
 0x6b4   :  { %7479 = vmatprep.subr.bf16.mxu1 %v16852_v44 }
 0x6b7   :  { %7480 = vmatpush1.bf16.msra.mxu1 %v16850_v38 }
 0x6b8   :  { %7481 = vmatprep.subr.bf16.mxu1 %v16855_v22 }
 0x6bb   :  { %7482 = vmatpush1.bf16.msra.mxu1 %v16853_v17  ;;  %v16958_v17 = vld [vmem:[#allocation10 + $0x128] ss:$24 sps:$4 sm:$0xff]  }
 0x6bc   :  { %7483 = vmatprep.subr.bf16.mxu1 %v16858_v0 }
 0x6bf   :  { %7484 = vmatpush1.bf16.msra.mxu1 %v16856_v59 }
 0x6c0   :  { %7485 = vmatprep.subr.bf16.mxu1 %v16861_v30  ;;  %v16966_v30 = vld [vmem:[#allocation10 + $0x15c] ss:$24 sps:$4 sm:$0xff]  }
 0x6c3   :  { %7486 = vmatpush1.bf16.msra.mxu1 %v16859_v45 }
 0x6c4   :  { %7487 = vmatprep.subr.bf16.mxu1 %v16864_v46 }
 0x6c7   :  { %7488 = vmatpush1.bf16.msra.mxu1 %v16862_v41 }
 0x6c8   :  { %7489 = vmatprep.subr.bf16.mxu1 %v16867_v6  ;;  %v16964_v6 = vld [vmem:[#allocation10 + $0x158] ss:$24 sps:$4 sm:$0xff]  }
 0x6cb   :  { %7490 = vmatpush1.bf16.msra.mxu1 %v16865_v61 }
 0x6cc   :  { %7491 = vmatprep.subr.bf16.mxu1 %v16870_v31  ;;  %v16972_v31 = vld [vmem:[#allocation10 + $0x18c] ss:$24 sps:$4 sm:$0xff]  }
 0x6cf   :  { %7492 = vmatpush1.bf16.msra.mxu1 %v16868_v32 }
 0x6d0   :  { %7493 = vmatprep.subr.bf16.mxu1 %v16873_v8 }
 0x6d3   :  { %7494 = vmatpush1.bf16.msra.mxu1 %v16871_v18  ;;  %v16967_v18 = vld [vmem:[#allocation10 + $0x300] ss:$24 sps:$4 sm:$0xff]  }
 0x6d4   :  { %7495 = vmatprep.subr.bf16.mxu1 %v16879_v24  ;;  %v16970_v24 = vld [vmem:[#allocation10 + $0x188] ss:$24 sps:$4 sm:$0xff]  }
 0x6d7   :  { %7496 = vmatpush1.bf16.msra.mxu1 %v16877_v25  ;;  %v16976_v25 = vld [vmem:[#allocation10 + $0x1b8] ss:$24 sps:$4 sm:$0xff]  }
 0x6d8   :  { %7497 = vmatprep.subr.bf16.mxu1 %v16885_v15  ;;  %v16981_v15 = vld [vmem:[#allocation10 + $0x364] ss:$24 sps:$4 sm:$0xff]  }
 0x6db   :  { %7498 = vmatpush1.bf16.msra.mxu1 %v16883_v26  ;;  %v16984_v26 = vld [vmem:[#allocation10 + $0x1ec] ss:$24 sps:$4 sm:$0xff]  }
 0x6dc   :  { %7499 = vmatprep.subr.bf16.mxu1 %v16891_v42  ;;  %v16979_v42 = vld [vmem:[#allocation10 + $0x360] ss:$24 sps:$4 sm:$0xff]  }
 0x6df   :  { %7500 = vmatpush1.bf16.msra.mxu1 %v16889_v43  ;;  %v16982_v43 = vld [vmem:[#allocation10 + $0x1e8] ss:$24 sps:$4 sm:$0xff]  }
 0x6e0   :  { %7501 = vmatprep.subr.bf16.mxu1 %v16897_v3  ;;  %v16987_v3 = vld [vmem:[#allocation10 + $0x394] ss:$24 sps:$4 sm:$0xff]  }
 0x6e3   :  { %7502 = vmatpush1.bf16.msra.mxu1 %v16895_v54  ;;  %v16990_v54 = vld [vmem:[#allocation10 + $0x21c] ss:$24 sps:$4 sm:$0xff]  }
 0x6e4   :  { %7503 = vmatprep.subr.bf16.mxu1 %v16903_v56  ;;  %v16985_v56 = vld [vmem:[#allocation10 + $0x390] ss:$24 sps:$4 sm:$0xff]  }
 0x6e7   :  { %7504 = vmatpush1.bf16.msra.mxu1 %v16901_v20  ;;  %v16988_v20 = vld [vmem:[#allocation10 + $0x218] ss:$24 sps:$4 sm:$0xff]  }
 0x6e8   :  { %7505 = vmatprep.subr.bf16.mxu1 %v16909_v9  ;;  %v16993_v9 = vld [vmem:[#allocation10 + $0x3c4] ss:$24 sps:$4 sm:$0xff]  }
 0x6eb   :  { %7506 = vmatpush1.bf16.msra.mxu1 %v16907_v62  ;;  %v16996_v62 = vld [vmem:[#allocation10 + $0x24c] ss:$24 sps:$4 sm:$0xff]  }
 0x6ec   :  { %7507 = vmatprep.subr.bf16.mxu1 %v16915_v35  ;;  %v16991_v35 = vld [vmem:[#allocation10 + $0x3c0] ss:$24 sps:$4 sm:$0xff]  }
 0x6ef   :  { %7508 = vmatpush1.bf16.msra.mxu1 %v16913_v5  ;;  %v16994_v5 = vld [vmem:[#allocation10 + $0x248] ss:$24 sps:$4 sm:$0xff]  }
 0x6f0   :  { %9567 = vmatprep.subr.bf16.mxu1 %v16924_v19  ;;  %v16999_v19 = vld [vmem:[#allocation10 + $0x3f4] ss:$24 sps:$4 sm:$0xff]  }
 0x6f2   :  { %7510 = vmatmul.mubr.bf16.vlgmr.msra.gmra.mrb[84].mxu1 %v20994_v58  ;;  %v18376_v58 = vld [vmem:[#allocation4 + $0x8] sm:$0xff] }
 0x6f3   :  { %9568 = vmatpush1.bf16.msra.mxu1 %v16922_v39  ;;  %v5692_v28 = vrot.slane %v18376_v58, %v21640_v63  ;;  %v17002_v39 = vld [vmem:[#allocation10 + $0x27c] ss:$24 sps:$4 sm:$0xff]   ;;  %v17020_v58 = vld [vmem:[#allocation10 + $0x30c] ss:$24 sps:$4 sm:$0xff]  }
 0x6f4   :  { %9569 = vmatprep.subr.bf16.mxu1 %v16930_v11  ;;  %v16997_v11 = vld [vmem:[#allocation10 + $0x3f0] ss:$24 sps:$4 sm:$0xff]  }
 0x6f7   :  { %9570 = vmatpush1.bf16.msra.mxu1 %v16928_v50  ;;  %v17000_v50 = vld [vmem:[#allocation10 + $0x278] ss:$24 sps:$4 sm:$0xff]  }
 0x6f8   :  { %9571 = vmatprep.subr.bf16.mxu1 %v16936_v33  ;;  %v17005_v33 = vld [vmem:[#allocation10 + $0x424] ss:$24 sps:$4 sm:$0xff]  }
 0x6fb   :  { %9572 = vmatpush1.bf16.msra.mxu1 %v16934_v14  ;;  %v17008_v14 = vld [vmem:[#allocation10 + $0x2ac] ss:$24 sps:$4 sm:$0xff]  }
 0x6fc   :  { %9573 = vmatprep.subr.bf16.mxu1 %v16942_v52  ;;  %v17003_v52 = vld [vmem:[#allocation10 + $0x420] ss:$24 sps:$4 sm:$0xff]  }
 0x6ff   :  { %9574 = vmatpush1.bf16.msra.mxu1 %v16940_v47  ;;  %v17006_v47 = vld [vmem:[#allocation10 + $0x2a8] ss:$24 sps:$4 sm:$0xff]  }
 0x700   :  { %9575 = vmatprep.subr.bf16.mxu1 %v16948_v53  ;;  %v17011_v53 = vld [vmem:[#allocation10 + $0x454] ss:$24 sps:$4 sm:$0xff]  }
 0x703   :  { %9576 = vmatpush1.bf16.msra.mxu1 %v16946_v51  ;;  %v17014_v51 = vld [vmem:[#allocation10 + $0x2dc] ss:$24 sps:$4 sm:$0xff]  }
 0x704   :  { %9577 = vmatprep.subr.bf16.mxu1 %v16954_v27  ;;  %v17009_v27 = vld [vmem:[#allocation10 + $0x450] ss:$24 sps:$4 sm:$0xff]  }
 0x705   :  { %v7265_v4 = vpop.f32.mrb[80].mxu1 }
 0x706   :  { %v15790_v34 = vadd.f32 %v7265_v4, %v5688_v57  ;;  %v7267_v44 = vpop.f32.mrb[81].mxu1  ;;  %v17017_v57 = vld [vmem:[#allocation10 + $0x484] ss:$24 sps:$4 sm:$0xff]  }
 0x707   :  { %v15791_v38 = vadd.f32 %v7267_v44, %v5692_v28  ;;  %v7269_v22 = vpop.f32.mrb[82].mxu1  ;;  %9578 = vmatpush1.bf16.msra.mxu1 %v16952_v55  ;;  %v17015_v28 = vld [vmem:[#allocation10 + $0x480] ss:$24 sps:$4 sm:$0xff]   ;;  %v17026_v4 = vld [vmem:[#allocation10 + $0x33c] ss:$24 sps:$4 sm:$0xff]  }
 0x708   :  { %v7518_v0 = vmax.f32 %v15790_v34, 0.0  ;;  %v7270_v59 = vpop.f32.mrb[83].mxu1  ;;  %9579 = vmatprep.subr.bf16.mxu1 %v16960_v37  ;;  %v17018_v55 = vld [vmem:[#allocation10 + $0x308] ss:$24 sps:$4 sm:$0xff]   ;;  %v17023_v37 = vld [vmem:[#allocation10 + $0x4b4] ss:$24 sps:$4 sm:$0xff]  }
 0x709   :  { %v7519_v45 = vmax.f32 %v15791_v38, 0.0  ;;  %v17021_v34 = vld [vmem:[#allocation10 + $0x4b0] ss:$24 sps:$4 sm:$0xff]   ;;  %v17029_v38 = vld [vmem:[#allocation10 + $0x4e4] ss:$24 sps:$4 sm:$0xff]  }
 0x70a   :  { %v7524_v46 = vmul.f32 %v21020_v48, %v7518_v0  ;;  %v17024_v44 = vld [vmem:[#allocation10 + $0x338] ss:$24 sps:$4 sm:$0xff]   ;;  %v17032_v22 = vld [vmem:[#allocation10 + $0x36c] ss:$24 sps:$4 sm:$0xff]   ;;  %v17030_v0 = vld [vmem:[#allocation10 + $0x368] ss:$24 sps:$4 sm:$0xff]  }
 0x70b   :  { %v7525_v41 = vmul.f32 %v21022_v40, %v7519_v45  ;;  %9580 = vmatpush1.bf16.msra.mxu1 %v16958_v17  ;;  %v16975_v40 = vld [vmem:[#allocation10 + $0x334] ss:$24 sps:$4 sm:$0xff]   ;;  %v17027_v17 = vld [vmem:[#allocation10 + $0x4e0] ss:$24 sps:$4 sm:$0xff]   ;;  %v17033_v45 = vld [vmem:[#allocation10 + $0x510] ss:$24 sps:$4 sm:$0xff]  }
 0x70c   :  { %v21085_v61 = vadd.f32 %v21027_v16, %v7524_v46  ;;  %9581 = vmatprep.subr.bf16.mxu1 %v16966_v30  ;;  %v16978_v16 = vld [vmem:[#allocation10 + $0x1bc] ss:$24 sps:$4 sm:$0xff]   ;;  %v17036_v46 = vld [vmem:[#allocation10 + $0x398] ss:$24 sps:$4 sm:$0xff]  }
 0x70d   :  { %v21088_v32 = vadd.f32 %v21030_v36, %v7525_v41  ;;  %v16973_v36 = vld [vmem:[#allocation10 + $0x330] ss:$24 sps:$4 sm:$0xff]   ;;  %v17035_v59 = vld [vmem:[#allocation10 + $0x514] ss:$24 sps:$4 sm:$0xff]   ;;  %v17041_v41 = vld [vmem:[#allocation10 + $0x544] ss:$24 sps:$4 sm:$0xff]  }
 0x70e   :  { %v21096_v48 = vpack.c.bf16 %v21085_v61, %v21085_v61  ;;  %v17038_v30 = vld [vmem:[#allocation10 + $0x39c] ss:$24 sps:$4 sm:$0xff]  }
 0x70f   :  { %v21092_v8 = vpack.c.bf16 %v21088_v32, %v21088_v32  ;;  %9582 = vmatpush1.bf16.msra.mxu1 %v16964_v6  ;;  %v17044_v6 = vld [vmem:[#allocation10 + $0x3cc] ss:$24 sps:$4 sm:$0xff]  }
 0x710   :  { %9583 = vmatprep.subr.bf16.mxu1 %v16972_v31  ;;  %v17039_v31 = vld [vmem:[#allocation10 + $0x540] ss:$24 sps:$4 sm:$0xff]  }
 0x711   :  { %9476 = vmatprep.mubr.bf16.mxu0 %v21092_v8  ;;  %9599 = vmatprep.mubr.bf16.mxu1 %v21092_v8 }
 0x712   :  { %9477 = vmatmul.mubr.bf16.vlgmr.msra.gmra.mrb[60].mxu0 %v21096_v48 }
 0x713   :  { %9486 = vmatpush1.bf16.msra.mxu0 %v16967_v18  ;;  %9584 = vmatpush1.bf16.msra.mxu1 %v16970_v24  ;;  %v17042_v18 = vld [vmem:[#allocation10 + $0x3c8] ss:$24 sps:$4 sm:$0xff]   ;;  %v17047_v24 = vld [vmem:[#allocation10 + $0x574] ss:$24 sps:$4 sm:$0xff]  }
 0x714   :  { %9487 = vmatprep.subr.bf16.mxu0 %v16975_v40  ;;  %9585 = vmatprep.subr.bf16.mxu1 %v16978_v16  ;;  %v17050_v40 = vld [vmem:[#allocation10 + $0x3fc] ss:$24 sps:$4 sm:$0xff]   ;;  %v5696_v16 = vrot.slane %v21040_v2, %v21640_v63 }
 0x715   :  { %v17059_v2 = vld [vmem:[#allocation10 + $0x5d4] ss:$24 sps:$4 sm:$0xff]  }
 0x717   :  { %9488 = vmatpush1.bf16.msra.mxu0 %v16973_v36  ;;  %9586 = vmatpush1.bf16.msra.mxu1 %v16976_v25  ;;  %v17045_v36 = vld [vmem:[#allocation10 + $0x570] ss:$24 sps:$4 sm:$0xff]  }
 0x718   :  { %9489 = vmatprep.subr.bf16.mxu0 %v16981_v15  ;;  %9587 = vmatprep.subr.bf16.mxu1 %v16984_v26  ;;  %v17048_v25 = vld [vmem:[#allocation10 + $0x3f8] ss:$24 sps:$4 sm:$0xff]   ;;  %v5700_v15 = vrot.slane %v21044_v13, %v21640_v63  ;;  %v17053_v26 = vld [vmem:[#allocation10 + $0x5a4] ss:$24 sps:$4 sm:$0xff]  }
 0x71b   :  { %9490 = vmatpush1.bf16.msra.mxu0 %v16979_v42  ;;  %9588 = vmatpush1.bf16.msra.mxu1 %v16982_v43  ;;  %v17056_v42 = vld [vmem:[#allocation10 + $0x42c] ss:$24 sps:$4 sm:$0xff]  }
 0x71c   :  { %9491 = vmatprep.subr.bf16.mxu0 %v16987_v3  ;;  %9589 = vmatprep.subr.bf16.mxu1 %v16990_v54 }
 0x71f   :  { %9492 = vmatpush1.bf16.msra.mxu0 %v16985_v56  ;;  %9590 = vmatpush1.bf16.msra.mxu1 %v16988_v20  ;;  %v17051_v56 = vld [vmem:[#allocation10 + $0x5a0] ss:$24 sps:$4 sm:$0xff]  }
 0x720   :  { %9493 = vmatprep.subr.bf16.mxu0 %v16993_v9  ;;  %9591 = vmatprep.subr.bf16.mxu1 %v16996_v62  ;;  %v17054_v20 = vld [vmem:[#allocation10 + $0x428] ss:$24 sps:$4 sm:$0xff]  }
 0x723   :  { %9494 = vmatpush1.bf16.msra.mxu0 %v16991_v35  ;;  %9592 = vmatpush1.bf16.msra.mxu1 %v16994_v5  ;;  %v17062_v35 = vld [vmem:[#allocation10 + $0x45c] ss:$24 sps:$4 sm:$0xff]  }
 0x724   :  { %9495 = vmatprep.subr.bf16.mxu0 %v16999_v19  ;;  %9593 = vmatprep.subr.bf16.mxu1 %v17002_v39 }
 0x727   :  { %9496 = vmatpush1.bf16.msra.mxu0 %v16997_v11  ;;  %9594 = vmatpush1.bf16.msra.mxu1 %v17000_v50  ;;  %v17057_v11 = vld [vmem:[#allocation10 + $0x5d0] ss:$24 sps:$4 sm:$0xff]  }
 0x728   :  { %9497 = vmatprep.subr.bf16.mxu0 %v17005_v33  ;;  %9595 = vmatprep.subr.bf16.mxu1 %v17008_v14  ;;  %v17060_v50 = vld [vmem:[#allocation10 + $0x458] ss:$24 sps:$4 sm:$0xff]   ;;  %v17065_v14 = vld [vmem:[#allocation10 + $0x48c] ss:$24 sps:$4 sm:$0xff]  }
 0x72b   :  { %9498 = vmatpush1.bf16.msra.mxu0 %v17003_v52  ;;  %9596 = vmatpush1.bf16.msra.mxu1 %v17006_v47  ;;  %v17089_v52 = vld [vmem:[#allocation10 + $0x604] ss:$24 sps:$4 sm:$0xff]  }
 0x72c   :  { %9499 = vmatprep.subr.bf16.mxu0 %v17011_v53  ;;  %9597 = vmatprep.subr.bf16.mxu1 %v17014_v51  ;;  %v17063_v51 = vld [vmem:[#allocation10 + $0x488] ss:$24 sps:$4 sm:$0xff]  }
 0x72f   :  { %9500 = vmatpush1.bf16.msra.mxu0 %v17009_v27  ;;  %9598 = vmatpush1.bf16.msra.mxu1 %v17012_v49  ;;  %v17068_v27 = vld [vmem:[#allocation10 + $0x4bc] ss:$24 sps:$4 sm:$0xff]  }
 0x730   :  { %9501 = vmatprep.subr.bf16.mxu0 %v17017_v57  ;;  %9608 = vmatprep.subr.bf16.mxu1 %v17020_v58  ;;  %v17071_v57 = vld [vmem:[#allocation10 + $0x4ec] ss:$24 sps:$4 sm:$0xff]   ;;  %v17093_v58 = vld [vmem:[#allocation10 + $0x630] ss:$24 sps:$4 sm:$0xff]  }
 0x732   :  { %9600 = vmatmul.mubr.bf16.vlgmr.msra.gmra.mrb[88].mxu1 %v21096_v48 }
 0x733   :  { %9502 = vmatpush1.bf16.msra.mxu0 %v17015_v28  ;;  %9609 = vmatpush1.bf16.msra.mxu1 %v17018_v55  ;;  %v17101_v28 = vld [vmem:[#allocation10 + $0x664] ss:$24 sps:$4 sm:$0xff]   ;;  %v17069_v55 = vld [vmem:[#allocation10 + $0x4e8] ss:$24 sps:$4 sm:$0xff]  }
 0x734   :  { %9503 = vmatprep.subr.bf16.mxu0 %v17023_v37  ;;  %9610 = vmatprep.subr.bf16.mxu1 %v17026_v4  ;;  %v17074_v37 = vld [vmem:[#allocation10 + $0x51c] ss:$24 sps:$4 sm:$0xff]   ;;  %v17099_v4 = vld [vmem:[#allocation10 + $0x660] ss:$24 sps:$4 sm:$0xff]  }
 0x737   :  { %9504 = vmatpush1.bf16.msra.mxu0 %v17021_v34  ;;  %9611 = vmatpush1.bf16.msra.mxu1 %v17024_v44  ;;  %v17107_v34 = vld [vmem:[#allocation10 + $0x694] ss:$24 sps:$4 sm:$0xff]   ;;  %v17072_v44 = vld [vmem:[#allocation10 + $0x518] ss:$24 sps:$4 sm:$0xff]  }
 0x738   :  { %9505 = vmatprep.subr.bf16.mxu0 %v17029_v38  ;;  %9612 = vmatprep.subr.bf16.mxu1 %v17032_v22  ;;  %v17077_v38 = vld [vmem:[#allocation10 + $0x54c] ss:$24 sps:$4 sm:$0xff]   ;;  %v17105_v22 = vld [vmem:[#allocation10 + $0x690] ss:$24 sps:$4 sm:$0xff]  }
 0x73b   :  { %9506 = vmatpush1.bf16.msra.mxu0 %v17027_v17  ;;  %9613 = vmatpush1.bf16.msra.mxu1 %v17030_v0  ;;  %v17113_v17 = vld [vmem:[#allocation10 + $0x6c4] ss:$24 sps:$4 sm:$0xff]   ;;  %v17075_v0 = vld [vmem:[#allocation10 + $0x548] ss:$24 sps:$4 sm:$0xff]  }
 0x73c   :  { %9507 = vmatprep.subr.bf16.mxu0 %v17035_v59  ;;  %9614 = vmatprep.subr.bf16.mxu1 %v17038_v30  ;;  %v17080_v59 = vld [vmem:[#allocation10 + $0x57c] ss:$24 sps:$4 sm:$0xff]   ;;  %v17111_v30 = vld [vmem:[#allocation10 + $0x6c0] ss:$24 sps:$4 sm:$0xff]  }
 0x73f   :  { %9508 = vmatpush1.bf16.msra.mxu0 %v17033_v45  ;;  %9615 = vmatpush1.bf16.msra.mxu1 %v17036_v46  ;;  %v17119_v45 = vld [vmem:[#allocation10 + $0x6f4] ss:$24 sps:$4 sm:$0xff]   ;;  %v17078_v46 = vld [vmem:[#allocation10 + $0x578] ss:$24 sps:$4 sm:$0xff]  }
 0x740   :  { %9509 = vmatprep.subr.bf16.mxu0 %v17041_v41  ;;  %9616 = vmatprep.subr.bf16.mxu1 %v17044_v6  ;;  %v17083_v41 = vld [vmem:[#allocation10 + $0x5ac] ss:$24 sps:$4 sm:$0xff]   ;;  %v17117_v6 = vld [vmem:[#allocation10 + $0x6f0] ss:$24 sps:$4 sm:$0xff]  }
 0x743   :  { %9510 = vmatpush1.bf16.msra.mxu0 %v17039_v31  ;;  %9617 = vmatpush1.bf16.msra.mxu1 %v17042_v18  ;;  %v17125_v31 = vld [vmem:[#allocation10 + $0x724] ss:$24 sps:$4 sm:$0xff]   ;;  %v17081_v18 = vld [vmem:[#allocation10 + $0x5a8] ss:$24 sps:$4 sm:$0xff]  }
 0x744   :  { %9511 = vmatprep.subr.bf16.mxu0 %v17047_v24  ;;  %9618 = vmatprep.subr.bf16.mxu1 %v17050_v40  ;;  %v17086_v24 = vld [vmem:[#allocation10 + $0x5dc] ss:$24 sps:$4 sm:$0xff]   ;;  %v17123_v40 = vld [vmem:[#allocation10 + $0x720] ss:$24 sps:$4 sm:$0xff]  }
 0x746   :  { %v7388_v43 = vpop.f32.mrb[56].mxu0 }
 0x747   :  { %v15792_v3 = vadd.f32 %v7388_v43, %v5696_v16  ;;  %v7390_v54 = vpop.f32.mrb[57].mxu0  ;;  %9512 = vmatpush1.bf16.msra.mxu0 %v17045_v36  ;;  %9619 = vmatpush1.bf16.msra.mxu1 %v17048_v25  ;;  %v17131_v16 = vld [vmem:[#allocation10 + $0x754] ss:$24 sps:$4 sm:$0xff]   ;;  %v17084_v36 = vld [vmem:[#allocation10 + $0x5d8] ss:$24 sps:$4 sm:$0xff]  }
 0x748   :  { %v15793_v9 = vadd.f32 %v7390_v54, %v5700_v15  ;;  %v7392_v62 = vpop.f32.mrb[58].mxu0  ;;  %9513 = vmatprep.subr.bf16.mxu0 %v17053_v26  ;;  %9620 = vmatprep.subr.bf16.mxu1 %v17056_v42  ;;  %v17092_v25 = vld [vmem:[#allocation10 + $0x60c] ss:$24 sps:$4 sm:$0xff]   ;;  %v17129_v15 = vld [vmem:[#allocation10 + $0x750] ss:$24 sps:$4 sm:$0xff]  }
 0x749   :  { %v7520_v5 = vmax.f32 %v15792_v3, 0.0  ;;  %v7393_v19 = vpop.f32.mrb[59].mxu0  ;;  %v17137_v26 = vld [vmem:[#allocation10 + $0x784] ss:$24 sps:$4 sm:$0xff]   ;;  %v17090_v42 = vld [vmem:[#allocation10 + $0x608] ss:$24 sps:$4 sm:$0xff]  }
 0x74a   :  { %v7521_v13 = vmax.f32 %v15793_v9, 0.0  ;;  %v17098_v43 = vld [vmem:[#allocation10 + $0x63c] ss:$24 sps:$4 sm:$0xff]   ;;  %v17135_v3 = vld [vmem:[#allocation10 + $0x780] ss:$24 sps:$4 sm:$0xff]  }
 0x74b   :  { %v7526_v39 = vmul.f32 %v21048_v21, %v7520_v5  ;;  %9514 = vmatpush1.bf16.msra.mxu0 %v17051_v56  ;;  %9621 = vmatpush1.bf16.msra.mxu1 %v17054_v20  ;;  %v17143_v54 = vld [vmem:[#allocation10 + $0x7b4] ss:$24 sps:$4 sm:$0xff]   ;;  %v17096_v56 = vld [vmem:[#allocation10 + $0x638] ss:$24 sps:$4 sm:$0xff]   ;;  %v17149_v62 = vld [vmem:[#allocation10 + $0x7e4] ss:$24 sps:$4 sm:$0xff]  }
 0x74c   :  { %v7527_v33 = vmul.f32 %v21050_v12, %v7521_v13  ;;  %9515 = vmatprep.subr.bf16.mxu0 %v17059_v2  ;;  %9622 = vmatprep.subr.bf16.mxu1 %v17062_v35  ;;  %v17087_v12 = vld [vmem:[#allocation10 + $0x600] ss:$24 sps:$4 sm:$0xff]   ;;  %v17104_v20 = vld [vmem:[#allocation10 + $0x66c] ss:$24 sps:$4 sm:$0xff]   ;;  %v17141_v9 = vld [vmem:[#allocation10 + $0x7b0] ss:$24 sps:$4 sm:$0xff]  }
 0x74d   :  { %v21109_v47 = vadd.f32 %v21055_v10, %v7526_v39  ;;  %v17095_v10 = vld [vmem:[#allocation10 + $0x634] ss:$24 sps:$4 sm:$0xff]   ;;  %v17102_v2 = vld [vmem:[#allocation10 + $0x668] ss:$24 sps:$4 sm:$0xff]   ;;  %v17108_v13 = vld [vmem:[#allocation10 + $0x698] ss:$24 sps:$4 sm:$0xff]  }
 0x74e   :  { %v21112_v53 = vadd.f32 %v21058_v23, %v7527_v33  ;;  %v17066_v23 = vld [vmem:[#allocation10 + $0x4b8] ss:$24 sps:$4 sm:$0xff]   ;;  %v17110_v35 = vld [vmem:[#allocation10 + $0x69c] ss:$24 sps:$4 sm:$0xff]   ;;  %v17116_v39 = vld [vmem:[#allocation10 + $0x6cc] ss:$24 sps:$4 sm:$0xff]  }
 0x74f   :  { %9516 = vmatpush1.bf16.msra.mxu0 %v17057_v11  ;;  %9623 = vmatpush1.bf16.msra.mxu1 %v17060_v50  ;;  %v21120_v49 = vpack.c.bf16 %v21109_v47, %v21109_v47  ;;  %v17147_v5 = vld [vmem:[#allocation10 + $0x7e0] ss:$24 sps:$4 sm:$0xff]   ;;  %v17155_v19 = vld [vmem:[#allocation10 + $0x814] ss:$24 sps:$4 sm:$0xff]   ;;  %v17153_v11 = vld [vmem:[#allocation10 + $0x810] ss:$24 sps:$4 sm:$0xff]  }
 0x750   :  { %v21116_v21 = vpack.c.bf16 %v21112_v53, %v21112_v53  ;;  %9624 = vmatprep.subr.bf16.mxu1 %v17065_v14  ;;  %9526 = vmatprep.subr.bf16.mxu0 %v17089_v52  ;;  %v17161_v50 = vld [vmem:[#allocation10 + $0x844] ss:$24 sps:$4 sm:$0xff]   ;;  %v17114_v33 = vld [vmem:[#allocation10 + $0x6c8] ss:$24 sps:$4 sm:$0xff]  }
 0x751   :  { %v17122_v14 = vld [vmem:[#allocation10 + $0x6fc] ss:$24 sps:$4 sm:$0xff]   ;;  %v17159_v52 = vld [vmem:[#allocation10 + $0x840] ss:$24 sps:$4 sm:$0xff]  }
 0x752   :  { %9517 = vmatprep.mubr.bf16.mxu0 %v21116_v21  ;;  %9640 = vmatprep.mubr.bf16.mxu1 %v21116_v21 }
 0x753   :  { %9518 = vmatmul.mubr.bf16.vlgmr.msra.gmra.mrb[60].mxu0 %v21120_v49  ;;  %9625 = vmatpush1.bf16.msra.mxu1 %v17063_v51  ;;  %v17167_v51 = vld [vmem:[#allocation10 + $0x874] ss:$24 sps:$4 sm:$0xff]  }
 0x754   :  { %9626 = vmatprep.subr.bf16.mxu1 %v17068_v27  ;;  %9527 = vmatpush1.bf16.msra.mxu0 %v17087_v12  ;;  %v17120_v27 = vld [vmem:[#allocation10 + $0x6f8] ss:$24 sps:$4 sm:$0xff]   ;;  %v17128_v12 = vld [vmem:[#allocation10 + $0x72c] ss:$24 sps:$4 sm:$0xff]  }
 0x755   :  { %9528 = vmatprep.subr.bf16.mxu0 %v17095_v10  ;;  %v17165_v10 = vld [vmem:[#allocation10 + $0x870] ss:$24 sps:$4 sm:$0xff]  }
 0x757   :  { %9627 = vmatpush1.bf16.msra.mxu1 %v17066_v23  ;;  %v17173_v23 = vld [vmem:[#allocation10 + $0x8a4] ss:$24 sps:$4 sm:$0xff]  }
 0x758   :  { %9628 = vmatprep.subr.bf16.mxu1 %v17071_v57  ;;  %9529 = vmatpush1.bf16.msra.mxu0 %v17093_v58  ;;  %v17126_v57 = vld [vmem:[#allocation10 + $0x728] ss:$24 sps:$4 sm:$0xff]   ;;  %v17134_v58 = vld [vmem:[#allocation10 + $0x75c] ss:$24 sps:$4 sm:$0xff]  }
 0x759   :  { %9530 = vmatprep.subr.bf16.mxu0 %v17101_v28  ;;  %v17171_v28 = vld [vmem:[#allocation10 + $0x8a0] ss:$24 sps:$4 sm:$0xff]  }
 0x75b   :  { %9629 = vmatpush1.bf16.msra.mxu1 %v17069_v55  ;;  %v17179_v55 = vld [vmem:[#allocation10 + $0x8d4] ss:$24 sps:$4 sm:$0xff]  }
 0x75c   :  { %9630 = vmatprep.subr.bf16.mxu1 %v17074_v37  ;;  %9531 = vmatpush1.bf16.msra.mxu0 %v17099_v4  ;;  %v17132_v37 = vld [vmem:[#allocation10 + $0x758] ss:$24 sps:$4 sm:$0xff]   ;;  %v17140_v4 = vld [vmem:[#allocation10 + $0x78c] ss:$24 sps:$4 sm:$0xff]  }
 0x75d   :  { %9532 = vmatprep.subr.bf16.mxu0 %v17107_v34  ;;  %v17177_v34 = vld [vmem:[#allocation10 + $0x8d0] ss:$24 sps:$4 sm:$0xff]  }
 0x75f   :  { %9631 = vmatpush1.bf16.msra.mxu1 %v17072_v44  ;;  %v17185_v44 = vld [vmem:[#allocation10 + $0x14] ss:$24 sps:$4 sm:$0xff]  }
 0x760   :  { %9632 = vmatprep.subr.bf16.mxu1 %v17077_v38  ;;  %9533 = vmatpush1.bf16.msra.mxu0 %v17105_v22  ;;  %v17138_v38 = vld [vmem:[#allocation10 + $0x788] ss:$24 sps:$4 sm:$0xff]   ;;  %v17146_v22 = vld [vmem:[#allocation10 + $0x7bc] ss:$24 sps:$4 sm:$0xff]  }
 0x761   :  { %9534 = vmatprep.subr.bf16.mxu0 %v17113_v17  ;;  %v17144_v17 = vld [vmem:[#allocation10 + $0x7b8] ss:$24 sps:$4 sm:$0xff]  }
 0x763   :  { %9633 = vmatpush1.bf16.msra.mxu1 %v17075_v0  ;;  %v17152_v0 = vld [vmem:[#allocation10 + $0x7ec] ss:$24 sps:$4 sm:$0xff]  }
 0x764   :  { %9634 = vmatprep.subr.bf16.mxu1 %v17080_v59  ;;  %9535 = vmatpush1.bf16.msra.mxu0 %v17111_v30  ;;  %v17150_v59 = vld [vmem:[#allocation10 + $0x7e8] ss:$24 sps:$4 sm:$0xff]   ;;  %v17158_v30 = vld [vmem:[#allocation10 + $0x81c] ss:$24 sps:$4 sm:$0xff]  }
 0x765   :  { %9536 = vmatprep.subr.bf16.mxu0 %v17119_v45  ;;  %v17156_v45 = vld [vmem:[#allocation10 + $0x818] ss:$24 sps:$4 sm:$0xff]  }
 0x767   :  { %9635 = vmatpush1.bf16.msra.mxu1 %v17078_v46  ;;  %v17164_v46 = vld [vmem:[#allocation10 + $0x84c] ss:$24 sps:$4 sm:$0xff]  }
 0x768   :  { %9636 = vmatprep.subr.bf16.mxu1 %v17083_v41  ;;  %9537 = vmatpush1.bf16.msra.mxu0 %v17117_v6  ;;  %v17162_v41 = vld [vmem:[#allocation10 + $0x848] ss:$24 sps:$4 sm:$0xff]   ;;  %v17170_v6 = vld [vmem:[#allocation10 + $0x87c] ss:$24 sps:$4 sm:$0xff]  }
 0x769   :  { %9538 = vmatprep.subr.bf16.mxu0 %v17125_v31  ;;  %v17168_v31 = vld [vmem:[#allocation10 + $0x878] ss:$24 sps:$4 sm:$0xff]  }
 0x76b   :  { %9637 = vmatpush1.bf16.msra.mxu1 %v17081_v18  ;;  %v17176_v18 = vld [vmem:[#allocation10 + $0x8ac] ss:$24 sps:$4 sm:$0xff]  }
 0x76c   :  { %9638 = vmatprep.subr.bf16.mxu1 %v17086_v24  ;;  %9539 = vmatpush1.bf16.msra.mxu0 %v17123_v40  ;;  %v17174_v24 = vld [vmem:[#allocation10 + $0x8a8] ss:$24 sps:$4 sm:$0xff]   ;;  %v17182_v40 = vld [vmem:[#allocation10 + $0x8dc] ss:$24 sps:$4 sm:$0xff]  }
 0x76d   :  { %9540 = vmatprep.subr.bf16.mxu0 %v17131_v16  ;;  %v17180_v16 = vld [vmem:[#allocation10 + $0x8d8] ss:$24 sps:$4 sm:$0xff]  }
 0x76f   :  { %9639 = vmatpush1.bf16.msra.mxu1 %v17084_v36  ;;  %v17188_v36 = vld [vmem:[#allocation12 + $0x4] ss:$24 sps:$4 sm:$0xff]  }
 0x770   :  { %9649 = vmatprep.subr.bf16.mxu1 %v17092_v25  ;;  %9541 = vmatpush1.bf16.msra.mxu0 %v17129_v15  ;;  %v18377_v25 = vld [vmem:[#allocation4 + $0x20] sm:$0xff] }
 0x771   :  { %9542 = vmatprep.subr.bf16.mxu0 %v17137_v26  ;;  %v5704_v15 = vrot.slane %v18377_v25, %v21640_v63  ;;  %v18378_v26 = vld [vmem:[#allocation4 + $0x28] sm:$0xff]  ;;  %v17245_v25 = vld [vmem:[#allocation10 + $0x1f4] ss:$24 sps:$4 sm:$0xff]  }
 0x772   :  { %9641 = vmatmul.mubr.bf16.vlgmr.msra.gmra.mrb[88].mxu1 %v21120_v49 }
 0x773   :  { %9650 = vmatpush1.bf16.msra.mxu1 %v17090_v42  ;;  %v5708_v42 = vrot.slane %v18378_v26, %v21640_v63  ;;  %v17243_v26 = vld [vmem:[#allocation10 + $0x1f0] ss:$24 sps:$4 sm:$0xff]  }
 0x774   :  { %9651 = vmatprep.subr.bf16.mxu1 %v17098_v43  ;;  %9543 = vmatpush1.bf16.msra.mxu0 %v17135_v3 }
 0x775   :  { %9544 = vmatprep.subr.bf16.mxu0 %v17143_v54 }
 0x777   :  { %9652 = vmatpush1.bf16.msra.mxu1 %v17096_v56 }
 0x778   :  { %9653 = vmatprep.subr.bf16.mxu1 %v17104_v20  ;;  %9545 = vmatpush1.bf16.msra.mxu0 %v17141_v9 }
 0x779   :  { %9546 = vmatprep.subr.bf16.mxu0 %v17149_v62 }
 0x77b   :  { %9654 = vmatpush1.bf16.msra.mxu1 %v17102_v2 }
 0x77c   :  { %9655 = vmatprep.subr.bf16.mxu1 %v17110_v35  ;;  %9547 = vmatpush1.bf16.msra.mxu0 %v17147_v5 }
 0x77d   :  { %9548 = vmatprep.subr.bf16.mxu0 %v17155_v19 }
 0x77f   :  { %9656 = vmatpush1.bf16.msra.mxu1 %v17108_v13 }
 0x780   :  { %9657 = vmatprep.subr.bf16.mxu1 %v17116_v39  ;;  %9549 = vmatpush1.bf16.msra.mxu0 %v17153_v11  ;;  %v17183_v39 = vld [vmem:[#allocation10 + $0x10] ss:$24 sps:$4 sm:$0xff]   ;;  %v17186_v11 = vld [vmem:[#allocation12] ss:$24 sps:$4 sm:$0xff]  }
 0x781   :  { %9550 = vmatprep.subr.bf16.mxu0 %v17161_v50 }
 0x783   :  { %9658 = vmatpush1.bf16.msra.mxu1 %v17114_v33  ;;  %v17197_v33 = vld [vmem:[#allocation10 + $0x74] ss:$24 sps:$4 sm:$0xff]  }
 0x784   :  { %9659 = vmatprep.subr.bf16.mxu1 %v17122_v14  ;;  %9551 = vmatpush1.bf16.msra.mxu0 %v17159_v52  ;;  %v17200_v14 = vld [vmem:[#allocation12 + $0x64] ss:$24 sps:$4 sm:$0xff]   ;;  %v17195_v52 = vld [vmem:[#allocation10 + $0x70] ss:$24 sps:$4 sm:$0xff]  }
 0x785   :  { %9552 = vmatprep.subr.bf16.mxu0 %v17167_v51  ;;  %v17198_v51 = vld [vmem:[#allocation12 + $0x60] ss:$24 sps:$4 sm:$0xff]  }
 0x787   :  { %9660 = vmatpush1.bf16.msra.mxu1 %v17120_v27  ;;  %v17203_v27 = vld [vmem:[#allocation10 + $0xa4] ss:$24 sps:$4 sm:$0xff]  }
 0x788   :  { %9661 = vmatprep.subr.bf16.mxu1 %v17128_v12  ;;  %9553 = vmatpush1.bf16.msra.mxu0 %v17165_v10  ;;  %v17206_v12 = vld [vmem:[#allocation12 + $0x94] ss:$24 sps:$4 sm:$0xff]   ;;  %v17201_v10 = vld [vmem:[#allocation10 + $0xa0] ss:$24 sps:$4 sm:$0xff]  }
 0x789   :  { %9554 = vmatprep.subr.bf16.mxu0 %v17173_v23  ;;  %v17204_v23 = vld [vmem:[#allocation12 + $0x90] ss:$24 sps:$4 sm:$0xff]  }
 0x78b   :  { %9662 = vmatpush1.bf16.msra.mxu1 %v17126_v57  ;;  %v17209_v57 = vld [vmem:[#allocation10 + $0xd4] ss:$24 sps:$4 sm:$0xff]  }
 0x78c   :  { %9663 = vmatprep.subr.bf16.mxu1 %v17134_v58  ;;  %9555 = vmatpush1.bf16.msra.mxu0 %v17171_v28  ;;  %v17212_v58 = vld [vmem:[#allocation12 + $0xc4] ss:$24 sps:$4 sm:$0xff]   ;;  %v17207_v28 = vld [vmem:[#allocation10 + $0xd0] ss:$24 sps:$4 sm:$0xff]  }
 0x78d   :  { %9556 = vmatprep.subr.bf16.mxu0 %v17179_v55  ;;  %v17210_v55 = vld [vmem:[#allocation12 + $0xc0] ss:$24 sps:$4 sm:$0xff]  }
 0x78f   :  { %9664 = vmatpush1.bf16.msra.mxu1 %v17132_v37  ;;  %v17215_v37 = vld [vmem:[#allocation10 + $0x104] ss:$24 sps:$4 sm:$0xff]  }
 0x790   :  { %9665 = vmatprep.subr.bf16.mxu1 %v17140_v4  ;;  %9557 = vmatpush1.bf16.msra.mxu0 %v17177_v34  ;;  %v17218_v4 = vld [vmem:[#allocation12 + $0xf4] ss:$24 sps:$4 sm:$0xff]   ;;  %v17213_v34 = vld [vmem:[#allocation10 + $0x100] ss:$24 sps:$4 sm:$0xff]  }
 0x791   :  { %9690 = vmatprep.subr.bf16.mxu0 %v17185_v44  ;;  %v17216_v44 = vld [vmem:[#allocation12 + $0xf0] ss:$24 sps:$4 sm:$0xff]  }
 0x793   :  { %9666 = vmatpush1.bf16.msra.mxu1 %v17138_v38  ;;  %v17221_v38 = vld [vmem:[#allocation10 + $0x134] ss:$24 sps:$4 sm:$0xff]  }
 0x794   :  { %9667 = vmatprep.subr.bf16.mxu1 %v17146_v22  ;;  %v17224_v22 = vld [vmem:[#allocation12 + $0x124] ss:$24 sps:$4 sm:$0xff]  }
 0x797   :  { %9668 = vmatpush1.bf16.msra.mxu1 %v17144_v17  ;;  %v17219_v17 = vld [vmem:[#allocation10 + $0x130] ss:$24 sps:$4 sm:$0xff]  }
 0x798   :  { %9669 = vmatprep.subr.bf16.mxu1 %v17152_v0  ;;  %v17222_v0 = vld [vmem:[#allocation12 + $0x120] ss:$24 sps:$4 sm:$0xff]  }
 0x79b   :  { %9670 = vmatpush1.bf16.msra.mxu1 %v17150_v59  ;;  %v17227_v59 = vld [vmem:[#allocation10 + $0x164] ss:$24 sps:$4 sm:$0xff]  }
 0x79c   :  { %9671 = vmatprep.subr.bf16.mxu1 %v17158_v30  ;;  %v17230_v30 = vld [vmem:[#allocation12 + $0x154] ss:$24 sps:$4 sm:$0xff]  }
 0x79f   :  { %9672 = vmatpush1.bf16.msra.mxu1 %v17156_v45  ;;  %v17225_v45 = vld [vmem:[#allocation10 + $0x160] ss:$24 sps:$4 sm:$0xff]  }
 0x7a0   :  { %9673 = vmatprep.subr.bf16.mxu1 %v17164_v46  ;;  %v17228_v46 = vld [vmem:[#allocation12 + $0x150] ss:$24 sps:$4 sm:$0xff]  }
 0x7a3   :  { %9674 = vmatpush1.bf16.msra.mxu1 %v17162_v41  ;;  %v17233_v41 = vld [vmem:[#allocation10 + $0x194] ss:$24 sps:$4 sm:$0xff]  }
 0x7a4   :  { %9675 = vmatprep.subr.bf16.mxu1 %v17170_v6  ;;  %v17236_v6 = vld [vmem:[#allocation12 + $0x184] ss:$24 sps:$4 sm:$0xff]  }
 0x7a7   :  { %9676 = vmatpush1.bf16.msra.mxu1 %v17168_v31  ;;  %v17231_v31 = vld [vmem:[#allocation10 + $0x190] ss:$24 sps:$4 sm:$0xff]  }
 0x7a8   :  { %9677 = vmatprep.subr.bf16.mxu1 %v17176_v18  ;;  %v17234_v18 = vld [vmem:[#allocation12 + $0x180] ss:$24 sps:$4 sm:$0xff]  }
 0x7ab   :  { %9678 = vmatpush1.bf16.msra.mxu1 %v17174_v24  ;;  %v17239_v24 = vld [vmem:[#allocation10 + $0x1c4] ss:$24 sps:$4 sm:$0xff]  }
 0x7ac   :  { %9679 = vmatprep.subr.bf16.mxu1 %v17182_v40  ;;  %v17242_v40 = vld [vmem:[#allocation12 + $0x1b4] ss:$24 sps:$4 sm:$0xff]  }
 0x7af   :  { %9680 = vmatpush1.bf16.msra.mxu1 %v17180_v16  ;;  %v17237_v16 = vld [vmem:[#allocation10 + $0x1c0] ss:$24 sps:$4 sm:$0xff]  }
 0x7b0   :  { %11601 = vmatprep.subr.bf16.mxu1 %v17188_v36  ;;  %v17240_v36 = vld [vmem:[#allocation12 + $0x1b0] ss:$24 sps:$4 sm:$0xff]  }
 0x7c5   :  { %v7511_v43 = vpop.f32.mrb[84].mxu1 }
 0x7c6   :  { %v15794_v3 = vadd.f32 %v7511_v43, %v5704_v15  ;;  %v7513_v54 = vpop.f32.mrb[85].mxu1  ;;  %v17248_v15 = vld [vmem:[#allocation12 + $0x1e4] ss:$24 sps:$4 sm:$0xff]  }
 0x7c7   :  { %v15795_v56 = vadd.f32 %v7513_v54, %v5708_v42  ;;  %v7515_v20 = vpop.f32.mrb[86].mxu1  ;;  %v17246_v42 = vld [vmem:[#allocation12 + $0x1e0] ss:$24 sps:$4 sm:$0xff]   ;;  %v17251_v43 = vld [vmem:[#allocation10 + $0x224] ss:$24 sps:$4 sm:$0xff]  }
 0x7c8   :  { %v7522_v9 = vmax.f32 %v15794_v3, 0.0  ;;  %v7516_v62 = vpop.f32.mrb[87].mxu1  ;;  %v17254_v3 = vld [vmem:[#allocation12 + $0x214] ss:$24 sps:$4 sm:$0xff]   ;;  %v17249_v54 = vld [vmem:[#allocation10 + $0x220] ss:$24 sps:$4 sm:$0xff]  }
 0x7c9   :  { %v7523_v2 = vmax.f32 %v15795_v56, 0.0  ;;  %v17252_v56 = vld [vmem:[#allocation12 + $0x210] ss:$24 sps:$4 sm:$0xff]   ;;  %v17257_v20 = vld [vmem:[#allocation10 + $0x254] ss:$24 sps:$4 sm:$0xff]  }
 0x7ca   :  { %v7528_v35 = vmul.f32 %v21065_v29, %v7522_v9  ;;  %v17191_v29 = vld [vmem:[#allocation10 + $0x44] ss:$24 sps:$4 sm:$0xff]   ;;  %v17255_v62 = vld [vmem:[#allocation10 + $0x250] ss:$24 sps:$4 sm:$0xff]  }
 0x7cb   :  { %v7529_v5 = vmul.f32 %v21067_v1, %v7523_v2  ;;  %v17194_v1 = vld [vmem:[#allocation12 + $0x34] ss:$24 sps:$4 sm:$0xff]   ;;  %v17260_v9 = vld [vmem:[#allocation12 + $0x244] ss:$24 sps:$4 sm:$0xff]   ;;  %v17258_v2 = vld [vmem:[#allocation12 + $0x240] ss:$24 sps:$4 sm:$0xff]  }
 0x7cc   :  { %v21131_v19 = vadd.f32 %v21072_v60, %v7528_v35  ;;  %v17189_v60 = vld [vmem:[#allocation10 + $0x40] ss:$24 sps:$4 sm:$0xff]   ;;  %v17263_v35 = vld [vmem:[#allocation10 + $0x284] ss:$24 sps:$4 sm:$0xff]  }
 0x7cd   :  { %v21134_v13 = vadd.f32 %v21075_v7, %v7529_v5  ;;  %v17192_v7 = vld [vmem:[#allocation12 + $0x30] ss:$24 sps:$4 sm:$0xff]   ;;  %v17266_v5 = vld [vmem:[#allocation12 + $0x274] ss:$24 sps:$4 sm:$0xff]  }
 0x7ce   :  { %v21142_v50 = vpack.c.bf16 %v21131_v19, %v21131_v19 }
 0x7cf   :  { %v21138_v63 = vpack.c.bf16 %v21134_v13, %v21134_v13 }
 0x7d1   :  { %9558 = vmatprep.mubr.bf16.mxu0 %v21138_v63  ;;  %9681 = vmatprep.mubr.bf16.mxu1 %v21138_v63 }
 0x7d2   :  { %9559 = vmatmul.mubr.bf16.vlgmr.msra.gmra.mrb[60].mxu0 %v21142_v50  ;;  %9682 = vmatmul.mubr.bf16.vlgmr.msra.gmra.mrb[88].mxu1 %v21142_v50 }
 0x7d3   :  { %9691 = vmatpush1.bf16.msra.mxu0 %v17183_v39  ;;  %11602 = vmatpush1.bf16.msra.mxu1 %v17186_v11  ;;  %v17261_v39 = vld [vmem:[#allocation10 + $0x280] ss:$24 sps:$4 sm:$0xff]   ;;  %v17264_v11 = vld [vmem:[#allocation12 + $0x270] ss:$24 sps:$4 sm:$0xff]  }
 0x7d4   :  { %9722 = vmatprep.mubr.bf16.mxu0 %v21092_v8  ;;  %11633 = vmatprep.mubr.bf16.mxu1 %v21092_v8 }
 0x7d5   :  { %9692 = vmatprep.subr.bf16.mxu0 %v17191_v29  ;;  %11603 = vmatprep.subr.bf16.mxu1 %v17194_v1  ;;  %v17269_v29 = vld [vmem:[#allocation10 + $0x2b4] ss:$24 sps:$4 sm:$0xff]   ;;  %v17272_v1 = vld [vmem:[#allocation12 + $0x2a4] ss:$24 sps:$4 sm:$0xff]  }
 0x7d7   :  { %9693 = vmatpush1.bf16.msra.mxu0 %v17189_v60  ;;  %11604 = vmatpush1.bf16.msra.mxu1 %v17192_v7  ;;  %v17267_v60 = vld [vmem:[#allocation10 + $0x2b0] ss:$24 sps:$4 sm:$0xff]   ;;  %v17270_v7 = vld [vmem:[#allocation12 + $0x2a0] ss:$24 sps:$4 sm:$0xff]  }
 0x7d8   :  { %9694 = vmatprep.subr.bf16.mxu0 %v17197_v33  ;;  %11605 = vmatprep.subr.bf16.mxu1 %v17200_v14  ;;  %v17275_v33 = vld [vmem:[#allocation10 + $0x2e4] ss:$24 sps:$4 sm:$0xff]   ;;  %v17278_v14 = vld [vmem:[#allocation12 + $0x2d4] ss:$24 sps:$4 sm:$0xff]  }
 0x7db   :  { %9695 = vmatpush1.bf16.msra.mxu0 %v17195_v52  ;;  %11606 = vmatpush1.bf16.msra.mxu1 %v17198_v51  ;;  %v17273_v52 = vld [vmem:[#allocation10 + $0x2e0] ss:$24 sps:$4 sm:$0xff]   ;;  %v17276_v51 = vld [vmem:[#allocation12 + $0x2d0] ss:$24 sps:$4 sm:$0xff]  }
 0x7dc   :  { %9696 = vmatprep.subr.bf16.mxu0 %v17203_v27  ;;  %11607 = vmatprep.subr.bf16.mxu1 %v17206_v12  ;;  %v17281_v27 = vld [vmem:[#allocation10 + $0x314] ss:$24 sps:$4 sm:$0xff]   ;;  %v17284_v12 = vld [vmem:[#allocation12 + $0x304] ss:$24 sps:$4 sm:$0xff]  }
 0x7df   :  { %9697 = vmatpush1.bf16.msra.mxu0 %v17201_v10  ;;  %11608 = vmatpush1.bf16.msra.mxu1 %v17204_v23  ;;  %v17279_v10 = vld [vmem:[#allocation10 + $0x310] ss:$24 sps:$4 sm:$0xff]   ;;  %v17282_v23 = vld [vmem:[#allocation12 + $0x300] ss:$24 sps:$4 sm:$0xff]  }
 0x7e0   :  { %9698 = vmatprep.subr.bf16.mxu0 %v17209_v57  ;;  %11609 = vmatprep.subr.bf16.mxu1 %v17212_v58  ;;  %v17287_v57 = vld [vmem:[#allocation10 + $0x344] ss:$24 sps:$4 sm:$0xff]   ;;  %v17290_v58 = vld [vmem:[#allocation12 + $0x334] ss:$24 sps:$4 sm:$0xff]  }
 0x7e3   :  { %9699 = vmatpush1.bf16.msra.mxu0 %v17207_v28  ;;  %11610 = vmatpush1.bf16.msra.mxu1 %v17210_v55  ;;  %v17285_v28 = vld [vmem:[#allocation10 + $0x340] ss:$24 sps:$4 sm:$0xff]   ;;  %v17288_v55 = vld [vmem:[#allocation12 + $0x330] ss:$24 sps:$4 sm:$0xff]  }
 0x7e4   :  { %9700 = vmatprep.subr.bf16.mxu0 %v17215_v37  ;;  %11611 = vmatprep.subr.bf16.mxu1 %v17218_v4  ;;  %v17293_v37 = vld [vmem:[#allocation10 + $0x374] ss:$24 sps:$4 sm:$0xff]   ;;  %v17296_v4 = vld [vmem:[#allocation12 + $0x364] ss:$24 sps:$4 sm:$0xff]  }
 0x7e7   :  { %9701 = vmatpush1.bf16.msra.mxu0 %v17213_v34  ;;  %11612 = vmatpush1.bf16.msra.mxu1 %v17216_v44  ;;  %v17291_v34 = vld [vmem:[#allocation10 + $0x370] ss:$24 sps:$4 sm:$0xff]   ;;  %v17294_v44 = vld [vmem:[#allocation12 + $0x360] ss:$24 sps:$4 sm:$0xff]  }
 0x7e8   :  { %9702 = vmatprep.subr.bf16.mxu0 %v17221_v38  ;;  %11613 = vmatprep.subr.bf16.mxu1 %v17224_v22  ;;  %v17299_v38 = vld [vmem:[#allocation10 + $0x3a4] ss:$24 sps:$4 sm:$0xff]   ;;  %v17302_v22 = vld [vmem:[#allocation12 + $0x394] ss:$24 sps:$4 sm:$0xff]  }
 0x7eb   :  { %9703 = vmatpush1.bf16.msra.mxu0 %v17219_v17  ;;  %11614 = vmatpush1.bf16.msra.mxu1 %v17222_v0  ;;  %v17297_v17 = vld [vmem:[#allocation10 + $0x3a0] ss:$24 sps:$4 sm:$0xff]   ;;  %v17300_v0 = vld [vmem:[#allocation12 + $0x390] ss:$24 sps:$4 sm:$0xff]  }
 0x7ec   :  { %9704 = vmatprep.subr.bf16.mxu0 %v17227_v59  ;;  %11615 = vmatprep.subr.bf16.mxu1 %v17230_v30  ;;  %v17305_v59 = vld [vmem:[#allocation10 + $0x3d4] ss:$24 sps:$4 sm:$0xff]   ;;  %v17308_v30 = vld [vmem:[#allocation12 + $0x3c4] ss:$24 sps:$4 sm:$0xff]  }
 0x7ef   :  { %9705 = vmatpush1.bf16.msra.mxu0 %v17225_v45  ;;  %11616 = vmatpush1.bf16.msra.mxu1 %v17228_v46  ;;  %v17303_v45 = vld [vmem:[#allocation10 + $0x3d0] ss:$24 sps:$4 sm:$0xff]   ;;  %v17306_v46 = vld [vmem:[#allocation12 + $0x3c0] ss:$24 sps:$4 sm:$0xff]  }
 0x7f0   :  { %9706 = vmatprep.subr.bf16.mxu0 %v17233_v41  ;;  %11617 = vmatprep.subr.bf16.mxu1 %v17236_v6  ;;  %v17311_v41 = vld [vmem:[#allocation10 + $0x404] ss:$24 sps:$4 sm:$0xff]   ;;  %v17314_v6 = vld [vmem:[#allocation12 + $0x3f4] ss:$24 sps:$4 sm:$0xff]  }
 0x7f3   :  { %9707 = vmatpush1.bf16.msra.mxu0 %v17231_v31  ;;  %11618 = vmatpush1.bf16.msra.mxu1 %v17234_v18  ;;  %v17309_v31 = vld [vmem:[#allocation10 + $0x400] ss:$24 sps:$4 sm:$0xff]   ;;  %v17312_v18 = vld [vmem:[#allocation12 + $0x3f0] ss:$24 sps:$4 sm:$0xff]  }
 0x7f4   :  { %9708 = vmatprep.subr.bf16.mxu0 %v17239_v24  ;;  %11619 = vmatprep.subr.bf16.mxu1 %v17242_v40  ;;  %v17317_v24 = vld [vmem:[#allocation10 + $0x434] ss:$24 sps:$4 sm:$0xff]   ;;  %v17320_v40 = vld [vmem:[#allocation12 + $0x424] ss:$24 sps:$4 sm:$0xff]  }
 0x7f7   :  { %9709 = vmatpush1.bf16.msra.mxu0 %v17237_v16  ;;  %11620 = vmatpush1.bf16.msra.mxu1 %v17240_v36  ;;  %v17315_v16 = vld [vmem:[#allocation10 + $0x430] ss:$24 sps:$4 sm:$0xff]   ;;  %v17318_v36 = vld [vmem:[#allocation12 + $0x420] ss:$24 sps:$4 sm:$0xff]  }
 0x7f8   :  { %9710 = vmatprep.subr.bf16.mxu0 %v17245_v25  ;;  %11621 = vmatprep.subr.bf16.mxu1 %v17248_v15  ;;  %v17323_v25 = vld [vmem:[#allocation10 + $0x464] ss:$24 sps:$4 sm:$0xff]   ;;  %v17326_v15 = vld [vmem:[#allocation12 + $0x454] ss:$24 sps:$4 sm:$0xff]  }
 0x7fb   :  { %9711 = vmatpush1.bf16.msra.mxu0 %v17243_v26  ;;  %11622 = vmatpush1.bf16.msra.mxu1 %v17246_v42  ;;  %v17321_v26 = vld [vmem:[#allocation10 + $0x460] ss:$24 sps:$4 sm:$0xff]   ;;  %v17324_v42 = vld [vmem:[#allocation12 + $0x450] ss:$24 sps:$4 sm:$0xff]  }
 0x7fc   :  { %9712 = vmatprep.subr.bf16.mxu0 %v17251_v43  ;;  %11623 = vmatprep.subr.bf16.mxu1 %v17254_v3  ;;  %v17329_v43 = vld [vmem:[#allocation10 + $0x494] ss:$24 sps:$4 sm:$0xff]   ;;  %v17332_v3 = vld [vmem:[#allocation12 + $0x484] ss:$24 sps:$4 sm:$0xff]  }
 0x7ff   :  { %9713 = vmatpush1.bf16.msra.mxu0 %v17249_v54  ;;  %11624 = vmatpush1.bf16.msra.mxu1 %v17252_v56  ;;  %v17327_v54 = vld [vmem:[#allocation10 + $0x490] ss:$24 sps:$4 sm:$0xff]   ;;  %v17330_v56 = vld [vmem:[#allocation12 + $0x480] ss:$24 sps:$4 sm:$0xff]  }
 0x800   :  { %9714 = vmatprep.subr.bf16.mxu0 %v17257_v20  ;;  %11625 = vmatprep.subr.bf16.mxu1 %v17260_v9  ;;  %v17335_v20 = vld [vmem:[#allocation10 + $0x4c4] ss:$24 sps:$4 sm:$0xff]   ;;  %v17338_v9 = vld [vmem:[#allocation12 + $0x4b4] ss:$24 sps:$4 sm:$0xff]  }
 0x803   :  { %9715 = vmatpush1.bf16.msra.mxu0 %v17255_v62  ;;  %11626 = vmatpush1.bf16.msra.mxu1 %v17258_v2  ;;  %v17333_v62 = vld [vmem:[#allocation10 + $0x4c0] ss:$24 sps:$4 sm:$0xff]   ;;  %v17336_v2 = vld [vmem:[#allocation12 + $0x4b0] ss:$24 sps:$4 sm:$0xff]  }
 0x804   :  { %9716 = vmatprep.subr.bf16.mxu0 %v17263_v35  ;;  %11627 = vmatprep.subr.bf16.mxu1 %v17266_v5  ;;  %v17341_v35 = vld [vmem:[#allocation10 + $0x4f4] ss:$24 sps:$4 sm:$0xff]   ;;  %v17344_v5 = vld [vmem:[#allocation12 + $0x4e4] ss:$24 sps:$4 sm:$0xff]  }
 0x807   :  { %9717 = vmatpush1.bf16.msra.mxu0 %v17261_v39  ;;  %11628 = vmatpush1.bf16.msra.mxu1 %v17264_v11  ;;  %v17339_v39 = vld [vmem:[#allocation10 + $0x4f0] ss:$24 sps:$4 sm:$0xff]   ;;  %v17342_v11 = vld [vmem:[#allocation12 + $0x4e0] ss:$24 sps:$4 sm:$0xff]  }
 0x808   :  { %9718 = vmatprep.subr.bf16.mxu0 %v17269_v29  ;;  %11629 = vmatprep.subr.bf16.mxu1 %v17272_v1  ;;  %v17347_v29 = vld [vmem:[#allocation10 + $0x524] ss:$24 sps:$4 sm:$0xff]   ;;  %v17350_v1 = vld [vmem:[#allocation12 + $0x514] ss:$24 sps:$4 sm:$0xff]  }
 0x80b   :  { %9719 = vmatpush1.bf16.msra.mxu0 %v17267_v60  ;;  %11630 = vmatpush1.bf16.msra.mxu1 %v17270_v7  ;;  %v17345_v60 = vld [vmem:[#allocation10 + $0x520] ss:$24 sps:$4 sm:$0xff]   ;;  %v17348_v7 = vld [vmem:[#allocation12 + $0x510] ss:$24 sps:$4 sm:$0xff]  }
 0x80c   :  { %9720 = vmatprep.subr.bf16.mxu0 %v17275_v33  ;;  %11631 = vmatprep.subr.bf16.mxu1 %v17278_v14  ;;  %v17353_v33 = vld [vmem:[#allocation10 + $0x554] ss:$24 sps:$4 sm:$0xff]   ;;  %v17356_v14 = vld [vmem:[#allocation12 + $0x544] ss:$24 sps:$4 sm:$0xff]  }
 0x80f   :  { %9721 = vmatpush1.bf16.msra.mxu0 %v17273_v52  ;;  %11632 = vmatpush1.bf16.msra.mxu1 %v17276_v51  ;;  %v17351_v52 = vld [vmem:[#allocation10 + $0x550] ss:$24 sps:$4 sm:$0xff]   ;;  %v17354_v51 = vld [vmem:[#allocation12 + $0x540] ss:$24 sps:$4 sm:$0xff]  }
 0x810   :  { %9731 = vmatprep.subr.bf16.mxu0 %v17281_v27  ;;  %11642 = vmatprep.subr.bf16.mxu1 %v17284_v12  ;;  %v17359_v27 = vld [vmem:[#allocation10 + $0x584] ss:$24 sps:$4 sm:$0xff]   ;;  %v17362_v12 = vld [vmem:[#allocation12 + $0x574] ss:$24 sps:$4 sm:$0xff]  }
 0x812   :  { %9723 = vmatmul.mubr.bf16.vlgmr.msra.gmra.mrb[64].mxu0 %v21096_v48  ;;  %11634 = vmatmul.mubr.bf16.vlgmr.msra.gmra.mrb[92].mxu1 %v21096_v48 }
 0x813   :  { %9732 = vmatpush1.bf16.msra.mxu0 %v17279_v10  ;;  %9763 = vmatprep.mubr.bf16.mxu0 %v21116_v21  ;;  %v17357_v10 = vld [vmem:[#allocation10 + $0x580] ss:$24 sps:$4 sm:$0xff]  }
 0x814   :  { %11643 = vmatpush1.bf16.msra.mxu1 %v17282_v23  ;;  %11674 = vmatprep.mubr.bf16.mxu1 %v21116_v21  ;;  %v17360_v23 = vld [vmem:[#allocation12 + $0x570] ss:$24 sps:$4 sm:$0xff]  }
 0x815   :  { %9733 = vmatprep.subr.bf16.mxu0 %v17287_v57  ;;  %11644 = vmatprep.subr.bf16.mxu1 %v17290_v58  ;;  %v17365_v57 = vld [vmem:[#allocation10 + $0x5b4] ss:$24 sps:$4 sm:$0xff]   ;;  %v17368_v58 = vld [vmem:[#allocation12 + $0x5a4] ss:$24 sps:$4 sm:$0xff]  }
 0x817   :  { %9734 = vmatpush1.bf16.msra.mxu0 %v17285_v28  ;;  %v17363_v28 = vld [vmem:[#allocation10 + $0x5b0] ss:$24 sps:$4 sm:$0xff]  }
 0x818   :  { %11645 = vmatpush1.bf16.msra.mxu1 %v17288_v55  ;;  %9735 = vmatprep.subr.bf16.mxu0 %v17293_v37  ;;  %v17366_v55 = vld [vmem:[#allocation12 + $0x5a0] ss:$24 sps:$4 sm:$0xff]   ;;  %v17371_v37 = vld [vmem:[#allocation10 + $0x5e4] ss:$24 sps:$4 sm:$0xff]  }
 0x819   :  { %11646 = vmatprep.subr.bf16.mxu1 %v17296_v4  ;;  %v17374_v4 = vld [vmem:[#allocation12 + $0x5d4] ss:$24 sps:$4 sm:$0xff]  }
 0x81b   :  { %9736 = vmatpush1.bf16.msra.mxu0 %v17291_v34  ;;  %v17369_v34 = vld [vmem:[#allocation10 + $0x5e0] ss:$24 sps:$4 sm:$0xff]  }
 0x81c   :  { %11647 = vmatpush1.bf16.msra.mxu1 %v17294_v44  ;;  %9737 = vmatprep.subr.bf16.mxu0 %v17299_v38  ;;  %v17372_v44 = vld [vmem:[#allocation12 + $0x5d0] ss:$24 sps:$4 sm:$0xff]   ;;  %v17377_v38 = vld [vmem:[#allocation10 + $0x614] ss:$24 sps:$4 sm:$0xff]  }
 0x81d   :  { %11648 = vmatprep.subr.bf16.mxu1 %v17302_v22  ;;  %v17380_v22 = vld [vmem:[#allocation12 + $0x604] ss:$24 sps:$4 sm:$0xff]  }
 0x81f   :  { %9738 = vmatpush1.bf16.msra.mxu0 %v17297_v17  ;;  %v17375_v17 = vld [vmem:[#allocation10 + $0x610] ss:$24 sps:$4 sm:$0xff]  }
 0x820   :  { %11649 = vmatpush1.bf16.msra.mxu1 %v17300_v0  ;;  %9739 = vmatprep.subr.bf16.mxu0 %v17305_v59  ;;  %v17378_v0 = vld [vmem:[#allocation12 + $0x600] ss:$24 sps:$4 sm:$0xff]   ;;  %v17383_v59 = vld [vmem:[#allocation10 + $0x644] ss:$24 sps:$4 sm:$0xff]  }
 0x821   :  { %11650 = vmatprep.subr.bf16.mxu1 %v17308_v30  ;;  %v17386_v30 = vld [vmem:[#allocation12 + $0x634] ss:$24 sps:$4 sm:$0xff]  }
 0x823   :  { %9740 = vmatpush1.bf16.msra.mxu0 %v17303_v45  ;;  %v17381_v45 = vld [vmem:[#allocation10 + $0x640] ss:$24 sps:$4 sm:$0xff]  }
 0x824   :  { %11651 = vmatpush1.bf16.msra.mxu1 %v17306_v46  ;;  %9741 = vmatprep.subr.bf16.mxu0 %v17311_v41  ;;  %v17384_v46 = vld [vmem:[#allocation12 + $0x630] ss:$24 sps:$4 sm:$0xff]   ;;  %v17389_v41 = vld [vmem:[#allocation10 + $0x674] ss:$24 sps:$4 sm:$0xff]  }
 0x825   :  { %11652 = vmatprep.subr.bf16.mxu1 %v17314_v6  ;;  %v17392_v6 = vld [vmem:[#allocation12 + $0x664] ss:$24 sps:$4 sm:$0xff]  }
 0x827   :  { %9742 = vmatpush1.bf16.msra.mxu0 %v17309_v31  ;;  %v17387_v31 = vld [vmem:[#allocation10 + $0x670] ss:$24 sps:$4 sm:$0xff]  }
 0x828   :  { %11653 = vmatpush1.bf16.msra.mxu1 %v17312_v18  ;;  %9743 = vmatprep.subr.bf16.mxu0 %v17317_v24  ;;  %v17390_v18 = vld [vmem:[#allocation12 + $0x660] ss:$24 sps:$4 sm:$0xff]   ;;  %v17395_v24 = vld [vmem:[#allocation10 + $0x6a4] ss:$24 sps:$4 sm:$0xff]  }
 0x829   :  { %11654 = vmatprep.subr.bf16.mxu1 %v17320_v40  ;;  %v17398_v40 = vld [vmem:[#allocation12 + $0x694] ss:$24 sps:$4 sm:$0xff]  }
 0x82b   :  { %9744 = vmatpush1.bf16.msra.mxu0 %v17315_v16  ;;  %v17393_v16 = vld [vmem:[#allocation10 + $0x6a0] ss:$24 sps:$4 sm:$0xff]  }
 0x82c   :  { %11655 = vmatpush1.bf16.msra.mxu1 %v17318_v36  ;;  %9745 = vmatprep.subr.bf16.mxu0 %v17323_v25  ;;  %v17396_v36 = vld [vmem:[#allocation12 + $0x690] ss:$24 sps:$4 sm:$0xff]   ;;  %v17401_v25 = vld [vmem:[#allocation10 + $0x6d4] ss:$24 sps:$4 sm:$0xff]  }
 0x82d   :  { %11656 = vmatprep.subr.bf16.mxu1 %v17326_v15  ;;  %v17404_v15 = vld [vmem:[#allocation12 + $0x6c4] ss:$24 sps:$4 sm:$0xff]  }
 0x82f   :  { %9746 = vmatpush1.bf16.msra.mxu0 %v17321_v26  ;;  %v17399_v26 = vld [vmem:[#allocation10 + $0x6d0] ss:$24 sps:$4 sm:$0xff]  }
 0x830   :  { %11657 = vmatpush1.bf16.msra.mxu1 %v17324_v42  ;;  %9747 = vmatprep.subr.bf16.mxu0 %v17329_v43  ;;  %v17402_v42 = vld [vmem:[#allocation12 + $0x6c0] ss:$24 sps:$4 sm:$0xff]   ;;  %v17407_v43 = vld [vmem:[#allocation10 + $0x704] ss:$24 sps:$4 sm:$0xff]  }
 0x831   :  { %11658 = vmatprep.subr.bf16.mxu1 %v17332_v3  ;;  %v17410_v3 = vld [vmem:[#allocation12 + $0x6f4] ss:$24 sps:$4 sm:$0xff]  }
 0x833   :  { %9748 = vmatpush1.bf16.msra.mxu0 %v17327_v54  ;;  %v17405_v54 = vld [vmem:[#allocation10 + $0x700] ss:$24 sps:$4 sm:$0xff]  }
 0x834   :  { %11659 = vmatpush1.bf16.msra.mxu1 %v17330_v56  ;;  %9749 = vmatprep.subr.bf16.mxu0 %v17335_v20  ;;  %v17408_v56 = vld [vmem:[#allocation12 + $0x6f0] ss:$24 sps:$4 sm:$0xff]   ;;  %v17413_v20 = vld [vmem:[#allocation10 + $0x734] ss:$24 sps:$4 sm:$0xff]  }
 0x835   :  { %11660 = vmatprep.subr.bf16.mxu1 %v17338_v9  ;;  %v17416_v9 = vld [vmem:[#allocation12 + $0x724] ss:$24 sps:$4 sm:$0xff]  }
 0x837   :  { %9750 = vmatpush1.bf16.msra.mxu0 %v17333_v62  ;;  %v17411_v62 = vld [vmem:[#allocation10 + $0x730] ss:$24 sps:$4 sm:$0xff]  }
 0x838   :  { %11661 = vmatpush1.bf16.msra.mxu1 %v17336_v2  ;;  %9751 = vmatprep.subr.bf16.mxu0 %v17341_v35  ;;  %v17414_v2 = vld [vmem:[#allocation12 + $0x720] ss:$24 sps:$4 sm:$0xff]   ;;  %v17419_v35 = vld [vmem:[#allocation10 + $0x764] ss:$24 sps:$4 sm:$0xff]  }
 0x839   :  { %11662 = vmatprep.subr.bf16.mxu1 %v17344_v5  ;;  %v17422_v5 = vld [vmem:[#allocation12 + $0x754] ss:$24 sps:$4 sm:$0xff]  }
 0x83b   :  { %9752 = vmatpush1.bf16.msra.mxu0 %v17339_v39  ;;  %v17417_v39 = vld [vmem:[#allocation10 + $0x760] ss:$24 sps:$4 sm:$0xff]  }
 0x83c   :  { %11663 = vmatpush1.bf16.msra.mxu1 %v17342_v11  ;;  %9753 = vmatprep.subr.bf16.mxu0 %v17347_v29  ;;  %v17420_v11 = vld [vmem:[#allocation12 + $0x750] ss:$24 sps:$4 sm:$0xff]   ;;  %v17425_v29 = vld [vmem:[#allocation10 + $0x794] ss:$24 sps:$4 sm:$0xff]  }
 0x83d   :  { %11664 = vmatprep.subr.bf16.mxu1 %v17350_v1  ;;  %v17428_v1 = vld [vmem:[#allocation12 + $0x784] ss:$24 sps:$4 sm:$0xff]  }
 0x83f   :  { %9754 = vmatpush1.bf16.msra.mxu0 %v17345_v60  ;;  %v17423_v60 = vld [vmem:[#allocation10 + $0x790] ss:$24 sps:$4 sm:$0xff]  }
 0x840   :  { %11665 = vmatpush1.bf16.msra.mxu1 %v17348_v7  ;;  %9755 = vmatprep.subr.bf16.mxu0 %v17353_v33  ;;  %v17426_v7 = vld [vmem:[#allocation12 + $0x780] ss:$24 sps:$4 sm:$0xff]   ;;  %v17431_v33 = vld [vmem:[#allocation10 + $0x7c4] ss:$24 sps:$4 sm:$0xff]  }
 0x841   :  { %11666 = vmatprep.subr.bf16.mxu1 %v17356_v14  ;;  %v17434_v14 = vld [vmem:[#allocation12 + $0x7b4] ss:$24 sps:$4 sm:$0xff]  }
 0x843   :  { %9756 = vmatpush1.bf16.msra.mxu0 %v17351_v52  ;;  %v17429_v52 = vld [vmem:[#allocation10 + $0x7c0] ss:$24 sps:$4 sm:$0xff]  }
 0x844   :  { %11667 = vmatpush1.bf16.msra.mxu1 %v17354_v51  ;;  %9757 = vmatprep.subr.bf16.mxu0 %v17359_v27  ;;  %v17432_v51 = vld [vmem:[#allocation12 + $0x7b0] ss:$24 sps:$4 sm:$0xff]   ;;  %v17437_v27 = vld [vmem:[#allocation10 + $0x7f4] ss:$24 sps:$4 sm:$0xff]  }
 0x845   :  { %11668 = vmatprep.subr.bf16.mxu1 %v17362_v12  ;;  %v17440_v12 = vld [vmem:[#allocation12 + $0x7e4] ss:$24 sps:$4 sm:$0xff]  }
 0x847   :  { %9758 = vmatpush1.bf16.msra.mxu0 %v17357_v10  ;;  %v17435_v10 = vld [vmem:[#allocation10 + $0x7f0] ss:$24 sps:$4 sm:$0xff]  }
 0x848   :  { %11669 = vmatpush1.bf16.msra.mxu1 %v17360_v23  ;;  %9759 = vmatprep.subr.bf16.mxu0 %v17365_v57  ;;  %v17438_v23 = vld [vmem:[#allocation12 + $0x7e0] ss:$24 sps:$4 sm:$0xff]   ;;  %v17443_v57 = vld [vmem:[#allocation10 + $0x824] ss:$24 sps:$4 sm:$0xff]  }
 0x849   :  { %11670 = vmatprep.subr.bf16.mxu1 %v17368_v58  ;;  %v17446_v58 = vld [vmem:[#allocation12 + $0x814] ss:$24 sps:$4 sm:$0xff]  }
 0x84b   :  { %9760 = vmatpush1.bf16.msra.mxu0 %v17363_v28  ;;  %v17441_v28 = vld [vmem:[#allocation10 + $0x820] ss:$24 sps:$4 sm:$0xff]  }
 0x84c   :  { %11671 = vmatpush1.bf16.msra.mxu1 %v17366_v55  ;;  %9761 = vmatprep.subr.bf16.mxu0 %v17371_v37  ;;  %v17444_v55 = vld [vmem:[#allocation12 + $0x810] ss:$24 sps:$4 sm:$0xff]   ;;  %v17449_v37 = vld [vmem:[#allocation10 + $0x854] ss:$24 sps:$4 sm:$0xff]  }
 0x84d   :  { %11672 = vmatprep.subr.bf16.mxu1 %v17374_v4  ;;  %v17452_v4 = vld [vmem:[#allocation12 + $0x844] ss:$24 sps:$4 sm:$0xff]  }
 0x84f   :  { %9762 = vmatpush1.bf16.msra.mxu0 %v17369_v34  ;;  %v17447_v34 = vld [vmem:[#allocation10 + $0x850] ss:$24 sps:$4 sm:$0xff]  }
 0x850   :  { %11673 = vmatpush1.bf16.msra.mxu1 %v17372_v44  ;;  %9772 = vmatprep.subr.bf16.mxu0 %v17377_v38  ;;  %v17450_v44 = vld [vmem:[#allocation12 + $0x840] ss:$24 sps:$4 sm:$0xff]   ;;  %v17455_v38 = vld [vmem:[#allocation10 + $0x884] ss:$24 sps:$4 sm:$0xff]  }
 0x851   :  { %11683 = vmatprep.subr.bf16.mxu1 %v17380_v22  ;;  %v17458_v22 = vld [vmem:[#allocation12 + $0x874] ss:$24 sps:$4 sm:$0xff]  }
 0x852   :  { %9764 = vmatmul.mubr.bf16.vlgmr.msra.gmra.mrb[64].mxu0 %v21120_v49 }
 0x853   :  { %11675 = vmatmul.mubr.bf16.vlgmr.msra.gmra.mrb[92].mxu1 %v21120_v49  ;;  %9773 = vmatpush1.bf16.msra.mxu0 %v17375_v17  ;;  %v17453_v17 = vld [vmem:[#allocation10 + $0x880] ss:$24 sps:$4 sm:$0xff]  }
 0x854   :  { %9804 = vmatprep.mubr.bf16.mxu0 %v21138_v63  ;;  %11684 = vmatpush1.bf16.msra.mxu1 %v17378_v0  ;;  %v17456_v0 = vld [vmem:[#allocation12 + $0x870] ss:$24 sps:$4 sm:$0xff]  }
 0x855   :  { %11715 = vmatprep.mubr.bf16.mxu1 %v21138_v63  ;;  %9774 = vmatprep.subr.bf16.mxu0 %v17383_v59  ;;  %v17461_v59 = vld [vmem:[#allocation10 + $0x8b4] ss:$24 sps:$4 sm:$0xff]  }
 0x856   :  { %11685 = vmatprep.subr.bf16.mxu1 %v17386_v30  ;;  %v17464_v30 = vld [vmem:[#allocation12 + $0x8a4] ss:$24 sps:$4 sm:$0xff]  }
 0x857   :  { %9775 = vmatpush1.bf16.msra.mxu0 %v17381_v45  ;;  %v17459_v45 = vld [vmem:[#allocation10 + $0x8b0] ss:$24 sps:$4 sm:$0xff]  }
 0x858   :  { %11686 = vmatpush1.bf16.msra.mxu1 %v17384_v46  ;;  %9776 = vmatprep.subr.bf16.mxu0 %v17389_v41  ;;  %v17462_v46 = vld [vmem:[#allocation12 + $0x8a0] ss:$24 sps:$4 sm:$0xff]   ;;  %v17467_v41 = vld [vmem:[#allocation10 + $0x8e4] ss:$24 sps:$4 sm:$0xff]  }
 0x859   :  { %11687 = vmatprep.subr.bf16.mxu1 %v17392_v6  ;;  %v17470_v6 = vld [vmem:[#allocation12 + $0x8d4] ss:$24 sps:$4 sm:$0xff]  }
 0x85b   :  { %9777 = vmatpush1.bf16.msra.mxu0 %v17387_v31  ;;  %v17465_v31 = vld [vmem:[#allocation10 + $0x8e0] ss:$24 sps:$4 sm:$0xff]  }
 0x85c   :  { %11688 = vmatpush1.bf16.msra.mxu1 %v17390_v18  ;;  %9778 = vmatprep.subr.bf16.mxu0 %v17395_v24  ;;  %v17468_v18 = vld [vmem:[#allocation12 + $0x8d0] ss:$24 sps:$4 sm:$0xff]   ;;  %v17473_v24 = vld [vmem:[#allocation12 + $0xc] ss:$24 sps:$4 sm:$0xff]  }
 0x85d   :  { %11689 = vmatprep.subr.bf16.mxu1 %v17398_v40  ;;  %v17476_v40 = vld [vmem:[#allocation12 + $0x14] ss:$24 sps:$4 sm:$0xff]  }
 0x85f   :  { %9779 = vmatpush1.bf16.msra.mxu0 %v17393_v16  ;;  %v17471_v16 = vld [vmem:[#allocation12 + $0x8] ss:$24 sps:$4 sm:$0xff]  }
 0x860   :  { %11690 = vmatpush1.bf16.msra.mxu1 %v17396_v36  ;;  %9780 = vmatprep.subr.bf16.mxu0 %v17401_v25  ;;  %v17474_v36 = vld [vmem:[#allocation12 + $0x10] ss:$24 sps:$4 sm:$0xff]   ;;  %v17479_v25 = vld [vmem:[#allocation12 + $0x3c] ss:$24 sps:$4 sm:$0xff]  }
 0x861   :  { %11691 = vmatprep.subr.bf16.mxu1 %v17404_v15  ;;  %v17482_v15 = vld [vmem:[#allocation12 + $0x44] ss:$24 sps:$4 sm:$0xff]  }
 0x863   :  { %9781 = vmatpush1.bf16.msra.mxu0 %v17399_v26  ;;  %v17477_v26 = vld [vmem:[#allocation12 + $0x38] ss:$24 sps:$4 sm:$0xff]  }
 0x864   :  { %11692 = vmatpush1.bf16.msra.mxu1 %v17402_v42  ;;  %9782 = vmatprep.subr.bf16.mxu0 %v17407_v43  ;;  %v17480_v42 = vld [vmem:[#allocation12 + $0x40] ss:$24 sps:$4 sm:$0xff]   ;;  %v17485_v43 = vld [vmem:[#allocation12 + $0x6c] ss:$24 sps:$4 sm:$0xff]  }
 0x865   :  { %11693 = vmatprep.subr.bf16.mxu1 %v17410_v3  ;;  %v17488_v3 = vld [vmem:[#allocation12 + $0x74] ss:$24 sps:$4 sm:$0xff]  }
 0x867   :  { %9783 = vmatpush1.bf16.msra.mxu0 %v17405_v54  ;;  %v17483_v54 = vld [vmem:[#allocation12 + $0x68] ss:$24 sps:$4 sm:$0xff]  }
 0x868   :  { %11694 = vmatpush1.bf16.msra.mxu1 %v17408_v56  ;;  %9784 = vmatprep.subr.bf16.mxu0 %v17413_v20  ;;  %v17486_v56 = vld [vmem:[#allocation12 + $0x70] ss:$24 sps:$4 sm:$0xff]   ;;  %v17491_v20 = vld [vmem:[#allocation12 + $0x9c] ss:$24 sps:$4 sm:$0xff]  }
 0x869   :  { %11695 = vmatprep.subr.bf16.mxu1 %v17416_v9  ;;  %v17494_v9 = vld [vmem:[#allocation12 + $0xa4] ss:$24 sps:$4 sm:$0xff]  }
 0x86b   :  { %9785 = vmatpush1.bf16.msra.mxu0 %v17411_v62  ;;  %v17489_v62 = vld [vmem:[#allocation12 + $0x98] ss:$24 sps:$4 sm:$0xff]  }
 0x86c   :  { %11696 = vmatpush1.bf16.msra.mxu1 %v17414_v2  ;;  %9786 = vmatprep.subr.bf16.mxu0 %v17419_v35  ;;  %v17492_v2 = vld [vmem:[#allocation12 + $0xa0] ss:$24 sps:$4 sm:$0xff]   ;;  %v17497_v35 = vld [vmem:[#allocation12 + $0xcc] ss:$24 sps:$4 sm:$0xff]  }
 0x86d   :  { %11697 = vmatprep.subr.bf16.mxu1 %v17422_v5  ;;  %v17500_v5 = vld [vmem:[#allocation12 + $0xd4] ss:$24 sps:$4 sm:$0xff]  }
 0x86f   :  { %9787 = vmatpush1.bf16.msra.mxu0 %v17417_v39  ;;  %v17498_v39 = vld [vmem:[#allocation12 + $0xd0] ss:$24 sps:$4 sm:$0xff]  }
 0x870   :  { %11698 = vmatpush1.bf16.msra.mxu1 %v17420_v11  ;;  %9788 = vmatprep.subr.bf16.mxu0 %v17425_v29  ;;  %v17503_v11 = vld [vmem:[#allocation12 + $0xfc] ss:$24 sps:$4 sm:$0xff]  }
 0x871   :  { %11699 = vmatprep.subr.bf16.mxu1 %v17428_v1  ;;  %v17506_v29 = vld [vmem:[#allocation12 + $0x104] ss:$24 sps:$4 sm:$0xff]   ;;  %v17501_v1 = vld [vmem:[#allocation12 + $0xf8] ss:$24 sps:$4 sm:$0xff]  }
 0x873   :  { %9789 = vmatpush1.bf16.msra.mxu0 %v17423_v60  ;;  %v17504_v60 = vld [vmem:[#allocation12 + $0x100] ss:$24 sps:$4 sm:$0xff]  }
 0x874   :  { %11700 = vmatpush1.bf16.msra.mxu1 %v17426_v7  ;;  %9790 = vmatprep.subr.bf16.mxu0 %v17431_v33  ;;  %v17509_v7 = vld [vmem:[#allocation12 + $0x12c] ss:$24 sps:$4 sm:$0xff]  }
 0x875   :  { %11701 = vmatprep.subr.bf16.mxu1 %v17434_v14 }
 0x877   :  { %9791 = vmatpush1.bf16.msra.mxu0 %v17429_v52  ;;  %v17512_v52 = vld [vmem:[#allocation12 + $0x134] ss:$24 sps:$4 sm:$0xff]  }
 0x878   :  { %11702 = vmatpush1.bf16.msra.mxu1 %v17432_v51  ;;  %9792 = vmatprep.subr.bf16.mxu0 %v17437_v27 }
 0x879   :  { %11703 = vmatprep.subr.bf16.mxu1 %v17440_v12 }
 0x87b   :  { %9793 = vmatpush1.bf16.msra.mxu0 %v17435_v10 }
 0x87c   :  { %11704 = vmatpush1.bf16.msra.mxu1 %v17438_v23  ;;  %9794 = vmatprep.subr.bf16.mxu0 %v17443_v57  ;;  %v17507_v23 = vld [vmem:[#allocation12 + $0x128] ss:$24 sps:$4 sm:$0xff]  }
 0x87d   :  { %11705 = vmatprep.subr.bf16.mxu1 %v17446_v58 }
 0x87f   :  { %9795 = vmatpush1.bf16.msra.mxu0 %v17441_v28  ;;  %v17510_v28 = vld [vmem:[#allocation12 + $0x130] ss:$24 sps:$4 sm:$0xff]  }
 0x880   :  { %11706 = vmatpush1.bf16.msra.mxu1 %v17444_v55  ;;  %9796 = vmatprep.subr.bf16.mxu0 %v17449_v37  ;;  %v17515_v55 = vld [vmem:[#allocation12 + $0x15c] ss:$24 sps:$4 sm:$0xff]  }
 0x881   :  { %11707 = vmatprep.subr.bf16.mxu1 %v17452_v4  ;;  %v17518_v37 = vld [vmem:[#allocation12 + $0x164] ss:$24 sps:$4 sm:$0xff]   ;;  %v17513_v4 = vld [vmem:[#allocation12 + $0x158] ss:$24 sps:$4 sm:$0xff]  }
 0x883   :  { %9797 = vmatpush1.bf16.msra.mxu0 %v17447_v34  ;;  %v17516_v34 = vld [vmem:[#allocation12 + $0x160] ss:$24 sps:$4 sm:$0xff]  }
 0x884   :  { %11708 = vmatpush1.bf16.msra.mxu1 %v17450_v44  ;;  %9798 = vmatprep.subr.bf16.mxu0 %v17455_v38  ;;  %v17521_v44 = vld [vmem:[#allocation12 + $0x18c] ss:$24 sps:$4 sm:$0xff]  }
 0x885   :  { %11709 = vmatprep.subr.bf16.mxu1 %v17458_v22  ;;  %v17524_v38 = vld [vmem:[#allocation12 + $0x194] ss:$24 sps:$4 sm:$0xff]   ;;  %v17519_v22 = vld [vmem:[#allocation12 + $0x188] ss:$24 sps:$4 sm:$0xff]  }
 0x887   :  { %9799 = vmatpush1.bf16.msra.mxu0 %v17453_v17  ;;  %v17522_v17 = vld [vmem:[#allocation12 + $0x190] ss:$24 sps:$4 sm:$0xff]  }
 0x888   :  { %11710 = vmatpush1.bf16.msra.mxu1 %v17456_v0  ;;  %9800 = vmatprep.subr.bf16.mxu0 %v17461_v59  ;;  %v17527_v0 = vld [vmem:[#allocation12 + $0x1bc] ss:$24 sps:$4 sm:$0xff]  }
 0x889   :  { %11711 = vmatprep.subr.bf16.mxu1 %v17464_v30  ;;  %v17530_v59 = vld [vmem:[#allocation12 + $0x1c4] ss:$24 sps:$4 sm:$0xff]   ;;  %v17525_v30 = vld [vmem:[#allocation12 + $0x1b8] ss:$24 sps:$4 sm:$0xff]  }
 0x88b   :  { %9801 = vmatpush1.bf16.msra.mxu0 %v17459_v45  ;;  %v17528_v45 = vld [vmem:[#allocation12 + $0x1c0] ss:$24 sps:$4 sm:$0xff]  }
 0x88c   :  { %11712 = vmatpush1.bf16.msra.mxu1 %v17462_v46  ;;  %9802 = vmatprep.subr.bf16.mxu0 %v17467_v41  ;;  %v17533_v46 = vld [vmem:[#allocation12 + $0x1ec] ss:$24 sps:$4 sm:$0xff]  }
 0x88d   :  { %11713 = vmatprep.subr.bf16.mxu1 %v17470_v6  ;;  %v17536_v41 = vld [vmem:[#allocation12 + $0x1f4] ss:$24 sps:$4 sm:$0xff]   ;;  %v17531_v6 = vld [vmem:[#allocation12 + $0x1e8] ss:$24 sps:$4 sm:$0xff]  }
 0x88f   :  { %9803 = vmatpush1.bf16.msra.mxu0 %v17465_v31  ;;  %v17534_v31 = vld [vmem:[#allocation12 + $0x1f0] ss:$24 sps:$4 sm:$0xff]  }
 0x890   :  { %11714 = vmatpush1.bf16.msra.mxu1 %v17468_v18  ;;  %11724 = vmatprep.subr.bf16.mxu0 %v17473_v24  ;;  %v17539_v18 = vld [vmem:[#allocation12 + $0x21c] ss:$24 sps:$4 sm:$0xff]  }
 0x891   :  { %11847 = vmatprep.subr.bf16.mxu1 %v17476_v40  ;;  %v17542_v24 = vld [vmem:[#allocation12 + $0x224] ss:$24 sps:$4 sm:$0xff]   ;;  %v17537_v40 = vld [vmem:[#allocation12 + $0x218] ss:$24 sps:$4 sm:$0xff]  }
 0x892   :  { %9805 = vmatmul.mubr.bf16.vlgmr.msra.gmra.mrb[64].mxu0 %v21142_v50 }
 0x893   :  { %11716 = vmatmul.mubr.bf16.vlgmr.msra.gmra.mrb[92].mxu1 %v21142_v50  ;;  %11725 = vmatpush1.bf16.msra.mxu0 %v17471_v16  ;;  %v17540_v16 = vld [vmem:[#allocation12 + $0x220] ss:$24 sps:$4 sm:$0xff]  }
 0x894   :  { %11756 = vmatprep.mubr.bf16.mxu0 %v21092_v8  ;;  %11848 = vmatpush1.bf16.msra.mxu1 %v17474_v36  ;;  %v17545_v36 = vld [vmem:[#allocation12 + $0x24c] ss:$24 sps:$4 sm:$0xff]  }
 0x895   :  { %11879 = vmatprep.mubr.bf16.mxu1 %v21092_v8  ;;  %11726 = vmatprep.subr.bf16.mxu0 %v17479_v25  ;;  %v17495_v8 = vld [vmem:[#allocation12 + $0xc8] ss:$24 sps:$4 sm:$0xff]   ;;  %v17548_v25 = vld [vmem:[#allocation12 + $0x254] ss:$24 sps:$4 sm:$0xff]  }
 0x896   :  { %11849 = vmatprep.subr.bf16.mxu1 %v17482_v15  ;;  %v17543_v15 = vld [vmem:[#allocation12 + $0x248] ss:$24 sps:$4 sm:$0xff]  }
 0x897   :  { %11727 = vmatpush1.bf16.msra.mxu0 %v17477_v26  ;;  %v17546_v26 = vld [vmem:[#allocation12 + $0x250] ss:$24 sps:$4 sm:$0xff]  }
 0x898   :  { %11850 = vmatpush1.bf16.msra.mxu1 %v17480_v42  ;;  %11728 = vmatprep.subr.bf16.mxu0 %v17485_v43  ;;  %v17551_v42 = vld [vmem:[#allocation12 + $0x27c] ss:$24 sps:$4 sm:$0xff]  }
 0x899   :  { %11851 = vmatprep.subr.bf16.mxu1 %v17488_v3  ;;  %v17554_v43 = vld [vmem:[#allocation12 + $0x284] ss:$24 sps:$4 sm:$0xff]   ;;  %v17549_v3 = vld [vmem:[#allocation12 + $0x278] ss:$24 sps:$4 sm:$0xff]  }
 0x89b   :  { %11729 = vmatpush1.bf16.msra.mxu0 %v17483_v54  ;;  %v17552_v54 = vld [vmem:[#allocation12 + $0x280] ss:$24 sps:$4 sm:$0xff]  }
 0x89c   :  { %11852 = vmatpush1.bf16.msra.mxu1 %v17486_v56  ;;  %11730 = vmatprep.subr.bf16.mxu0 %v17491_v20  ;;  %v17557_v56 = vld [vmem:[#allocation12 + $0x2ac] ss:$24 sps:$4 sm:$0xff]  }
 0x89d   :  { %11853 = vmatprep.subr.bf16.mxu1 %v17494_v9  ;;  %v17560_v20 = vld [vmem:[#allocation12 + $0x2b4] ss:$24 sps:$4 sm:$0xff]   ;;  %v17555_v9 = vld [vmem:[#allocation12 + $0x2a8] ss:$24 sps:$4 sm:$0xff]  }
 0x89f   :  { %11731 = vmatpush1.bf16.msra.mxu0 %v17489_v62  ;;  %v17558_v62 = vld [vmem:[#allocation12 + $0x2b0] ss:$24 sps:$4 sm:$0xff]  }
 0x8a0   :  { %11854 = vmatpush1.bf16.msra.mxu1 %v17492_v2  ;;  %11732 = vmatprep.subr.bf16.mxu0 %v17497_v35  ;;  %v17563_v2 = vld [vmem:[#allocation12 + $0x2dc] ss:$24 sps:$4 sm:$0xff]  }
 0x8a1   :  { %11855 = vmatprep.subr.bf16.mxu1 %v17500_v5  ;;  %v17566_v35 = vld [vmem:[#allocation12 + $0x2e4] ss:$24 sps:$4 sm:$0xff]   ;;  %v17561_v5 = vld [vmem:[#allocation12 + $0x2d8] ss:$24 sps:$4 sm:$0xff]  }
 0x8a3   :  { %11733 = vmatpush1.bf16.msra.mxu0 %v17495_v8  ;;  %v17564_v8 = vld [vmem:[#allocation12 + $0x2e0] ss:$24 sps:$4 sm:$0xff]  }
 0x8a4   :  { %11856 = vmatpush1.bf16.msra.mxu1 %v17498_v39  ;;  %11734 = vmatprep.subr.bf16.mxu0 %v17503_v11  ;;  %v17569_v39 = vld [vmem:[#allocation12 + $0x30c] ss:$24 sps:$4 sm:$0xff]  }
 0x8a5   :  { %v21162_v33 = vpop.f32.mrb[60].mxu0  ;;  %v21164_v14 = vpop.f32.mrb[88].mxu1  ;;  %11857 = vmatprep.subr.bf16.mxu1 %v17506_v29  ;;  %v17572_v11 = vld [vmem:[#allocation12 + $0x314] ss:$24 sps:$4 sm:$0xff]   ;;  %v17567_v29 = vld [vmem:[#allocation12 + $0x308] ss:$24 sps:$4 sm:$0xff]  }
 0x8a6   :  { %v21166_v51 = vpop.f32.mrb[61].mxu0  ;;  %v21168_v27 = vpop.f32.mrb[89].mxu1 }
 0x8a7   :  { %11735 = vmatpush1.bf16.msra.mxu0 %v17501_v1  ;;  %v9564_v12 = vpop.f32.mrb[62].mxu0  ;;  %v9687_v10 = vpop.f32.mrb[90].mxu1  ;;  %v17570_v1 = vld [vmem:[#allocation12 + $0x310] ss:$24 sps:$4 sm:$0xff]  }
 0x8a8   :  { %11858 = vmatpush1.bf16.msra.mxu1 %v17504_v60  ;;  %v9565_v57 = vpop.f32.mrb[63].mxu0  ;;  %v9688_v58 = vpop.f32.mrb[91].mxu1  ;;  %11736 = vmatprep.subr.bf16.mxu0 %v17509_v7  ;;  %v17575_v60 = vld [vmem:[#allocation12 + $0x33c] ss:$24 sps:$4 sm:$0xff]   ;;  %v17576_v12 = vld [vmem:[#allocation12 + $0x340] ss:$24 sps:$4 sm:$0xff]  }
 0x8a9   :  { %11859 = vmatprep.subr.bf16.mxu1 %v17512_v52  ;;  %v17578_v7 = vld [vmem:[#allocation12 + $0x344] ss:$24 sps:$4 sm:$0xff]   ;;  %v17573_v52 = vld [vmem:[#allocation12 + $0x338] ss:$24 sps:$4 sm:$0xff]   ;;  %v17579_v57 = vld [vmem:[#allocation12 + $0x368] ss:$24 sps:$4 sm:$0xff]  }
 0x8aa   :  { %v17581_v10 = vld [vmem:[#allocation12 + $0x36c] ss:$24 sps:$4 sm:$0xff]   ;;  %v17582_v58 = vld [vmem:[#allocation12 + $0x370] ss:$24 sps:$4 sm:$0xff]  }
 0x8ab   :  { %11737 = vmatpush1.bf16.msra.mxu0 %v17507_v23  ;;  %v17584_v23 = vld [vmem:[#allocation12 + $0x374] ss:$24 sps:$4 sm:$0xff]  }
 0x8ac   :  { %11860 = vmatpush1.bf16.msra.mxu1 %v17510_v28  ;;  %11738 = vmatprep.subr.bf16.mxu0 %v17515_v55  ;;  %v17587_v28 = vld [vmem:[#allocation12 + $0x39c] ss:$24 sps:$4 sm:$0xff]   ;;  %v17585_v55 = vld [vmem:[#allocation12 + $0x398] ss:$24 sps:$4 sm:$0xff]  }
 0x8ad   :  { %11861 = vmatprep.subr.bf16.mxu1 %v17518_v37  ;;  %v17588_v37 = vld [vmem:[#allocation12 + $0x3a0] ss:$24 sps:$4 sm:$0xff]  }
 0x8af   :  { %11739 = vmatpush1.bf16.msra.mxu0 %v17513_v4  ;;  %v17593_v4 = vld [vmem:[#allocation12 + $0x3cc] ss:$24 sps:$4 sm:$0xff]  }
 0x8b0   :  { %11862 = vmatpush1.bf16.msra.mxu1 %v17516_v34  ;;  %11740 = vmatprep.subr.bf16.mxu0 %v17521_v44  ;;  %v17596_v34 = vld [vmem:[#allocation12 + $0x3d4] ss:$24 sps:$4 sm:$0xff]   ;;  %v17594_v44 = vld [vmem:[#allocation12 + $0x3d0] ss:$24 sps:$4 sm:$0xff]  }
 0x8b1   :  { %11863 = vmatprep.subr.bf16.mxu1 %v17524_v38  ;;  %v17599_v38 = vld [vmem:[#allocation12 + $0x3fc] ss:$24 sps:$4 sm:$0xff]  }
 0x8b3   :  { %11741 = vmatpush1.bf16.msra.mxu0 %v17519_v22  ;;  %v17602_v22 = vld [vmem:[#allocation12 + $0x404] ss:$24 sps:$4 sm:$0xff]  }
 0x8b4   :  { %11864 = vmatpush1.bf16.msra.mxu1 %v17522_v17  ;;  %11742 = vmatprep.subr.bf16.mxu0 %v17527_v0  ;;  %v17597_v17 = vld [vmem:[#allocation12 + $0x3f8] ss:$24 sps:$4 sm:$0xff]  }
 0x8b5   :  { %11865 = vmatprep.subr.bf16.mxu1 %v17530_v59  ;;  %v17600_v0 = vld [vmem:[#allocation12 + $0x400] ss:$24 sps:$4 sm:$0xff]   ;;  %v17605_v59 = vld [vmem:[#allocation12 + $0x42c] ss:$24 sps:$4 sm:$0xff]  }
 0x8b7   :  { %11743 = vmatpush1.bf16.msra.mxu0 %v17525_v30  ;;  %v17608_v30 = vld [vmem:[#allocation12 + $0x434] ss:$24 sps:$4 sm:$0xff]  }
 0x8b8   :  { %11866 = vmatpush1.bf16.msra.mxu1 %v17528_v45  ;;  %11744 = vmatprep.subr.bf16.mxu0 %v17533_v46  ;;  %v17603_v45 = vld [vmem:[#allocation12 + $0x428] ss:$24 sps:$4 sm:$0xff]  }
 0x8b9   :  { %11867 = vmatprep.subr.bf16.mxu1 %v17536_v41  ;;  %v17606_v46 = vld [vmem:[#allocation12 + $0x430] ss:$24 sps:$4 sm:$0xff]   ;;  %v17611_v41 = vld [vmem:[#allocation12 + $0x45c] ss:$24 sps:$4 sm:$0xff]  }
 0x8bb   :  { %11745 = vmatpush1.bf16.msra.mxu0 %v17531_v6  ;;  %v17614_v6 = vld [vmem:[#allocation12 + $0x464] ss:$24 sps:$4 sm:$0xff]  }
 0x8bc   :  { %11868 = vmatpush1.bf16.msra.mxu1 %v17534_v31  ;;  %11746 = vmatprep.subr.bf16.mxu0 %v17539_v18  ;;  %v17609_v31 = vld [vmem:[#allocation12 + $0x458] ss:$24 sps:$4 sm:$0xff]  }
 0x8bd   :  { %11869 = vmatprep.subr.bf16.mxu1 %v17542_v24  ;;  %v17612_v18 = vld [vmem:[#allocation12 + $0x460] ss:$24 sps:$4 sm:$0xff]   ;;  %v17617_v24 = vld [vmem:[#allocation12 + $0x48c] ss:$24 sps:$4 sm:$0xff]  }
 0x8bf   :  { %11747 = vmatpush1.bf16.msra.mxu0 %v17537_v40  ;;  %v17620_v40 = vld [vmem:[#allocation12 + $0x494] ss:$24 sps:$4 sm:$0xff]  }
 0x8c0   :  { %11870 = vmatpush1.bf16.msra.mxu1 %v17540_v16  ;;  %11748 = vmatprep.subr.bf16.mxu0 %v17545_v36  ;;  %v17615_v16 = vld [vmem:[#allocation12 + $0x488] ss:$24 sps:$4 sm:$0xff]  }
 0x8c1   :  { %11871 = vmatprep.subr.bf16.mxu1 %v17548_v25  ;;  %v17618_v36 = vld [vmem:[#allocation12 + $0x490] ss:$24 sps:$4 sm:$0xff]   ;;  %v17623_v25 = vld [vmem:[#allocation12 + $0x4bc] ss:$24 sps:$4 sm:$0xff]  }
 0x8c3   :  { %11749 = vmatpush1.bf16.msra.mxu0 %v17543_v15  ;;  %v17626_v15 = vld [vmem:[#allocation12 + $0x4c4] ss:$24 sps:$4 sm:$0xff]  }
 0x8c4   :  { %11872 = vmatpush1.bf16.msra.mxu1 %v17546_v26  ;;  %11750 = vmatprep.subr.bf16.mxu0 %v17551_v42  ;;  %v17621_v26 = vld [vmem:[#allocation12 + $0x4b8] ss:$24 sps:$4 sm:$0xff]  }
 0x8c5   :  { %11873 = vmatprep.subr.bf16.mxu1 %v17554_v43  ;;  %v17624_v42 = vld [vmem:[#allocation12 + $0x4c0] ss:$24 sps:$4 sm:$0xff]   ;;  %v17629_v43 = vld [vmem:[#allocation12 + $0x4ec] ss:$24 sps:$4 sm:$0xff]  }
 0x8c7   :  { %11751 = vmatpush1.bf16.msra.mxu0 %v17549_v3  ;;  %v17632_v3 = vld [vmem:[#allocation12 + $0x4f4] ss:$24 sps:$4 sm:$0xff]  }
 0x8c8   :  { %11874 = vmatpush1.bf16.msra.mxu1 %v17552_v54  ;;  %11752 = vmatprep.subr.bf16.mxu0 %v17557_v56  ;;  %v17627_v54 = vld [vmem:[#allocation12 + $0x4e8] ss:$24 sps:$4 sm:$0xff]  }
 0x8c9   :  { %11875 = vmatprep.subr.bf16.mxu1 %v17560_v20  ;;  %v17630_v56 = vld [vmem:[#allocation12 + $0x4f0] ss:$24 sps:$4 sm:$0xff]   ;;  %v17635_v20 = vld [vmem:[#allocation12 + $0x51c] ss:$24 sps:$4 sm:$0xff]  }
 0x8cb   :  { %11753 = vmatpush1.bf16.msra.mxu0 %v17555_v9  ;;  %v17638_v9 = vld [vmem:[#allocation12 + $0x524] ss:$24 sps:$4 sm:$0xff]  }
 0x8cc   :  { %11876 = vmatpush1.bf16.msra.mxu1 %v17558_v62  ;;  %11754 = vmatprep.subr.bf16.mxu0 %v17563_v2  ;;  %v17633_v62 = vld [vmem:[#allocation12 + $0x518] ss:$24 sps:$4 sm:$0xff]  }
 0x8cd   :  { %11877 = vmatprep.subr.bf16.mxu1 %v17566_v35  ;;  %v17636_v2 = vld [vmem:[#allocation12 + $0x520] ss:$24 sps:$4 sm:$0xff]   ;;  %v17641_v35 = vld [vmem:[#allocation12 + $0x54c] ss:$24 sps:$4 sm:$0xff]  }
 0x8cf   :  { %11755 = vmatpush1.bf16.msra.mxu0 %v17561_v5  ;;  %v17644_v5 = vld [vmem:[#allocation12 + $0x554] ss:$24 sps:$4 sm:$0xff]  }
 0x8d0   :  { %11878 = vmatpush1.bf16.msra.mxu1 %v17564_v8  ;;  %11765 = vmatprep.subr.bf16.mxu0 %v17569_v39  ;;  %v17639_v8 = vld [vmem:[#allocation12 + $0x548] ss:$24 sps:$4 sm:$0xff]  }
 0x8d1   :  { %11888 = vmatprep.subr.bf16.mxu1 %v17572_v11  ;;  %v17642_v39 = vld [vmem:[#allocation12 + $0x550] ss:$24 sps:$4 sm:$0xff]   ;;  %v17647_v11 = vld [vmem:[#allocation12 + $0x57c] ss:$24 sps:$4 sm:$0xff]  }
 0x8d2   :  { %11757 = vmatmul.mubr.bf16.vlgmr.msra.gmra.mrb[68].mxu0 %v21096_v48 }
 0x8d3   :  { %11880 = vmatmul.mubr.bf16.vlgmr.msra.gmra.mrb[96].mxu1 %v21096_v48  ;;  %11766 = vmatpush1.bf16.msra.mxu0 %v17567_v29  ;;  %v17590_v48 = vld [vmem:[#allocation12 + $0x3a4] ss:$24 sps:$4 sm:$0xff]  }
 0x8d4   :  { %11797 = vmatprep.mubr.bf16.mxu0 %v21116_v21  ;;  %11889 = vmatpush1.bf16.msra.mxu1 %v17570_v1  ;;  %v17650_v29 = vld [vmem:[#allocation12 + $0x584] ss:$24 sps:$4 sm:$0xff]   ;;  %v17645_v1 = vld [vmem:[#allocation12 + $0x578] ss:$24 sps:$4 sm:$0xff]  }
 0x8d5   :  { %11920 = vmatprep.mubr.bf16.mxu1 %v21116_v21  ;;  %11767 = vmatprep.subr.bf16.mxu0 %v17575_v60  ;;  %v17591_v21 = vld [vmem:[#allocation12 + $0x3c8] ss:$24 sps:$4 sm:$0xff]  }
 0x8d6   :  { %11890 = vmatprep.subr.bf16.mxu1 %v17578_v7  ;;  %v17648_v60 = vld [vmem:[#allocation12 + $0x580] ss:$24 sps:$4 sm:$0xff]   ;;  %v17653_v7 = vld [vmem:[#allocation12 + $0x5ac] ss:$24 sps:$4 sm:$0xff]  }
 0x8d7   :  { %11768 = vmatpush1.bf16.msra.mxu0 %v17573_v52  ;;  %v17656_v52 = vld [vmem:[#allocation12 + $0x5b4] ss:$24 sps:$4 sm:$0xff]  }
 0x8d8   :  { %11891 = vmatpush1.bf16.msra.mxu1 %v17576_v12  ;;  %11769 = vmatprep.subr.bf16.mxu0 %v17581_v10  ;;  %v17651_v12 = vld [vmem:[#allocation12 + $0x5a8] ss:$24 sps:$4 sm:$0xff]  }
 0x8d9   :  { %11892 = vmatprep.subr.bf16.mxu1 %v17584_v23  ;;  %v17654_v10 = vld [vmem:[#allocation12 + $0x5b0] ss:$24 sps:$4 sm:$0xff]   ;;  %v17659_v23 = vld [vmem:[#allocation12 + $0x5dc] ss:$24 sps:$4 sm:$0xff]  }
 0x8db   :  { %11770 = vmatpush1.bf16.msra.mxu0 %v17579_v57  ;;  %v17662_v57 = vld [vmem:[#allocation12 + $0x5e4] ss:$24 sps:$4 sm:$0xff]  }
 0x8dc   :  { %11893 = vmatpush1.bf16.msra.mxu1 %v17582_v58  ;;  %11771 = vmatprep.subr.bf16.mxu0 %v17587_v28  ;;  %v17657_v58 = vld [vmem:[#allocation12 + $0x5d8] ss:$24 sps:$4 sm:$0xff]  }
 0x8dd   :  { %11894 = vmatprep.subr.bf16.mxu1 %v17590_v48  ;;  %v17660_v28 = vld [vmem:[#allocation12 + $0x5e0] ss:$24 sps:$4 sm:$0xff]   ;;  %v17665_v48 = vld [vmem:[#allocation12 + $0x60c] ss:$24 sps:$4 sm:$0xff]  }
 0x8df   :  { %11772 = vmatpush1.bf16.msra.mxu0 %v17585_v55  ;;  %v17668_v55 = vld [vmem:[#allocation12 + $0x614] ss:$24 sps:$4 sm:$0xff]  }
 0x8e0   :  { %11895 = vmatpush1.bf16.msra.mxu1 %v17588_v37  ;;  %11773 = vmatprep.subr.bf16.mxu0 %v17593_v4  ;;  %v17663_v37 = vld [vmem:[#allocation12 + $0x608] ss:$24 sps:$4 sm:$0xff]  }
 0x8e1   :  { %11896 = vmatprep.subr.bf16.mxu1 %v17596_v34  ;;  %v17666_v4 = vld [vmem:[#allocation12 + $0x610] ss:$24 sps:$4 sm:$0xff]   ;;  %v17671_v34 = vld [vmem:[#allocation12 + $0x63c] ss:$24 sps:$4 sm:$0xff]  }
 0x8e3   :  { %11774 = vmatpush1.bf16.msra.mxu0 %v17591_v21  ;;  %v17674_v21 = vld [vmem:[#allocation12 + $0x644] ss:$24 sps:$4 sm:$0xff]  }
 0x8e4   :  { %11897 = vmatpush1.bf16.msra.mxu1 %v17594_v44  ;;  %11775 = vmatprep.subr.bf16.mxu0 %v17599_v38  ;;  %v17669_v44 = vld [vmem:[#allocation12 + $0x638] ss:$24 sps:$4 sm:$0xff]  }
 0x8e5   :  { %11898 = vmatprep.subr.bf16.mxu1 %v17602_v22  ;;  %v17672_v38 = vld [vmem:[#allocation12 + $0x640] ss:$24 sps:$4 sm:$0xff]   ;;  %v17677_v22 = vld [vmem:[#allocation12 + $0x66c] ss:$24 sps:$4 sm:$0xff]  }
 0x8e7   :  { %11776 = vmatpush1.bf16.msra.mxu0 %v17597_v17  ;;  %v17680_v17 = vld [vmem:[#allocation12 + $0x674] ss:$24 sps:$4 sm:$0xff]  }
 0x8e8   :  { %11899 = vmatpush1.bf16.msra.mxu1 %v17600_v0  ;;  %11777 = vmatprep.subr.bf16.mxu0 %v17605_v59  ;;  %v17675_v0 = vld [vmem:[#allocation12 + $0x668] ss:$24 sps:$4 sm:$0xff]  }
 0x8e9   :  { %11900 = vmatprep.subr.bf16.mxu1 %v17608_v30  ;;  %v17678_v59 = vld [vmem:[#allocation12 + $0x670] ss:$24 sps:$4 sm:$0xff]   ;;  %v17683_v30 = vld [vmem:[#allocation12 + $0x69c] ss:$24 sps:$4 sm:$0xff]  }
 0x8eb   :  { %11778 = vmatpush1.bf16.msra.mxu0 %v17603_v45  ;;  %v17681_v45 = vld [vmem:[#allocation12 + $0x698] ss:$24 sps:$4 sm:$0xff]  }
 0x8ec   :  { %11901 = vmatpush1.bf16.msra.mxu1 %v17606_v46  ;;  %11779 = vmatprep.subr.bf16.mxu0 %v17611_v41  ;;  %v17684_v46 = vld [vmem:[#allocation12 + $0x6a0] ss:$24 sps:$4 sm:$0xff]   ;;  %v17689_v41 = vld [vmem:[#allocation12 + $0x6cc] ss:$24 sps:$4 sm:$0xff]  }
 0x8ed   :  { %11902 = vmatprep.subr.bf16.mxu1 %v17614_v6  ;;  %v17692_v6 = vld [vmem:[#allocation12 + $0x6d4] ss:$24 sps:$4 sm:$0xff]  }
 0x8ef   :  { %11780 = vmatpush1.bf16.msra.mxu0 %v17609_v31  ;;  %v17690_v31 = vld [vmem:[#allocation12 + $0x6d0] ss:$24 sps:$4 sm:$0xff]  }
 0x8f0   :  { %11903 = vmatpush1.bf16.msra.mxu1 %v17612_v18  ;;  %11781 = vmatprep.subr.bf16.mxu0 %v17617_v24  ;;  %v17695_v18 = vld [vmem:[#allocation12 + $0x6fc] ss:$24 sps:$4 sm:$0xff]  }
 0x8f1   :  { %11904 = vmatprep.subr.bf16.mxu1 %v17620_v40  ;;  %v17698_v24 = vld [vmem:[#allocation12 + $0x704] ss:$24 sps:$4 sm:$0xff]   ;;  %v17693_v40 = vld [vmem:[#allocation12 + $0x6f8] ss:$24 sps:$4 sm:$0xff]  }
 0x8f3   :  { %11782 = vmatpush1.bf16.msra.mxu0 %v17615_v16  ;;  %v17696_v16 = vld [vmem:[#allocation12 + $0x700] ss:$24 sps:$4 sm:$0xff]  }
 0x8f4   :  { %11905 = vmatpush1.bf16.msra.mxu1 %v17618_v36  ;;  %11783 = vmatprep.subr.bf16.mxu0 %v17623_v25  ;;  %v17701_v36 = vld [vmem:[#allocation12 + $0x72c] ss:$24 sps:$4 sm:$0xff]  }
 0x8f5   :  { %11906 = vmatprep.subr.bf16.mxu1 %v17626_v15  ;;  %v17704_v25 = vld [vmem:[#allocation12 + $0x734] ss:$24 sps:$4 sm:$0xff]   ;;  %v17699_v15 = vld [vmem:[#allocation12 + $0x728] ss:$24 sps:$4 sm:$0xff]  }
 0x8f7   :  { %11784 = vmatpush1.bf16.msra.mxu0 %v17621_v26  ;;  %v17702_v26 = vld [vmem:[#allocation12 + $0x730] ss:$24 sps:$4 sm:$0xff]  }
 0x8f8   :  { %11907 = vmatpush1.bf16.msra.mxu1 %v17624_v42  ;;  %11785 = vmatprep.subr.bf16.mxu0 %v17629_v43  ;;  %v17707_v42 = vld [vmem:[#allocation12 + $0x75c] ss:$24 sps:$4 sm:$0xff]  }
 0x8f9   :  { %11908 = vmatprep.subr.bf16.mxu1 %v17632_v3  ;;  %v17710_v43 = vld [vmem:[#allocation12 + $0x764] ss:$24 sps:$4 sm:$0xff]   ;;  %v17705_v3 = vld [vmem:[#allocation12 + $0x758] ss:$24 sps:$4 sm:$0xff]  }
 0x8fb   :  { %11786 = vmatpush1.bf16.msra.mxu0 %v17627_v54  ;;  %v17708_v54 = vld [vmem:[#allocation12 + $0x760] ss:$24 sps:$4 sm:$0xff]  }
 0x8fc   :  { %11909 = vmatpush1.bf16.msra.mxu1 %v17630_v56  ;;  %11787 = vmatprep.subr.bf16.mxu0 %v17635_v20  ;;  %v17713_v56 = vld [vmem:[#allocation12 + $0x78c] ss:$24 sps:$4 sm:$0xff]  }
 0x8fd   :  { %11910 = vmatprep.subr.bf16.mxu1 %v17638_v9  ;;  %v17716_v20 = vld [vmem:[#allocation12 + $0x794] ss:$24 sps:$4 sm:$0xff]   ;;  %v17711_v9 = vld [vmem:[#allocation12 + $0x788] ss:$24 sps:$4 sm:$0xff]  }
 0x8ff   :  { %11788 = vmatpush1.bf16.msra.mxu0 %v17633_v62  ;;  %v17714_v62 = vld [vmem:[#allocation12 + $0x790] ss:$24 sps:$4 sm:$0xff]  }
 0x900   :  { %11911 = vmatpush1.bf16.msra.mxu1 %v17636_v2  ;;  %11789 = vmatprep.subr.bf16.mxu0 %v17641_v35  ;;  %v17719_v2 = vld [vmem:[#allocation12 + $0x7bc] ss:$24 sps:$4 sm:$0xff]  }
 0x901   :  { %11912 = vmatprep.subr.bf16.mxu1 %v17644_v5  ;;  %v17722_v35 = vld [vmem:[#allocation12 + $0x7c4] ss:$24 sps:$4 sm:$0xff]   ;;  %v17717_v5 = vld [vmem:[#allocation12 + $0x7b8] ss:$24 sps:$4 sm:$0xff]  }
 0x903   :  { %11790 = vmatpush1.bf16.msra.mxu0 %v17639_v8  ;;  %v17720_v8 = vld [vmem:[#allocation12 + $0x7c0] ss:$24 sps:$4 sm:$0xff]  }
 0x904   :  { %11913 = vmatpush1.bf16.msra.mxu1 %v17642_v39  ;;  %11791 = vmatprep.subr.bf16.mxu0 %v17647_v11  ;;  %v17725_v39 = vld [vmem:[#allocation12 + $0x7ec] ss:$24 sps:$4 sm:$0xff]  }
 0x905   :  { %11914 = vmatprep.subr.bf16.mxu1 %v17650_v29  ;;  %v17728_v11 = vld [vmem:[#allocation12 + $0x7f4] ss:$24 sps:$4 sm:$0xff]   ;;  %v17723_v29 = vld [vmem:[#allocation12 + $0x7e8] ss:$24 sps:$4 sm:$0xff]  }
 0x907   :  { %11792 = vmatpush1.bf16.msra.mxu0 %v17645_v1  ;;  %v17726_v1 = vld [vmem:[#allocation12 + $0x7f0] ss:$24 sps:$4 sm:$0xff]  }
 0x908   :  { %11915 = vmatpush1.bf16.msra.mxu1 %v17648_v60  ;;  %11793 = vmatprep.subr.bf16.mxu0 %v17653_v7  ;;  %v17731_v60 = vld [vmem:[#allocation12 + $0x81c] ss:$24 sps:$4 sm:$0xff]  }
 0x909   :  { %11916 = vmatprep.subr.bf16.mxu1 %v17656_v52  ;;  %v17734_v7 = vld [vmem:[#allocation12 + $0x824] ss:$24 sps:$4 sm:$0xff]   ;;  %v17729_v52 = vld [vmem:[#allocation12 + $0x818] ss:$24 sps:$4 sm:$0xff]  }
 0x90b   :  { %11794 = vmatpush1.bf16.msra.mxu0 %v17651_v12  ;;  %v21178_v12 = vld [vmem:[#allocation4] sm:$0xff] }
 0x90c   :  { %11917 = vmatpush1.bf16.msra.mxu1 %v17654_v10  ;;  %11795 = vmatprep.subr.bf16.mxu0 %v17659_v23  ;;  %v21641_v10 = vld [vmem:[#allocation23_spill] sm:$0xff] }
 0x90d   :  { %11918 = vmatprep.subr.bf16.mxu1 %v17662_v57  ;;  %v7983_v23 = vrot.slane %v21178_v12, %v21641_v10  ;;  %v17732_v57 = vld [vmem:[#allocation12 + $0x820] ss:$24 sps:$4 sm:$0xff]  }
 0x90f   :  { %11796 = vmatpush1.bf16.msra.mxu0 %v17657_v58  ;;  %v17737_v58 = vld [vmem:[#allocation12 + $0x84c] ss:$24 sps:$4 sm:$0xff]  }
 0x910   :  { %11919 = vmatpush1.bf16.msra.mxu1 %v17660_v28  ;;  %11806 = vmatprep.subr.bf16.mxu0 %v17665_v48  ;;  %v21182_v28 = vld [vmem:[#allocation4 + $0x8] sm:$0xff] }
 0x911   :  { %11929 = vmatprep.subr.bf16.mxu1 %v17668_v55  ;;  %v7987_v48 = vrot.slane %v21182_v28, %v21641_v10  ;;  %v17740_v55 = vld [vmem:[#allocation12 + $0x854] ss:$24 sps:$4 sm:$0xff]  }
 0x912   :  { %11798 = vmatmul.mubr.bf16.vlgmr.msra.gmra.mrb[68].mxu0 %v21120_v49 }
 0x913   :  { %11921 = vmatmul.mubr.bf16.vlgmr.msra.gmra.mrb[96].mxu1 %v21120_v49  ;;  %11807 = vmatpush1.bf16.msra.mxu0 %v17663_v37  ;;  %v17686_v49 = vld [vmem:[#allocation12 + $0x6a4] ss:$24 sps:$4 sm:$0xff]   ;;  %v17735_v37 = vld [vmem:[#allocation12 + $0x848] ss:$24 sps:$4 sm:$0xff]  }
 0x914   :  { %11838 = vmatprep.mubr.bf16.mxu0 %v21138_v63  ;;  %11930 = vmatpush1.bf16.msra.mxu1 %v17666_v4  ;;  %v15796_v4 = vadd.f32 %v21162_v33, %v7983_v23  ;;  %v17747_v33 = vld [vmem:[#allocation12 + $0x8a8] ss:$24 sps:$4 sm:$0xff]  }
 0x915   :  { %11961 = vmatprep.mubr.bf16.mxu1 %v21138_v63  ;;  %11808 = vmatprep.subr.bf16.mxu0 %v17671_v34  ;;  %v17687_v63 = vld [vmem:[#allocation12 + $0x6c8] ss:$24 sps:$4 sm:$0xff]  }
 0x916   :  { %11931 = vmatprep.subr.bf16.mxu1 %v17674_v21  ;;  %v17738_v34 = vld [vmem:[#allocation12 + $0x850] ss:$24 sps:$4 sm:$0xff]   ;;  %v17743_v21 = vld [vmem:[#allocation12 + $0x87c] ss:$24 sps:$4 sm:$0xff]  }
 0x917   :  { %11809 = vmatpush1.bf16.msra.mxu0 %v17669_v44  ;;  %v15797_v44 = vadd.f32 %v21166_v51, %v7987_v48  ;;  %v17758_v51 = vld [vmem:[#allocation12 + $0x8e4] ss:$24 sps:$4 sm:$0xff]  }
 0x918   :  { %11932 = vmatpush1.bf16.msra.mxu1 %v17672_v38  ;;  %11810 = vmatprep.subr.bf16.mxu0 %v17677_v22  ;;  %v17746_v38 = vld [vmem:[#allocation12 + $0x884] ss:$24 sps:$4 sm:$0xff]   ;;  %v17741_v22 = vld [vmem:[#allocation12 + $0x878] ss:$24 sps:$4 sm:$0xff]  }
 0x919   :  { %11933 = vmatprep.subr.bf16.mxu1 %v17680_v17  ;;  %v15112_v17 = vmul.f32 -1.442695, %v15796_v4  ;;  %v17797_v48 = vld [vmem:[#allocation13 + $0x124] ss:$24 sps:$4 sm:$0xff]  }
 0x91b   :  { %11811 = vmatpush1.bf16.msra.mxu0 %v17675_v0  ;;  %v17744_v0 = vld [vmem:[#allocation12 + $0x880] ss:$24 sps:$4 sm:$0xff]   ;;  %18311 = vpow2.f32 %v15112_v17 }
 0x91c   :  { %11934 = vmatpush1.bf16.msra.mxu1 %v17678_v59  ;;  %11812 = vmatprep.subr.bf16.mxu0 %v17683_v30  ;;  %v17749_v59 = vld [vmem:[#allocation12 + $0x8ac] ss:$24 sps:$4 sm:$0xff]   ;;  %v15113_v30 = vmul.f32 -1.442695, %v15797_v44 }
 0x91d   :  { %11935 = vmatprep.subr.bf16.mxu1 %v17686_v49  ;;  %v17752_v49 = vld [vmem:[#allocation12 + $0x8b4] ss:$24 sps:$4 sm:$0xff]  }
 0x91e   :  { %18313 = vpow2.f32 %v15113_v30  ;;  %v17798_v30 = vld [vmem:[#allocation13 + $0x128] ss:$24 sps:$4 sm:$0xff]  }
 0x91f   :  { %11813 = vmatpush1.bf16.msra.mxu0 %v17681_v45  ;;  %v17750_v45 = vld [vmem:[#allocation12 + $0x8b0] ss:$24 sps:$4 sm:$0xff]  }
 0x920   :  { %11936 = vmatpush1.bf16.msra.mxu1 %v17684_v46  ;;  %11814 = vmatprep.subr.bf16.mxu0 %v17689_v41  ;;  %v17755_v46 = vld [vmem:[#allocation12 + $0x8dc] ss:$24 sps:$4 sm:$0xff]   ;;  %v17753_v41 = vld [vmem:[#allocation12 + $0x8d8] ss:$24 sps:$4 sm:$0xff]  }
 0x921   :  { %11937 = vmatprep.subr.bf16.mxu1 %v17692_v6  ;;  %v17756_v6 = vld [vmem:[#allocation12 + $0x8e0] ss:$24 sps:$4 sm:$0xff]  }
 0x923   :  { %11815 = vmatpush1.bf16.msra.mxu0 %v17687_v63  ;;  %v17761_v63 = vld [vmem:[#allocation13 + $0x4] ss:$24 sps:$4 sm:$0xff]  }
 0x924   :  { %11938 = vmatpush1.bf16.msra.mxu1 %v17690_v31  ;;  %11816 = vmatprep.subr.bf16.mxu0 %v17695_v18  ;;  %v17764_v31 = vld [vmem:[#allocation13 + $0xc] ss:$24 sps:$4 sm:$0xff]   ;;  %v17759_v18 = vld [vmem:[#allocation13] ss:$24 sps:$4 sm:$0xff]  }
 0x925   :  { %11939 = vmatprep.subr.bf16.mxu1 %v17698_v24  ;;  %v17762_v24 = vld [vmem:[#allocation13 + $0x8] ss:$24 sps:$4 sm:$0xff]  }
 0x927   :  { %11817 = vmatpush1.bf16.msra.mxu0 %v17693_v40  ;;  %v17767_v40 = vld [vmem:[#allocation13 + $0x34] ss:$24 sps:$4 sm:$0xff]  }
 0x928   :  { %11940 = vmatpush1.bf16.msra.mxu1 %v17696_v16  ;;  %11818 = vmatprep.subr.bf16.mxu0 %v17701_v36  ;;  %v17770_v16 = vld [vmem:[#allocation13 + $0x3c] ss:$24 sps:$4 sm:$0xff]   ;;  %v18312_v36 = vpop.eup %18311 }
 0x929   :  { %11941 = vmatprep.subr.bf16.mxu1 %v17704_v25  ;;  %v18314_v25 = vpop.eup %18313 }
 0x92b   :  { %11819 = vmatpush1.bf16.msra.mxu0 %v17699_v15  ;;  %v17765_v15 = vld [vmem:[#allocation13 + $0x30] ss:$24 sps:$4 sm:$0xff]  }
 0x92c   :  { %11942 = vmatpush1.bf16.msra.mxu1 %v17702_v26  ;;  %11820 = vmatprep.subr.bf16.mxu0 %v17707_v42  ;;  %v17768_v26 = vld [vmem:[#allocation13 + $0x38] ss:$24 sps:$4 sm:$0xff]   ;;  %v17773_v42 = vld [vmem:[#allocation13 + $0x64] ss:$24 sps:$4 sm:$0xff]  }
 0x92d   :  { %11943 = vmatprep.subr.bf16.mxu1 %v17710_v43  ;;  %v9831_v43 = vadd.f32 1.0, %v18312_v36  ;;  %v17812_v36 = vld [vmem:[#allocation13 + $0x18c] ss:$24 sps:$4 sm:$0xff]  }
 0x92f   :  { %11821 = vmatpush1.bf16.msra.mxu0 %v17705_v3  ;;  %v17776_v3 = vld [vmem:[#allocation13 + $0x6c] ss:$24 sps:$4 sm:$0xff]   ;;  %18315 = vrcp.f32 %v9831_v43  ;;  %v17818_v43 = vld [vmem:[#allocation13 + $0x1bc] ss:$24 sps:$4 sm:$0xff]  }
 0x930   :  { %11944 = vmatpush1.bf16.msra.mxu1 %v17708_v54  ;;  %11822 = vmatprep.subr.bf16.mxu0 %v17713_v56  ;;  %v9832_v54 = vadd.f32 1.0, %v18314_v25  ;;  %v17771_v56 = vld [vmem:[#allocation13 + $0x60] ss:$24 sps:$4 sm:$0xff]  }
 0x931   :  { %11945 = vmatprep.subr.bf16.mxu1 %v17716_v20  ;;  %v17774_v20 = vld [vmem:[#allocation13 + $0x68] ss:$24 sps:$4 sm:$0xff]  }
 0x932   :  { %18317 = vrcp.f32 %v9832_v54  ;;  %v17821_v54 = vld [vmem:[#allocation13 + $0x1e4] ss:$24 sps:$4 sm:$0xff]  }
 0x933   :  { %11823 = vmatpush1.bf16.msra.mxu0 %v17711_v9  ;;  %v17779_v9 = vld [vmem:[#allocation13 + $0x94] ss:$24 sps:$4 sm:$0xff]  }
 0x934   :  { %11946 = vmatpush1.bf16.msra.mxu1 %v17714_v62  ;;  %11824 = vmatprep.subr.bf16.mxu0 %v17719_v2  ;;  %v17782_v62 = vld [vmem:[#allocation13 + $0x9c] ss:$24 sps:$4 sm:$0xff]   ;;  %v17780_v2 = vld [vmem:[#allocation13 + $0x98] ss:$24 sps:$4 sm:$0xff]  }
 0x935   :  { %11947 = vmatprep.subr.bf16.mxu1 %v17722_v35  ;;  %v17785_v35 = vld [vmem:[#allocation13 + $0xc4] ss:$24 sps:$4 sm:$0xff]  }
 0x937   :  { %11825 = vmatpush1.bf16.msra.mxu0 %v17717_v5  ;;  %v17788_v5 = vld [vmem:[#allocation13 + $0xcc] ss:$24 sps:$4 sm:$0xff]  }
 0x938   :  { %11948 = vmatpush1.bf16.msra.mxu1 %v17720_v8  ;;  %11826 = vmatprep.subr.bf16.mxu0 %v17725_v39  ;;  %v17783_v8 = vld [vmem:[#allocation13 + $0xc0] ss:$24 sps:$4 sm:$0xff]  }
 0x939   :  { %11949 = vmatprep.subr.bf16.mxu1 %v17728_v11  ;;  %v17786_v39 = vld [vmem:[#allocation13 + $0xc8] ss:$24 sps:$4 sm:$0xff]   ;;  %v17791_v11 = vld [vmem:[#allocation13 + $0xf4] ss:$24 sps:$4 sm:$0xff]  }
 0x93b   :  { %11827 = vmatpush1.bf16.msra.mxu0 %v17723_v29  ;;  %v17794_v29 = vld [vmem:[#allocation13 + $0xfc] ss:$24 sps:$4 sm:$0xff]  }
 0x93c   :  { %11950 = vmatpush1.bf16.msra.mxu1 %v17726_v1  ;;  %11828 = vmatprep.subr.bf16.mxu0 %v17731_v60  ;;  %v18316_v1 = vpop.eup %18315  ;;  %v21642_v60 = vld [vmem:[#allocation25_spill] sm:$0xff] }
 0x93d   :  { %11951 = vmatprep.subr.bf16.mxu1 %v17734_v7  ;;  %v10140_v7 = vrot.slane %v21178_v12, %v21642_v60  ;;  %v18318_v23 = vpop.eup %18317  ;;  %v11982_v44 = vsub.f32 1.0, %v18316_v1 }
 0x93e   :  { %v11983_v17 = vsub.f32 1.0, %v18318_v23 }
 0x93f   :  { %11829 = vmatpush1.bf16.msra.mxu0 %v17729_v52  ;;  %v17789_v52 = vld [vmem:[#allocation13 + $0xf0] ss:$24 sps:$4 sm:$0xff]  }
 0x940   :  { %11952 = vmatpush1.bf16.msra.mxu1 %v17732_v57  ;;  %11830 = vmatprep.subr.bf16.mxu0 %v17737_v58  ;;  %v10144_v57 = vrot.slane %v21182_v28, %v21642_v60  ;;  %v17792_v58 = vld [vmem:[#allocation13 + $0xf8] ss:$24 sps:$4 sm:$0xff]  }
 0x941   :  { %11953 = vmatprep.subr.bf16.mxu1 %v17740_v55 }
 0x943   :  { %11831 = vmatpush1.bf16.msra.mxu0 %v17735_v37  ;;  %v17800_v37 = vld [vmem:[#allocation13 + $0x12c] ss:$24 sps:$4 sm:$0xff]  }
 0x944   :  { %11954 = vmatpush1.bf16.msra.mxu1 %v17738_v34  ;;  %11832 = vmatprep.subr.bf16.mxu0 %v17743_v21 }
 0x945   :  { %11955 = vmatprep.subr.bf16.mxu1 %v17746_v38 }
 0x947   :  { %11833 = vmatpush1.bf16.msra.mxu0 %v17741_v22  ;;  %v17795_v22 = vld [vmem:[#allocation13 + $0x120] ss:$24 sps:$4 sm:$0xff]  }
 0x948   :  { %11956 = vmatpush1.bf16.msra.mxu1 %v17744_v0  ;;  %11834 = vmatprep.subr.bf16.mxu0 %v17749_v59 }
 0x949   :  { %11957 = vmatprep.subr.bf16.mxu1 %v17752_v49  ;;  %v17803_v49 = vld [vmem:[#allocation13 + $0x154] ss:$24 sps:$4 sm:$0xff]  }
 0x94b   :  { %11835 = vmatpush1.bf16.msra.mxu0 %v17747_v33 }
 0x94c   :  { %11958 = vmatpush1.bf16.msra.mxu1 %v17750_v45  ;;  %11836 = vmatprep.subr.bf16.mxu0 %v17755_v46  ;;  %v17806_v46 = vld [vmem:[#allocation13 + $0x15c] ss:$24 sps:$4 sm:$0xff]  }
 0x94d   :  { %11959 = vmatprep.subr.bf16.mxu1 %v17758_v51 }
 0x94f   :  { %11837 = vmatpush1.bf16.msra.mxu0 %v17753_v41 }
 0x950   :  { %11960 = vmatpush1.bf16.msra.mxu1 %v17756_v6  ;;  %13758 = vmatprep.subr.bf16.mxu0 %v17761_v63  ;;  %v11988_v6 = vmul.f32 %v11982_v44, %v21085_v61  ;;  %v17801_v63 = vld [vmem:[#allocation13 + $0x150] ss:$24 sps:$4 sm:$0xff]  }
 0x951   :  { %13881 = vmatprep.subr.bf16.mxu1 %v17764_v31  ;;  %v17810_v61 = vld [vmem:[#allocation13 + $0x188] ss:$24 sps:$4 sm:$0xff]   ;;  %v17852_v44 = vld [vmem:[#allocation13 + $0x2d8] ss:$24 sps:$4 sm:$0xff]  }
 0x952   :  { %11839 = vmatmul.mubr.bf16.vlgmr.msra.gmra.mrb[68].mxu0 %v21142_v50 }
 0x953   :  { %11962 = vmatmul.mubr.bf16.vlgmr.msra.gmra.mrb[96].mxu1 %v21142_v50  ;;  %13759 = vmatpush1.bf16.msra.mxu0 %v17759_v18  ;;  %v17777_v50 = vld [vmem:[#allocation13 + $0x90] ss:$24 sps:$4 sm:$0xff]  }
 0x954   :  { %13882 = vmatpush1.bf16.msra.mxu1 %v17762_v24  ;;  %13760 = vmatprep.subr.bf16.mxu0 %v17767_v40  ;;  %v17804_v18 = vld [vmem:[#allocation13 + $0x158] ss:$24 sps:$4 sm:$0xff]   ;;  %v11989_v24 = vmul.f32 %v11983_v17, %v21088_v32  ;;  %v17809_v40 = vld [vmem:[#allocation13 + $0x184] ss:$24 sps:$4 sm:$0xff]  }
 0x955   :  { %13883 = vmatprep.subr.bf16.mxu1 %v17770_v16  ;;  %v17813_v32 = vld [vmem:[#allocation13 + $0x1b0] ss:$24 sps:$4 sm:$0xff]  }
 0x957   :  { %13761 = vmatpush1.bf16.msra.mxu0 %v17765_v15  ;;  %v17807_v15 = vld [vmem:[#allocation13 + $0x180] ss:$24 sps:$4 sm:$0xff]  }
 0x958   :  { %13884 = vmatpush1.bf16.msra.mxu1 %v17768_v26  ;;  %13762 = vmatprep.subr.bf16.mxu0 %v17773_v42  ;;  %v17815_v42 = vld [vmem:[#allocation13 + $0x1b4] ss:$24 sps:$4 sm:$0xff]  }
 0x959   :  { %13885 = vmatprep.subr.bf16.mxu1 %v17776_v3  ;;  %v17816_v3 = vld [vmem:[#allocation13 + $0x1b8] ss:$24 sps:$4 sm:$0xff]  }
 0x95b   :  { %13763 = vmatpush1.bf16.msra.mxu0 %v17771_v56  ;;  %v17824_v56 = vld [vmem:[#allocation13 + $0x1ec] ss:$24 sps:$4 sm:$0xff]  }
 0x95c   :  { %13886 = vmatpush1.bf16.msra.mxu1 %v17774_v20  ;;  %13764 = vmatprep.subr.bf16.mxu0 %v17779_v9  ;;  %v17819_v20 = vld [vmem:[#allocation13 + $0x1e0] ss:$24 sps:$4 sm:$0xff]  }
 0x95d   :  { %13887 = vmatprep.subr.bf16.mxu1 %v17782_v62  ;;  %v17822_v9 = vld [vmem:[#allocation13 + $0x1e8] ss:$24 sps:$4 sm:$0xff]   ;;  %v17827_v62 = vld [vmem:[#allocation13 + $0x214] ss:$24 sps:$4 sm:$0xff]  }
 0x95f   :  { %13765 = vmatpush1.bf16.msra.mxu0 %v17777_v50  ;;  %v17830_v50 = vld [vmem:[#allocation13 + $0x21c] ss:$24 sps:$4 sm:$0xff]  }
 0x960   :  { %13888 = vmatpush1.bf16.msra.mxu1 %v17780_v2  ;;  %13766 = vmatprep.subr.bf16.mxu0 %v17785_v35  ;;  %v17825_v2 = vld [vmem:[#allocation13 + $0x210] ss:$24 sps:$4 sm:$0xff]  }
 0x961   :  { %13889 = vmatprep.subr.bf16.mxu1 %v17788_v5  ;;  %v17828_v35 = vld [vmem:[#allocation13 + $0x218] ss:$24 sps:$4 sm:$0xff]   ;;  %v17833_v5 = vld [vmem:[#allocation13 + $0x244] ss:$24 sps:$4 sm:$0xff]  }
 0x963   :  { %13767 = vmatpush1.bf16.msra.mxu0 %v17783_v8  ;;  %v17836_v8 = vld [vmem:[#allocation13 + $0x24c] ss:$24 sps:$4 sm:$0xff]  }
 0x964   :  { %13890 = vmatpush1.bf16.msra.mxu1 %v17786_v39  ;;  %13768 = vmatprep.subr.bf16.mxu0 %v17791_v11  ;;  %v17831_v39 = vld [vmem:[#allocation13 + $0x240] ss:$24 sps:$4 sm:$0xff]  }
 0x965   :  { %v21194_v55 = vpop.f32.mrb[64].mxu0  ;;  %13891 = vmatprep.subr.bf16.mxu1 %v17794_v29  ;;  %v17834_v11 = vld [vmem:[#allocation13 + $0x248] ss:$24 sps:$4 sm:$0xff]   ;;  %v17839_v29 = vld [vmem:[#allocation13 + $0x274] ss:$24 sps:$4 sm:$0xff]  }
 0x966   :  { %v11717_v4 = vpop.f32.mrb[92].mxu1  ;;  %v21196_v34 = vpop.f32.mrb[65].mxu0 }
 0x967   :  { %v15802_v21 = vadd.f32 %v11717_v4, %v10140_v7  ;;  %v11719_v38 = vpop.f32.mrb[93].mxu1  ;;  %v9810_v12 = vpop.f32.mrb[66].mxu0  ;;  %13769 = vmatpush1.bf16.msra.mxu0 %v17789_v52  ;;  %v17837_v7 = vld [vmem:[#allocation13 + $0x270] ss:$24 sps:$4 sm:$0xff]   ;;  %v17854_v4 = vld [vmem:[#allocation13 + $0x2dc] ss:$24 sps:$4 sm:$0xff]  }
 0x968   :  { %v15803_v0 = vadd.f32 %v11719_v38, %v10144_v57  ;;  %v11721_v59 = vpop.f32.mrb[94].mxu1  ;;  %13892 = vmatpush1.bf16.msra.mxu1 %v17792_v58  ;;  %v9811_v28 = vpop.f32.mrb[67].mxu0  ;;  %13770 = vmatprep.subr.bf16.mxu0 %v17797_v48  ;;  %v17840_v52 = vld [vmem:[#allocation13 + $0x278] ss:$24 sps:$4 sm:$0xff]   ;;  %v17848_v57 = vld [vmem:[#allocation13 + $0x2ac] ss:$24 sps:$4 sm:$0xff]  }
 0x969   :  { %v11970_v33 = vmax.f32 %v15802_v21, 0.0  ;;  %v11722_v45 = vpop.f32.mrb[95].mxu1  ;;  %13893 = vmatprep.subr.bf16.mxu1 %v17800_v37  ;;  %v17843_v58 = vld [vmem:[#allocation13 + $0x2a0] ss:$24 sps:$4 sm:$0xff]   ;;  %v17851_v37 = vld [vmem:[#allocation13 + $0x2d4] ss:$24 sps:$4 sm:$0xff]  }
 0x96a   :  { %v11971_v51 = vmax.f32 %v15803_v0, 0.0  ;;  %v17846_v48 = vld [vmem:[#allocation13 + $0x2a8] ss:$24 sps:$4 sm:$0xff]   ;;  %v17857_v38 = vld [vmem:[#allocation13 + $0x304] ss:$24 sps:$4 sm:$0xff]  }
 0x96b   :  { %v11976_v41 = vmul.f32 %v18316_v1, %v11970_v33  ;;  %13771 = vmatpush1.bf16.msra.mxu0 %v17795_v22  ;;  %v17842_v1 = vld [vmem:[#allocation13 + $0x27c] ss:$24 sps:$4 sm:$0xff]   ;;  %v17849_v21 = vld [vmem:[#allocation13 + $0x2d0] ss:$24 sps:$4 sm:$0xff]   ;;  %v17860_v12 = vld [vmem:[#allocation13 + $0x30c] ss:$24 sps:$4 sm:$0xff]  }
 0x96c   :  { %v11977_v31 = vmul.f32 %v18318_v23, %v11971_v51  ;;  %13894 = vmatpush1.bf16.msra.mxu1 %v17798_v30  ;;  %13772 = vmatprep.subr.bf16.mxu0 %v17803_v49  ;;  %v17845_v23 = vld [vmem:[#allocation13 + $0x2a4] ss:$24 sps:$4 sm:$0xff]   ;;  %v17855_v22 = vld [vmem:[#allocation13 + $0x300] ss:$24 sps:$4 sm:$0xff]   ;;  %v17863_v59 = vld [vmem:[#allocation13 + $0x334] ss:$24 sps:$4 sm:$0xff]  }
 0x96d   :  { %v21200_v16 = vadd.f32 %v11988_v6, %v11976_v41  ;;  %13895 = vmatprep.subr.bf16.mxu1 %v17806_v46  ;;  %v17858_v0 = vld [vmem:[#allocation13 + $0x308] ss:$24 sps:$4 sm:$0xff]   ;;  %v17866_v28 = vld [vmem:[#allocation13 + $0x33c] ss:$24 sps:$4 sm:$0xff]   ;;  %v17864_v49 = vld [vmem:[#allocation13 + $0x338] ss:$24 sps:$4 sm:$0xff]  }
 0x96e   :  { %v11995_v25 = vadd.f32 %v11989_v24, %v11977_v31  ;;  %v17861_v30 = vld [vmem:[#allocation13 + $0x330] ss:$24 sps:$4 sm:$0xff]   ;;  %v17869_v33 = vld [vmem:[#allocation13 + $0x364] ss:$24 sps:$4 sm:$0xff]   ;;  %v17867_v46 = vld [vmem:[#allocation13 + $0x360] ss:$24 sps:$4 sm:$0xff]  }
 0x96f   :  { %13773 = vmatpush1.bf16.msra.mxu0 %v17801_v63  ;;  %v21208_v17 = vpack.c.bf16 %v21200_v16, %v21200_v16  ;;  %v17872_v45 = vld [vmem:[#allocation13 + $0x36c] ss:$24 sps:$4 sm:$0xff]   ;;  %v17870_v51 = vld [vmem:[#allocation13 + $0x368] ss:$24 sps:$4 sm:$0xff]   ;;  %v17878_v6 = vld [vmem:[#allocation13 + $0x39c] ss:$24 sps:$4 sm:$0xff]  }
 0x970   :  { %13896 = vmatpush1.bf16.msra.mxu1 %v17804_v18  ;;  %v21202_v26 = vpack.c.bf16 %v11995_v25, %v11995_v25  ;;  %13774 = vmatprep.subr.bf16.mxu0 %v17809_v40  ;;  %v17875_v41 = vld [vmem:[#allocation13 + $0x394] ss:$24 sps:$4 sm:$0xff]   ;;  %v17873_v63 = vld [vmem:[#allocation13 + $0x390] ss:$24 sps:$4 sm:$0xff]   ;;  %v17881_v18 = vld [vmem:[#allocation13 + $0x3c4] ss:$24 sps:$4 sm:$0xff]  }
 0x971   :  { %13897 = vmatprep.subr.bf16.mxu1 %v17812_v36  ;;  %v17876_v31 = vld [vmem:[#allocation13 + $0x398] ss:$24 sps:$4 sm:$0xff]   ;;  %v17884_v24 = vld [vmem:[#allocation13 + $0x3cc] ss:$24 sps:$4 sm:$0xff]   ;;  %v17882_v16 = vld [vmem:[#allocation13 + $0x3c8] ss:$24 sps:$4 sm:$0xff]  }
 0x972   :  { %13790 = vmatprep.mubr.bf16.mxu0 %v21202_v26  ;;  %13913 = vmatprep.mubr.bf16.mxu1 %v21202_v26  ;;  %v17879_v40 = vld [vmem:[#allocation13 + $0x3c0] ss:$24 sps:$4 sm:$0xff]   ;;  %v17887_v36 = vld [vmem:[#allocation13 + $0x3f4] ss:$24 sps:$4 sm:$0xff]  }
 0x973   :  { %13775 = vmatpush1.bf16.msra.mxu0 %v17807_v15  ;;  %v17890_v25 = vld [vmem:[#allocation13 + $0x3fc] ss:$24 sps:$4 sm:$0xff]   ;;  %v17885_v15 = vld [vmem:[#allocation13 + $0x3f0] ss:$24 sps:$4 sm:$0xff]  }
 0x974   :  { %13898 = vmatpush1.bf16.msra.mxu1 %v17810_v61  ;;  %13776 = vmatprep.subr.bf16.mxu0 %v17815_v42  ;;  %v17888_v61 = vld [vmem:[#allocation13 + $0x3f8] ss:$24 sps:$4 sm:$0xff]   ;;  %v17893_v42 = vld [vmem:[#allocation13 + $0x424] ss:$24 sps:$4 sm:$0xff]  }
 0x975   :  { %13899 = vmatprep.subr.bf16.mxu1 %v17818_v43  ;;  %v17896_v43 = vld [vmem:[#allocation13 + $0x42c] ss:$24 sps:$4 sm:$0xff]  }
 0x977   :  { %13777 = vmatpush1.bf16.msra.mxu0 %v17813_v32  ;;  %v17891_v32 = vld [vmem:[#allocation13 + $0x420] ss:$24 sps:$4 sm:$0xff]  }
 0x978   :  { %13900 = vmatpush1.bf16.msra.mxu1 %v17816_v3  ;;  %13778 = vmatprep.subr.bf16.mxu0 %v17821_v54  ;;  %v17894_v3 = vld [vmem:[#allocation13 + $0x428] ss:$24 sps:$4 sm:$0xff]   ;;  %v17899_v54 = vld [vmem:[#allocation13 + $0x454] ss:$24 sps:$4 sm:$0xff]  }
 0x979   :  { %13901 = vmatprep.subr.bf16.mxu1 %v17824_v56  ;;  %v17902_v56 = vld [vmem:[#allocation13 + $0x45c] ss:$24 sps:$4 sm:$0xff]  }
 0x97b   :  { %13779 = vmatpush1.bf16.msra.mxu0 %v17819_v20  ;;  %v17897_v20 = vld [vmem:[#allocation13 + $0x450] ss:$24 sps:$4 sm:$0xff]  }
 0x97c   :  { %13902 = vmatpush1.bf16.msra.mxu1 %v17822_v9  ;;  %13780 = vmatprep.subr.bf16.mxu0 %v17827_v62  ;;  %v17900_v9 = vld [vmem:[#allocation13 + $0x458] ss:$24 sps:$4 sm:$0xff]   ;;  %v17905_v62 = vld [vmem:[#allocation13 + $0x484] ss:$24 sps:$4 sm:$0xff]  }
 0x97d   :  { %13903 = vmatprep.subr.bf16.mxu1 %v17830_v50  ;;  %v17908_v50 = vld [vmem:[#allocation13 + $0x48c] ss:$24 sps:$4 sm:$0xff]  }
 0x97f   :  { %13781 = vmatpush1.bf16.msra.mxu0 %v17825_v2  ;;  %v17903_v2 = vld [vmem:[#allocation13 + $0x480] ss:$24 sps:$4 sm:$0xff]  }
 0x980   :  { %13904 = vmatpush1.bf16.msra.mxu1 %v17828_v35  ;;  %13782 = vmatprep.subr.bf16.mxu0 %v17833_v5  ;;  %v17906_v35 = vld [vmem:[#allocation13 + $0x488] ss:$24 sps:$4 sm:$0xff]   ;;  %v17911_v5 = vld [vmem:[#allocation13 + $0x4b4] ss:$24 sps:$4 sm:$0xff]  }
 0x981   :  { %13905 = vmatprep.subr.bf16.mxu1 %v17836_v8  ;;  %v17914_v8 = vld [vmem:[#allocation13 + $0x4bc] ss:$24 sps:$4 sm:$0xff]  }
 0x983   :  { %13783 = vmatpush1.bf16.msra.mxu0 %v17831_v39  ;;  %v17909_v39 = vld [vmem:[#allocation13 + $0x4b0] ss:$24 sps:$4 sm:$0xff]  }
 0x984   :  { %13906 = vmatpush1.bf16.msra.mxu1 %v17834_v11  ;;  %13784 = vmatprep.subr.bf16.mxu0 %v17839_v29  ;;  %v17912_v11 = vld [vmem:[#allocation13 + $0x4b8] ss:$24 sps:$4 sm:$0xff]   ;;  %v17917_v29 = vld [vmem:[#allocation13 + $0x4e4] ss:$24 sps:$4 sm:$0xff]  }
 0x985   :  { %13907 = vmatprep.subr.bf16.mxu1 %v17842_v1  ;;  %v17920_v1 = vld [vmem:[#allocation13 + $0x4ec] ss:$24 sps:$4 sm:$0xff]  }
 0x987   :  { %13785 = vmatpush1.bf16.msra.mxu0 %v17837_v7  ;;  %v17915_v7 = vld [vmem:[#allocation13 + $0x4e0] ss:$24 sps:$4 sm:$0xff]  }
 0x988   :  { %13908 = vmatpush1.bf16.msra.mxu1 %v17840_v52  ;;  %13786 = vmatprep.subr.bf16.mxu0 %v17845_v23  ;;  %v17918_v52 = vld [vmem:[#allocation13 + $0x4e8] ss:$24 sps:$4 sm:$0xff]   ;;  %v17923_v23 = vld [vmem:[#allocation13 + $0x514] ss:$24 sps:$4 sm:$0xff]  }
 0x989   :  { %13909 = vmatprep.subr.bf16.mxu1 %v17848_v57  ;;  %v17926_v57 = vld [vmem:[#allocation13 + $0x51c] ss:$24 sps:$4 sm:$0xff]  }
 0x98b   :  { %13787 = vmatpush1.bf16.msra.mxu0 %v17843_v58  ;;  %v17921_v58 = vld [vmem:[#allocation13 + $0x510] ss:$24 sps:$4 sm:$0xff]  }
 0x98c   :  { %13910 = vmatpush1.bf16.msra.mxu1 %v17846_v48  ;;  %13788 = vmatprep.subr.bf16.mxu0 %v17851_v37  ;;  %v17924_v48 = vld [vmem:[#allocation13 + $0x518] ss:$24 sps:$4 sm:$0xff]   ;;  %v17929_v37 = vld [vmem:[#allocation13 + $0x544] ss:$24 sps:$4 sm:$0xff]  }
 0x98d   :  { %13911 = vmatprep.subr.bf16.mxu1 %v17854_v4  ;;  %v17932_v4 = vld [vmem:[#allocation13 + $0x54c] ss:$24 sps:$4 sm:$0xff]  }
 0x98f   :  { %13789 = vmatpush1.bf16.msra.mxu0 %v17849_v21  ;;  %v17927_v21 = vld [vmem:[#allocation13 + $0x540] ss:$24 sps:$4 sm:$0xff]  }
 0x990   :  { %13912 = vmatpush1.bf16.msra.mxu1 %v17852_v44  ;;  %13799 = vmatprep.subr.bf16.mxu0 %v17857_v38  ;;  %v17930_v44 = vld [vmem:[#allocation13 + $0x548] ss:$24 sps:$4 sm:$0xff]   ;;  %v17935_v38 = vld [vmem:[#allocation13 + $0x574] ss:$24 sps:$4 sm:$0xff]  }
 0x991   :  { %13922 = vmatprep.subr.bf16.mxu1 %v17860_v12  ;;  %v17938_v12 = vld [vmem:[#allocation13 + $0x57c] ss:$24 sps:$4 sm:$0xff]  }
 0x992   :  { %13791 = vmatmul.mubr.bf16.vlgmr.msra.gmra.mrb[72].mxu0 %v21208_v17 }
 0x993   :  { %13914 = vmatmul.mubr.bf16.vlgmr.msra.gmra.mrb[100].mxu1 %v21208_v17  ;;  %13800 = vmatpush1.bf16.msra.mxu0 %v17855_v22  ;;  %v17933_v22 = vld [vmem:[#allocation13 + $0x570] ss:$24 sps:$4 sm:$0xff]  }
 0x994   :  { %13923 = vmatpush1.bf16.msra.mxu1 %v17858_v0  ;;  %13801 = vmatprep.subr.bf16.mxu0 %v17863_v59  ;;  %v17936_v0 = vld [vmem:[#allocation13 + $0x578] ss:$24 sps:$4 sm:$0xff]   ;;  %v17941_v59 = vld [vmem:[#allocation13 + $0x5a4] ss:$24 sps:$4 sm:$0xff]  }
 0x995   :  { %13924 = vmatprep.subr.bf16.mxu1 %v17866_v28  ;;  %v17944_v28 = vld [vmem:[#allocation13 + $0x5ac] ss:$24 sps:$4 sm:$0xff]  }
 0x997   :  { %13802 = vmatpush1.bf16.msra.mxu0 %v17861_v30  ;;  %v17939_v30 = vld [vmem:[#allocation13 + $0x5a0] ss:$24 sps:$4 sm:$0xff]  }
 0x998   :  { %13925 = vmatpush1.bf16.msra.mxu1 %v17864_v49  ;;  %13803 = vmatprep.subr.bf16.mxu0 %v17869_v33  ;;  %v17942_v49 = vld [vmem:[#allocation13 + $0x5a8] ss:$24 sps:$4 sm:$0xff]   ;;  %v17947_v33 = vld [vmem:[#allocation13 + $0x5d4] ss:$24 sps:$4 sm:$0xff]  }
 0x999   :  { %13926 = vmatprep.subr.bf16.mxu1 %v17872_v45  ;;  %v17950_v45 = vld [vmem:[#allocation13 + $0x5dc] ss:$24 sps:$4 sm:$0xff]  }
 0x99b   :  { %13804 = vmatpush1.bf16.msra.mxu0 %v17867_v46  ;;  %v17945_v46 = vld [vmem:[#allocation13 + $0x5d0] ss:$24 sps:$4 sm:$0xff]  }
 0x99c   :  { %13927 = vmatpush1.bf16.msra.mxu1 %v17870_v51  ;;  %13805 = vmatprep.subr.bf16.mxu0 %v17875_v41  ;;  %v17948_v51 = vld [vmem:[#allocation13 + $0x5d8] ss:$24 sps:$4 sm:$0xff]   ;;  %v17953_v41 = vld [vmem:[#allocation13 + $0x604] ss:$24 sps:$4 sm:$0xff]  }
 0x99d   :  { %13928 = vmatprep.subr.bf16.mxu1 %v17878_v6  ;;  %v17956_v6 = vld [vmem:[#allocation13 + $0x60c] ss:$24 sps:$4 sm:$0xff]  }
 0x99f   :  { %13806 = vmatpush1.bf16.msra.mxu0 %v17873_v63  ;;  %v21212_v63 = vld [vmem:[#allocation4 + $0x10] sm:$0xff] }
 0x9a0   :  { %13929 = vmatpush1.bf16.msra.mxu1 %v17876_v31  ;;  %13807 = vmatprep.subr.bf16.mxu0 %v17881_v18  ;;  %v7991_v31 = vrot.slane %v21212_v63, %v21641_v10  ;;  %v21216_v18 = vld [vmem:[#allocation4 + $0x18] sm:$0xff] }
 0x9a1   :  { %13930 = vmatprep.subr.bf16.mxu1 %v17884_v24  ;;  %v7995_v24 = vrot.slane %v21216_v18, %v21641_v10 }
 0x9a3   :  { %13808 = vmatpush1.bf16.msra.mxu0 %v17879_v40  ;;  %v21220_v40 = vld [vmem:[#allocation4 + $0x20] sm:$0xff] }
 0x9a4   :  { %13931 = vmatpush1.bf16.msra.mxu1 %v17882_v16  ;;  %13809 = vmatprep.subr.bf16.mxu0 %v17887_v36  ;;  %v7999_v16 = vrot.slane %v21220_v40, %v21641_v10  ;;  %v21224_v36 = vld [vmem:[#allocation4 + $0x28] sm:$0xff] }
 0x9a5   :  { %13932 = vmatprep.subr.bf16.mxu1 %v17890_v25  ;;  %v8003_v25 = vrot.slane %v21224_v36, %v21641_v10 }
 0x9a7   :  { %13810 = vmatpush1.bf16.msra.mxu0 %v17885_v15  ;;  %v15798_v15 = vadd.f32 %v21164_v14, %v7991_v31 }
 0x9a8   :  { %13933 = vmatpush1.bf16.msra.mxu1 %v17888_v61  ;;  %13811 = vmatprep.subr.bf16.mxu0 %v17893_v42  ;;  %v15799_v61 = vadd.f32 %v21168_v27, %v7995_v24  ;;  %v15800_v42 = vadd.f32 %v21194_v55, %v7999_v16 }
 0x9a9   :  { %13934 = vmatprep.subr.bf16.mxu1 %v17896_v43  ;;  %v15801_v43 = vadd.f32 %v21196_v34, %v8003_v25  ;;  %v10148_v34 = vrot.slane %v21212_v63, %v21642_v60 }
 0x9ab   :  { %13812 = vmatpush1.bf16.msra.mxu0 %v17891_v32  ;;  %v15114_v32 = vmul.f32 -1.442695, %v15798_v15 }
 0x9ac   :  { %13935 = vmatpush1.bf16.msra.mxu1 %v17894_v3  ;;  %13813 = vmatprep.subr.bf16.mxu0 %v17899_v54  ;;  %v15115_v3 = vmul.f32 -1.442695, %v15799_v61  ;;  %v15116_v54 = vmul.f32 -1.442695, %v15800_v42 }
 0x9ad   :  { %13936 = vmatprep.subr.bf16.mxu1 %v17902_v56  ;;  %v15117_v56 = vmul.f32 -1.442695, %v15801_v43  ;;  %18319 = vpow2.f32 %v15114_v32  ;;  %v17951_v43 = vld [vmem:[#allocation13 + $0x600] ss:$24 sps:$4 sm:$0xff]  }
 0x9ae   :  { %18321 = vpow2.f32 %v15115_v3  ;;  %v17954_v32 = vld [vmem:[#allocation13 + $0x608] ss:$24 sps:$4 sm:$0xff]  }
 0x9af   :  { %13814 = vmatpush1.bf16.msra.mxu0 %v17897_v20  ;;  %18323 = vpow2.f32 %v15116_v54  ;;  %v17957_v3 = vld [vmem:[#allocation13 + $0x630] ss:$24 sps:$4 sm:$0xff]  }
 0x9b0   :  { %13937 = vmatpush1.bf16.msra.mxu1 %v17900_v9  ;;  %13815 = vmatprep.subr.bf16.mxu0 %v17905_v62  ;;  %18325 = vpow2.f32 %v15117_v56  ;;  %v17960_v54 = vld [vmem:[#allocation13 + $0x638] ss:$24 sps:$4 sm:$0xff]   ;;  %v17965_v56 = vld [vmem:[#allocation13 + $0x664] ss:$24 sps:$4 sm:$0xff]  }
 0x9b1   :  { %13938 = vmatprep.subr.bf16.mxu1 %v17908_v50 }
 0x9b3   :  { %13816 = vmatpush1.bf16.msra.mxu0 %v17903_v2 }
 0x9b4   :  { %13939 = vmatpush1.bf16.msra.mxu1 %v17906_v35  ;;  %13817 = vmatprep.subr.bf16.mxu0 %v17911_v5  ;;  %v10156_v5 = vrot.slane %v21220_v40, %v21642_v60 }
 0x9b5   :  { %13940 = vmatprep.subr.bf16.mxu1 %v17914_v8  ;;  %v10152_v8 = vrot.slane %v21216_v18, %v21642_v60 }
 0x9b7   :  { %13818 = vmatpush1.bf16.msra.mxu0 %v17909_v39  ;;  %v18320_v20 = vpop.eup %18319 }
 0x9b8   :  { %13941 = vmatpush1.bf16.msra.mxu1 %v17912_v11  ;;  %13819 = vmatprep.subr.bf16.mxu0 %v17917_v29  ;;  %v18322_v9 = vpop.eup %18321  ;;  %v9833_v50 = vadd.f32 1.0, %v18320_v20  ;;  %v10160_v11 = vrot.slane %v21224_v36, %v21642_v60  ;;  %v17968_v20 = vld [vmem:[#allocation13 + $0x66c] ss:$24 sps:$4 sm:$0xff]  }
 0x9b9   :  { %13942 = vmatprep.subr.bf16.mxu1 %v17920_v1  ;;  %v18324_v62 = vpop.eup %18323  ;;  %v9834_v14 = vadd.f32 1.0, %v18322_v9  ;;  %v17963_v9 = vld [vmem:[#allocation13 + $0x660] ss:$24 sps:$4 sm:$0xff]  }
 0x9ba   :  { %v18326_v10 = vpop.eup %18325  ;;  %v9835_v2 = vadd.f32 1.0, %v18324_v62  ;;  %18327 = vrcp.f32 %v9833_v50  ;;  %v17966_v62 = vld [vmem:[#allocation13 + $0x668] ss:$24 sps:$4 sm:$0xff]   ;;  %v17974_v50 = vld [vmem:[#allocation13 + $0x69c] ss:$24 sps:$4 sm:$0xff]  }
 0x9bb   :  { %13820 = vmatpush1.bf16.msra.mxu0 %v17915_v7  ;;  %v9836_v27 = vadd.f32 1.0, %v18326_v10  ;;  %18329 = vrcp.f32 %v9834_v14  ;;  %v17971_v10 = vld [vmem:[#allocation13 + $0x694] ss:$24 sps:$4 sm:$0xff]   ;;  %v17969_v14 = vld [vmem:[#allocation13 + $0x690] ss:$24 sps:$4 sm:$0xff]  }
 0x9bc   :  { %13943 = vmatpush1.bf16.msra.mxu1 %v17918_v52  ;;  %13821 = vmatprep.subr.bf16.mxu0 %v17923_v23  ;;  %18331 = vrcp.f32 %v9835_v2  ;;  %v17972_v2 = vld [vmem:[#allocation13 + $0x698] ss:$24 sps:$4 sm:$0xff]  }
 0x9bd   :  { %13944 = vmatprep.subr.bf16.mxu1 %v17926_v57  ;;  %18333 = vrcp.f32 %v9836_v27  ;;  %v17977_v27 = vld [vmem:[#allocation13 + $0x6c4] ss:$24 sps:$4 sm:$0xff]  }
 0x9bf   :  { %13822 = vmatpush1.bf16.msra.mxu0 %v17921_v58 }
 0x9c0   :  { %13945 = vmatpush1.bf16.msra.mxu1 %v17924_v48  ;;  %13823 = vmatprep.subr.bf16.mxu0 %v17929_v37 }
 0x9c1   :  { %13946 = vmatprep.subr.bf16.mxu1 %v17932_v4 }
 0x9c3   :  { %13824 = vmatpush1.bf16.msra.mxu0 %v17927_v21 }
 0x9c4   :  { %13947 = vmatpush1.bf16.msra.mxu1 %v17930_v44  ;;  %13825 = vmatprep.subr.bf16.mxu0 %v17935_v38  ;;  %v18328_v55 = vpop.eup %18327 }
 0x9c5   :  { %13948 = vmatprep.subr.bf16.mxu1 %v17938_v12  ;;  %v18330_v35 = vpop.eup %18329  ;;  %v11984_v52 = vsub.f32 1.0, %v18328_v55 }
 0x9c6   :  { %v18332_v39 = vpop.eup %18331  ;;  %v11985_v44 = vsub.f32 1.0, %v18330_v35 }
 0x9c7   :  { %13826 = vmatpush1.bf16.msra.mxu0 %v17933_v22  ;;  %v18334_v29 = vpop.eup %18333  ;;  %v11986_v48 = vsub.f32 1.0, %v18332_v39 }
 0x9c8   :  { %13949 = vmatpush1.bf16.msra.mxu1 %v17936_v0  ;;  %13827 = vmatprep.subr.bf16.mxu0 %v17941_v59  ;;  %v11987_v59 = vsub.f32 1.0, %v18334_v29 }
 0x9c9   :  { %13950 = vmatprep.subr.bf16.mxu1 %v17944_v28 }
 0x9ca   :  { %v11993_v16 = vmul.f32 %v11987_v59, %v21134_v13  ;;  %v18013_v59 = vld [vmem:[#allocation13 + $0x7e4] ss:$24 sps:$4 sm:$0xff]  }
 0x9cb   :  { %13828 = vmatpush1.bf16.msra.mxu0 %v17939_v30 }
 0x9cc   :  { %13951 = vmatpush1.bf16.msra.mxu1 %v17942_v49  ;;  %13829 = vmatprep.subr.bf16.mxu0 %v17947_v33  ;;  %v11990_v33 = vmul.f32 %v11984_v52, %v21109_v47  ;;  %v17990_v52 = vld [vmem:[#allocation13 + $0x728] ss:$24 sps:$4 sm:$0xff]  }
 0x9cd   :  { %13952 = vmatprep.subr.bf16.mxu1 %v17950_v45 }
 0x9cf   :  { %13830 = vmatpush1.bf16.msra.mxu0 %v17945_v46 }
 0x9d0   :  { %13953 = vmatpush1.bf16.msra.mxu1 %v17948_v51  ;;  %13840 = vmatprep.subr.bf16.mxu0 %v17953_v41  ;;  %v11992_v51 = vmul.f32 %v11986_v48, %v21131_v19  ;;  %v17959_v19 = vld [vmem:[#allocation13 + $0x634] ss:$24 sps:$4 sm:$0xff]   ;;  %v17996_v48 = vld [vmem:[#allocation13 + $0x758] ss:$24 sps:$4 sm:$0xff]  }
 0x9d1   :  { %13963 = vmatprep.subr.bf16.mxu1 %v17956_v6  ;;  %v11991_v6 = vmul.f32 %v11985_v44, %v21112_v53  ;;  %v17962_v53 = vld [vmem:[#allocation13 + $0x63c] ss:$24 sps:$4 sm:$0xff]   ;;  %v18002_v44 = vld [vmem:[#allocation13 + $0x788] ss:$24 sps:$4 sm:$0xff]  }
 0xa25   :  { %v11840_v1 = vpop.f32.mrb[68].mxu0 }
 0xa26   :  { %v15804_v7 = vadd.f32 %v11840_v1, %v10148_v34  ;;  %v11963_v23 = vpop.f32.mrb[96].mxu1  ;;  %v11842_v57 = vpop.f32.mrb[69].mxu0  ;;  %v17975_v34 = vld [vmem:[#allocation13 + $0x6c0] ss:$24 sps:$4 sm:$0xff]   ;;  %v17992_v1 = vld [vmem:[#allocation13 + $0x72c] ss:$24 sps:$4 sm:$0xff]  }
 0xa27   :  { %v15806_v58 = vadd.f32 %v11963_v23, %v10156_v5  ;;  %v15805_v37 = vadd.f32 %v11842_v57, %v10152_v8  ;;  %v11965_v4 = vpop.f32.mrb[97].mxu1  ;;  %v11844_v21 = vpop.f32.mrb[70].mxu0  ;;  %v17983_v5 = vld [vmem:[#allocation13 + $0x6f4] ss:$24 sps:$4 sm:$0xff]  }
 0xa28   :  { %v11972_v38 = vmax.f32 %v15804_v7, 0.0  ;;  %v15807_v12 = vadd.f32 %v11965_v4, %v10160_v11  ;;  %v11967_v22 = vpop.f32.mrb[98].mxu1  ;;  %v11845_v0 = vpop.f32.mrb[71].mxu0  ;;  %v17986_v8 = vld [vmem:[#allocation13 + $0x6fc] ss:$24 sps:$4 sm:$0xff]  }
 0xa29   :  { %v11974_v28 = vmax.f32 %v15806_v58, 0.0  ;;  %v11973_v30 = vmax.f32 %v15805_v37, 0.0  ;;  %v11968_v60 = vpop.f32.mrb[99].mxu1  ;;  %v17984_v11 = vld [vmem:[#allocation13 + $0x6f8] ss:$24 sps:$4 sm:$0xff]  }
 0xa2a   :  { %v11978_v49 = vmul.f32 %v18328_v55, %v11972_v38  ;;  %v11975_v45 = vmax.f32 %v15807_v12, 0.0  ;;  %v17980_v55 = vld [vmem:[#allocation13 + $0x6cc] ss:$24 sps:$4 sm:$0xff]   ;;  %v17987_v7 = vld [vmem:[#allocation13 + $0x720] ss:$24 sps:$4 sm:$0xff]  }
 0xa2b   :  { %v11980_v46 = vmul.f32 %v18332_v39, %v11974_v28  ;;  %v11979_v41 = vmul.f32 %v18330_v35, %v11973_v30  ;;  %v17978_v35 = vld [vmem:[#allocation13 + $0x6c8] ss:$24 sps:$4 sm:$0xff]   ;;  %v17995_v23 = vld [vmem:[#allocation13 + $0x754] ss:$24 sps:$4 sm:$0xff]   ;;  %v18001_v37 = vld [vmem:[#allocation13 + $0x784] ss:$24 sps:$4 sm:$0xff]  }
 0xa2c   :  { %v11996_v31 = vadd.f32 %v11990_v33, %v11978_v49  ;;  %v11981_v24 = vmul.f32 %v18334_v29, %v11975_v45  ;;  %v17981_v39 = vld [vmem:[#allocation13 + $0x6f0] ss:$24 sps:$4 sm:$0xff]   ;;  %v17989_v29 = vld [vmem:[#allocation13 + $0x724] ss:$24 sps:$4 sm:$0xff]   ;;  %v17999_v21 = vld [vmem:[#allocation13 + $0x780] ss:$24 sps:$4 sm:$0xff]  }
 0xa2d   :  { %v21244_v25 = vadd.f32 %v11992_v51, %v11980_v46  ;;  %v11997_v15 = vadd.f32 %v11991_v6, %v11979_v41  ;;  %v17998_v57 = vld [vmem:[#allocation13 + $0x75c] ss:$24 sps:$4 sm:$0xff]   ;;  %v17993_v58 = vld [vmem:[#allocation13 + $0x750] ss:$24 sps:$4 sm:$0xff]   ;;  %v18004_v4 = vld [vmem:[#allocation13 + $0x78c] ss:$24 sps:$4 sm:$0xff]  }
 0xa2e   :  { %v11999_v61 = vadd.f32 %v11993_v16, %v11981_v24  ;;  %v21248_v47 = vpack.c.bf16 %v11996_v31, %v11996_v31  ;;  %v18007_v38 = vld [vmem:[#allocation13 + $0x7b4] ss:$24 sps:$4 sm:$0xff]   ;;  %v18005_v22 = vld [vmem:[#allocation13 + $0x7b0] ss:$24 sps:$4 sm:$0xff]   ;;  %v18011_v30 = vld [vmem:[#allocation13 + $0x7e0] ss:$24 sps:$4 sm:$0xff]  }
 0xa2f   :  { %v21246_v42 = vpack.c.bf16 %v11997_v15, %v11997_v15  ;;  %v18010_v12 = vld [vmem:[#allocation13 + $0x7bc] ss:$24 sps:$4 sm:$0xff]   ;;  %v18008_v0 = vld [vmem:[#allocation13 + $0x7b8] ss:$24 sps:$4 sm:$0xff]   ;;  %v18016_v28 = vld [vmem:[#allocation13 + $0x7ec] ss:$24 sps:$4 sm:$0xff]  }
 0xa30   :  { %v21254_v13 = vpack.c.bf16 %v11999_v61, %v11999_v61  ;;  %v18014_v60 = vld [vmem:[#allocation13 + $0x7e8] ss:$24 sps:$4 sm:$0xff]   ;;  %v18019_v49 = vld [vmem:[#allocation13 + $0x814] ss:$24 sps:$4 sm:$0xff]   ;;  %v18020_v46 = vld [vmem:[#allocation13 + $0x818] ss:$24 sps:$4 sm:$0xff]  }
 0xa31   :  { %13831 = vmatprep.mubr.bf16.mxu0 %v21246_v42  ;;  %13954 = vmatprep.mubr.bf16.mxu1 %v21246_v42  ;;  %v18022_v33 = vld [vmem:[#allocation13 + $0x81c] ss:$24 sps:$4 sm:$0xff]   ;;  %v18017_v45 = vld [vmem:[#allocation13 + $0x810] ss:$24 sps:$4 sm:$0xff]   ;;  %v18028_v41 = vld [vmem:[#allocation13 + $0x84c] ss:$24 sps:$4 sm:$0xff]  }
 0xa32   :  { %13832 = vmatmul.mubr.bf16.vlgmr.msra.gmra.mrb[72].mxu0 %v21248_v47  ;;  %13955 = vmatmul.mubr.bf16.vlgmr.msra.gmra.mrb[100].mxu1 %v21248_v47  ;;  %v18025_v51 = vld [vmem:[#allocation13 + $0x844] ss:$24 sps:$4 sm:$0xff]   ;;  %v18023_v6 = vld [vmem:[#allocation13 + $0x840] ss:$24 sps:$4 sm:$0xff]   ;;  %v18031_v24 = vld [vmem:[#allocation13 + $0x874] ss:$24 sps:$4 sm:$0xff]  }
 0xa33   :  { %13841 = vmatpush1.bf16.msra.mxu0 %v17951_v43  ;;  %13964 = vmatpush1.bf16.msra.mxu1 %v17954_v32  ;;  %v18026_v31 = vld [vmem:[#allocation13 + $0x848] ss:$24 sps:$4 sm:$0xff]   ;;  %v18034_v16 = vld [vmem:[#allocation13 + $0x87c] ss:$24 sps:$4 sm:$0xff]   ;;  %v18032_v61 = vld [vmem:[#allocation13 + $0x878] ss:$24 sps:$4 sm:$0xff]  }
 0xa34   :  { %13872 = vmatprep.mubr.bf16.mxu0 %v21254_v13  ;;  %13995 = vmatprep.mubr.bf16.mxu1 %v21254_v13  ;;  %v18029_v15 = vld [vmem:[#allocation13 + $0x870] ss:$24 sps:$4 sm:$0xff]   ;;  %v18037_v43 = vld [vmem:[#allocation13 + $0x8a4] ss:$24 sps:$4 sm:$0xff]  }
 0xa35   :  { %13842 = vmatprep.subr.bf16.mxu0 %v17959_v19  ;;  %13965 = vmatprep.subr.bf16.mxu1 %v17962_v53  ;;  %v18040_v32 = vld [vmem:[#allocation13 + $0x8ac] ss:$24 sps:$4 sm:$0xff]   ;;  %v18035_v19 = vld [vmem:[#allocation13 + $0x8a0] ss:$24 sps:$4 sm:$0xff]  }
 0xa36   :  { %v18038_v53 = vld [vmem:[#allocation13 + $0x8a8] ss:$24 sps:$4 sm:$0xff]  }
 0xa37   :  { %13843 = vmatpush1.bf16.msra.mxu0 %v17957_v3  ;;  %13966 = vmatpush1.bf16.msra.mxu1 %v17960_v54  ;;  %v18043_v3 = vld [vmem:[#allocation13 + $0x8d4] ss:$24 sps:$4 sm:$0xff]  }
 0xa38   :  { %13844 = vmatprep.subr.bf16.mxu0 %v17965_v56  ;;  %13967 = vmatprep.subr.bf16.mxu1 %v17968_v20  ;;  %v18046_v54 = vld [vmem:[#allocation13 + $0x8dc] ss:$24 sps:$4 sm:$0xff]   ;;  %v18041_v56 = vld [vmem:[#allocation13 + $0x8d0] ss:$24 sps:$4 sm:$0xff]  }
 0xa39   :  { %v18044_v20 = vld [vmem:[#allocation13 + $0x8d8] ss:$24 sps:$4 sm:$0xff]  }
 0xa3b   :  { %13845 = vmatpush1.bf16.msra.mxu0 %v17963_v9  ;;  %13968 = vmatpush1.bf16.msra.mxu1 %v17966_v62  ;;  %v18049_v9 = vld [vmem:[#allocation13 + $0x14] ss:$24 sps:$4 sm:$0xff]   ;;  %v18047_v62 = vld [vmem:[#allocation13 + $0x10] ss:$24 sps:$4 sm:$0xff]  }
 0xa3c   :  { %13846 = vmatprep.subr.bf16.mxu0 %v17971_v10  ;;  %13969 = vmatprep.subr.bf16.mxu1 %v17974_v50  ;;  %v21260_v10 = vpack.c.bf16 %v21244_v25, %v21244_v25  ;;  %v18052_v50 = vld [vmem:[#allocation13 + $0x44] ss:$24 sps:$4 sm:$0xff]   ;;  %v18061_v25 = vld [vmem:[#allocation13 + $0xd4] ss:$24 sps:$4 sm:$0xff]  }
 0xa3f   :  { %13847 = vmatpush1.bf16.msra.mxu0 %v17969_v14  ;;  %13970 = vmatpush1.bf16.msra.mxu1 %v17972_v2  ;;  %v18050_v14 = vld [vmem:[#allocation13 + $0x40] ss:$24 sps:$4 sm:$0xff]   ;;  %v18055_v2 = vld [vmem:[#allocation13 + $0x74] ss:$24 sps:$4 sm:$0xff]  }
 0xa40   :  { %13848 = vmatprep.subr.bf16.mxu0 %v17977_v27  ;;  %13971 = vmatprep.subr.bf16.mxu1 %v17980_v55  ;;  %v18053_v27 = vld [vmem:[#allocation13 + $0x70] ss:$24 sps:$4 sm:$0xff]   ;;  %v18058_v55 = vld [vmem:[#allocation13 + $0xa4] ss:$24 sps:$4 sm:$0xff]  }
 0xa43   :  { %13849 = vmatpush1.bf16.msra.mxu0 %v17975_v34  ;;  %13972 = vmatpush1.bf16.msra.mxu1 %v17978_v35  ;;  %v18056_v34 = vld [vmem:[#allocation13 + $0xa0] ss:$24 sps:$4 sm:$0xff]   ;;  %v18059_v35 = vld [vmem:[#allocation13 + $0xd0] ss:$24 sps:$4 sm:$0xff]  }
 0xa44   :  { %13850 = vmatprep.subr.bf16.mxu0 %v17983_v5  ;;  %13973 = vmatprep.subr.bf16.mxu1 %v17986_v8  ;;  %v18064_v5 = vld [vmem:[#allocation13 + $0x104] ss:$24 sps:$4 sm:$0xff]   ;;  %v18062_v8 = vld [vmem:[#allocation13 + $0x100] ss:$24 sps:$4 sm:$0xff]  }
 0xa47   :  { %13851 = vmatpush1.bf16.msra.mxu0 %v17981_v39  ;;  %13974 = vmatpush1.bf16.msra.mxu1 %v17984_v11  ;;  %v18067_v39 = vld [vmem:[#allocation13 + $0x134] ss:$24 sps:$4 sm:$0xff]   ;;  %v18070_v11 = vld [vmem:[#allocation13 + $0x164] ss:$24 sps:$4 sm:$0xff]  }
 0xa48   :  { %13852 = vmatprep.subr.bf16.mxu0 %v17989_v29  ;;  %13975 = vmatprep.subr.bf16.mxu1 %v17992_v1  ;;  %v18068_v29 = vld [vmem:[#allocation13 + $0x160] ss:$24 sps:$4 sm:$0xff]   ;;  %v18073_v1 = vld [vmem:[#allocation13 + $0x194] ss:$24 sps:$4 sm:$0xff]  }
 0xa4b   :  { %13853 = vmatpush1.bf16.msra.mxu0 %v17987_v7  ;;  %13976 = vmatpush1.bf16.msra.mxu1 %v17990_v52  ;;  %v18071_v7 = vld [vmem:[#allocation13 + $0x190] ss:$24 sps:$4 sm:$0xff]   ;;  %v18076_v52 = vld [vmem:[#allocation13 + $0x1c4] ss:$24 sps:$4 sm:$0xff]  }
 0xa4c   :  { %13854 = vmatprep.subr.bf16.mxu0 %v17995_v23  ;;  %13977 = vmatprep.subr.bf16.mxu1 %v17998_v57  ;;  %v18074_v23 = vld [vmem:[#allocation13 + $0x1c0] ss:$24 sps:$4 sm:$0xff]   ;;  %v18079_v57 = vld [vmem:[#allocation13 + $0x1f4] ss:$24 sps:$4 sm:$0xff]  }
 0xa4f   :  { %13855 = vmatpush1.bf16.msra.mxu0 %v17993_v58  ;;  %13978 = vmatpush1.bf16.msra.mxu1 %v17996_v48  ;;  %v18077_v58 = vld [vmem:[#allocation13 + $0x1f0] ss:$24 sps:$4 sm:$0xff]   ;;  %v18082_v48 = vld [vmem:[#allocation13 + $0x224] ss:$24 sps:$4 sm:$0xff]  }
 0xa50   :  { %13856 = vmatprep.subr.bf16.mxu0 %v18001_v37  ;;  %13979 = vmatprep.subr.bf16.mxu1 %v18004_v4  ;;  %v18080_v37 = vld [vmem:[#allocation13 + $0x220] ss:$24 sps:$4 sm:$0xff]   ;;  %v18085_v4 = vld [vmem:[#allocation13 + $0x254] ss:$24 sps:$4 sm:$0xff]  }
 0xa53   :  { %13857 = vmatpush1.bf16.msra.mxu0 %v17999_v21  ;;  %13980 = vmatpush1.bf16.msra.mxu1 %v18002_v44  ;;  %v18083_v21 = vld [vmem:[#allocation13 + $0x250] ss:$24 sps:$4 sm:$0xff]   ;;  %v18088_v44 = vld [vmem:[#allocation13 + $0x284] ss:$24 sps:$4 sm:$0xff]  }
 0xa54   :  { %13858 = vmatprep.subr.bf16.mxu0 %v18007_v38  ;;  %13981 = vmatprep.subr.bf16.mxu1 %v18010_v12  ;;  %v18086_v38 = vld [vmem:[#allocation13 + $0x280] ss:$24 sps:$4 sm:$0xff]   ;;  %v18091_v12 = vld [vmem:[#allocation13 + $0x2b4] ss:$24 sps:$4 sm:$0xff]  }
 0xa57   :  { %13859 = vmatpush1.bf16.msra.mxu0 %v18005_v22  ;;  %13982 = vmatpush1.bf16.msra.mxu1 %v18008_v0  ;;  %v18089_v22 = vld [vmem:[#allocation13 + $0x2b0] ss:$24 sps:$4 sm:$0xff]   ;;  %v18094_v0 = vld [vmem:[#allocation13 + $0x2e4] ss:$24 sps:$4 sm:$0xff]  }
 0xa58   :  { %13860 = vmatprep.subr.bf16.mxu0 %v18013_v59  ;;  %13983 = vmatprep.subr.bf16.mxu1 %v18016_v28  ;;  %v18092_v59 = vld [vmem:[#allocation13 + $0x2e0] ss:$24 sps:$4 sm:$0xff]   ;;  %v18097_v28 = vld [vmem:[#allocation13 + $0x314] ss:$24 sps:$4 sm:$0xff]  }
 0xa5b   :  { %13861 = vmatpush1.bf16.msra.mxu0 %v18011_v30  ;;  %13984 = vmatpush1.bf16.msra.mxu1 %v18014_v60  ;;  %v18095_v30 = vld [vmem:[#allocation13 + $0x310] ss:$24 sps:$4 sm:$0xff]   ;;  %v18100_v60 = vld [vmem:[#allocation13 + $0x344] ss:$24 sps:$4 sm:$0xff]  }
 0xa5c   :  { %13862 = vmatprep.subr.bf16.mxu0 %v18019_v49  ;;  %13985 = vmatprep.subr.bf16.mxu1 %v18022_v33  ;;  %v18098_v49 = vld [vmem:[#allocation13 + $0x340] ss:$24 sps:$4 sm:$0xff]   ;;  %v18103_v33 = vld [vmem:[#allocation13 + $0x374] ss:$24 sps:$4 sm:$0xff]  }
 0xa5f   :  { %13863 = vmatpush1.bf16.msra.mxu0 %v18017_v45  ;;  %13986 = vmatpush1.bf16.msra.mxu1 %v18020_v46  ;;  %v18101_v45 = vld [vmem:[#allocation13 + $0x370] ss:$24 sps:$4 sm:$0xff]   ;;  %v18106_v46 = vld [vmem:[#allocation13 + $0x3a4] ss:$24 sps:$4 sm:$0xff]  }
 0xa60   :  { %13864 = vmatprep.subr.bf16.mxu0 %v18025_v51  ;;  %13987 = vmatprep.subr.bf16.mxu1 %v18028_v41  ;;  %v18104_v51 = vld [vmem:[#allocation13 + $0x3a0] ss:$24 sps:$4 sm:$0xff]   ;;  %v18109_v41 = vld [vmem:[#allocation13 + $0x3d4] ss:$24 sps:$4 sm:$0xff]  }
 0xa63   :  { %13865 = vmatpush1.bf16.msra.mxu0 %v18023_v6  ;;  %13988 = vmatpush1.bf16.msra.mxu1 %v18026_v31  ;;  %v18107_v6 = vld [vmem:[#allocation13 + $0x3d0] ss:$24 sps:$4 sm:$0xff]   ;;  %v18112_v31 = vld [vmem:[#allocation13 + $0x404] ss:$24 sps:$4 sm:$0xff]  }
 0xa64   :  { %13866 = vmatprep.subr.bf16.mxu0 %v18031_v24  ;;  %13989 = vmatprep.subr.bf16.mxu1 %v18034_v16  ;;  %v18115_v24 = vld [vmem:[#allocation13 + $0x434] ss:$24 sps:$4 sm:$0xff]   ;;  %v18118_v16 = vld [vmem:[#allocation13 + $0x464] ss:$24 sps:$4 sm:$0xff]  }
 0xa67   :  { %13867 = vmatpush1.bf16.msra.mxu0 %v18029_v15  ;;  %13990 = vmatpush1.bf16.msra.mxu1 %v18032_v61  ;;  %v18116_v15 = vld [vmem:[#allocation13 + $0x460] ss:$24 sps:$4 sm:$0xff]   ;;  %v18121_v61 = vld [vmem:[#allocation13 + $0x494] ss:$24 sps:$4 sm:$0xff]  }
 0xa68   :  { %13868 = vmatprep.subr.bf16.mxu0 %v18037_v43  ;;  %13991 = vmatprep.subr.bf16.mxu1 %v18040_v32  ;;  %v18119_v43 = vld [vmem:[#allocation13 + $0x490] ss:$24 sps:$4 sm:$0xff]   ;;  %v18124_v32 = vld [vmem:[#allocation13 + $0x4c4] ss:$24 sps:$4 sm:$0xff]  }
 0xa6b   :  { %13869 = vmatpush1.bf16.msra.mxu0 %v18035_v19  ;;  %13992 = vmatpush1.bf16.msra.mxu1 %v18038_v53  ;;  %v18122_v19 = vld [vmem:[#allocation13 + $0x4c0] ss:$24 sps:$4 sm:$0xff]   ;;  %v18127_v53 = vld [vmem:[#allocation13 + $0x4f4] ss:$24 sps:$4 sm:$0xff]  }
 0xa6c   :  { %13870 = vmatprep.subr.bf16.mxu0 %v18043_v3  ;;  %13993 = vmatprep.subr.bf16.mxu1 %v18046_v54  ;;  %v18125_v3 = vld [vmem:[#allocation13 + $0x4f0] ss:$24 sps:$4 sm:$0xff]   ;;  %v18130_v54 = vld [vmem:[#allocation13 + $0x524] ss:$24 sps:$4 sm:$0xff]  }
 0xa6f   :  { %13871 = vmatpush1.bf16.msra.mxu0 %v18041_v56  ;;  %13994 = vmatpush1.bf16.msra.mxu1 %v18044_v20  ;;  %v18128_v56 = vld [vmem:[#allocation13 + $0x520] ss:$24 sps:$4 sm:$0xff]   ;;  %v18133_v20 = vld [vmem:[#allocation13 + $0x554] ss:$24 sps:$4 sm:$0xff]  }
 0xa70   :  { %14004 = vmatprep.subr.bf16.mxu0 %v18049_v9  ;;  %v18131_v9 = vld [vmem:[#allocation13 + $0x550] ss:$24 sps:$4 sm:$0xff]  }
 0xa72   :  { %13873 = vmatmul.mubr.bf16.vlgmr.msra.gmra.mrb[72].mxu0 %v21260_v10  ;;  %13996 = vmatmul.mubr.bf16.vlgmr.msra.gmra.mrb[100].mxu1 %v21260_v10 }
 0xa73   :  { %14005 = vmatpush1.bf16.msra.mxu0 %v18047_v62  ;;  %14036 = vmatprep.mubr.bf16.mxu0 %v21202_v26  ;;  %v18065_v26 = vld [vmem:[#allocation13 + $0x130] ss:$24 sps:$4 sm:$0xff]   ;;  %v18136_v62 = vld [vmem:[#allocation13 + $0x584] ss:$24 sps:$4 sm:$0xff]  }
 0xa74   :  { %14006 = vmatprep.subr.bf16.mxu0 %v18052_v50  ;;  %v18134_v50 = vld [vmem:[#allocation13 + $0x580] ss:$24 sps:$4 sm:$0xff]  }
 0xa77   :  { %14007 = vmatpush1.bf16.msra.mxu0 %v18050_v14  ;;  %v18139_v14 = vld [vmem:[#allocation13 + $0x5b4] ss:$24 sps:$4 sm:$0xff]  }
 0xa78   :  { %14008 = vmatprep.subr.bf16.mxu0 %v18055_v2  ;;  %v18137_v2 = vld [vmem:[#allocation13 + $0x5b0] ss:$24 sps:$4 sm:$0xff]  }
 0xa7b   :  { %14009 = vmatpush1.bf16.msra.mxu0 %v18053_v27  ;;  %v18142_v27 = vld [vmem:[#allocation13 + $0x5e4] ss:$24 sps:$4 sm:$0xff]  }
 0xa7c   :  { %14010 = vmatprep.subr.bf16.mxu0 %v18058_v55  ;;  %v18140_v55 = vld [vmem:[#allocation13 + $0x5e0] ss:$24 sps:$4 sm:$0xff]  }
 0xa7f   :  { %14011 = vmatpush1.bf16.msra.mxu0 %v18056_v34  ;;  %v18145_v34 = vld [vmem:[#allocation13 + $0x614] ss:$24 sps:$4 sm:$0xff]  }
 0xa80   :  { %14012 = vmatprep.subr.bf16.mxu0 %v18061_v25  ;;  %v18143_v25 = vld [vmem:[#allocation13 + $0x610] ss:$24 sps:$4 sm:$0xff]  }
 0xa83   :  { %14013 = vmatpush1.bf16.msra.mxu0 %v18059_v35  ;;  %v18148_v35 = vld [vmem:[#allocation13 + $0x644] ss:$24 sps:$4 sm:$0xff]  }
 0xa84   :  { %14014 = vmatprep.subr.bf16.mxu0 %v18064_v5  ;;  %v18146_v5 = vld [vmem:[#allocation13 + $0x640] ss:$24 sps:$4 sm:$0xff]  }
 0xa87   :  { %14015 = vmatpush1.bf16.msra.mxu0 %v18062_v8  ;;  %v18151_v8 = vld [vmem:[#allocation13 + $0x674] ss:$24 sps:$4 sm:$0xff]  }
 0xa88   :  { %14016 = vmatprep.subr.bf16.mxu0 %v18067_v39  ;;  %v18149_v39 = vld [vmem:[#allocation13 + $0x670] ss:$24 sps:$4 sm:$0xff]  }
 0xa8b   :  { %14017 = vmatpush1.bf16.msra.mxu0 %v18065_v26  ;;  %v18154_v26 = vld [vmem:[#allocation13 + $0x6a4] ss:$24 sps:$4 sm:$0xff]  }
 0xa8c   :  { %14018 = vmatprep.subr.bf16.mxu0 %v18070_v11  ;;  %v18152_v11 = vld [vmem:[#allocation13 + $0x6a0] ss:$24 sps:$4 sm:$0xff]  }
 0xa8f   :  { %14019 = vmatpush1.bf16.msra.mxu0 %v18068_v29  ;;  %v18157_v29 = vld [vmem:[#allocation13 + $0x6d4] ss:$24 sps:$4 sm:$0xff]  }
 0xa90   :  { %14020 = vmatprep.subr.bf16.mxu0 %v18073_v1  ;;  %v18155_v1 = vld [vmem:[#allocation13 + $0x6d0] ss:$24 sps:$4 sm:$0xff]  }
 0xa93   :  { %14021 = vmatpush1.bf16.msra.mxu0 %v18071_v7  ;;  %v18160_v7 = vld [vmem:[#allocation13 + $0x704] ss:$24 sps:$4 sm:$0xff]  }
 0xa94   :  { %14022 = vmatprep.subr.bf16.mxu0 %v18076_v52  ;;  %v18163_v52 = vld [vmem:[#allocation13 + $0x734] ss:$24 sps:$4 sm:$0xff]  }
 0xa97   :  { %14023 = vmatpush1.bf16.msra.mxu0 %v18074_v23  ;;  %v18166_v23 = vld [vmem:[#allocation13 + $0x764] ss:$24 sps:$4 sm:$0xff]  }
 0xa98   :  { %14024 = vmatprep.subr.bf16.mxu0 %v18079_v57  ;;  %v18164_v57 = vld [vmem:[#allocation13 + $0x760] ss:$24 sps:$4 sm:$0xff]  }
 0xa9b   :  { %14025 = vmatpush1.bf16.msra.mxu0 %v18077_v58  ;;  %v18169_v58 = vld [vmem:[#allocation13 + $0x794] ss:$24 sps:$4 sm:$0xff]  }
 0xa9c   :  { %14026 = vmatprep.subr.bf16.mxu0 %v18082_v48  ;;  %v18167_v48 = vld [vmem:[#allocation13 + $0x790] ss:$24 sps:$4 sm:$0xff]  }
 0xa9f   :  { %14027 = vmatpush1.bf16.msra.mxu0 %v18080_v37  ;;  %v18172_v37 = vld [vmem:[#allocation13 + $0x7c4] ss:$24 sps:$4 sm:$0xff]  }
 0xaa0   :  { %14028 = vmatprep.subr.bf16.mxu0 %v18085_v4  ;;  %v18170_v4 = vld [vmem:[#allocation13 + $0x7c0] ss:$24 sps:$4 sm:$0xff]  }
 0xaa3   :  { %14029 = vmatpush1.bf16.msra.mxu0 %v18083_v21  ;;  %v18175_v21 = vld [vmem:[#allocation13 + $0x7f4] ss:$24 sps:$4 sm:$0xff]  }
 0xaa4   :  { %14030 = vmatprep.subr.bf16.mxu0 %v18088_v44  ;;  %v18173_v44 = vld [vmem:[#allocation13 + $0x7f0] ss:$24 sps:$4 sm:$0xff]  }
 0xaa7   :  { %14031 = vmatpush1.bf16.msra.mxu0 %v18086_v38  ;;  %v18178_v38 = vld [vmem:[#allocation13 + $0x824] ss:$24 sps:$4 sm:$0xff]  }
 0xaa8   :  { %14032 = vmatprep.subr.bf16.mxu0 %v18091_v12  ;;  %v18176_v12 = vld [vmem:[#allocation13 + $0x820] ss:$24 sps:$4 sm:$0xff]  }
 0xaab   :  { %14033 = vmatpush1.bf16.msra.mxu0 %v18089_v22  ;;  %v18181_v22 = vld [vmem:[#allocation13 + $0x854] ss:$24 sps:$4 sm:$0xff]  }
 0xaac   :  { %14034 = vmatprep.subr.bf16.mxu0 %v18094_v0  ;;  %v18179_v0 = vld [vmem:[#allocation13 + $0x850] ss:$24 sps:$4 sm:$0xff]  }
 0xaaf   :  { %14035 = vmatpush1.bf16.msra.mxu0 %v18092_v59  ;;  %v18184_v59 = vld [vmem:[#allocation13 + $0x884] ss:$24 sps:$4 sm:$0xff]  }
 0xab0   :  { %14045 = vmatprep.subr.bf16.mxu0 %v18097_v28  ;;  %v18182_v28 = vld [vmem:[#allocation13 + $0x880] ss:$24 sps:$4 sm:$0xff]  }
 0xab2   :  { %14037 = vmatmul.mubr.bf16.vlgmr.msra.gmra.mrb[76].mxu0 %v21208_v17  ;;  %v18110_v17 = vld [vmem:[#allocation13 + $0x400] ss:$24 sps:$4 sm:$0xff]  }
 0xab3   :  { %14046 = vmatpush1.bf16.msra.mxu0 %v18095_v30  ;;  %14077 = vmatprep.mubr.bf16.mxu0 %v21246_v42  ;;  %v18113_v42 = vld [vmem:[#allocation13 + $0x430] ss:$24 sps:$4 sm:$0xff]   ;;  %v18187_v30 = vld [vmem:[#allocation13 + $0x8b4] ss:$24 sps:$4 sm:$0xff]  }
 0xab4   :  { %14047 = vmatprep.subr.bf16.mxu0 %v18100_v60  ;;  %v18185_v60 = vld [vmem:[#allocation13 + $0x8b0] ss:$24 sps:$4 sm:$0xff]  }
 0xab7   :  { %14048 = vmatpush1.bf16.msra.mxu0 %v18098_v49  ;;  %v18190_v49 = vld [vmem:[#allocation13 + $0x8e4] ss:$24 sps:$4 sm:$0xff]  }
 0xab8   :  { %14049 = vmatprep.subr.bf16.mxu0 %v18103_v33  ;;  %v18188_v33 = vld [vmem:[#allocation13 + $0x8e0] ss:$24 sps:$4 sm:$0xff]  }
 0xabb   :  { %14050 = vmatpush1.bf16.msra.mxu0 %v18101_v45  ;;  %v18385_v45 = vld [vmem:[#allocation4] sm:$0xff] }
 0xabc   :  { %14051 = vmatprep.subr.bf16.mxu0 %v18106_v46  ;;  %v21643_v46 = vld [vmem:[#allocation24_spill] sm:$0xff] }
 0xabf   :  { %14052 = vmatpush1.bf16.msra.mxu0 %v18104_v51  ;;  %v12297_v51 = vrot.slane %v18385_v45, %v21643_v46 }
 0xac0   :  { %14053 = vmatprep.subr.bf16.mxu0 %v18109_v41  ;;  %v12305_v41 = vrot.slane %v21212_v63, %v21643_v46 }
 0xac3   :  { %14054 = vmatpush1.bf16.msra.mxu0 %v18107_v6  ;;  %v18386_v6 = vld [vmem:[#allocation4 + $0x8] sm:$0xff] }
 0xac4   :  { %14055 = vmatprep.subr.bf16.mxu0 %v18112_v31  ;;  %v12301_v31 = vrot.slane %v18386_v6, %v21643_v46 }
 0xac7   :  { %14056 = vmatpush1.bf16.msra.mxu0 %v18110_v17  ;;  %v12309_v17 = vrot.slane %v21216_v18, %v21643_v46 }
 0xac8   :  { %14057 = vmatprep.subr.bf16.mxu0 %v18115_v24 }
 0xacb   :  { %14058 = vmatpush1.bf16.msra.mxu0 %v18113_v42 }
 0xacc   :  { %14059 = vmatprep.subr.bf16.mxu0 %v18118_v16 }
 0xacf   :  { %14060 = vmatpush1.bf16.msra.mxu0 %v18116_v15 }
 0xad0   :  { %14061 = vmatprep.subr.bf16.mxu0 %v18121_v61 }
 0xad3   :  { %14062 = vmatpush1.bf16.msra.mxu0 %v18119_v43 }
 0xad4   :  { %14063 = vmatprep.subr.bf16.mxu0 %v18124_v32 }
 0xad7   :  { %14064 = vmatpush1.bf16.msra.mxu0 %v18122_v19 }
 0xad8   :  { %14065 = vmatprep.subr.bf16.mxu0 %v18127_v53 }
 0xadb   :  { %14066 = vmatpush1.bf16.msra.mxu0 %v18125_v3  ;;  %v12313_v3 = vrot.slane %v21220_v40, %v21643_v46 }
 0xadc   :  { %14067 = vmatprep.subr.bf16.mxu0 %v18130_v54  ;;  %v12317_v54 = vrot.slane %v21224_v36, %v21643_v46 }
 0xadf   :  { %14068 = vmatpush1.bf16.msra.mxu0 %v18128_v56 }
 0xae0   :  { %14069 = vmatprep.subr.bf16.mxu0 %v18133_v20 }
 0xae3   :  { %14070 = vmatpush1.bf16.msra.mxu0 %v18131_v9 }
 0xae4   :  { %14071 = vmatprep.subr.bf16.mxu0 %v18136_v62 }
 0xae7   :  { %14072 = vmatpush1.bf16.msra.mxu0 %v18134_v50 }
 0xae8   :  { %14073 = vmatprep.subr.bf16.mxu0 %v18139_v14 }
 0xaeb   :  { %14074 = vmatpush1.bf16.msra.mxu0 %v18137_v2 }
 0xaec   :  { %14075 = vmatprep.subr.bf16.mxu0 %v18142_v27 }
 0xaef   :  { %14076 = vmatpush1.bf16.msra.mxu0 %v18140_v55 }
 0xaf0   :  { %14086 = vmatprep.subr.bf16.mxu0 %v18145_v34 }
 0xaf2   :  { %14078 = vmatmul.mubr.bf16.vlgmr.msra.gmra.mrb[76].mxu0 %v21248_v47  ;;  %v18158_v47 = vld [vmem:[#allocation13 + $0x700] ss:$24 sps:$4 sm:$0xff]  }
 0xaf3   :  { %14087 = vmatpush1.bf16.msra.mxu0 %v18143_v25  ;;  %14118 = vmatprep.mubr.bf16.mxu0 %v21254_v13  ;;  %v18161_v13 = vld [vmem:[#allocation13 + $0x730] ss:$24 sps:$4 sm:$0xff]  }
 0xaf4   :  { %14088 = vmatprep.subr.bf16.mxu0 %v18148_v35 }
 0xaf7   :  { %14089 = vmatpush1.bf16.msra.mxu0 %v18146_v5 }
 0xaf8   :  { %14090 = vmatprep.subr.bf16.mxu0 %v18151_v8 }
 0xafb   :  { %14091 = vmatpush1.bf16.msra.mxu0 %v18149_v39 }
 0xafc   :  { %14092 = vmatprep.subr.bf16.mxu0 %v18154_v26 }
 0xaff   :  { %14093 = vmatpush1.bf16.msra.mxu0 %v18152_v11 }
 0xb00   :  { %14094 = vmatprep.subr.bf16.mxu0 %v18157_v29 }
 0xb03   :  { %14095 = vmatpush1.bf16.msra.mxu0 %v18155_v1 }
 0xb04   :  { %14096 = vmatprep.subr.bf16.mxu0 %v18160_v7 }
 0xb07   :  { %14097 = vmatpush1.bf16.msra.mxu0 %v18158_v47 }
 0xb08   :  { %14098 = vmatprep.subr.bf16.mxu0 %v18163_v52 }
 0xb0b   :  { %14099 = vmatpush1.bf16.msra.mxu0 %v18161_v13 }
 0xb0c   :  { %14100 = vmatprep.subr.bf16.mxu0 %v18166_v23 }
 0xb0f   :  { %14101 = vmatpush1.bf16.msra.mxu0 %v18164_v57 }
 0xb10   :  { %14102 = vmatprep.subr.bf16.mxu0 %v18169_v58 }
 0xb13   :  { %14103 = vmatpush1.bf16.msra.mxu0 %v18167_v48 }
 0xb14   :  { %14104 = vmatprep.subr.bf16.mxu0 %v18172_v37 }
 0xb17   :  { %14105 = vmatpush1.bf16.msra.mxu0 %v18170_v4 }
 0xb18   :  { %14106 = vmatprep.subr.bf16.mxu0 %v18175_v21 }
 0xb1b   :  { %14107 = vmatpush1.bf16.msra.mxu0 %v18173_v44 }
 0xb1c   :  { %14108 = vmatprep.subr.bf16.mxu0 %v18178_v38 }
 0xb1f   :  { %14109 = vmatpush1.bf16.msra.mxu0 %v18176_v12 }
 0xb20   :  { %14110 = vmatprep.subr.bf16.mxu0 %v18181_v22 }
 0xb23   :  { %14111 = vmatpush1.bf16.msra.mxu0 %v18179_v0 }
 0xb24   :  { %14112 = vmatprep.subr.bf16.mxu0 %v18184_v59 }
 0xb27   :  { %14113 = vmatpush1.bf16.msra.mxu0 %v18182_v28 }
 0xb28   :  { %14114 = vmatprep.subr.bf16.mxu0 %v18187_v30 }
 0xb2b   :  { %14115 = vmatpush1.bf16.msra.mxu0 %v18185_v60 }
 0xb2c   :  { %14116 = vmatprep.subr.bf16.mxu0 %v18190_v49 }
 0xb2f   :  { %14117 = vmatpush1.bf16.msra.mxu0 %v18188_v33 }
 0xb32   :  { %14119 = vmatmul.mubr.bf16.vlgmr.msra.gmra.mrb[76].mxu0 %v21260_v10 }
 0xb45   :  { %v13874_v24 = vpop.f32.mrb[72].mxu0  ;;  %v13997_v42 = vpop.f32.mrb[100].mxu1 }
 0xb46   :  { %v15808_v16 = vadd.f32 %v13874_v24, %v12297_v51  ;;  %v15810_v15 = vadd.f32 %v13997_v42, %v12305_v41  ;;  %v13876_v61 = vpop.f32.mrb[73].mxu0  ;;  %v13999_v43 = vpop.f32.mrb[101].mxu1 }
 0xb47   :  { %v15809_v32 = vadd.f32 %v13876_v61, %v12301_v31  ;;  %v15811_v10 = vadd.f32 %v13999_v43, %v12309_v17  ;;  %v13878_v19 = vpop.f32.mrb[74].mxu0  ;;  %v14001_v53 = vpop.f32.mrb[102].mxu1 }
 0xb48   :  { %14127 = vst [vmem:[%s21308_s10] sm:$0xff] %v15808_v16  ;;  %14129 = vst [vmem:[%s21308_s10 + $0x10] sm:$0xff] %v15810_v15  ;;  %v13879_v63 = vpop.f32.mrb[75].mxu0  ;;  %v14002_v18 = vpop.f32.mrb[103].mxu1 }
 0xb49   :  { %14128 = vst [vmem:[%s21308_s10 + $0x8] sm:$0xff] %v15809_v32  ;;  %14130 = vst [vmem:[%s21308_s10 + $0x18] sm:$0xff] %v15811_v10 }
 0xc05   :  { %v14120_v56 = vpop.f32.mrb[76].mxu0 }
 0xc06   :  { %v15812_v20 = vadd.f32 %v14120_v56, %v12313_v3  ;;  %v14122_v9 = vpop.f32.mrb[77].mxu0 }
 0xc07   :  { %v15813_v62 = vadd.f32 %v14122_v9, %v12317_v54  ;;  %v14124_v50 = vpop.f32.mrb[78].mxu0 }
 0xc08   :  { %14131 = vst [vmem:[%s21308_s10 + $0x20] sm:$0xff] %v15812_v20  ;;  %v14125_v14 = vpop.f32.mrb[79].mxu0 }
 0xc09   :  { %14132 = vst [vmem:[%s21308_s10 + $0x28] sm:$0xff] %v15813_v62 }
 0xc0a   :  { %14137 = vsyncpa [#allocation3], 1 }
 0xc0b   :  { %14138 = vsyncpa [#allocation5], 1 }
 0xc0c   :  { %14139 = vsyncpa [#allocation8], 1 }
 0xc0d   :  { %14140 = vsyncpa [#allocation11], 1 }
 0xc0e   :  { %14141 = vsyncpa [#allocation14], 1 }

</bundles_post_ra>
